<compile_context>
chip_gen: v6e
topology: v6e:2x2x1
jax: 0.10.0
libtpu: 0.0.40
codegen_flags: <defaults>
</compile_context>

<pallas_src>
import functools

import jax
import jax.numpy as jnp
from jax import lax
from jax.experimental import pallas as pl
from jax.experimental.pallas import tpu as pltpu


# Index map for the twenty 3x3 (n_feat -> n_feat, padding 1) convolutions:
#   0,1   RA_RB1                      6,7   MB_RB1
#   2,3   RA_TB resblock a            8     MB_Down (3x3, stride 2)
#   4,5   RA_TB resblock b            9,10  MB_RB2 resblock a (8x8)
#   11,12 MB_RB2 resblock b (8x8)     13,14 MB_RB3
#   15,16 RA_tail resblock a          17,18 RA_tail resblock b
#   19    trailing conv of _ResGroup.body
_N_CONV3 = 20
_TAPS3 = tuple((kh - 1, kw - 1) for kh in range(3) for kw in range(3))


# ----------------------------------------------------------------------------
# Fused Pallas kernel: one program per grid step, all activations in VMEM.
# ----------------------------------------------------------------------------
def _fused_kernel(x_ref, w3_ref, b3_ref, wph_ref, bup_ref, w1_ref, b1_ref,
                  s_ref, u_ref, mf_ref, md_ref, out_ref, *, W):
    f32, bf16 = jnp.float32, jnp.bfloat16
    C = x_ref.shape[1]
    x = x_ref[0].astype(f32)            # (C, L), lane-dense, images contiguous
    Wd = W // 2

    def shift_lanes(v, s):
        # out[:, n] = v[:, (n + s) mod L]; the circular wrap lands in lanes that
        # the per-tap validity mask zeroes anyway.
        L = v.shape[-1]
        if s == 0:
            return v
        if L % 128 == 0:
            return pltpu.roll(v, (-s) % L, axis=1)       # XLU slot, no relayout
        # <128-lane fallback (8x8 map with batch_block == 1): slice + zero pad.
        pad = jnp.zeros((v.shape[0], abs(s)), v.dtype)
        if s > 0:
            return jnp.concatenate([v[:, s:], pad], axis=1)
        return jnp.concatenate([pad, v[:, :L + s]], axis=1)

    def tap_patch(v, w_img, mask_ref):
        # 9-tap im2col patch (tap-major, then input channel); bf16 for the MXU.
        taps = []
        for t, (dh, dw) in enumerate(_TAPS3):
            if dh == 0 and dw == 0:
                taps.append(v.astype(bf16))
            else:
                shifted = shift_lanes(v, dh * w_img + dw)
                taps.append((shifted * mask_ref[t]).astype(bf16))
        return jnp.concatenate(taps, axis=0)             # (9*C, L) bf16

    def conv3(v, i, w_img, mask_ref, *, relu=False, res=None):
        patch = tap_patch(v, w_img, mask_ref)
        acc = jnp.dot(w3_ref[i], patch, preferred_element_type=f32)
        acc = acc + b3_ref[i]
        if relu:
            acc = jnp.maximum(acc, 0.0)
        if res is not None:
            acc = acc + res
        return acc

    def resblock(v, i, w_img, mask_ref):
        h = conv3(v, i, w_img, mask_ref, relu=True)
        return conv3(h, i + 1, w_img, mask_ref, res=v)

    # ---------------- ResAttModuleDownUpPlus ----------------
    rb1 = resblock(x, 0, W, mf_ref)                               # RA_RB1
    tx = resblock(resblock(rb1, 2, W, mf_ref), 4, W, mf_ref)      # trunk branch

    m1 = resblock(rb1, 6, W, mf_ref)                              # MB_RB1
    # MB_Down: stride-2 conv == full-res conv decimated at even (h, w) pixels.
    full = conv3(m1, 8, W, mf_ref)
    down = jnp.dot(full.astype(bf16), s_ref[...], preferred_element_type=f32)
    h8 = resblock(resblock(down, 9, Wd, md_ref), 11, Wd, md_ref)  # MB_RB2 (8x8)

    # MB_Up: ConvTranspose2d(6, stride 2, pad 2) as 4 stride-phase 3x3 convs on
    # the coarse map (one shared patch, one stacked matmul) + a 0/1 scatter
    # matmul onto the fine grid.  Bias and the x_RB1 skip are fused in.
    patch8 = tap_patch(h8, Wd, md_ref)                            # (9C, Ld) bf16
    ph = jnp.dot(wph_ref[...], patch8, preferred_element_type=f32)  # (4C, Ld)
    pre3 = m1 + bup_ref[...]
    for p in range(4):
        pre3 = pre3 + jnp.dot(ph[p * C:(p + 1) * C].astype(bf16), u_ref[p],
                              preferred_element_type=f32)
    m3 = resblock(pre3, 13, W, mf_ref)                            # MB_RB3
    mx = jax.nn.sigmoid(
        jnp.dot(w1_ref[...], m3.astype(bf16), preferred_element_type=f32)
        + b1_ref[...])                                            # MB_1x1 + sigmoid

    hx = tx * mx + rb1                                            # txmx + RA_RB1_x
    hx = resblock(resblock(hx, 15, W, mf_ref), 17, W, mf_ref)     # RA_tail
    y = conv3(hx, 19, W, mf_ref)                                  # trailing conv
    out_ref[0] = y.astype(out_ref.dtype)


# ----------------------------------------------------------------------------
# Layout constants: per-tap validity masks, decimation / sub-pixel scatter mats.
# ----------------------------------------------------------------------------
def _layout_constants(H, W, bblk):
    Hd, Wd = H // 2, W // 2
    hw, hwd = H * W, Hd * Wd
    L, Ld = bblk * hw, bblk * hwd

    def tap_masks(h, w):
        n = bblk * h * w
        pos = jnp.arange(n)
        r = (pos % (h * w)) // w
        c = pos % w
        ms = []
        for dh, dw in _TAPS3:
            ok = (r + dh >= 0) & (r + dh < h) & (c + dw >= 0) & (c + dw < w)
            ms.append(ok.astype(jnp.float32))
        return jnp.stack(ms).reshape(9, 1, n)

    m = jnp.arange(Ld)
    b, mm = m // hwd, m % hwd
    ca, cb = mm // Wd, mm % Wd
    # Stride-2 decimation: fine lane (2a, 2b) of image b -> coarse lane m.
    fine_even = b * hw + (2 * ca) * W + 2 * cb
    S = jnp.zeros((L, Ld), jnp.float32).at[fine_even, m].set(1.0)
    # Sub-pixel scatter: coarse lane m, phase (pi, pj) -> fine lane (2a+pi, 2b+pj).
    U = []
    for pi in range(2):
        for pj in range(2):
            fine = b * hw + (2 * ca + pi) * W + (2 * cb + pj)
            U.append(jnp.zeros((Ld, L), jnp.float32).at[m, fine].set(1.0))
    return (tap_masks(H, W), tap_masks(Hd, Wd),
            S.astype(jnp.bfloat16), jnp.stack(U).astype(jnp.bfloat16))


# ----------------------------------------------------------------------------
# Wrapper: single pallas_call over the whole module.
# ----------------------------------------------------------------------------
def res_group_forward(x, wp, *, batch_block=1):
    """x: (B, C, H, W) NCHW.  wp: packed weights from prepare_params().

    batch_block images are folded into the lane dimension of each grid step
    (amortizes per-conv fixed costs on the single-TensorCore chips); with
    batch_block=1 each grid step handles one image so v7x's two TCs split B.
    """
    B, C, H, W = x.shape
    assert B % batch_block == 0 and H % 2 == 0 and W % 2 == 0
    Bg = B // batch_block
    hw = H * W
    L, Ld = batch_block * hw, batch_block * (hw // 4)

    mf, md, S, U = _layout_constants(H, W, batch_block)
    xf = (x.reshape(Bg, batch_block, C, hw).transpose(0, 2, 1, 3)
           .reshape(Bg, C, L))

    # Advisory cost estimate (16 full-res + 4 half-res 3x3 convs, deconv phases,
    # scatter, decimation, 1x1).
    mac = (16 * 9 * C * C * L + 4 * 9 * C * C * Ld + 4 * 9 * C * C * Ld
           + 4 * C * Ld * L + C * L * Ld + C * C * L) * Bg
    operands = (xf, wp["w3"], wp["b3"], wp["wph"], wp["bup"], wp["w1"],
                wp["b1"], S, U, mf, md)
    bytes_accessed = sum(int(a.size) * a.dtype.itemsize for a in operands)
    bytes_accessed += int(xf.size) * xf.dtype.itemsize   # output

    out = pl.pallas_call(
        functools.partial(_fused_kernel, W=W),
        out_shape=jax.ShapeDtypeStruct((Bg, C, L), x.dtype),
        grid=(Bg,),
        in_specs=[
            pl.BlockSpec((1, C, L), lambda b: (b, 0, 0)),
            pl.BlockSpec(wp["w3"].shape, lambda b: (0, 0, 0)),
            pl.BlockSpec(wp["b3"].shape, lambda b: (0, 0, 0)),
            pl.BlockSpec(wp["wph"].shape, lambda b: (0, 0)),
            pl.BlockSpec(wp["bup"].shape, lambda b: (0, 0)),
            pl.BlockSpec(wp["w1"].shape, lambda b: (0, 0)),
            pl.BlockSpec(wp["b1"].shape, lambda b: (0, 0)),
            pl.BlockSpec(S.shape, lambda b: (0, 0)),
            pl.BlockSpec(U.shape, lambda b: (0, 0, 0)),
            pl.BlockSpec(mf.shape, lambda b: (0, 0, 0)),
            pl.BlockSpec(md.shape, lambda b: (0, 0, 0)),
        ],
        out_specs=pl.BlockSpec((1, C, L), lambda b: (b, 0, 0)),
        # TODO(synk): confirm with an xprof trace that this axis actually splits
        # across v7x's two TensorCores; if not, switch to pltpu.CORE_PARALLEL.
        compiler_params=pltpu.CompilerParams(
            dimension_semantics=("parallel",)),
        cost_estimate=pl.CostEstimate(flops=2 * mac,
                                      transcendentals=C * L * Bg,
                                      bytes_accessed=bytes_accessed),
    )(*operands)
    return (out.reshape(Bg, C, batch_block, H, W).transpose(0, 2, 1, 3, 4)
               .reshape(B, C, H, W))


# ----------------------------------------------------------------------------
# Parameters (torch layouts) + packing into the matrices the kernel consumes.
# ----------------------------------------------------------------------------
def init_params(key, C=16):
    n = _N_CONV3
    it = iter(jax.random.split(key, 2 * n + 4))
    w3 = [jax.random.normal(next(it), (C, C, 3, 3), jnp.float32) * 0.05
          for _ in range(n)]
    b3 = [jax.random.normal(next(it), (C,), jnp.float32) * 0.01
          for _ in range(n)]
    wup = jax.random.normal(next(it), (C, C, 6, 6), jnp.float32) * 0.05
    bup = jax.random.normal(next(it), (C,), jnp.float32) * 0.01
    w1 = jax.random.normal(next(it), (C, C), jnp.float32) * 0.05
    b1 = jax.random.normal(next(it), (C,), jnp.float32) * 0.01
    return {"w3": w3, "b3": b3, "wup": wup, "bup": bup, "w1": w1, "b1": b1}


def prepare_params(p):
    """Pack torch-layout params into kernel operands (hoisted out of forward)."""
    C = p["w1"].shape[0]
    bf16 = jnp.bfloat16

    def conv_mat(w):      # (Cout, Cin, 3, 3) -> (Cout, 9*Cin), tap-major
        cout, cin, k, _ = w.shape
        return jnp.transpose(w, (2, 3, 1, 0)).reshape(k * k * cin, cout).T

    def deconv_phase_mat(wt):   # ConvTranspose2d weight (Cin, Cout, 6, 6)
        cin, cout = wt.shape[0], wt.shape[1]
        mats = []
        for pi in range(2):
            for pj in range(2):
                # Tap (dh, dw) = (kh-1, kw-1) of the phase-(pi,pj) 3x3 conv uses
                # the transposed-conv weight element [pi + 2*(1-dh), pj + 2*(1-dw)].
                cols = [wt[:, :, pi + 4 - 2 * kh, pj + 4 - 2 * kw]
                        for kh in range(3) for kw in range(3)]
                mats.append(jnp.stack(cols, 0).reshape(9 * cin, cout).T)
        return jnp.concatenate(mats, axis=0)              # (4*Cout, 9*Cin)

    return {
        "w3": jnp.stack([conv_mat(w) for w in p["w3"]]).astype(bf16),   # (20,C,9C)
        "b3": jnp.stack([b.reshape(C, 1) for b in p["b3"]]),            # (20,C,1) f32
        "wph": deconv_phase_mat(p["wup"]).astype(bf16),                 # (4C,9C)
        "bup": p["bup"].reshape(C, 1),
        "w1": p["w1"].astype(bf16),
        "b1": p["b1"].reshape(C, 1),
    }


# ----------------------------------------------------------------------------
# Pure-JAX reference (lax.conv) of the exact PyTorch forward, for verification.
# mxu_bf16=True mirrors the kernel's bf16 MXU operands (f32 accumulation).
# ----------------------------------------------------------------------------
def _reference_forward(x, p, *, mxu_bf16=False):
    P = lax.Precision.HIGHEST
    f32 = jnp.float32
    cast = (lambda a: a.astype(jnp.bfloat16)) if mxu_bf16 else (lambda a: a)

    def conv(v, w, b, *, stride=1, padding=1):
        y = lax.conv_general_dilated(
            cast(v), cast(w), window_strides=(stride, stride),
            padding=((padding, padding), (padding, padding)),
            dimension_numbers=("NCHW", "OIHW", "NCHW"),
            preferred_element_type=f32, precision=P)
        return y + b[None, :, None, None]

    def deconv(v, wt, b):
        # ConvTranspose2d(k=6, s=2, p=2) == lhs-dilated conv, flipped kernel, pad 3.
        w = jnp.transpose(wt, (1, 0, 2, 3))[:, :, ::-1, ::-1]
        y = lax.conv_general_dilated(
            cast(v), cast(w), window_strides=(1, 1), padding=((3, 3), (3, 3)),
            lhs_dilation=(2, 2), dimension_numbers=("NCHW", "OIHW", "NCHW"),
            preferred_element_type=f32, precision=P)
        return y + b[None, :, None, None]

    def resblock(v, i):
        h = jax.nn.relu(conv(v, p["w3"][i], p["b3"][i]))
        return conv(h, p["w3"][i + 1], p["b3"][i + 1]) + v

    rb1 = resblock(x, 0)
    tx = resblock(resblock(rb1, 2), 4)
    m1 = resblock(rb1, 6)
    down = conv(m1, p["w3"][8], p["b3"][8], stride=2, padding=1)
    h8 = resblock(resblock(down, 9), 11)
    up = deconv(h8, p["wup"], p["bup"])
    m3 = resblock(m1 + up, 13)
    x1 = jnp.einsum("oc,bchw->bohw", cast(p["w1"]), cast(m3),
                    precision=P, preferred_element_type=f32)
    mx = jax.nn.sigmoid(x1 + p["b1"][None, :, None, None])
    hx = tx * mx + rb1
    hx = resblock(resblock(hx, 15), 17)
    return conv(hx, p["w3"][19], p["b3"][19])


# ----------------------------------------------------------------------------
if __name__ == "__main__":
    key = jax.random.PRNGKey(0)
    pkey, xkey = jax.random.split(key)

    B, C, H, W = 2, 16, 16, 16            # n_feats = 16, kernel_size = 3
    params = init_params(pkey, C=C)
    wp = prepare_params(params)
    x = jax.random.normal(xkey, (B, C, H, W), jnp.float32)

    ref_f32 = _reference_forward(x, params)
    ref_bf16 = _reference_forward(x, params, mxu_bf16=True)
    ref_norm = float(jnp.linalg.norm(ref_f32))

    # batch_block=1: one image per grid step (v7x: one per TensorCore).
    # batch_block=2: both images folded into the lane dim (v5e/v6e serial grid).
    for bblk in (1, 2):
        fwd = jax.jit(functools.partial(res_group_forward, batch_block=bblk))
        out = jax.block_until_ready(fwd(x, wp))
        assert out.shape == (B, C, H, W), out.shape
        assert bool(jnp.all(jnp.isfinite(out)))
        # Tight check vs the bf16-MXU-matched reference: only f32 accumulation
        # order and two extra bf16 roundings (decimation/scatter points) differ
        # -> expected ~1e-3.
        err_bf16 = float(jnp.max(jnp.abs(out - ref_bf16)))
        assert err_bf16 < 2e-2, f"batch_block={bblk}: vs bf16-matched ref {err_bf16}"
        # Sanity check vs the f32 HIGHEST reference: bf16 operands add ~0.2%
        # relative error per matmul over a ~12-matmul-deep path -> ~1-2%
        # relative RMS expected; assert with headroom.
        rel = float(jnp.linalg.norm(out - ref_f32)) / ref_norm
        assert rel < 5e-2, f"batch_block={bblk}: rel RMS vs f32 ref {rel}"

    print("KERNEL_OK")
</pallas_src>

<mosaic_0001>
module attributes {stable_mosaic.version = 11 : i64} {
  func.func @_fused_kernel(%arg0: i32, %arg1: memref<1x16x256xf32, #tpu.memory_space<vmem>>, %arg2: memref<20x16x144xbf16, #tpu.memory_space<vmem>>, %arg3: memref<20x16x1xf32, #tpu.memory_space<vmem>>, %arg4: memref<64x144xbf16, #tpu.memory_space<vmem>>, %arg5: memref<16x1xf32, #tpu.memory_space<vmem>>, %arg6: memref<16x16xbf16, #tpu.memory_space<vmem>>, %arg7: memref<16x1xf32, #tpu.memory_space<vmem>>, %arg8: memref<256x64xbf16, #tpu.memory_space<vmem>>, %arg9: memref<4x64x256xbf16, #tpu.memory_space<vmem>>, %arg10: memref<9x1x256xf32, #tpu.memory_space<vmem>>, %arg11: memref<9x1x64xf32, #tpu.memory_space<vmem>>, %arg12: memref<1x16x256xf32, #tpu.memory_space<vmem>>) attributes {dimension_semantics = [#tpu.dimension_semantics<parallel>], iteration_bounds = array<i64: 2>, scalar_prefetch = 0 : i64, scratch_operands = 0 : i64, tpu.core_type = #tpu.core_type<tc>, window_params = [{transform_indices = @transform_0, window_bounds = array<i64: 1, 16, 256>}, {pipeline_mode = #tpu.pipeline_mode<synchronous>, transform_indices = @transform_1, window_bounds = array<i64: 20, 16, 144>}, {pipeline_mode = #tpu.pipeline_mode<synchronous>, transform_indices = @transform_2, window_bounds = array<i64: 20, 16, 1>}, {pipeline_mode = #tpu.pipeline_mode<synchronous>, transform_indices = @transform_3, window_bounds = array<i64: 64, 144>}, {pipeline_mode = #tpu.pipeline_mode<synchronous>, transform_indices = @transform_4, window_bounds = array<i64: 16, 1>}, {pipeline_mode = #tpu.pipeline_mode<synchronous>, transform_indices = @transform_5, window_bounds = array<i64: 16, 16>}, {pipeline_mode = #tpu.pipeline_mode<synchronous>, transform_indices = @transform_6, window_bounds = array<i64: 16, 1>}, {pipeline_mode = #tpu.pipeline_mode<synchronous>, transform_indices = @transform_7, window_bounds = array<i64: 256, 64>}, {pipeline_mode = #tpu.pipeline_mode<synchronous>, transform_indices = @transform_8, window_bounds = array<i64: 4, 64, 256>}, {pipeline_mode = #tpu.pipeline_mode<synchronous>, transform_indices = @transform_9, window_bounds = array<i64: 9, 1, 256>}, {pipeline_mode = #tpu.pipeline_mode<synchronous>, transform_indices = @transform_10, window_bounds = array<i64: 9, 1, 64>}, {transform_indices = @transform_11, window_bounds = array<i64: 1, 16, 256>}]} {
    %c0 = arith.constant 0 : index
    %c0_0 = arith.constant 0 : index
    %c0_1 = arith.constant 0 : index
    %0 = vector.load %arg1[%c0, %c0_0, %c0_1] : memref<1x16x256xf32, #tpu.memory_space<vmem>>, vector<1x16x256xf32>
    %1 = vector.shape_cast %0 : vector<1x16x256xf32> to vector<16x256xf32>
    %c17_i32 = arith.constant 17 : i32
    %2 = tpu.dynamic_rotate %1 by %c17_i32 dim 1 : vector<16x256xf32>, i32 -> vector<16x256xf32>
    %c0_2 = arith.constant 0 : index
    %c0_3 = arith.constant 0 : index
    %c0_4 = arith.constant 0 : index
    %3 = vector.load %arg10[%c0_2, %c0_3, %c0_4] : memref<9x1x256xf32, #tpu.memory_space<vmem>>, vector<1x1x256xf32>
    %4 = vector.shape_cast %3 : vector<1x1x256xf32> to vector<1x256xf32>
    %5 = vector.broadcast %4 : vector<1x256xf32> to vector<16x256xf32>
    %6 = arith.mulf %2, %5 : vector<16x256xf32>
    %7 = arith.truncf %6 : vector<16x256xf32> to vector<16x256xbf16>
    %c16_i32 = arith.constant 16 : i32
    %8 = tpu.dynamic_rotate %1 by %c16_i32 dim 1 : vector<16x256xf32>, i32 -> vector<16x256xf32>
    %c1 = arith.constant 1 : index
    %c0_5 = arith.constant 0 : index
    %c0_6 = arith.constant 0 : index
    %9 = vector.load %arg10[%c1, %c0_5, %c0_6] : memref<9x1x256xf32, #tpu.memory_space<vmem>>, vector<1x1x256xf32>
    %10 = vector.shape_cast %9 : vector<1x1x256xf32> to vector<1x256xf32>
    %11 = vector.broadcast %10 : vector<1x256xf32> to vector<16x256xf32>
    %12 = arith.mulf %8, %11 : vector<16x256xf32>
    %13 = arith.truncf %12 : vector<16x256xf32> to vector<16x256xbf16>
    %c15_i32 = arith.constant 15 : i32
    %14 = tpu.dynamic_rotate %1 by %c15_i32 dim 1 : vector<16x256xf32>, i32 -> vector<16x256xf32>
    %c2 = arith.constant 2 : index
    %c0_7 = arith.constant 0 : index
    %c0_8 = arith.constant 0 : index
    %15 = vector.load %arg10[%c2, %c0_7, %c0_8] : memref<9x1x256xf32, #tpu.memory_space<vmem>>, vector<1x1x256xf32>
    %16 = vector.shape_cast %15 : vector<1x1x256xf32> to vector<1x256xf32>
    %17 = vector.broadcast %16 : vector<1x256xf32> to vector<16x256xf32>
    %18 = arith.mulf %14, %17 : vector<16x256xf32>
    %19 = arith.truncf %18 : vector<16x256xf32> to vector<16x256xbf16>
    %c1_i32 = arith.constant 1 : i32
    %20 = tpu.dynamic_rotate %1 by %c1_i32 dim 1 : vector<16x256xf32>, i32 -> vector<16x256xf32>
    %c3 = arith.constant 3 : index
    %c0_9 = arith.constant 0 : index
    %c0_10 = arith.constant 0 : index
    %21 = vector.load %arg10[%c3, %c0_9, %c0_10] : memref<9x1x256xf32, #tpu.memory_space<vmem>>, vector<1x1x256xf32>
    %22 = vector.shape_cast %21 : vector<1x1x256xf32> to vector<1x256xf32>
    %23 = vector.broadcast %22 : vector<1x256xf32> to vector<16x256xf32>
    %24 = arith.mulf %20, %23 : vector<16x256xf32>
    %25 = arith.truncf %24 : vector<16x256xf32> to vector<16x256xbf16>
    %26 = arith.truncf %1 : vector<16x256xf32> to vector<16x256xbf16>
    %c255_i32 = arith.constant 255 : i32
    %27 = tpu.dynamic_rotate %1 by %c255_i32 dim 1 : vector<16x256xf32>, i32 -> vector<16x256xf32>
    %c5 = arith.constant 5 : index
    %c0_11 = arith.constant 0 : index
    %c0_12 = arith.constant 0 : index
    %28 = vector.load %arg10[%c5, %c0_11, %c0_12] : memref<9x1x256xf32, #tpu.memory_space<vmem>>, vector<1x1x256xf32>
    %29 = vector.shape_cast %28 : vector<1x1x256xf32> to vector<1x256xf32>
    %30 = vector.broadcast %29 : vector<1x256xf32> to vector<16x256xf32>
    %31 = arith.mulf %27, %30 : vector<16x256xf32>
    %32 = arith.truncf %31 : vector<16x256xf32> to vector<16x256xbf16>
    %c241_i32 = arith.constant 241 : i32
    %33 = tpu.dynamic_rotate %1 by %c241_i32 dim 1 : vector<16x256xf32>, i32 -> vector<16x256xf32>
    %c6 = arith.constant 6 : index
    %c0_13 = arith.constant 0 : index
    %c0_14 = arith.constant 0 : index
    %34 = vector.load %arg10[%c6, %c0_13, %c0_14] : memref<9x1x256xf32, #tpu.memory_space<vmem>>, vector<1x1x256xf32>
    %35 = vector.shape_cast %34 : vector<1x1x256xf32> to vector<1x256xf32>
    %36 = vector.broadcast %35 : vector<1x256xf32> to vector<16x256xf32>
    %37 = arith.mulf %33, %36 : vector<16x256xf32>
    %38 = arith.truncf %37 : vector<16x256xf32> to vector<16x256xbf16>
    %c240_i32 = arith.constant 240 : i32
    %39 = tpu.dynamic_rotate %1 by %c240_i32 dim 1 : vector<16x256xf32>, i32 -> vector<16x256xf32>
    %c7 = arith.constant 7 : index
    %c0_15 = arith.constant 0 : index
    %c0_16 = arith.constant 0 : index
    %40 = vector.load %arg10[%c7, %c0_15, %c0_16] : memref<9x1x256xf32, #tpu.memory_space<vmem>>, vector<1x1x256xf32>
    %41 = vector.shape_cast %40 : vector<1x1x256xf32> to vector<1x256xf32>
    %42 = vector.broadcast %41 : vector<1x256xf32> to vector<16x256xf32>
    %43 = arith.mulf %39, %42 : vector<16x256xf32>
    %44 = arith.truncf %43 : vector<16x256xf32> to vector<16x256xbf16>
    %c239_i32 = arith.constant 239 : i32
    %45 = tpu.dynamic_rotate %1 by %c239_i32 dim 1 : vector<16x256xf32>, i32 -> vector<16x256xf32>
    %c8 = arith.constant 8 : index
    %c0_17 = arith.constant 0 : index
    %c0_18 = arith.constant 0 : index
    %46 = vector.load %arg10[%c8, %c0_17, %c0_18] : memref<9x1x256xf32, #tpu.memory_space<vmem>>, vector<1x1x256xf32>
    %47 = vector.shape_cast %46 : vector<1x1x256xf32> to vector<1x256xf32>
    %48 = vector.broadcast %47 : vector<1x256xf32> to vector<16x256xf32>
    %49 = arith.mulf %45, %48 : vector<16x256xf32>
    %50 = arith.truncf %49 : vector<16x256xf32> to vector<16x256xbf16>
    %51 = tpu.concatenate %7, %13, %19, %25, %26, %32, %38, %44, %50 in 0 : vector<16x256xbf16>, vector<16x256xbf16>, vector<16x256xbf16>, vector<16x256xbf16>, vector<16x256xbf16>, vector<16x256xbf16>, vector<16x256xbf16>, vector<16x256xbf16>, vector<16x256xbf16> -> vector<144x256xbf16>
    %c0_19 = arith.constant 0 : index
    %c0_20 = arith.constant 0 : index
    %c0_21 = arith.constant 0 : index
    %52 = vector.load %arg2[%c0_19, %c0_20, %c0_21] : memref<20x16x144xbf16, #tpu.memory_space<vmem>>, vector<1x16x144xbf16>
    %53 = vector.shape_cast %52 : vector<1x16x144xbf16> to vector<16x144xbf16>
    %cst = arith.constant dense<0.000000e+00> : vector<16x256xf32>
    %54 = tpu.matmul %53, %51, %cst {dimension_numbers = #tpu.dot_dimension_numbers<[1], [0], [0], [1], [0, 0, 1, 1], [], []>} : vector<16x144xbf16>, vector<144x256xbf16>, vector<16x256xf32> -> vector<16x256xf32>
    %c0_22 = arith.constant 0 : index
    %c0_23 = arith.constant 0 : index
    %c0_24 = arith.constant 0 : index
    %55 = vector.load %arg3[%c0_22, %c0_23, %c0_24] : memref<20x16x1xf32, #tpu.memory_space<vmem>>, vector<1x16x1xf32>
    %56 = vector.shape_cast %55 : vector<1x16x1xf32> to vector<16x1xf32>
    %57 = vector.broadcast %56 : vector<16x1xf32> to vector<16x256xf32>
    %58 = arith.addf %54, %57 : vector<16x256xf32>
    %cst_25 = arith.constant 0.000000e+00 : f32
    %59 = vector.broadcast %cst_25 : f32 to vector<16x256xf32>
    %60 = arith.maximumf %58, %59 : vector<16x256xf32>
    %c17_i32_26 = arith.constant 17 : i32
    %61 = tpu.dynamic_rotate %60 by %c17_i32_26 dim 1 : vector<16x256xf32>, i32 -> vector<16x256xf32>
    %c0_27 = arith.constant 0 : index
    %c0_28 = arith.constant 0 : index
    %c0_29 = arith.constant 0 : index
    %62 = vector.load %arg10[%c0_27, %c0_28, %c0_29] : memref<9x1x256xf32, #tpu.memory_space<vmem>>, vector<1x1x256xf32>
    %63 = vector.shape_cast %62 : vector<1x1x256xf32> to vector<1x256xf32>
    %64 = vector.broadcast %63 : vector<1x256xf32> to vector<16x256xf32>
    %65 = arith.mulf %61, %64 : vector<16x256xf32>
    %66 = arith.truncf %65 : vector<16x256xf32> to vector<16x256xbf16>
    %c16_i32_30 = arith.constant 16 : i32
    %67 = tpu.dynamic_rotate %60 by %c16_i32_30 dim 1 : vector<16x256xf32>, i32 -> vector<16x256xf32>
    %c1_31 = arith.constant 1 : index
    %c0_32 = arith.constant 0 : index
    %c0_33 = arith.constant 0 : index
    %68 = vector.load %arg10[%c1_31, %c0_32, %c0_33] : memref<9x1x256xf32, #tpu.memory_space<vmem>>, vector<1x1x256xf32>
    %69 = vector.shape_cast %68 : vector<1x1x256xf32> to vector<1x256xf32>
    %70 = vector.broadcast %69 : vector<1x256xf32> to vector<16x256xf32>
    %71 = arith.mulf %67, %70 : vector<16x256xf32>
    %72 = arith.truncf %71 : vector<16x256xf32> to vector<16x256xbf16>
    %c15_i32_34 = arith.constant 15 : i32
    %73 = tpu.dynamic_rotate %60 by %c15_i32_34 dim 1 : vector<16x256xf32>, i32 -> vector<16x256xf32>
    %c2_35 = arith.constant 2 : index
    %c0_36 = arith.constant 0 : index
    %c0_37 = arith.constant 0 : index
    %74 = vector.load %arg10[%c2_35, %c0_36, %c0_37] : memref<9x1x256xf32, #tpu.memory_space<vmem>>, vector<1x1x256xf32>
    %75 = vector.shape_cast %74 : vector<1x1x256xf32> to vector<1x256xf32>
    %76 = vector.broadcast %75 : vector<1x256xf32> to vector<16x256xf32>
    %77 = arith.mulf %73, %76 : vector<16x256xf32>
    %78 = arith.truncf %77 : vector<16x256xf32> to vector<16x256xbf16>
    %c1_i32_38 = arith.constant 1 : i32
    %79 = tpu.dynamic_rotate %60 by %c1_i32_38 dim 1 : vector<16x256xf32>, i32 -> vector<16x256xf32>
    %c3_39 = arith.constant 3 : index
    %c0_40 = arith.constant 0 : index
    %c0_41 = arith.constant 0 : index
    %80 = vector.load %arg10[%c3_39, %c0_40, %c0_41] : memref<9x1x256xf32, #tpu.memory_space<vmem>>, vector<1x1x256xf32>
    %81 = vector.shape_cast %80 : vector<1x1x256xf32> to vector<1x256xf32>
    %82 = vector.broadcast %81 : vector<1x256xf32> to vector<16x256xf32>
    %83 = arith.mulf %79, %82 : vector<16x256xf32>
    %84 = arith.truncf %83 : vector<16x256xf32> to vector<16x256xbf16>
    %85 = arith.truncf %60 : vector<16x256xf32> to vector<16x256xbf16>
    %c255_i32_42 = arith.constant 255 : i32
    %86 = tpu.dynamic_rotate %60 by %c255_i32_42 dim 1 : vector<16x256xf32>, i32 -> vector<16x256xf32>
    %c5_43 = arith.constant 5 : index
    %c0_44 = arith.constant 0 : index
    %c0_45 = arith.constant 0 : index
    %87 = vector.load %arg10[%c5_43, %c0_44, %c0_45] : memref<9x1x256xf32, #tpu.memory_space<vmem>>, vector<1x1x256xf32>
    %88 = vector.shape_cast %87 : vector<1x1x256xf32> to vector<1x256xf32>
    %89 = vector.broadcast %88 : vector<1x256xf32> to vector<16x256xf32>
    %90 = arith.mulf %86, %89 : vector<16x256xf32>
    %91 = arith.truncf %90 : vector<16x256xf32> to vector<16x256xbf16>
    %c241_i32_46 = arith.constant 241 : i32
    %92 = tpu.dynamic_rotate %60 by %c241_i32_46 dim 1 : vector<16x256xf32>, i32 -> vector<16x256xf32>
    %c6_47 = arith.constant 6 : index
    %c0_48 = arith.constant 0 : index
    %c0_49 = arith.constant 0 : index
    %93 = vector.load %arg10[%c6_47, %c0_48, %c0_49] : memref<9x1x256xf32, #tpu.memory_space<vmem>>, vector<1x1x256xf32>
    %94 = vector.shape_cast %93 : vector<1x1x256xf32> to vector<1x256xf32>
    %95 = vector.broadcast %94 : vector<1x256xf32> to vector<16x256xf32>
    %96 = arith.mulf %92, %95 : vector<16x256xf32>
    %97 = arith.truncf %96 : vector<16x256xf32> to vector<16x256xbf16>
    %c240_i32_50 = arith.constant 240 : i32
    %98 = tpu.dynamic_rotate %60 by %c240_i32_50 dim 1 : vector<16x256xf32>, i32 -> vector<16x256xf32>
    %c7_51 = arith.constant 7 : index
    %c0_52 = arith.constant 0 : index
    %c0_53 = arith.constant 0 : index
    %99 = vector.load %arg10[%c7_51, %c0_52, %c0_53] : memref<9x1x256xf32, #tpu.memory_space<vmem>>, vector<1x1x256xf32>
    %100 = vector.shape_cast %99 : vector<1x1x256xf32> to vector<1x256xf32>
    %101 = vector.broadcast %100 : vector<1x256xf32> to vector<16x256xf32>
    %102 = arith.mulf %98, %101 : vector<16x256xf32>
    %103 = arith.truncf %102 : vector<16x256xf32> to vector<16x256xbf16>
    %c239_i32_54 = arith.constant 239 : i32
    %104 = tpu.dynamic_rotate %60 by %c239_i32_54 dim 1 : vector<16x256xf32>, i32 -> vector<16x256xf32>
    %c8_55 = arith.constant 8 : index
    %c0_56 = arith.constant 0 : index
    %c0_57 = arith.constant 0 : index
    %105 = vector.load %arg10[%c8_55, %c0_56, %c0_57] : memref<9x1x256xf32, #tpu.memory_space<vmem>>, vector<1x1x256xf32>
    %106 = vector.shape_cast %105 : vector<1x1x256xf32> to vector<1x256xf32>
    %107 = vector.broadcast %106 : vector<1x256xf32> to vector<16x256xf32>
    %108 = arith.mulf %104, %107 : vector<16x256xf32>
    %109 = arith.truncf %108 : vector<16x256xf32> to vector<16x256xbf16>
    %110 = tpu.concatenate %66, %72, %78, %84, %85, %91, %97, %103, %109 in 0 : vector<16x256xbf16>, vector<16x256xbf16>, vector<16x256xbf16>, vector<16x256xbf16>, vector<16x256xbf16>, vector<16x256xbf16>, vector<16x256xbf16>, vector<16x256xbf16>, vector<16x256xbf16> -> vector<144x256xbf16>
    %c1_58 = arith.constant 1 : index
    %c0_59 = arith.constant 0 : index
    %c0_60 = arith.constant 0 : index
    %111 = vector.load %arg2[%c1_58, %c0_59, %c0_60] : memref<20x16x144xbf16, #tpu.memory_space<vmem>>, vector<1x16x144xbf16>
    %112 = vector.shape_cast %111 : vector<1x16x144xbf16> to vector<16x144xbf16>
    %cst_61 = arith.constant dense<0.000000e+00> : vector<16x256xf32>
    %113 = tpu.matmul %112, %110, %cst_61 {dimension_numbers = #tpu.dot_dimension_numbers<[1], [0], [0], [1], [0, 0, 1, 1], [], []>} : vector<16x144xbf16>, vector<144x256xbf16>, vector<16x256xf32> -> vector<16x256xf32>
    %c1_62 = arith.constant 1 : index
    %c0_63 = arith.constant 0 : index
    %c0_64 = arith.constant 0 : index
    %114 = vector.load %arg3[%c1_62, %c0_63, %c0_64] : memref<20x16x1xf32, #tpu.memory_space<vmem>>, vector<1x16x1xf32>
    %115 = vector.shape_cast %114 : vector<1x16x1xf32> to vector<16x1xf32>
    %116 = vector.broadcast %115 : vector<16x1xf32> to vector<16x256xf32>
    %117 = arith.addf %113, %116 : vector<16x256xf32>
    %118 = arith.addf %117, %1 : vector<16x256xf32>
    %c17_i32_65 = arith.constant 17 : i32
    %119 = tpu.dynamic_rotate %118 by %c17_i32_65 dim 1 : vector<16x256xf32>, i32 -> vector<16x256xf32>
    %c0_66 = arith.constant 0 : index
    %c0_67 = arith.constant 0 : index
    %c0_68 = arith.constant 0 : index
    %120 = vector.load %arg10[%c0_66, %c0_67, %c0_68] : memref<9x1x256xf32, #tpu.memory_space<vmem>>, vector<1x1x256xf32>
    %121 = vector.shape_cast %120 : vector<1x1x256xf32> to vector<1x256xf32>
    %122 = vector.broadcast %121 : vector<1x256xf32> to vector<16x256xf32>
    %123 = arith.mulf %119, %122 : vector<16x256xf32>
    %124 = arith.truncf %123 : vector<16x256xf32> to vector<16x256xbf16>
    %c16_i32_69 = arith.constant 16 : i32
    %125 = tpu.dynamic_rotate %118 by %c16_i32_69 dim 1 : vector<16x256xf32>, i32 -> vector<16x256xf32>
    %c1_70 = arith.constant 1 : index
    %c0_71 = arith.constant 0 : index
    %c0_72 = arith.constant 0 : index
    %126 = vector.load %arg10[%c1_70, %c0_71, %c0_72] : memref<9x1x256xf32, #tpu.memory_space<vmem>>, vector<1x1x256xf32>
    %127 = vector.shape_cast %126 : vector<1x1x256xf32> to vector<1x256xf32>
    %128 = vector.broadcast %127 : vector<1x256xf32> to vector<16x256xf32>
    %129 = arith.mulf %125, %128 : vector<16x256xf32>
    %130 = arith.truncf %129 : vector<16x256xf32> to vector<16x256xbf16>
    %c15_i32_73 = arith.constant 15 : i32
    %131 = tpu.dynamic_rotate %118 by %c15_i32_73 dim 1 : vector<16x256xf32>, i32 -> vector<16x256xf32>
    %c2_74 = arith.constant 2 : index
    %c0_75 = arith.constant 0 : index
    %c0_76 = arith.constant 0 : index
    %132 = vector.load %arg10[%c2_74, %c0_75, %c0_76] : memref<9x1x256xf32, #tpu.memory_space<vmem>>, vector<1x1x256xf32>
    %133 = vector.shape_cast %132 : vector<1x1x256xf32> to vector<1x256xf32>
    %134 = vector.broadcast %133 : vector<1x256xf32> to vector<16x256xf32>
    %135 = arith.mulf %131, %134 : vector<16x256xf32>
    %136 = arith.truncf %135 : vector<16x256xf32> to vector<16x256xbf16>
    %c1_i32_77 = arith.constant 1 : i32
    %137 = tpu.dynamic_rotate %118 by %c1_i32_77 dim 1 : vector<16x256xf32>, i32 -> vector<16x256xf32>
    %c3_78 = arith.constant 3 : index
    %c0_79 = arith.constant 0 : index
    %c0_80 = arith.constant 0 : index
    %138 = vector.load %arg10[%c3_78, %c0_79, %c0_80] : memref<9x1x256xf32, #tpu.memory_space<vmem>>, vector<1x1x256xf32>
    %139 = vector.shape_cast %138 : vector<1x1x256xf32> to vector<1x256xf32>
    %140 = vector.broadcast %139 : vector<1x256xf32> to vector<16x256xf32>
    %141 = arith.mulf %137, %140 : vector<16x256xf32>
    %142 = arith.truncf %141 : vector<16x256xf32> to vector<16x256xbf16>
    %143 = arith.truncf %118 : vector<16x256xf32> to vector<16x256xbf16>
    %c255_i32_81 = arith.constant 255 : i32
    %144 = tpu.dynamic_rotate %118 by %c255_i32_81 dim 1 : vector<16x256xf32>, i32 -> vector<16x256xf32>
    %c5_82 = arith.constant 5 : index
    %c0_83 = arith.constant 0 : index
    %c0_84 = arith.constant 0 : index
    %145 = vector.load %arg10[%c5_82, %c0_83, %c0_84] : memref<9x1x256xf32, #tpu.memory_space<vmem>>, vector<1x1x256xf32>
    %146 = vector.shape_cast %145 : vector<1x1x256xf32> to vector<1x256xf32>
    %147 = vector.broadcast %146 : vector<1x256xf32> to vector<16x256xf32>
    %148 = arith.mulf %144, %147 : vector<16x256xf32>
    %149 = arith.truncf %148 : vector<16x256xf32> to vector<16x256xbf16>
    %c241_i32_85 = arith.constant 241 : i32
    %150 = tpu.dynamic_rotate %118 by %c241_i32_85 dim 1 : vector<16x256xf32>, i32 -> vector<16x256xf32>
    %c6_86 = arith.constant 6 : index
    %c0_87 = arith.constant 0 : index
    %c0_88 = arith.constant 0 : index
    %151 = vector.load %arg10[%c6_86, %c0_87, %c0_88] : memref<9x1x256xf32, #tpu.memory_space<vmem>>, vector<1x1x256xf32>
    %152 = vector.shape_cast %151 : vector<1x1x256xf32> to vector<1x256xf32>
    %153 = vector.broadcast %152 : vector<1x256xf32> to vector<16x256xf32>
    %154 = arith.mulf %150, %153 : vector<16x256xf32>
    %155 = arith.truncf %154 : vector<16x256xf32> to vector<16x256xbf16>
    %c240_i32_89 = arith.constant 240 : i32
    %156 = tpu.dynamic_rotate %118 by %c240_i32_89 dim 1 : vector<16x256xf32>, i32 -> vector<16x256xf32>
    %c7_90 = arith.constant 7 : index
    %c0_91 = arith.constant 0 : index
    %c0_92 = arith.constant 0 : index
    %157 = vector.load %arg10[%c7_90, %c0_91, %c0_92] : memref<9x1x256xf32, #tpu.memory_space<vmem>>, vector<1x1x256xf32>
    %158 = vector.shape_cast %157 : vector<1x1x256xf32> to vector<1x256xf32>
    %159 = vector.broadcast %158 : vector<1x256xf32> to vector<16x256xf32>
    %160 = arith.mulf %156, %159 : vector<16x256xf32>
    %161 = arith.truncf %160 : vector<16x256xf32> to vector<16x256xbf16>
    %c239_i32_93 = arith.constant 239 : i32
    %162 = tpu.dynamic_rotate %118 by %c239_i32_93 dim 1 : vector<16x256xf32>, i32 -> vector<16x256xf32>
    %c8_94 = arith.constant 8 : index
    %c0_95 = arith.constant 0 : index
    %c0_96 = arith.constant 0 : index
    %163 = vector.load %arg10[%c8_94, %c0_95, %c0_96] : memref<9x1x256xf32, #tpu.memory_space<vmem>>, vector<1x1x256xf32>
    %164 = vector.shape_cast %163 : vector<1x1x256xf32> to vector<1x256xf32>
    %165 = vector.broadcast %164 : vector<1x256xf32> to vector<16x256xf32>
    %166 = arith.mulf %162, %165 : vector<16x256xf32>
    %167 = arith.truncf %166 : vector<16x256xf32> to vector<16x256xbf16>
    %168 = tpu.concatenate %124, %130, %136, %142, %143, %149, %155, %161, %167 in 0 : vector<16x256xbf16>, vector<16x256xbf16>, vector<16x256xbf16>, vector<16x256xbf16>, vector<16x256xbf16>, vector<16x256xbf16>, vector<16x256xbf16>, vector<16x256xbf16>, vector<16x256xbf16> -> vector<144x256xbf16>
    %c2_97 = arith.constant 2 : index
    %c0_98 = arith.constant 0 : index
    %c0_99 = arith.constant 0 : index
    %169 = vector.load %arg2[%c2_97, %c0_98, %c0_99] : memref<20x16x144xbf16, #tpu.memory_space<vmem>>, vector<1x16x144xbf16>
    %170 = vector.shape_cast %169 : vector<1x16x144xbf16> to vector<16x144xbf16>
    %cst_100 = arith.constant dense<0.000000e+00> : vector<16x256xf32>
    %171 = tpu.matmul %170, %168, %cst_100 {dimension_numbers = #tpu.dot_dimension_numbers<[1], [0], [0], [1], [0, 0, 1, 1], [], []>} : vector<16x144xbf16>, vector<144x256xbf16>, vector<16x256xf32> -> vector<16x256xf32>
    %c2_101 = arith.constant 2 : index
    %c0_102 = arith.constant 0 : index
    %c0_103 = arith.constant 0 : index
    %172 = vector.load %arg3[%c2_101, %c0_102, %c0_103] : memref<20x16x1xf32, #tpu.memory_space<vmem>>, vector<1x16x1xf32>
    %173 = vector.shape_cast %172 : vector<1x16x1xf32> to vector<16x1xf32>
    %174 = vector.broadcast %173 : vector<16x1xf32> to vector<16x256xf32>
    %175 = arith.addf %171, %174 : vector<16x256xf32>
    %cst_104 = arith.constant 0.000000e+00 : f32
    %176 = vector.broadcast %cst_104 : f32 to vector<16x256xf32>
    %177 = arith.maximumf %175, %176 : vector<16x256xf32>
    %c17_i32_105 = arith.constant 17 : i32
    %178 = tpu.dynamic_rotate %177 by %c17_i32_105 dim 1 : vector<16x256xf32>, i32 -> vector<16x256xf32>
    %c0_106 = arith.constant 0 : index
    %c0_107 = arith.constant 0 : index
    %c0_108 = arith.constant 0 : index
    %179 = vector.load %arg10[%c0_106, %c0_107, %c0_108] : memref<9x1x256xf32, #tpu.memory_space<vmem>>, vector<1x1x256xf32>
    %180 = vector.shape_cast %179 : vector<1x1x256xf32> to vector<1x256xf32>
    %181 = vector.broadcast %180 : vector<1x256xf32> to vector<16x256xf32>
    %182 = arith.mulf %178, %181 : vector<16x256xf32>
    %183 = arith.truncf %182 : vector<16x256xf32> to vector<16x256xbf16>
    %c16_i32_109 = arith.constant 16 : i32
    %184 = tpu.dynamic_rotate %177 by %c16_i32_109 dim 1 : vector<16x256xf32>, i32 -> vector<16x256xf32>
    %c1_110 = arith.constant 1 : index
    %c0_111 = arith.constant 0 : index
    %c0_112 = arith.constant 0 : index
    %185 = vector.load %arg10[%c1_110, %c0_111, %c0_112] : memref<9x1x256xf32, #tpu.memory_space<vmem>>, vector<1x1x256xf32>
    %186 = vector.shape_cast %185 : vector<1x1x256xf32> to vector<1x256xf32>
    %187 = vector.broadcast %186 : vector<1x256xf32> to vector<16x256xf32>
    %188 = arith.mulf %184, %187 : vector<16x256xf32>
    %189 = arith.truncf %188 : vector<16x256xf32> to vector<16x256xbf16>
    %c15_i32_113 = arith.constant 15 : i32
    %190 = tpu.dynamic_rotate %177 by %c15_i32_113 dim 1 : vector<16x256xf32>, i32 -> vector<16x256xf32>
    %c2_114 = arith.constant 2 : index
    %c0_115 = arith.constant 0 : index
    %c0_116 = arith.constant 0 : index
    %191 = vector.load %arg10[%c2_114, %c0_115, %c0_116] : memref<9x1x256xf32, #tpu.memory_space<vmem>>, vector<1x1x256xf32>
    %192 = vector.shape_cast %191 : vector<1x1x256xf32> to vector<1x256xf32>
    %193 = vector.broadcast %192 : vector<1x256xf32> to vector<16x256xf32>
    %194 = arith.mulf %190, %193 : vector<16x256xf32>
    %195 = arith.truncf %194 : vector<16x256xf32> to vector<16x256xbf16>
    %c1_i32_117 = arith.constant 1 : i32
    %196 = tpu.dynamic_rotate %177 by %c1_i32_117 dim 1 : vector<16x256xf32>, i32 -> vector<16x256xf32>
    %c3_118 = arith.constant 3 : index
    %c0_119 = arith.constant 0 : index
    %c0_120 = arith.constant 0 : index
    %197 = vector.load %arg10[%c3_118, %c0_119, %c0_120] : memref<9x1x256xf32, #tpu.memory_space<vmem>>, vector<1x1x256xf32>
    %198 = vector.shape_cast %197 : vector<1x1x256xf32> to vector<1x256xf32>
    %199 = vector.broadcast %198 : vector<1x256xf32> to vector<16x256xf32>
    %200 = arith.mulf %196, %199 : vector<16x256xf32>
    %201 = arith.truncf %200 : vector<16x256xf32> to vector<16x256xbf16>
    %202 = arith.truncf %177 : vector<16x256xf32> to vector<16x256xbf16>
    %c255_i32_121 = arith.constant 255 : i32
    %203 = tpu.dynamic_rotate %177 by %c255_i32_121 dim 1 : vector<16x256xf32>, i32 -> vector<16x256xf32>
    %c5_122 = arith.constant 5 : index
    %c0_123 = arith.constant 0 : index
    %c0_124 = arith.constant 0 : index
    %204 = vector.load %arg10[%c5_122, %c0_123, %c0_124] : memref<9x1x256xf32, #tpu.memory_space<vmem>>, vector<1x1x256xf32>
    %205 = vector.shape_cast %204 : vector<1x1x256xf32> to vector<1x256xf32>
    %206 = vector.broadcast %205 : vector<1x256xf32> to vector<16x256xf32>
    %207 = arith.mulf %203, %206 : vector<16x256xf32>
    %208 = arith.truncf %207 : vector<16x256xf32> to vector<16x256xbf16>
    %c241_i32_125 = arith.constant 241 : i32
    %209 = tpu.dynamic_rotate %177 by %c241_i32_125 dim 1 : vector<16x256xf32>, i32 -> vector<16x256xf32>
    %c6_126 = arith.constant 6 : index
    %c0_127 = arith.constant 0 : index
    %c0_128 = arith.constant 0 : index
    %210 = vector.load %arg10[%c6_126, %c0_127, %c0_128] : memref<9x1x256xf32, #tpu.memory_space<vmem>>, vector<1x1x256xf32>
    %211 = vector.shape_cast %210 : vector<1x1x256xf32> to vector<1x256xf32>
    %212 = vector.broadcast %211 : vector<1x256xf32> to vector<16x256xf32>
    %213 = arith.mulf %209, %212 : vector<16x256xf32>
    %214 = arith.truncf %213 : vector<16x256xf32> to vector<16x256xbf16>
    %c240_i32_129 = arith.constant 240 : i32
    %215 = tpu.dynamic_rotate %177 by %c240_i32_129 dim 1 : vector<16x256xf32>, i32 -> vector<16x256xf32>
    %c7_130 = arith.constant 7 : index
    %c0_131 = arith.constant 0 : index
    %c0_132 = arith.constant 0 : index
    %216 = vector.load %arg10[%c7_130, %c0_131, %c0_132] : memref<9x1x256xf32, #tpu.memory_space<vmem>>, vector<1x1x256xf32>
    %217 = vector.shape_cast %216 : vector<1x1x256xf32> to vector<1x256xf32>
    %218 = vector.broadcast %217 : vector<1x256xf32> to vector<16x256xf32>
    %219 = arith.mulf %215, %218 : vector<16x256xf32>
    %220 = arith.truncf %219 : vector<16x256xf32> to vector<16x256xbf16>
    %c239_i32_133 = arith.constant 239 : i32
    %221 = tpu.dynamic_rotate %177 by %c239_i32_133 dim 1 : vector<16x256xf32>, i32 -> vector<16x256xf32>
    %c8_134 = arith.constant 8 : index
    %c0_135 = arith.constant 0 : index
    %c0_136 = arith.constant 0 : index
    %222 = vector.load %arg10[%c8_134, %c0_135, %c0_136] : memref<9x1x256xf32, #tpu.memory_space<vmem>>, vector<1x1x256xf32>
    %223 = vector.shape_cast %222 : vector<1x1x256xf32> to vector<1x256xf32>
    %224 = vector.broadcast %223 : vector<1x256xf32> to vector<16x256xf32>
    %225 = arith.mulf %221, %224 : vector<16x256xf32>
    %226 = arith.truncf %225 : vector<16x256xf32> to vector<16x256xbf16>
    %227 = tpu.concatenate %183, %189, %195, %201, %202, %208, %214, %220, %226 in 0 : vector<16x256xbf16>, vector<16x256xbf16>, vector<16x256xbf16>, vector<16x256xbf16>, vector<16x256xbf16>, vector<16x256xbf16>, vector<16x256xbf16>, vector<16x256xbf16>, vector<16x256xbf16> -> vector<144x256xbf16>
    %c3_137 = arith.constant 3 : index
    %c0_138 = arith.constant 0 : index
    %c0_139 = arith.constant 0 : index
    %228 = vector.load %arg2[%c3_137, %c0_138, %c0_139] : memref<20x16x144xbf16, #tpu.memory_space<vmem>>, vector<1x16x144xbf16>
    %229 = vector.shape_cast %228 : vector<1x16x144xbf16> to vector<16x144xbf16>
    %cst_140 = arith.constant dense<0.000000e+00> : vector<16x256xf32>
    %230 = tpu.matmul %229, %227, %cst_140 {dimension_numbers = #tpu.dot_dimension_numbers<[1], [0], [0], [1], [0, 0, 1, 1], [], []>} : vector<16x144xbf16>, vector<144x256xbf16>, vector<16x256xf32> -> vector<16x256xf32>
    %c3_141 = arith.constant 3 : index
    %c0_142 = arith.constant 0 : index
    %c0_143 = arith.constant 0 : index
    %231 = vector.load %arg3[%c3_141, %c0_142, %c0_143] : memref<20x16x1xf32, #tpu.memory_space<vmem>>, vector<1x16x1xf32>
    %232 = vector.shape_cast %231 : vector<1x16x1xf32> to vector<16x1xf32>
    %233 = vector.broadcast %232 : vector<16x1xf32> to vector<16x256xf32>
    %234 = arith.addf %230, %233 : vector<16x256xf32>
    %235 = arith.addf %234, %118 : vector<16x256xf32>
    %c17_i32_144 = arith.constant 17 : i32
    %236 = tpu.dynamic_rotate %235 by %c17_i32_144 dim 1 : vector<16x256xf32>, i32 -> vector<16x256xf32>
    %c0_145 = arith.constant 0 : index
    %c0_146 = arith.constant 0 : index
    %c0_147 = arith.constant 0 : index
    %237 = vector.load %arg10[%c0_145, %c0_146, %c0_147] : memref<9x1x256xf32, #tpu.memory_space<vmem>>, vector<1x1x256xf32>
    %238 = vector.shape_cast %237 : vector<1x1x256xf32> to vector<1x256xf32>
    %239 = vector.broadcast %238 : vector<1x256xf32> to vector<16x256xf32>
    %240 = arith.mulf %236, %239 : vector<16x256xf32>
    %241 = arith.truncf %240 : vector<16x256xf32> to vector<16x256xbf16>
    %c16_i32_148 = arith.constant 16 : i32
    %242 = tpu.dynamic_rotate %235 by %c16_i32_148 dim 1 : vector<16x256xf32>, i32 -> vector<16x256xf32>
    %c1_149 = arith.constant 1 : index
    %c0_150 = arith.constant 0 : index
    %c0_151 = arith.constant 0 : index
    %243 = vector.load %arg10[%c1_149, %c0_150, %c0_151] : memref<9x1x256xf32, #tpu.memory_space<vmem>>, vector<1x1x256xf32>
    %244 = vector.shape_cast %243 : vector<1x1x256xf32> to vector<1x256xf32>
    %245 = vector.broadcast %244 : vector<1x256xf32> to vector<16x256xf32>
    %246 = arith.mulf %242, %245 : vector<16x256xf32>
    %247 = arith.truncf %246 : vector<16x256xf32> to vector<16x256xbf16>
    %c15_i32_152 = arith.constant 15 : i32
    %248 = tpu.dynamic_rotate %235 by %c15_i32_152 dim 1 : vector<16x256xf32>, i32 -> vector<16x256xf32>
    %c2_153 = arith.constant 2 : index
    %c0_154 = arith.constant 0 : index
    %c0_155 = arith.constant 0 : index
    %249 = vector.load %arg10[%c2_153, %c0_154, %c0_155] : memref<9x1x256xf32, #tpu.memory_space<vmem>>, vector<1x1x256xf32>
    %250 = vector.shape_cast %249 : vector<1x1x256xf32> to vector<1x256xf32>
    %251 = vector.broadcast %250 : vector<1x256xf32> to vector<16x256xf32>
    %252 = arith.mulf %248, %251 : vector<16x256xf32>
    %253 = arith.truncf %252 : vector<16x256xf32> to vector<16x256xbf16>
    %c1_i32_156 = arith.constant 1 : i32
    %254 = tpu.dynamic_rotate %235 by %c1_i32_156 dim 1 : vector<16x256xf32>, i32 -> vector<16x256xf32>
    %c3_157 = arith.constant 3 : index
    %c0_158 = arith.constant 0 : index
    %c0_159 = arith.constant 0 : index
    %255 = vector.load %arg10[%c3_157, %c0_158, %c0_159] : memref<9x1x256xf32, #tpu.memory_space<vmem>>, vector<1x1x256xf32>
    %256 = vector.shape_cast %255 : vector<1x1x256xf32> to vector<1x256xf32>
    %257 = vector.broadcast %256 : vector<1x256xf32> to vector<16x256xf32>
    %258 = arith.mulf %254, %257 : vector<16x256xf32>
    %259 = arith.truncf %258 : vector<16x256xf32> to vector<16x256xbf16>
    %260 = arith.truncf %235 : vector<16x256xf32> to vector<16x256xbf16>
    %c255_i32_160 = arith.constant 255 : i32
    %261 = tpu.dynamic_rotate %235 by %c255_i32_160 dim 1 : vector<16x256xf32>, i32 -> vector<16x256xf32>
    %c5_161 = arith.constant 5 : index
    %c0_162 = arith.constant 0 : index
    %c0_163 = arith.constant 0 : index
    %262 = vector.load %arg10[%c5_161, %c0_162, %c0_163] : memref<9x1x256xf32, #tpu.memory_space<vmem>>, vector<1x1x256xf32>
    %263 = vector.shape_cast %262 : vector<1x1x256xf32> to vector<1x256xf32>
    %264 = vector.broadcast %263 : vector<1x256xf32> to vector<16x256xf32>
    %265 = arith.mulf %261, %264 : vector<16x256xf32>
    %266 = arith.truncf %265 : vector<16x256xf32> to vector<16x256xbf16>
    %c241_i32_164 = arith.constant 241 : i32
    %267 = tpu.dynamic_rotate %235 by %c241_i32_164 dim 1 : vector<16x256xf32>, i32 -> vector<16x256xf32>
    %c6_165 = arith.constant 6 : index
    %c0_166 = arith.constant 0 : index
    %c0_167 = arith.constant 0 : index
    %268 = vector.load %arg10[%c6_165, %c0_166, %c0_167] : memref<9x1x256xf32, #tpu.memory_space<vmem>>, vector<1x1x256xf32>
    %269 = vector.shape_cast %268 : vector<1x1x256xf32> to vector<1x256xf32>
    %270 = vector.broadcast %269 : vector<1x256xf32> to vector<16x256xf32>
    %271 = arith.mulf %267, %270 : vector<16x256xf32>
    %272 = arith.truncf %271 : vector<16x256xf32> to vector<16x256xbf16>
    %c240_i32_168 = arith.constant 240 : i32
    %273 = tpu.dynamic_rotate %235 by %c240_i32_168 dim 1 : vector<16x256xf32>, i32 -> vector<16x256xf32>
    %c7_169 = arith.constant 7 : index
    %c0_170 = arith.constant 0 : index
    %c0_171 = arith.constant 0 : index
    %274 = vector.load %arg10[%c7_169, %c0_170, %c0_171] : memref<9x1x256xf32, #tpu.memory_space<vmem>>, vector<1x1x256xf32>
    %275 = vector.shape_cast %274 : vector<1x1x256xf32> to vector<1x256xf32>
    %276 = vector.broadcast %275 : vector<1x256xf32> to vector<16x256xf32>
    %277 = arith.mulf %273, %276 : vector<16x256xf32>
    %278 = arith.truncf %277 : vector<16x256xf32> to vector<16x256xbf16>
    %c239_i32_172 = arith.constant 239 : i32
    %279 = tpu.dynamic_rotate %235 by %c239_i32_172 dim 1 : vector<16x256xf32>, i32 -> vector<16x256xf32>
    %c8_173 = arith.constant 8 : index
    %c0_174 = arith.constant 0 : index
    %c0_175 = arith.constant 0 : index
    %280 = vector.load %arg10[%c8_173, %c0_174, %c0_175] : memref<9x1x256xf32, #tpu.memory_space<vmem>>, vector<1x1x256xf32>
    %281 = vector.shape_cast %280 : vector<1x1x256xf32> to vector<1x256xf32>
    %282 = vector.broadcast %281 : vector<1x256xf32> to vector<16x256xf32>
    %283 = arith.mulf %279, %282 : vector<16x256xf32>
    %284 = arith.truncf %283 : vector<16x256xf32> to vector<16x256xbf16>
    %285 = tpu.concatenate %241, %247, %253, %259, %260, %266, %272, %278, %284 in 0 : vector<16x256xbf16>, vector<16x256xbf16>, vector<16x256xbf16>, vector<16x256xbf16>, vector<16x256xbf16>, vector<16x256xbf16>, vector<16x256xbf16>, vector<16x256xbf16>, vector<16x256xbf16> -> vector<144x256xbf16>
    %c4 = arith.constant 4 : index
    %c0_176 = arith.constant 0 : index
    %c0_177 = arith.constant 0 : index
    %286 = vector.load %arg2[%c4, %c0_176, %c0_177] : memref<20x16x144xbf16, #tpu.memory_space<vmem>>, vector<1x16x144xbf16>
    %287 = vector.shape_cast %286 : vector<1x16x144xbf16> to vector<16x144xbf16>
    %cst_178 = arith.constant dense<0.000000e+00> : vector<16x256xf32>
    %288 = tpu.matmul %287, %285, %cst_178 {dimension_numbers = #tpu.dot_dimension_numbers<[1], [0], [0], [1], [0, 0, 1, 1], [], []>} : vector<16x144xbf16>, vector<144x256xbf16>, vector<16x256xf32> -> vector<16x256xf32>
    %c4_179 = arith.constant 4 : index
    %c0_180 = arith.constant 0 : index
    %c0_181 = arith.constant 0 : index
    %289 = vector.load %arg3[%c4_179, %c0_180, %c0_181] : memref<20x16x1xf32, #tpu.memory_space<vmem>>, vector<1x16x1xf32>
    %290 = vector.shape_cast %289 : vector<1x16x1xf32> to vector<16x1xf32>
    %291 = vector.broadcast %290 : vector<16x1xf32> to vector<16x256xf32>
    %292 = arith.addf %288, %291 : vector<16x256xf32>
    %cst_182 = arith.constant 0.000000e+00 : f32
    %293 = vector.broadcast %cst_182 : f32 to vector<16x256xf32>
    %294 = arith.maximumf %292, %293 : vector<16x256xf32>
    %c17_i32_183 = arith.constant 17 : i32
    %295 = tpu.dynamic_rotate %294 by %c17_i32_183 dim 1 : vector<16x256xf32>, i32 -> vector<16x256xf32>
    %c0_184 = arith.constant 0 : index
    %c0_185 = arith.constant 0 : index
    %c0_186 = arith.constant 0 : index
    %296 = vector.load %arg10[%c0_184, %c0_185, %c0_186] : memref<9x1x256xf32, #tpu.memory_space<vmem>>, vector<1x1x256xf32>
    %297 = vector.shape_cast %296 : vector<1x1x256xf32> to vector<1x256xf32>
    %298 = vector.broadcast %297 : vector<1x256xf32> to vector<16x256xf32>
    %299 = arith.mulf %295, %298 : vector<16x256xf32>
    %300 = arith.truncf %299 : vector<16x256xf32> to vector<16x256xbf16>
    %c16_i32_187 = arith.constant 16 : i32
    %301 = tpu.dynamic_rotate %294 by %c16_i32_187 dim 1 : vector<16x256xf32>, i32 -> vector<16x256xf32>
    %c1_188 = arith.constant 1 : index
    %c0_189 = arith.constant 0 : index
    %c0_190 = arith.constant 0 : index
    %302 = vector.load %arg10[%c1_188, %c0_189, %c0_190] : memref<9x1x256xf32, #tpu.memory_space<vmem>>, vector<1x1x256xf32>
    %303 = vector.shape_cast %302 : vector<1x1x256xf32> to vector<1x256xf32>
    %304 = vector.broadcast %303 : vector<1x256xf32> to vector<16x256xf32>
    %305 = arith.mulf %301, %304 : vector<16x256xf32>
    %306 = arith.truncf %305 : vector<16x256xf32> to vector<16x256xbf16>
    %c15_i32_191 = arith.constant 15 : i32
    %307 = tpu.dynamic_rotate %294 by %c15_i32_191 dim 1 : vector<16x256xf32>, i32 -> vector<16x256xf32>
    %c2_192 = arith.constant 2 : index
    %c0_193 = arith.constant 0 : index
    %c0_194 = arith.constant 0 : index
    %308 = vector.load %arg10[%c2_192, %c0_193, %c0_194] : memref<9x1x256xf32, #tpu.memory_space<vmem>>, vector<1x1x256xf32>
    %309 = vector.shape_cast %308 : vector<1x1x256xf32> to vector<1x256xf32>
    %310 = vector.broadcast %309 : vector<1x256xf32> to vector<16x256xf32>
    %311 = arith.mulf %307, %310 : vector<16x256xf32>
    %312 = arith.truncf %311 : vector<16x256xf32> to vector<16x256xbf16>
    %c1_i32_195 = arith.constant 1 : i32
    %313 = tpu.dynamic_rotate %294 by %c1_i32_195 dim 1 : vector<16x256xf32>, i32 -> vector<16x256xf32>
    %c3_196 = arith.constant 3 : index
    %c0_197 = arith.constant 0 : index
    %c0_198 = arith.constant 0 : index
    %314 = vector.load %arg10[%c3_196, %c0_197, %c0_198] : memref<9x1x256xf32, #tpu.memory_space<vmem>>, vector<1x1x256xf32>
    %315 = vector.shape_cast %314 : vector<1x1x256xf32> to vector<1x256xf32>
    %316 = vector.broadcast %315 : vector<1x256xf32> to vector<16x256xf32>
    %317 = arith.mulf %313, %316 : vector<16x256xf32>
    %318 = arith.truncf %317 : vector<16x256xf32> to vector<16x256xbf16>
    %319 = arith.truncf %294 : vector<16x256xf32> to vector<16x256xbf16>
    %c255_i32_199 = arith.constant 255 : i32
    %320 = tpu.dynamic_rotate %294 by %c255_i32_199 dim 1 : vector<16x256xf32>, i32 -> vector<16x256xf32>
    %c5_200 = arith.constant 5 : index
    %c0_201 = arith.constant 0 : index
    %c0_202 = arith.constant 0 : index
    %321 = vector.load %arg10[%c5_200, %c0_201, %c0_202] : memref<9x1x256xf32, #tpu.memory_space<vmem>>, vector<1x1x256xf32>
    %322 = vector.shape_cast %321 : vector<1x1x256xf32> to vector<1x256xf32>
    %323 = vector.broadcast %322 : vector<1x256xf32> to vector<16x256xf32>
    %324 = arith.mulf %320, %323 : vector<16x256xf32>
    %325 = arith.truncf %324 : vector<16x256xf32> to vector<16x256xbf16>
    %c241_i32_203 = arith.constant 241 : i32
    %326 = tpu.dynamic_rotate %294 by %c241_i32_203 dim 1 : vector<16x256xf32>, i32 -> vector<16x256xf32>
    %c6_204 = arith.constant 6 : index
    %c0_205 = arith.constant 0 : index
    %c0_206 = arith.constant 0 : index
    %327 = vector.load %arg10[%c6_204, %c0_205, %c0_206] : memref<9x1x256xf32, #tpu.memory_space<vmem>>, vector<1x1x256xf32>
    %328 = vector.shape_cast %327 : vector<1x1x256xf32> to vector<1x256xf32>
    %329 = vector.broadcast %328 : vector<1x256xf32> to vector<16x256xf32>
    %330 = arith.mulf %326, %329 : vector<16x256xf32>
    %331 = arith.truncf %330 : vector<16x256xf32> to vector<16x256xbf16>
    %c240_i32_207 = arith.constant 240 : i32
    %332 = tpu.dynamic_rotate %294 by %c240_i32_207 dim 1 : vector<16x256xf32>, i32 -> vector<16x256xf32>
    %c7_208 = arith.constant 7 : index
    %c0_209 = arith.constant 0 : index
    %c0_210 = arith.constant 0 : index
    %333 = vector.load %arg10[%c7_208, %c0_209, %c0_210] : memref<9x1x256xf32, #tpu.memory_space<vmem>>, vector<1x1x256xf32>
    %334 = vector.shape_cast %333 : vector<1x1x256xf32> to vector<1x256xf32>
    %335 = vector.broadcast %334 : vector<1x256xf32> to vector<16x256xf32>
    %336 = arith.mulf %332, %335 : vector<16x256xf32>
    %337 = arith.truncf %336 : vector<16x256xf32> to vector<16x256xbf16>
    %c239_i32_211 = arith.constant 239 : i32
    %338 = tpu.dynamic_rotate %294 by %c239_i32_211 dim 1 : vector<16x256xf32>, i32 -> vector<16x256xf32>
    %c8_212 = arith.constant 8 : index
    %c0_213 = arith.constant 0 : index
    %c0_214 = arith.constant 0 : index
    %339 = vector.load %arg10[%c8_212, %c0_213, %c0_214] : memref<9x1x256xf32, #tpu.memory_space<vmem>>, vector<1x1x256xf32>
    %340 = vector.shape_cast %339 : vector<1x1x256xf32> to vector<1x256xf32>
    %341 = vector.broadcast %340 : vector<1x256xf32> to vector<16x256xf32>
    %342 = arith.mulf %338, %341 : vector<16x256xf32>
    %343 = arith.truncf %342 : vector<16x256xf32> to vector<16x256xbf16>
    %344 = tpu.concatenate %300, %306, %312, %318, %319, %325, %331, %337, %343 in 0 : vector<16x256xbf16>, vector<16x256xbf16>, vector<16x256xbf16>, vector<16x256xbf16>, vector<16x256xbf16>, vector<16x256xbf16>, vector<16x256xbf16>, vector<16x256xbf16>, vector<16x256xbf16> -> vector<144x256xbf16>
    %c5_215 = arith.constant 5 : index
    %c0_216 = arith.constant 0 : index
    %c0_217 = arith.constant 0 : index
    %345 = vector.load %arg2[%c5_215, %c0_216, %c0_217] : memref<20x16x144xbf16, #tpu.memory_space<vmem>>, vector<1x16x144xbf16>
    %346 = vector.shape_cast %345 : vector<1x16x144xbf16> to vector<16x144xbf16>
    %cst_218 = arith.constant dense<0.000000e+00> : vector<16x256xf32>
    %347 = tpu.matmul %346, %344, %cst_218 {dimension_numbers = #tpu.dot_dimension_numbers<[1], [0], [0], [1], [0, 0, 1, 1], [], []>} : vector<16x144xbf16>, vector<144x256xbf16>, vector<16x256xf32> -> vector<16x256xf32>
    %c5_219 = arith.constant 5 : index
    %c0_220 = arith.constant 0 : index
    %c0_221 = arith.constant 0 : index
    %348 = vector.load %arg3[%c5_219, %c0_220, %c0_221] : memref<20x16x1xf32, #tpu.memory_space<vmem>>, vector<1x16x1xf32>
    %349 = vector.shape_cast %348 : vector<1x16x1xf32> to vector<16x1xf32>
    %350 = vector.broadcast %349 : vector<16x1xf32> to vector<16x256xf32>
    %351 = arith.addf %347, %350 : vector<16x256xf32>
    %352 = arith.addf %351, %235 : vector<16x256xf32>
    %c17_i32_222 = arith.constant 17 : i32
    %353 = tpu.dynamic_rotate %118 by %c17_i32_222 dim 1 : vector<16x256xf32>, i32 -> vector<16x256xf32>
    %c0_223 = arith.constant 0 : index
    %c0_224 = arith.constant 0 : index
    %c0_225 = arith.constant 0 : index
    %354 = vector.load %arg10[%c0_223, %c0_224, %c0_225] : memref<9x1x256xf32, #tpu.memory_space<vmem>>, vector<1x1x256xf32>
    %355 = vector.shape_cast %354 : vector<1x1x256xf32> to vector<1x256xf32>
    %356 = vector.broadcast %355 : vector<1x256xf32> to vector<16x256xf32>
    %357 = arith.mulf %353, %356 : vector<16x256xf32>
    %358 = arith.truncf %357 : vector<16x256xf32> to vector<16x256xbf16>
    %c16_i32_226 = arith.constant 16 : i32
    %359 = tpu.dynamic_rotate %118 by %c16_i32_226 dim 1 : vector<16x256xf32>, i32 -> vector<16x256xf32>
    %c1_227 = arith.constant 1 : index
    %c0_228 = arith.constant 0 : index
    %c0_229 = arith.constant 0 : index
    %360 = vector.load %arg10[%c1_227, %c0_228, %c0_229] : memref<9x1x256xf32, #tpu.memory_space<vmem>>, vector<1x1x256xf32>
    %361 = vector.shape_cast %360 : vector<1x1x256xf32> to vector<1x256xf32>
    %362 = vector.broadcast %361 : vector<1x256xf32> to vector<16x256xf32>
    %363 = arith.mulf %359, %362 : vector<16x256xf32>
    %364 = arith.truncf %363 : vector<16x256xf32> to vector<16x256xbf16>
    %c15_i32_230 = arith.constant 15 : i32
    %365 = tpu.dynamic_rotate %118 by %c15_i32_230 dim 1 : vector<16x256xf32>, i32 -> vector<16x256xf32>
    %c2_231 = arith.constant 2 : index
    %c0_232 = arith.constant 0 : index
    %c0_233 = arith.constant 0 : index
    %366 = vector.load %arg10[%c2_231, %c0_232, %c0_233] : memref<9x1x256xf32, #tpu.memory_space<vmem>>, vector<1x1x256xf32>
    %367 = vector.shape_cast %366 : vector<1x1x256xf32> to vector<1x256xf32>
    %368 = vector.broadcast %367 : vector<1x256xf32> to vector<16x256xf32>
    %369 = arith.mulf %365, %368 : vector<16x256xf32>
    %370 = arith.truncf %369 : vector<16x256xf32> to vector<16x256xbf16>
    %c1_i32_234 = arith.constant 1 : i32
    %371 = tpu.dynamic_rotate %118 by %c1_i32_234 dim 1 : vector<16x256xf32>, i32 -> vector<16x256xf32>
    %c3_235 = arith.constant 3 : index
    %c0_236 = arith.constant 0 : index
    %c0_237 = arith.constant 0 : index
    %372 = vector.load %arg10[%c3_235, %c0_236, %c0_237] : memref<9x1x256xf32, #tpu.memory_space<vmem>>, vector<1x1x256xf32>
    %373 = vector.shape_cast %372 : vector<1x1x256xf32> to vector<1x256xf32>
    %374 = vector.broadcast %373 : vector<1x256xf32> to vector<16x256xf32>
    %375 = arith.mulf %371, %374 : vector<16x256xf32>
    %376 = arith.truncf %375 : vector<16x256xf32> to vector<16x256xbf16>
    %377 = arith.truncf %118 : vector<16x256xf32> to vector<16x256xbf16>
    %c255_i32_238 = arith.constant 255 : i32
    %378 = tpu.dynamic_rotate %118 by %c255_i32_238 dim 1 : vector<16x256xf32>, i32 -> vector<16x256xf32>
    %c5_239 = arith.constant 5 : index
    %c0_240 = arith.constant 0 : index
    %c0_241 = arith.constant 0 : index
    %379 = vector.load %arg10[%c5_239, %c0_240, %c0_241] : memref<9x1x256xf32, #tpu.memory_space<vmem>>, vector<1x1x256xf32>
    %380 = vector.shape_cast %379 : vector<1x1x256xf32> to vector<1x256xf32>
    %381 = vector.broadcast %380 : vector<1x256xf32> to vector<16x256xf32>
    %382 = arith.mulf %378, %381 : vector<16x256xf32>
    %383 = arith.truncf %382 : vector<16x256xf32> to vector<16x256xbf16>
    %c241_i32_242 = arith.constant 241 : i32
    %384 = tpu.dynamic_rotate %118 by %c241_i32_242 dim 1 : vector<16x256xf32>, i32 -> vector<16x256xf32>
    %c6_243 = arith.constant 6 : index
    %c0_244 = arith.constant 0 : index
    %c0_245 = arith.constant 0 : index
    %385 = vector.load %arg10[%c6_243, %c0_244, %c0_245] : memref<9x1x256xf32, #tpu.memory_space<vmem>>, vector<1x1x256xf32>
    %386 = vector.shape_cast %385 : vector<1x1x256xf32> to vector<1x256xf32>
    %387 = vector.broadcast %386 : vector<1x256xf32> to vector<16x256xf32>
    %388 = arith.mulf %384, %387 : vector<16x256xf32>
    %389 = arith.truncf %388 : vector<16x256xf32> to vector<16x256xbf16>
    %c240_i32_246 = arith.constant 240 : i32
    %390 = tpu.dynamic_rotate %118 by %c240_i32_246 dim 1 : vector<16x256xf32>, i32 -> vector<16x256xf32>
    %c7_247 = arith.constant 7 : index
    %c0_248 = arith.constant 0 : index
    %c0_249 = arith.constant 0 : index
    %391 = vector.load %arg10[%c7_247, %c0_248, %c0_249] : memref<9x1x256xf32, #tpu.memory_space<vmem>>, vector<1x1x256xf32>
    %392 = vector.shape_cast %391 : vector<1x1x256xf32> to vector<1x256xf32>
    %393 = vector.broadcast %392 : vector<1x256xf32> to vector<16x256xf32>
    %394 = arith.mulf %390, %393 : vector<16x256xf32>
    %395 = arith.truncf %394 : vector<16x256xf32> to vector<16x256xbf16>
    %c239_i32_250 = arith.constant 239 : i32
    %396 = tpu.dynamic_rotate %118 by %c239_i32_250 dim 1 : vector<16x256xf32>, i32 -> vector<16x256xf32>
    %c8_251 = arith.constant 8 : index
    %c0_252 = arith.constant 0 : index
    %c0_253 = arith.constant 0 : index
    %397 = vector.load %arg10[%c8_251, %c0_252, %c0_253] : memref<9x1x256xf32, #tpu.memory_space<vmem>>, vector<1x1x256xf32>
    %398 = vector.shape_cast %397 : vector<1x1x256xf32> to vector<1x256xf32>
    %399 = vector.broadcast %398 : vector<1x256xf32> to vector<16x256xf32>
    %400 = arith.mulf %396, %399 : vector<16x256xf32>
    %401 = arith.truncf %400 : vector<16x256xf32> to vector<16x256xbf16>
    %402 = tpu.concatenate %358, %364, %370, %376, %377, %383, %389, %395, %401 in 0 : vector<16x256xbf16>, vector<16x256xbf16>, vector<16x256xbf16>, vector<16x256xbf16>, vector<16x256xbf16>, vector<16x256xbf16>, vector<16x256xbf16>, vector<16x256xbf16>, vector<16x256xbf16> -> vector<144x256xbf16>
    %c6_254 = arith.constant 6 : index
    %c0_255 = arith.constant 0 : index
    %c0_256 = arith.constant 0 : index
    %403 = vector.load %arg2[%c6_254, %c0_255, %c0_256] : memref<20x16x144xbf16, #tpu.memory_space<vmem>>, vector<1x16x144xbf16>
    %404 = vector.shape_cast %403 : vector<1x16x144xbf16> to vector<16x144xbf16>
    %cst_257 = arith.constant dense<0.000000e+00> : vector<16x256xf32>
    %405 = tpu.matmul %404, %402, %cst_257 {dimension_numbers = #tpu.dot_dimension_numbers<[1], [0], [0], [1], [0, 0, 1, 1], [], []>} : vector<16x144xbf16>, vector<144x256xbf16>, vector<16x256xf32> -> vector<16x256xf32>
    %c6_258 = arith.constant 6 : index
    %c0_259 = arith.constant 0 : index
    %c0_260 = arith.constant 0 : index
    %406 = vector.load %arg3[%c6_258, %c0_259, %c0_260] : memref<20x16x1xf32, #tpu.memory_space<vmem>>, vector<1x16x1xf32>
    %407 = vector.shape_cast %406 : vector<1x16x1xf32> to vector<16x1xf32>
    %408 = vector.broadcast %407 : vector<16x1xf32> to vector<16x256xf32>
    %409 = arith.addf %405, %408 : vector<16x256xf32>
    %cst_261 = arith.constant 0.000000e+00 : f32
    %410 = vector.broadcast %cst_261 : f32 to vector<16x256xf32>
    %411 = arith.maximumf %409, %410 : vector<16x256xf32>
    %c17_i32_262 = arith.constant 17 : i32
    %412 = tpu.dynamic_rotate %411 by %c17_i32_262 dim 1 : vector<16x256xf32>, i32 -> vector<16x256xf32>
    %c0_263 = arith.constant 0 : index
    %c0_264 = arith.constant 0 : index
    %c0_265 = arith.constant 0 : index
    %413 = vector.load %arg10[%c0_263, %c0_264, %c0_265] : memref<9x1x256xf32, #tpu.memory_space<vmem>>, vector<1x1x256xf32>
    %414 = vector.shape_cast %413 : vector<1x1x256xf32> to vector<1x256xf32>
    %415 = vector.broadcast %414 : vector<1x256xf32> to vector<16x256xf32>
    %416 = arith.mulf %412, %415 : vector<16x256xf32>
    %417 = arith.truncf %416 : vector<16x256xf32> to vector<16x256xbf16>
    %c16_i32_266 = arith.constant 16 : i32
    %418 = tpu.dynamic_rotate %411 by %c16_i32_266 dim 1 : vector<16x256xf32>, i32 -> vector<16x256xf32>
    %c1_267 = arith.constant 1 : index
    %c0_268 = arith.constant 0 : index
    %c0_269 = arith.constant 0 : index
    %419 = vector.load %arg10[%c1_267, %c0_268, %c0_269] : memref<9x1x256xf32, #tpu.memory_space<vmem>>, vector<1x1x256xf32>
    %420 = vector.shape_cast %419 : vector<1x1x256xf32> to vector<1x256xf32>
    %421 = vector.broadcast %420 : vector<1x256xf32> to vector<16x256xf32>
    %422 = arith.mulf %418, %421 : vector<16x256xf32>
    %423 = arith.truncf %422 : vector<16x256xf32> to vector<16x256xbf16>
    %c15_i32_270 = arith.constant 15 : i32
    %424 = tpu.dynamic_rotate %411 by %c15_i32_270 dim 1 : vector<16x256xf32>, i32 -> vector<16x256xf32>
    %c2_271 = arith.constant 2 : index
    %c0_272 = arith.constant 0 : index
    %c0_273 = arith.constant 0 : index
    %425 = vector.load %arg10[%c2_271, %c0_272, %c0_273] : memref<9x1x256xf32, #tpu.memory_space<vmem>>, vector<1x1x256xf32>
    %426 = vector.shape_cast %425 : vector<1x1x256xf32> to vector<1x256xf32>
    %427 = vector.broadcast %426 : vector<1x256xf32> to vector<16x256xf32>
    %428 = arith.mulf %424, %427 : vector<16x256xf32>
    %429 = arith.truncf %428 : vector<16x256xf32> to vector<16x256xbf16>
    %c1_i32_274 = arith.constant 1 : i32
    %430 = tpu.dynamic_rotate %411 by %c1_i32_274 dim 1 : vector<16x256xf32>, i32 -> vector<16x256xf32>
    %c3_275 = arith.constant 3 : index
    %c0_276 = arith.constant 0 : index
    %c0_277 = arith.constant 0 : index
    %431 = vector.load %arg10[%c3_275, %c0_276, %c0_277] : memref<9x1x256xf32, #tpu.memory_space<vmem>>, vector<1x1x256xf32>
    %432 = vector.shape_cast %431 : vector<1x1x256xf32> to vector<1x256xf32>
    %433 = vector.broadcast %432 : vector<1x256xf32> to vector<16x256xf32>
    %434 = arith.mulf %430, %433 : vector<16x256xf32>
    %435 = arith.truncf %434 : vector<16x256xf32> to vector<16x256xbf16>
    %436 = arith.truncf %411 : vector<16x256xf32> to vector<16x256xbf16>
    %c255_i32_278 = arith.constant 255 : i32
    %437 = tpu.dynamic_rotate %411 by %c255_i32_278 dim 1 : vector<16x256xf32>, i32 -> vector<16x256xf32>
    %c5_279 = arith.constant 5 : index
    %c0_280 = arith.constant 0 : index
    %c0_281 = arith.constant 0 : index
    %438 = vector.load %arg10[%c5_279, %c0_280, %c0_281] : memref<9x1x256xf32, #tpu.memory_space<vmem>>, vector<1x1x256xf32>
    %439 = vector.shape_cast %438 : vector<1x1x256xf32> to vector<1x256xf32>
    %440 = vector.broadcast %439 : vector<1x256xf32> to vector<16x256xf32>
    %441 = arith.mulf %437, %440 : vector<16x256xf32>
    %442 = arith.truncf %441 : vector<16x256xf32> to vector<16x256xbf16>
    %c241_i32_282 = arith.constant 241 : i32
    %443 = tpu.dynamic_rotate %411 by %c241_i32_282 dim 1 : vector<16x256xf32>, i32 -> vector<16x256xf32>
    %c6_283 = arith.constant 6 : index
    %c0_284 = arith.constant 0 : index
    %c0_285 = arith.constant 0 : index
    %444 = vector.load %arg10[%c6_283, %c0_284, %c0_285] : memref<9x1x256xf32, #tpu.memory_space<vmem>>, vector<1x1x256xf32>
    %445 = vector.shape_cast %444 : vector<1x1x256xf32> to vector<1x256xf32>
    %446 = vector.broadcast %445 : vector<1x256xf32> to vector<16x256xf32>
    %447 = arith.mulf %443, %446 : vector<16x256xf32>
    %448 = arith.truncf %447 : vector<16x256xf32> to vector<16x256xbf16>
    %c240_i32_286 = arith.constant 240 : i32
    %449 = tpu.dynamic_rotate %411 by %c240_i32_286 dim 1 : vector<16x256xf32>, i32 -> vector<16x256xf32>
    %c7_287 = arith.constant 7 : index
    %c0_288 = arith.constant 0 : index
    %c0_289 = arith.constant 0 : index
    %450 = vector.load %arg10[%c7_287, %c0_288, %c0_289] : memref<9x1x256xf32, #tpu.memory_space<vmem>>, vector<1x1x256xf32>
    %451 = vector.shape_cast %450 : vector<1x1x256xf32> to vector<1x256xf32>
    %452 = vector.broadcast %451 : vector<1x256xf32> to vector<16x256xf32>
    %453 = arith.mulf %449, %452 : vector<16x256xf32>
    %454 = arith.truncf %453 : vector<16x256xf32> to vector<16x256xbf16>
    %c239_i32_290 = arith.constant 239 : i32
    %455 = tpu.dynamic_rotate %411 by %c239_i32_290 dim 1 : vector<16x256xf32>, i32 -> vector<16x256xf32>
    %c8_291 = arith.constant 8 : index
    %c0_292 = arith.constant 0 : index
    %c0_293 = arith.constant 0 : index
    %456 = vector.load %arg10[%c8_291, %c0_292, %c0_293] : memref<9x1x256xf32, #tpu.memory_space<vmem>>, vector<1x1x256xf32>
    %457 = vector.shape_cast %456 : vector<1x1x256xf32> to vector<1x256xf32>
    %458 = vector.broadcast %457 : vector<1x256xf32> to vector<16x256xf32>
    %459 = arith.mulf %455, %458 : vector<16x256xf32>
    %460 = arith.truncf %459 : vector<16x256xf32> to vector<16x256xbf16>
    %461 = tpu.concatenate %417, %423, %429, %435, %436, %442, %448, %454, %460 in 0 : vector<16x256xbf16>, vector<16x256xbf16>, vector<16x256xbf16>, vector<16x256xbf16>, vector<16x256xbf16>, vector<16x256xbf16>, vector<16x256xbf16>, vector<16x256xbf16>, vector<16x256xbf16> -> vector<144x256xbf16>
    %c7_294 = arith.constant 7 : index
    %c0_295 = arith.constant 0 : index
    %c0_296 = arith.constant 0 : index
    %462 = vector.load %arg2[%c7_294, %c0_295, %c0_296] : memref<20x16x144xbf16, #tpu.memory_space<vmem>>, vector<1x16x144xbf16>
    %463 = vector.shape_cast %462 : vector<1x16x144xbf16> to vector<16x144xbf16>
    %cst_297 = arith.constant dense<0.000000e+00> : vector<16x256xf32>
    %464 = tpu.matmul %463, %461, %cst_297 {dimension_numbers = #tpu.dot_dimension_numbers<[1], [0], [0], [1], [0, 0, 1, 1], [], []>} : vector<16x144xbf16>, vector<144x256xbf16>, vector<16x256xf32> -> vector<16x256xf32>
    %c7_298 = arith.constant 7 : index
    %c0_299 = arith.constant 0 : index
    %c0_300 = arith.constant 0 : index
    %465 = vector.load %arg3[%c7_298, %c0_299, %c0_300] : memref<20x16x1xf32, #tpu.memory_space<vmem>>, vector<1x16x1xf32>
    %466 = vector.shape_cast %465 : vector<1x16x1xf32> to vector<16x1xf32>
    %467 = vector.broadcast %466 : vector<16x1xf32> to vector<16x256xf32>
    %468 = arith.addf %464, %467 : vector<16x256xf32>
    %469 = arith.addf %468, %118 : vector<16x256xf32>
    %c17_i32_301 = arith.constant 17 : i32
    %470 = tpu.dynamic_rotate %469 by %c17_i32_301 dim 1 : vector<16x256xf32>, i32 -> vector<16x256xf32>
    %c0_302 = arith.constant 0 : index
    %c0_303 = arith.constant 0 : index
    %c0_304 = arith.constant 0 : index
    %471 = vector.load %arg10[%c0_302, %c0_303, %c0_304] : memref<9x1x256xf32, #tpu.memory_space<vmem>>, vector<1x1x256xf32>
    %472 = vector.shape_cast %471 : vector<1x1x256xf32> to vector<1x256xf32>
    %473 = vector.broadcast %472 : vector<1x256xf32> to vector<16x256xf32>
    %474 = arith.mulf %470, %473 : vector<16x256xf32>
    %475 = arith.truncf %474 : vector<16x256xf32> to vector<16x256xbf16>
    %c16_i32_305 = arith.constant 16 : i32
    %476 = tpu.dynamic_rotate %469 by %c16_i32_305 dim 1 : vector<16x256xf32>, i32 -> vector<16x256xf32>
    %c1_306 = arith.constant 1 : index
    %c0_307 = arith.constant 0 : index
    %c0_308 = arith.constant 0 : index
    %477 = vector.load %arg10[%c1_306, %c0_307, %c0_308] : memref<9x1x256xf32, #tpu.memory_space<vmem>>, vector<1x1x256xf32>
    %478 = vector.shape_cast %477 : vector<1x1x256xf32> to vector<1x256xf32>
    %479 = vector.broadcast %478 : vector<1x256xf32> to vector<16x256xf32>
    %480 = arith.mulf %476, %479 : vector<16x256xf32>
    %481 = arith.truncf %480 : vector<16x256xf32> to vector<16x256xbf16>
    %c15_i32_309 = arith.constant 15 : i32
    %482 = tpu.dynamic_rotate %469 by %c15_i32_309 dim 1 : vector<16x256xf32>, i32 -> vector<16x256xf32>
    %c2_310 = arith.constant 2 : index
    %c0_311 = arith.constant 0 : index
    %c0_312 = arith.constant 0 : index
    %483 = vector.load %arg10[%c2_310, %c0_311, %c0_312] : memref<9x1x256xf32, #tpu.memory_space<vmem>>, vector<1x1x256xf32>
    %484 = vector.shape_cast %483 : vector<1x1x256xf32> to vector<1x256xf32>
    %485 = vector.broadcast %484 : vector<1x256xf32> to vector<16x256xf32>
    %486 = arith.mulf %482, %485 : vector<16x256xf32>
    %487 = arith.truncf %486 : vector<16x256xf32> to vector<16x256xbf16>
    %c1_i32_313 = arith.constant 1 : i32
    %488 = tpu.dynamic_rotate %469 by %c1_i32_313 dim 1 : vector<16x256xf32>, i32 -> vector<16x256xf32>
    %c3_314 = arith.constant 3 : index
    %c0_315 = arith.constant 0 : index
    %c0_316 = arith.constant 0 : index
    %489 = vector.load %arg10[%c3_314, %c0_315, %c0_316] : memref<9x1x256xf32, #tpu.memory_space<vmem>>, vector<1x1x256xf32>
    %490 = vector.shape_cast %489 : vector<1x1x256xf32> to vector<1x256xf32>
    %491 = vector.broadcast %490 : vector<1x256xf32> to vector<16x256xf32>
    %492 = arith.mulf %488, %491 : vector<16x256xf32>
    %493 = arith.truncf %492 : vector<16x256xf32> to vector<16x256xbf16>
    %494 = arith.truncf %469 : vector<16x256xf32> to vector<16x256xbf16>
    %c255_i32_317 = arith.constant 255 : i32
    %495 = tpu.dynamic_rotate %469 by %c255_i32_317 dim 1 : vector<16x256xf32>, i32 -> vector<16x256xf32>
    %c5_318 = arith.constant 5 : index
    %c0_319 = arith.constant 0 : index
    %c0_320 = arith.constant 0 : index
    %496 = vector.load %arg10[%c5_318, %c0_319, %c0_320] : memref<9x1x256xf32, #tpu.memory_space<vmem>>, vector<1x1x256xf32>
    %497 = vector.shape_cast %496 : vector<1x1x256xf32> to vector<1x256xf32>
    %498 = vector.broadcast %497 : vector<1x256xf32> to vector<16x256xf32>
    %499 = arith.mulf %495, %498 : vector<16x256xf32>
    %500 = arith.truncf %499 : vector<16x256xf32> to vector<16x256xbf16>
    %c241_i32_321 = arith.constant 241 : i32
    %501 = tpu.dynamic_rotate %469 by %c241_i32_321 dim 1 : vector<16x256xf32>, i32 -> vector<16x256xf32>
    %c6_322 = arith.constant 6 : index
    %c0_323 = arith.constant 0 : index
    %c0_324 = arith.constant 0 : index
    %502 = vector.load %arg10[%c6_322, %c0_323, %c0_324] : memref<9x1x256xf32, #tpu.memory_space<vmem>>, vector<1x1x256xf32>
    %503 = vector.shape_cast %502 : vector<1x1x256xf32> to vector<1x256xf32>
    %504 = vector.broadcast %503 : vector<1x256xf32> to vector<16x256xf32>
    %505 = arith.mulf %501, %504 : vector<16x256xf32>
    %506 = arith.truncf %505 : vector<16x256xf32> to vector<16x256xbf16>
    %c240_i32_325 = arith.constant 240 : i32
    %507 = tpu.dynamic_rotate %469 by %c240_i32_325 dim 1 : vector<16x256xf32>, i32 -> vector<16x256xf32>
    %c7_326 = arith.constant 7 : index
    %c0_327 = arith.constant 0 : index
    %c0_328 = arith.constant 0 : index
    %508 = vector.load %arg10[%c7_326, %c0_327, %c0_328] : memref<9x1x256xf32, #tpu.memory_space<vmem>>, vector<1x1x256xf32>
    %509 = vector.shape_cast %508 : vector<1x1x256xf32> to vector<1x256xf32>
    %510 = vector.broadcast %509 : vector<1x256xf32> to vector<16x256xf32>
    %511 = arith.mulf %507, %510 : vector<16x256xf32>
    %512 = arith.truncf %511 : vector<16x256xf32> to vector<16x256xbf16>
    %c239_i32_329 = arith.constant 239 : i32
    %513 = tpu.dynamic_rotate %469 by %c239_i32_329 dim 1 : vector<16x256xf32>, i32 -> vector<16x256xf32>
    %c8_330 = arith.constant 8 : index
    %c0_331 = arith.constant 0 : index
    %c0_332 = arith.constant 0 : index
    %514 = vector.load %arg10[%c8_330, %c0_331, %c0_332] : memref<9x1x256xf32, #tpu.memory_space<vmem>>, vector<1x1x256xf32>
    %515 = vector.shape_cast %514 : vector<1x1x256xf32> to vector<1x256xf32>
    %516 = vector.broadcast %515 : vector<1x256xf32> to vector<16x256xf32>
    %517 = arith.mulf %513, %516 : vector<16x256xf32>
    %518 = arith.truncf %517 : vector<16x256xf32> to vector<16x256xbf16>
    %519 = tpu.concatenate %475, %481, %487, %493, %494, %500, %506, %512, %518 in 0 : vector<16x256xbf16>, vector<16x256xbf16>, vector<16x256xbf16>, vector<16x256xbf16>, vector<16x256xbf16>, vector<16x256xbf16>, vector<16x256xbf16>, vector<16x256xbf16>, vector<16x256xbf16> -> vector<144x256xbf16>
    %c8_333 = arith.constant 8 : index
    %c0_334 = arith.constant 0 : index
    %c0_335 = arith.constant 0 : index
    %520 = vector.load %arg2[%c8_333, %c0_334, %c0_335] : memref<20x16x144xbf16, #tpu.memory_space<vmem>>, vector<1x16x144xbf16>
    %521 = vector.shape_cast %520 : vector<1x16x144xbf16> to vector<16x144xbf16>
    %cst_336 = arith.constant dense<0.000000e+00> : vector<16x256xf32>
    %522 = tpu.matmul %521, %519, %cst_336 {dimension_numbers = #tpu.dot_dimension_numbers<[1], [0], [0], [1], [0, 0, 1, 1], [], []>} : vector<16x144xbf16>, vector<144x256xbf16>, vector<16x256xf32> -> vector<16x256xf32>
    %c8_337 = arith.constant 8 : index
    %c0_338 = arith.constant 0 : index
    %c0_339 = arith.constant 0 : index
    %523 = vector.load %arg3[%c8_337, %c0_338, %c0_339] : memref<20x16x1xf32, #tpu.memory_space<vmem>>, vector<1x16x1xf32>
    %524 = vector.shape_cast %523 : vector<1x16x1xf32> to vector<16x1xf32>
    %525 = vector.broadcast %524 : vector<16x1xf32> to vector<16x256xf32>
    %526 = arith.addf %522, %525 : vector<16x256xf32>
    %527 = arith.truncf %526 : vector<16x256xf32> to vector<16x256xbf16>
    %c0_340 = arith.constant 0 : index
    %c0_341 = arith.constant 0 : index
    %528 = vector.load %arg8[%c0_340, %c0_341] : memref<256x64xbf16, #tpu.memory_space<vmem>>, vector<256x64xbf16>
    %cst_342 = arith.constant dense<0.000000e+00> : vector<16x64xf32>
    %529 = tpu.matmul %527, %528, %cst_342 {dimension_numbers = #tpu.dot_dimension_numbers<[1], [0], [0], [1], [0, 0, 1, 1], [], []>} : vector<16x256xbf16>, vector<256x64xbf16>, vector<16x64xf32> -> vector<16x64xf32>
    %cst_343 = arith.constant 0.000000e+00 : f32
    %530 = vector.broadcast %cst_343 : f32 to vector<16x9xf32>
    %531 = vector.extract_strided_slice %529 {offsets = [0, 0], sizes = [16, 55], strides = [1, 1]} : vector<16x64xf32> to vector<16x55xf32>
    %532 = tpu.concatenate %530, %531 in 1 : vector<16x9xf32>, vector<16x55xf32> -> vector<16x64xf32>
    %c0_344 = arith.constant 0 : index
    %c0_345 = arith.constant 0 : index
    %c0_346 = arith.constant 0 : index
    %533 = vector.load %arg11[%c0_344, %c0_345, %c0_346] : memref<9x1x64xf32, #tpu.memory_space<vmem>>, vector<1x1x64xf32>
    %534 = vector.shape_cast %533 : vector<1x1x64xf32> to vector<1x64xf32>
    %535 = vector.broadcast %534 : vector<1x64xf32> to vector<16x64xf32>
    %536 = arith.mulf %532, %535 : vector<16x64xf32>
    %537 = arith.truncf %536 : vector<16x64xf32> to vector<16x64xbf16>
    %cst_347 = arith.constant 0.000000e+00 : f32
    %538 = vector.broadcast %cst_347 : f32 to vector<16x8xf32>
    %539 = vector.extract_strided_slice %529 {offsets = [0, 0], sizes = [16, 56], strides = [1, 1]} : vector<16x64xf32> to vector<16x56xf32>
    %540 = tpu.concatenate %538, %539 in 1 : vector<16x8xf32>, vector<16x56xf32> -> vector<16x64xf32>
    %c1_348 = arith.constant 1 : index
    %c0_349 = arith.constant 0 : index
    %c0_350 = arith.constant 0 : index
    %541 = vector.load %arg11[%c1_348, %c0_349, %c0_350] : memref<9x1x64xf32, #tpu.memory_space<vmem>>, vector<1x1x64xf32>
    %542 = vector.shape_cast %541 : vector<1x1x64xf32> to vector<1x64xf32>
    %543 = vector.broadcast %542 : vector<1x64xf32> to vector<16x64xf32>
    %544 = arith.mulf %540, %543 : vector<16x64xf32>
    %545 = arith.truncf %544 : vector<16x64xf32> to vector<16x64xbf16>
    %cst_351 = arith.constant 0.000000e+00 : f32
    %546 = vector.broadcast %cst_351 : f32 to vector<16x7xf32>
    %547 = vector.extract_strided_slice %529 {offsets = [0, 0], sizes = [16, 57], strides = [1, 1]} : vector<16x64xf32> to vector<16x57xf32>
    %548 = tpu.concatenate %546, %547 in 1 : vector<16x7xf32>, vector<16x57xf32> -> vector<16x64xf32>
    %c2_352 = arith.constant 2 : index
    %c0_353 = arith.constant 0 : index
    %c0_354 = arith.constant 0 : index
    %549 = vector.load %arg11[%c2_352, %c0_353, %c0_354] : memref<9x1x64xf32, #tpu.memory_space<vmem>>, vector<1x1x64xf32>
    %550 = vector.shape_cast %549 : vector<1x1x64xf32> to vector<1x64xf32>
    %551 = vector.broadcast %550 : vector<1x64xf32> to vector<16x64xf32>
    %552 = arith.mulf %548, %551 : vector<16x64xf32>
    %553 = arith.truncf %552 : vector<16x64xf32> to vector<16x64xbf16>
    %cst_355 = arith.constant 0.000000e+00 : f32
    %554 = vector.broadcast %cst_355 : f32 to vector<16x1xf32>
    %555 = vector.extract_strided_slice %529 {offsets = [0, 0], sizes = [16, 63], strides = [1, 1]} : vector<16x64xf32> to vector<16x63xf32>
    %556 = tpu.concatenate %554, %555 in 1 : vector<16x1xf32>, vector<16x63xf32> -> vector<16x64xf32>
    %c3_356 = arith.constant 3 : index
    %c0_357 = arith.constant 0 : index
    %c0_358 = arith.constant 0 : index
    %557 = vector.load %arg11[%c3_356, %c0_357, %c0_358] : memref<9x1x64xf32, #tpu.memory_space<vmem>>, vector<1x1x64xf32>
    %558 = vector.shape_cast %557 : vector<1x1x64xf32> to vector<1x64xf32>
    %559 = vector.broadcast %558 : vector<1x64xf32> to vector<16x64xf32>
    %560 = arith.mulf %556, %559 : vector<16x64xf32>
    %561 = arith.truncf %560 : vector<16x64xf32> to vector<16x64xbf16>
    %562 = arith.truncf %529 : vector<16x64xf32> to vector<16x64xbf16>
    %cst_359 = arith.constant 0.000000e+00 : f32
    %563 = vector.broadcast %cst_359 : f32 to vector<16x1xf32>
    %564 = vector.extract_strided_slice %529 {offsets = [0, 1], sizes = [16, 63], strides = [1, 1]} : vector<16x64xf32> to vector<16x63xf32>
    %565 = tpu.concatenate %564, %563 in 1 : vector<16x63xf32>, vector<16x1xf32> -> vector<16x64xf32>
    %c5_360 = arith.constant 5 : index
    %c0_361 = arith.constant 0 : index
    %c0_362 = arith.constant 0 : index
    %566 = vector.load %arg11[%c5_360, %c0_361, %c0_362] : memref<9x1x64xf32, #tpu.memory_space<vmem>>, vector<1x1x64xf32>
    %567 = vector.shape_cast %566 : vector<1x1x64xf32> to vector<1x64xf32>
    %568 = vector.broadcast %567 : vector<1x64xf32> to vector<16x64xf32>
    %569 = arith.mulf %565, %568 : vector<16x64xf32>
    %570 = arith.truncf %569 : vector<16x64xf32> to vector<16x64xbf16>
    %cst_363 = arith.constant 0.000000e+00 : f32
    %571 = vector.broadcast %cst_363 : f32 to vector<16x7xf32>
    %572 = vector.extract_strided_slice %529 {offsets = [0, 7], sizes = [16, 57], strides = [1, 1]} : vector<16x64xf32> to vector<16x57xf32>
    %573 = tpu.concatenate %572, %571 in 1 : vector<16x57xf32>, vector<16x7xf32> -> vector<16x64xf32>
    %c6_364 = arith.constant 6 : index
    %c0_365 = arith.constant 0 : index
    %c0_366 = arith.constant 0 : index
    %574 = vector.load %arg11[%c6_364, %c0_365, %c0_366] : memref<9x1x64xf32, #tpu.memory_space<vmem>>, vector<1x1x64xf32>
    %575 = vector.shape_cast %574 : vector<1x1x64xf32> to vector<1x64xf32>
    %576 = vector.broadcast %575 : vector<1x64xf32> to vector<16x64xf32>
    %577 = arith.mulf %573, %576 : vector<16x64xf32>
    %578 = arith.truncf %577 : vector<16x64xf32> to vector<16x64xbf16>
    %cst_367 = arith.constant 0.000000e+00 : f32
    %579 = vector.broadcast %cst_367 : f32 to vector<16x8xf32>
    %580 = vector.extract_strided_slice %529 {offsets = [0, 8], sizes = [16, 56], strides = [1, 1]} : vector<16x64xf32> to vector<16x56xf32>
    %581 = tpu.concatenate %580, %579 in 1 : vector<16x56xf32>, vector<16x8xf32> -> vector<16x64xf32>
    %c7_368 = arith.constant 7 : index
    %c0_369 = arith.constant 0 : index
    %c0_370 = arith.constant 0 : index
    %582 = vector.load %arg11[%c7_368, %c0_369, %c0_370] : memref<9x1x64xf32, #tpu.memory_space<vmem>>, vector<1x1x64xf32>
    %583 = vector.shape_cast %582 : vector<1x1x64xf32> to vector<1x64xf32>
    %584 = vector.broadcast %583 : vector<1x64xf32> to vector<16x64xf32>
    %585 = arith.mulf %581, %584 : vector<16x64xf32>
    %586 = arith.truncf %585 : vector<16x64xf32> to vector<16x64xbf16>
    %cst_371 = arith.constant 0.000000e+00 : f32
    %587 = vector.broadcast %cst_371 : f32 to vector<16x9xf32>
    %588 = vector.extract_strided_slice %529 {offsets = [0, 9], sizes = [16, 55], strides = [1, 1]} : vector<16x64xf32> to vector<16x55xf32>
    %589 = tpu.concatenate %588, %587 in 1 : vector<16x55xf32>, vector<16x9xf32> -> vector<16x64xf32>
    %c8_372 = arith.constant 8 : index
    %c0_373 = arith.constant 0 : index
    %c0_374 = arith.constant 0 : index
    %590 = vector.load %arg11[%c8_372, %c0_373, %c0_374] : memref<9x1x64xf32, #tpu.memory_space<vmem>>, vector<1x1x64xf32>
    %591 = vector.shape_cast %590 : vector<1x1x64xf32> to vector<1x64xf32>
    %592 = vector.broadcast %591 : vector<1x64xf32> to vector<16x64xf32>
    %593 = arith.mulf %589, %592 : vector<16x64xf32>
    %594 = arith.truncf %593 : vector<16x64xf32> to vector<16x64xbf16>
    %595 = tpu.concatenate %537, %545, %553, %561, %562, %570, %578, %586, %594 in 0 : vector<16x64xbf16>, vector<16x64xbf16>, vector<16x64xbf16>, vector<16x64xbf16>, vector<16x64xbf16>, vector<16x64xbf16>, vector<16x64xbf16>, vector<16x64xbf16>, vector<16x64xbf16> -> vector<144x64xbf16>
    %c9 = arith.constant 9 : index
    %c0_375 = arith.constant 0 : index
    %c0_376 = arith.constant 0 : index
    %596 = vector.load %arg2[%c9, %c0_375, %c0_376] : memref<20x16x144xbf16, #tpu.memory_space<vmem>>, vector<1x16x144xbf16>
    %597 = vector.shape_cast %596 : vector<1x16x144xbf16> to vector<16x144xbf16>
    %cst_377 = arith.constant dense<0.000000e+00> : vector<16x64xf32>
    %598 = tpu.matmul %597, %595, %cst_377 {dimension_numbers = #tpu.dot_dimension_numbers<[1], [0], [0], [1], [0, 0, 1, 1], [], []>} : vector<16x144xbf16>, vector<144x64xbf16>, vector<16x64xf32> -> vector<16x64xf32>
    %c9_378 = arith.constant 9 : index
    %c0_379 = arith.constant 0 : index
    %c0_380 = arith.constant 0 : index
    %599 = vector.load %arg3[%c9_378, %c0_379, %c0_380] : memref<20x16x1xf32, #tpu.memory_space<vmem>>, vector<1x16x1xf32>
    %600 = vector.shape_cast %599 : vector<1x16x1xf32> to vector<16x1xf32>
    %601 = vector.broadcast %600 : vector<16x1xf32> to vector<16x64xf32>
    %602 = arith.addf %598, %601 : vector<16x64xf32>
    %cst_381 = arith.constant 0.000000e+00 : f32
    %603 = vector.broadcast %cst_381 : f32 to vector<16x64xf32>
    %604 = arith.maximumf %602, %603 : vector<16x64xf32>
    %cst_382 = arith.constant 0.000000e+00 : f32
    %605 = vector.broadcast %cst_382 : f32 to vector<16x9xf32>
    %606 = vector.extract_strided_slice %604 {offsets = [0, 0], sizes = [16, 55], strides = [1, 1]} : vector<16x64xf32> to vector<16x55xf32>
    %607 = tpu.concatenate %605, %606 in 1 : vector<16x9xf32>, vector<16x55xf32> -> vector<16x64xf32>
    %c0_383 = arith.constant 0 : index
    %c0_384 = arith.constant 0 : index
    %c0_385 = arith.constant 0 : index
    %608 = vector.load %arg11[%c0_383, %c0_384, %c0_385] : memref<9x1x64xf32, #tpu.memory_space<vmem>>, vector<1x1x64xf32>
    %609 = vector.shape_cast %608 : vector<1x1x64xf32> to vector<1x64xf32>
    %610 = vector.broadcast %609 : vector<1x64xf32> to vector<16x64xf32>
    %611 = arith.mulf %607, %610 : vector<16x64xf32>
    %612 = arith.truncf %611 : vector<16x64xf32> to vector<16x64xbf16>
    %cst_386 = arith.constant 0.000000e+00 : f32
    %613 = vector.broadcast %cst_386 : f32 to vector<16x8xf32>
    %614 = vector.extract_strided_slice %604 {offsets = [0, 0], sizes = [16, 56], strides = [1, 1]} : vector<16x64xf32> to vector<16x56xf32>
    %615 = tpu.concatenate %613, %614 in 1 : vector<16x8xf32>, vector<16x56xf32> -> vector<16x64xf32>
    %c1_387 = arith.constant 1 : index
    %c0_388 = arith.constant 0 : index
    %c0_389 = arith.constant 0 : index
    %616 = vector.load %arg11[%c1_387, %c0_388, %c0_389] : memref<9x1x64xf32, #tpu.memory_space<vmem>>, vector<1x1x64xf32>
    %617 = vector.shape_cast %616 : vector<1x1x64xf32> to vector<1x64xf32>
    %618 = vector.broadcast %617 : vector<1x64xf32> to vector<16x64xf32>
    %619 = arith.mulf %615, %618 : vector<16x64xf32>
    %620 = arith.truncf %619 : vector<16x64xf32> to vector<16x64xbf16>
    %cst_390 = arith.constant 0.000000e+00 : f32
    %621 = vector.broadcast %cst_390 : f32 to vector<16x7xf32>
    %622 = vector.extract_strided_slice %604 {offsets = [0, 0], sizes = [16, 57], strides = [1, 1]} : vector<16x64xf32> to vector<16x57xf32>
    %623 = tpu.concatenate %621, %622 in 1 : vector<16x7xf32>, vector<16x57xf32> -> vector<16x64xf32>
    %c2_391 = arith.constant 2 : index
    %c0_392 = arith.constant 0 : index
    %c0_393 = arith.constant 0 : index
    %624 = vector.load %arg11[%c2_391, %c0_392, %c0_393] : memref<9x1x64xf32, #tpu.memory_space<vmem>>, vector<1x1x64xf32>
    %625 = vector.shape_cast %624 : vector<1x1x64xf32> to vector<1x64xf32>
    %626 = vector.broadcast %625 : vector<1x64xf32> to vector<16x64xf32>
    %627 = arith.mulf %623, %626 : vector<16x64xf32>
    %628 = arith.truncf %627 : vector<16x64xf32> to vector<16x64xbf16>
    %cst_394 = arith.constant 0.000000e+00 : f32
    %629 = vector.broadcast %cst_394 : f32 to vector<16x1xf32>
    %630 = vector.extract_strided_slice %604 {offsets = [0, 0], sizes = [16, 63], strides = [1, 1]} : vector<16x64xf32> to vector<16x63xf32>
    %631 = tpu.concatenate %629, %630 in 1 : vector<16x1xf32>, vector<16x63xf32> -> vector<16x64xf32>
    %c3_395 = arith.constant 3 : index
    %c0_396 = arith.constant 0 : index
    %c0_397 = arith.constant 0 : index
    %632 = vector.load %arg11[%c3_395, %c0_396, %c0_397] : memref<9x1x64xf32, #tpu.memory_space<vmem>>, vector<1x1x64xf32>
    %633 = vector.shape_cast %632 : vector<1x1x64xf32> to vector<1x64xf32>
    %634 = vector.broadcast %633 : vector<1x64xf32> to vector<16x64xf32>
    %635 = arith.mulf %631, %634 : vector<16x64xf32>
    %636 = arith.truncf %635 : vector<16x64xf32> to vector<16x64xbf16>
    %637 = arith.truncf %604 : vector<16x64xf32> to vector<16x64xbf16>
    %cst_398 = arith.constant 0.000000e+00 : f32
    %638 = vector.broadcast %cst_398 : f32 to vector<16x1xf32>
    %639 = vector.extract_strided_slice %604 {offsets = [0, 1], sizes = [16, 63], strides = [1, 1]} : vector<16x64xf32> to vector<16x63xf32>
    %640 = tpu.concatenate %639, %638 in 1 : vector<16x63xf32>, vector<16x1xf32> -> vector<16x64xf32>
    %c5_399 = arith.constant 5 : index
    %c0_400 = arith.constant 0 : index
    %c0_401 = arith.constant 0 : index
    %641 = vector.load %arg11[%c5_399, %c0_400, %c0_401] : memref<9x1x64xf32, #tpu.memory_space<vmem>>, vector<1x1x64xf32>
    %642 = vector.shape_cast %641 : vector<1x1x64xf32> to vector<1x64xf32>
    %643 = vector.broadcast %642 : vector<1x64xf32> to vector<16x64xf32>
    %644 = arith.mulf %640, %643 : vector<16x64xf32>
    %645 = arith.truncf %644 : vector<16x64xf32> to vector<16x64xbf16>
    %cst_402 = arith.constant 0.000000e+00 : f32
    %646 = vector.broadcast %cst_402 : f32 to vector<16x7xf32>
    %647 = vector.extract_strided_slice %604 {offsets = [0, 7], sizes = [16, 57], strides = [1, 1]} : vector<16x64xf32> to vector<16x57xf32>
    %648 = tpu.concatenate %647, %646 in 1 : vector<16x57xf32>, vector<16x7xf32> -> vector<16x64xf32>
    %c6_403 = arith.constant 6 : index
    %c0_404 = arith.constant 0 : index
    %c0_405 = arith.constant 0 : index
    %649 = vector.load %arg11[%c6_403, %c0_404, %c0_405] : memref<9x1x64xf32, #tpu.memory_space<vmem>>, vector<1x1x64xf32>
    %650 = vector.shape_cast %649 : vector<1x1x64xf32> to vector<1x64xf32>
    %651 = vector.broadcast %650 : vector<1x64xf32> to vector<16x64xf32>
    %652 = arith.mulf %648, %651 : vector<16x64xf32>
    %653 = arith.truncf %652 : vector<16x64xf32> to vector<16x64xbf16>
    %cst_406 = arith.constant 0.000000e+00 : f32
    %654 = vector.broadcast %cst_406 : f32 to vector<16x8xf32>
    %655 = vector.extract_strided_slice %604 {offsets = [0, 8], sizes = [16, 56], strides = [1, 1]} : vector<16x64xf32> to vector<16x56xf32>
    %656 = tpu.concatenate %655, %654 in 1 : vector<16x56xf32>, vector<16x8xf32> -> vector<16x64xf32>
    %c7_407 = arith.constant 7 : index
    %c0_408 = arith.constant 0 : index
    %c0_409 = arith.constant 0 : index
    %657 = vector.load %arg11[%c7_407, %c0_408, %c0_409] : memref<9x1x64xf32, #tpu.memory_space<vmem>>, vector<1x1x64xf32>
    %658 = vector.shape_cast %657 : vector<1x1x64xf32> to vector<1x64xf32>
    %659 = vector.broadcast %658 : vector<1x64xf32> to vector<16x64xf32>
    %660 = arith.mulf %656, %659 : vector<16x64xf32>
    %661 = arith.truncf %660 : vector<16x64xf32> to vector<16x64xbf16>
    %cst_410 = arith.constant 0.000000e+00 : f32
    %662 = vector.broadcast %cst_410 : f32 to vector<16x9xf32>
    %663 = vector.extract_strided_slice %604 {offsets = [0, 9], sizes = [16, 55], strides = [1, 1]} : vector<16x64xf32> to vector<16x55xf32>
    %664 = tpu.concatenate %663, %662 in 1 : vector<16x55xf32>, vector<16x9xf32> -> vector<16x64xf32>
    %c8_411 = arith.constant 8 : index
    %c0_412 = arith.constant 0 : index
    %c0_413 = arith.constant 0 : index
    %665 = vector.load %arg11[%c8_411, %c0_412, %c0_413] : memref<9x1x64xf32, #tpu.memory_space<vmem>>, vector<1x1x64xf32>
    %666 = vector.shape_cast %665 : vector<1x1x64xf32> to vector<1x64xf32>
    %667 = vector.broadcast %666 : vector<1x64xf32> to vector<16x64xf32>
    %668 = arith.mulf %664, %667 : vector<16x64xf32>
    %669 = arith.truncf %668 : vector<16x64xf32> to vector<16x64xbf16>
    %670 = tpu.concatenate %612, %620, %628, %636, %637, %645, %653, %661, %669 in 0 : vector<16x64xbf16>, vector<16x64xbf16>, vector<16x64xbf16>, vector<16x64xbf16>, vector<16x64xbf16>, vector<16x64xbf16>, vector<16x64xbf16>, vector<16x64xbf16>, vector<16x64xbf16> -> vector<144x64xbf16>
    %c10 = arith.constant 10 : index
    %c0_414 = arith.constant 0 : index
    %c0_415 = arith.constant 0 : index
    %671 = vector.load %arg2[%c10, %c0_414, %c0_415] : memref<20x16x144xbf16, #tpu.memory_space<vmem>>, vector<1x16x144xbf16>
    %672 = vector.shape_cast %671 : vector<1x16x144xbf16> to vector<16x144xbf16>
    %cst_416 = arith.constant dense<0.000000e+00> : vector<16x64xf32>
    %673 = tpu.matmul %672, %670, %cst_416 {dimension_numbers = #tpu.dot_dimension_numbers<[1], [0], [0], [1], [0, 0, 1, 1], [], []>} : vector<16x144xbf16>, vector<144x64xbf16>, vector<16x64xf32> -> vector<16x64xf32>
    %c10_417 = arith.constant 10 : index
    %c0_418 = arith.constant 0 : index
    %c0_419 = arith.constant 0 : index
    %674 = vector.load %arg3[%c10_417, %c0_418, %c0_419] : memref<20x16x1xf32, #tpu.memory_space<vmem>>, vector<1x16x1xf32>
    %675 = vector.shape_cast %674 : vector<1x16x1xf32> to vector<16x1xf32>
    %676 = vector.broadcast %675 : vector<16x1xf32> to vector<16x64xf32>
    %677 = arith.addf %673, %676 : vector<16x64xf32>
    %678 = arith.addf %677, %529 : vector<16x64xf32>
    %cst_420 = arith.constant 0.000000e+00 : f32
    %679 = vector.broadcast %cst_420 : f32 to vector<16x9xf32>
    %680 = vector.extract_strided_slice %678 {offsets = [0, 0], sizes = [16, 55], strides = [1, 1]} : vector<16x64xf32> to vector<16x55xf32>
    %681 = tpu.concatenate %679, %680 in 1 : vector<16x9xf32>, vector<16x55xf32> -> vector<16x64xf32>
    %c0_421 = arith.constant 0 : index
    %c0_422 = arith.constant 0 : index
    %c0_423 = arith.constant 0 : index
    %682 = vector.load %arg11[%c0_421, %c0_422, %c0_423] : memref<9x1x64xf32, #tpu.memory_space<vmem>>, vector<1x1x64xf32>
    %683 = vector.shape_cast %682 : vector<1x1x64xf32> to vector<1x64xf32>
    %684 = vector.broadcast %683 : vector<1x64xf32> to vector<16x64xf32>
    %685 = arith.mulf %681, %684 : vector<16x64xf32>
    %686 = arith.truncf %685 : vector<16x64xf32> to vector<16x64xbf16>
    %cst_424 = arith.constant 0.000000e+00 : f32
    %687 = vector.broadcast %cst_424 : f32 to vector<16x8xf32>
    %688 = vector.extract_strided_slice %678 {offsets = [0, 0], sizes = [16, 56], strides = [1, 1]} : vector<16x64xf32> to vector<16x56xf32>
    %689 = tpu.concatenate %687, %688 in 1 : vector<16x8xf32>, vector<16x56xf32> -> vector<16x64xf32>
    %c1_425 = arith.constant 1 : index
    %c0_426 = arith.constant 0 : index
    %c0_427 = arith.constant 0 : index
    %690 = vector.load %arg11[%c1_425, %c0_426, %c0_427] : memref<9x1x64xf32, #tpu.memory_space<vmem>>, vector<1x1x64xf32>
    %691 = vector.shape_cast %690 : vector<1x1x64xf32> to vector<1x64xf32>
    %692 = vector.broadcast %691 : vector<1x64xf32> to vector<16x64xf32>
    %693 = arith.mulf %689, %692 : vector<16x64xf32>
    %694 = arith.truncf %693 : vector<16x64xf32> to vector<16x64xbf16>
    %cst_428 = arith.constant 0.000000e+00 : f32
    %695 = vector.broadcast %cst_428 : f32 to vector<16x7xf32>
    %696 = vector.extract_strided_slice %678 {offsets = [0, 0], sizes = [16, 57], strides = [1, 1]} : vector<16x64xf32> to vector<16x57xf32>
    %697 = tpu.concatenate %695, %696 in 1 : vector<16x7xf32>, vector<16x57xf32> -> vector<16x64xf32>
    %c2_429 = arith.constant 2 : index
    %c0_430 = arith.constant 0 : index
    %c0_431 = arith.constant 0 : index
    %698 = vector.load %arg11[%c2_429, %c0_430, %c0_431] : memref<9x1x64xf32, #tpu.memory_space<vmem>>, vector<1x1x64xf32>
    %699 = vector.shape_cast %698 : vector<1x1x64xf32> to vector<1x64xf32>
    %700 = vector.broadcast %699 : vector<1x64xf32> to vector<16x64xf32>
    %701 = arith.mulf %697, %700 : vector<16x64xf32>
    %702 = arith.truncf %701 : vector<16x64xf32> to vector<16x64xbf16>
    %cst_432 = arith.constant 0.000000e+00 : f32
    %703 = vector.broadcast %cst_432 : f32 to vector<16x1xf32>
    %704 = vector.extract_strided_slice %678 {offsets = [0, 0], sizes = [16, 63], strides = [1, 1]} : vector<16x64xf32> to vector<16x63xf32>
    %705 = tpu.concatenate %703, %704 in 1 : vector<16x1xf32>, vector<16x63xf32> -> vector<16x64xf32>
    %c3_433 = arith.constant 3 : index
    %c0_434 = arith.constant 0 : index
    %c0_435 = arith.constant 0 : index
    %706 = vector.load %arg11[%c3_433, %c0_434, %c0_435] : memref<9x1x64xf32, #tpu.memory_space<vmem>>, vector<1x1x64xf32>
    %707 = vector.shape_cast %706 : vector<1x1x64xf32> to vector<1x64xf32>
    %708 = vector.broadcast %707 : vector<1x64xf32> to vector<16x64xf32>
    %709 = arith.mulf %705, %708 : vector<16x64xf32>
    %710 = arith.truncf %709 : vector<16x64xf32> to vector<16x64xbf16>
    %711 = arith.truncf %678 : vector<16x64xf32> to vector<16x64xbf16>
    %cst_436 = arith.constant 0.000000e+00 : f32
    %712 = vector.broadcast %cst_436 : f32 to vector<16x1xf32>
    %713 = vector.extract_strided_slice %678 {offsets = [0, 1], sizes = [16, 63], strides = [1, 1]} : vector<16x64xf32> to vector<16x63xf32>
    %714 = tpu.concatenate %713, %712 in 1 : vector<16x63xf32>, vector<16x1xf32> -> vector<16x64xf32>
    %c5_437 = arith.constant 5 : index
    %c0_438 = arith.constant 0 : index
    %c0_439 = arith.constant 0 : index
    %715 = vector.load %arg11[%c5_437, %c0_438, %c0_439] : memref<9x1x64xf32, #tpu.memory_space<vmem>>, vector<1x1x64xf32>
    %716 = vector.shape_cast %715 : vector<1x1x64xf32> to vector<1x64xf32>
    %717 = vector.broadcast %716 : vector<1x64xf32> to vector<16x64xf32>
    %718 = arith.mulf %714, %717 : vector<16x64xf32>
    %719 = arith.truncf %718 : vector<16x64xf32> to vector<16x64xbf16>
    %cst_440 = arith.constant 0.000000e+00 : f32
    %720 = vector.broadcast %cst_440 : f32 to vector<16x7xf32>
    %721 = vector.extract_strided_slice %678 {offsets = [0, 7], sizes = [16, 57], strides = [1, 1]} : vector<16x64xf32> to vector<16x57xf32>
    %722 = tpu.concatenate %721, %720 in 1 : vector<16x57xf32>, vector<16x7xf32> -> vector<16x64xf32>
    %c6_441 = arith.constant 6 : index
    %c0_442 = arith.constant 0 : index
    %c0_443 = arith.constant 0 : index
    %723 = vector.load %arg11[%c6_441, %c0_442, %c0_443] : memref<9x1x64xf32, #tpu.memory_space<vmem>>, vector<1x1x64xf32>
    %724 = vector.shape_cast %723 : vector<1x1x64xf32> to vector<1x64xf32>
    %725 = vector.broadcast %724 : vector<1x64xf32> to vector<16x64xf32>
    %726 = arith.mulf %722, %725 : vector<16x64xf32>
    %727 = arith.truncf %726 : vector<16x64xf32> to vector<16x64xbf16>
    %cst_444 = arith.constant 0.000000e+00 : f32
    %728 = vector.broadcast %cst_444 : f32 to vector<16x8xf32>
    %729 = vector.extract_strided_slice %678 {offsets = [0, 8], sizes = [16, 56], strides = [1, 1]} : vector<16x64xf32> to vector<16x56xf32>
    %730 = tpu.concatenate %729, %728 in 1 : vector<16x56xf32>, vector<16x8xf32> -> vector<16x64xf32>
    %c7_445 = arith.constant 7 : index
    %c0_446 = arith.constant 0 : index
    %c0_447 = arith.constant 0 : index
    %731 = vector.load %arg11[%c7_445, %c0_446, %c0_447] : memref<9x1x64xf32, #tpu.memory_space<vmem>>, vector<1x1x64xf32>
    %732 = vector.shape_cast %731 : vector<1x1x64xf32> to vector<1x64xf32>
    %733 = vector.broadcast %732 : vector<1x64xf32> to vector<16x64xf32>
    %734 = arith.mulf %730, %733 : vector<16x64xf32>
    %735 = arith.truncf %734 : vector<16x64xf32> to vector<16x64xbf16>
    %cst_448 = arith.constant 0.000000e+00 : f32
    %736 = vector.broadcast %cst_448 : f32 to vector<16x9xf32>
    %737 = vector.extract_strided_slice %678 {offsets = [0, 9], sizes = [16, 55], strides = [1, 1]} : vector<16x64xf32> to vector<16x55xf32>
    %738 = tpu.concatenate %737, %736 in 1 : vector<16x55xf32>, vector<16x9xf32> -> vector<16x64xf32>
    %c8_449 = arith.constant 8 : index
    %c0_450 = arith.constant 0 : index
    %c0_451 = arith.constant 0 : index
    %739 = vector.load %arg11[%c8_449, %c0_450, %c0_451] : memref<9x1x64xf32, #tpu.memory_space<vmem>>, vector<1x1x64xf32>
    %740 = vector.shape_cast %739 : vector<1x1x64xf32> to vector<1x64xf32>
    %741 = vector.broadcast %740 : vector<1x64xf32> to vector<16x64xf32>
    %742 = arith.mulf %738, %741 : vector<16x64xf32>
    %743 = arith.truncf %742 : vector<16x64xf32> to vector<16x64xbf16>
    %744 = tpu.concatenate %686, %694, %702, %710, %711, %719, %727, %735, %743 in 0 : vector<16x64xbf16>, vector<16x64xbf16>, vector<16x64xbf16>, vector<16x64xbf16>, vector<16x64xbf16>, vector<16x64xbf16>, vector<16x64xbf16>, vector<16x64xbf16>, vector<16x64xbf16> -> vector<144x64xbf16>
    %c11 = arith.constant 11 : index
    %c0_452 = arith.constant 0 : index
    %c0_453 = arith.constant 0 : index
    %745 = vector.load %arg2[%c11, %c0_452, %c0_453] : memref<20x16x144xbf16, #tpu.memory_space<vmem>>, vector<1x16x144xbf16>
    %746 = vector.shape_cast %745 : vector<1x16x144xbf16> to vector<16x144xbf16>
    %cst_454 = arith.constant dense<0.000000e+00> : vector<16x64xf32>
    %747 = tpu.matmul %746, %744, %cst_454 {dimension_numbers = #tpu.dot_dimension_numbers<[1], [0], [0], [1], [0, 0, 1, 1], [], []>} : vector<16x144xbf16>, vector<144x64xbf16>, vector<16x64xf32> -> vector<16x64xf32>
    %c11_455 = arith.constant 11 : index
    %c0_456 = arith.constant 0 : index
    %c0_457 = arith.constant 0 : index
    %748 = vector.load %arg3[%c11_455, %c0_456, %c0_457] : memref<20x16x1xf32, #tpu.memory_space<vmem>>, vector<1x16x1xf32>
    %749 = vector.shape_cast %748 : vector<1x16x1xf32> to vector<16x1xf32>
    %750 = vector.broadcast %749 : vector<16x1xf32> to vector<16x64xf32>
    %751 = arith.addf %747, %750 : vector<16x64xf32>
    %cst_458 = arith.constant 0.000000e+00 : f32
    %752 = vector.broadcast %cst_458 : f32 to vector<16x64xf32>
    %753 = arith.maximumf %751, %752 : vector<16x64xf32>
    %cst_459 = arith.constant 0.000000e+00 : f32
    %754 = vector.broadcast %cst_459 : f32 to vector<16x9xf32>
    %755 = vector.extract_strided_slice %753 {offsets = [0, 0], sizes = [16, 55], strides = [1, 1]} : vector<16x64xf32> to vector<16x55xf32>
    %756 = tpu.concatenate %754, %755 in 1 : vector<16x9xf32>, vector<16x55xf32> -> vector<16x64xf32>
    %c0_460 = arith.constant 0 : index
    %c0_461 = arith.constant 0 : index
    %c0_462 = arith.constant 0 : index
    %757 = vector.load %arg11[%c0_460, %c0_461, %c0_462] : memref<9x1x64xf32, #tpu.memory_space<vmem>>, vector<1x1x64xf32>
    %758 = vector.shape_cast %757 : vector<1x1x64xf32> to vector<1x64xf32>
    %759 = vector.broadcast %758 : vector<1x64xf32> to vector<16x64xf32>
    %760 = arith.mulf %756, %759 : vector<16x64xf32>
    %761 = arith.truncf %760 : vector<16x64xf32> to vector<16x64xbf16>
    %cst_463 = arith.constant 0.000000e+00 : f32
    %762 = vector.broadcast %cst_463 : f32 to vector<16x8xf32>
    %763 = vector.extract_strided_slice %753 {offsets = [0, 0], sizes = [16, 56], strides = [1, 1]} : vector<16x64xf32> to vector<16x56xf32>
    %764 = tpu.concatenate %762, %763 in 1 : vector<16x8xf32>, vector<16x56xf32> -> vector<16x64xf32>
    %c1_464 = arith.constant 1 : index
    %c0_465 = arith.constant 0 : index
    %c0_466 = arith.constant 0 : index
    %765 = vector.load %arg11[%c1_464, %c0_465, %c0_466] : memref<9x1x64xf32, #tpu.memory_space<vmem>>, vector<1x1x64xf32>
    %766 = vector.shape_cast %765 : vector<1x1x64xf32> to vector<1x64xf32>
    %767 = vector.broadcast %766 : vector<1x64xf32> to vector<16x64xf32>
    %768 = arith.mulf %764, %767 : vector<16x64xf32>
    %769 = arith.truncf %768 : vector<16x64xf32> to vector<16x64xbf16>
    %cst_467 = arith.constant 0.000000e+00 : f32
    %770 = vector.broadcast %cst_467 : f32 to vector<16x7xf32>
    %771 = vector.extract_strided_slice %753 {offsets = [0, 0], sizes = [16, 57], strides = [1, 1]} : vector<16x64xf32> to vector<16x57xf32>
    %772 = tpu.concatenate %770, %771 in 1 : vector<16x7xf32>, vector<16x57xf32> -> vector<16x64xf32>
    %c2_468 = arith.constant 2 : index
    %c0_469 = arith.constant 0 : index
    %c0_470 = arith.constant 0 : index
    %773 = vector.load %arg11[%c2_468, %c0_469, %c0_470] : memref<9x1x64xf32, #tpu.memory_space<vmem>>, vector<1x1x64xf32>
    %774 = vector.shape_cast %773 : vector<1x1x64xf32> to vector<1x64xf32>
    %775 = vector.broadcast %774 : vector<1x64xf32> to vector<16x64xf32>
    %776 = arith.mulf %772, %775 : vector<16x64xf32>
    %777 = arith.truncf %776 : vector<16x64xf32> to vector<16x64xbf16>
    %cst_471 = arith.constant 0.000000e+00 : f32
    %778 = vector.broadcast %cst_471 : f32 to vector<16x1xf32>
    %779 = vector.extract_strided_slice %753 {offsets = [0, 0], sizes = [16, 63], strides = [1, 1]} : vector<16x64xf32> to vector<16x63xf32>
    %780 = tpu.concatenate %778, %779 in 1 : vector<16x1xf32>, vector<16x63xf32> -> vector<16x64xf32>
    %c3_472 = arith.constant 3 : index
    %c0_473 = arith.constant 0 : index
    %c0_474 = arith.constant 0 : index
    %781 = vector.load %arg11[%c3_472, %c0_473, %c0_474] : memref<9x1x64xf32, #tpu.memory_space<vmem>>, vector<1x1x64xf32>
    %782 = vector.shape_cast %781 : vector<1x1x64xf32> to vector<1x64xf32>
    %783 = vector.broadcast %782 : vector<1x64xf32> to vector<16x64xf32>
    %784 = arith.mulf %780, %783 : vector<16x64xf32>
    %785 = arith.truncf %784 : vector<16x64xf32> to vector<16x64xbf16>
    %786 = arith.truncf %753 : vector<16x64xf32> to vector<16x64xbf16>
    %cst_475 = arith.constant 0.000000e+00 : f32
    %787 = vector.broadcast %cst_475 : f32 to vector<16x1xf32>
    %788 = vector.extract_strided_slice %753 {offsets = [0, 1], sizes = [16, 63], strides = [1, 1]} : vector<16x64xf32> to vector<16x63xf32>
    %789 = tpu.concatenate %788, %787 in 1 : vector<16x63xf32>, vector<16x1xf32> -> vector<16x64xf32>
    %c5_476 = arith.constant 5 : index
    %c0_477 = arith.constant 0 : index
    %c0_478 = arith.constant 0 : index
    %790 = vector.load %arg11[%c5_476, %c0_477, %c0_478] : memref<9x1x64xf32, #tpu.memory_space<vmem>>, vector<1x1x64xf32>
    %791 = vector.shape_cast %790 : vector<1x1x64xf32> to vector<1x64xf32>
    %792 = vector.broadcast %791 : vector<1x64xf32> to vector<16x64xf32>
    %793 = arith.mulf %789, %792 : vector<16x64xf32>
    %794 = arith.truncf %793 : vector<16x64xf32> to vector<16x64xbf16>
    %cst_479 = arith.constant 0.000000e+00 : f32
    %795 = vector.broadcast %cst_479 : f32 to vector<16x7xf32>
    %796 = vector.extract_strided_slice %753 {offsets = [0, 7], sizes = [16, 57], strides = [1, 1]} : vector<16x64xf32> to vector<16x57xf32>
    %797 = tpu.concatenate %796, %795 in 1 : vector<16x57xf32>, vector<16x7xf32> -> vector<16x64xf32>
    %c6_480 = arith.constant 6 : index
    %c0_481 = arith.constant 0 : index
    %c0_482 = arith.constant 0 : index
    %798 = vector.load %arg11[%c6_480, %c0_481, %c0_482] : memref<9x1x64xf32, #tpu.memory_space<vmem>>, vector<1x1x64xf32>
    %799 = vector.shape_cast %798 : vector<1x1x64xf32> to vector<1x64xf32>
    %800 = vector.broadcast %799 : vector<1x64xf32> to vector<16x64xf32>
    %801 = arith.mulf %797, %800 : vector<16x64xf32>
    %802 = arith.truncf %801 : vector<16x64xf32> to vector<16x64xbf16>
    %cst_483 = arith.constant 0.000000e+00 : f32
    %803 = vector.broadcast %cst_483 : f32 to vector<16x8xf32>
    %804 = vector.extract_strided_slice %753 {offsets = [0, 8], sizes = [16, 56], strides = [1, 1]} : vector<16x64xf32> to vector<16x56xf32>
    %805 = tpu.concatenate %804, %803 in 1 : vector<16x56xf32>, vector<16x8xf32> -> vector<16x64xf32>
    %c7_484 = arith.constant 7 : index
    %c0_485 = arith.constant 0 : index
    %c0_486 = arith.constant 0 : index
    %806 = vector.load %arg11[%c7_484, %c0_485, %c0_486] : memref<9x1x64xf32, #tpu.memory_space<vmem>>, vector<1x1x64xf32>
    %807 = vector.shape_cast %806 : vector<1x1x64xf32> to vector<1x64xf32>
    %808 = vector.broadcast %807 : vector<1x64xf32> to vector<16x64xf32>
    %809 = arith.mulf %805, %808 : vector<16x64xf32>
    %810 = arith.truncf %809 : vector<16x64xf32> to vector<16x64xbf16>
    %cst_487 = arith.constant 0.000000e+00 : f32
    %811 = vector.broadcast %cst_487 : f32 to vector<16x9xf32>
    %812 = vector.extract_strided_slice %753 {offsets = [0, 9], sizes = [16, 55], strides = [1, 1]} : vector<16x64xf32> to vector<16x55xf32>
    %813 = tpu.concatenate %812, %811 in 1 : vector<16x55xf32>, vector<16x9xf32> -> vector<16x64xf32>
    %c8_488 = arith.constant 8 : index
    %c0_489 = arith.constant 0 : index
    %c0_490 = arith.constant 0 : index
    %814 = vector.load %arg11[%c8_488, %c0_489, %c0_490] : memref<9x1x64xf32, #tpu.memory_space<vmem>>, vector<1x1x64xf32>
    %815 = vector.shape_cast %814 : vector<1x1x64xf32> to vector<1x64xf32>
    %816 = vector.broadcast %815 : vector<1x64xf32> to vector<16x64xf32>
    %817 = arith.mulf %813, %816 : vector<16x64xf32>
    %818 = arith.truncf %817 : vector<16x64xf32> to vector<16x64xbf16>
    %819 = tpu.concatenate %761, %769, %777, %785, %786, %794, %802, %810, %818 in 0 : vector<16x64xbf16>, vector<16x64xbf16>, vector<16x64xbf16>, vector<16x64xbf16>, vector<16x64xbf16>, vector<16x64xbf16>, vector<16x64xbf16>, vector<16x64xbf16>, vector<16x64xbf16> -> vector<144x64xbf16>
    %c12 = arith.constant 12 : index
    %c0_491 = arith.constant 0 : index
    %c0_492 = arith.constant 0 : index
    %820 = vector.load %arg2[%c12, %c0_491, %c0_492] : memref<20x16x144xbf16, #tpu.memory_space<vmem>>, vector<1x16x144xbf16>
    %821 = vector.shape_cast %820 : vector<1x16x144xbf16> to vector<16x144xbf16>
    %cst_493 = arith.constant dense<0.000000e+00> : vector<16x64xf32>
    %822 = tpu.matmul %821, %819, %cst_493 {dimension_numbers = #tpu.dot_dimension_numbers<[1], [0], [0], [1], [0, 0, 1, 1], [], []>} : vector<16x144xbf16>, vector<144x64xbf16>, vector<16x64xf32> -> vector<16x64xf32>
    %c12_494 = arith.constant 12 : index
    %c0_495 = arith.constant 0 : index
    %c0_496 = arith.constant 0 : index
    %823 = vector.load %arg3[%c12_494, %c0_495, %c0_496] : memref<20x16x1xf32, #tpu.memory_space<vmem>>, vector<1x16x1xf32>
    %824 = vector.shape_cast %823 : vector<1x16x1xf32> to vector<16x1xf32>
    %825 = vector.broadcast %824 : vector<16x1xf32> to vector<16x64xf32>
    %826 = arith.addf %822, %825 : vector<16x64xf32>
    %827 = arith.addf %826, %678 : vector<16x64xf32>
    %cst_497 = arith.constant 0.000000e+00 : f32
    %828 = vector.broadcast %cst_497 : f32 to vector<16x9xf32>
    %829 = vector.extract_strided_slice %827 {offsets = [0, 0], sizes = [16, 55], strides = [1, 1]} : vector<16x64xf32> to vector<16x55xf32>
    %830 = tpu.concatenate %828, %829 in 1 : vector<16x9xf32>, vector<16x55xf32> -> vector<16x64xf32>
    %c0_498 = arith.constant 0 : index
    %c0_499 = arith.constant 0 : index
    %c0_500 = arith.constant 0 : index
    %831 = vector.load %arg11[%c0_498, %c0_499, %c0_500] : memref<9x1x64xf32, #tpu.memory_space<vmem>>, vector<1x1x64xf32>
    %832 = vector.shape_cast %831 : vector<1x1x64xf32> to vector<1x64xf32>
    %833 = vector.broadcast %832 : vector<1x64xf32> to vector<16x64xf32>
    %834 = arith.mulf %830, %833 : vector<16x64xf32>
    %835 = arith.truncf %834 : vector<16x64xf32> to vector<16x64xbf16>
    %cst_501 = arith.constant 0.000000e+00 : f32
    %836 = vector.broadcast %cst_501 : f32 to vector<16x8xf32>
    %837 = vector.extract_strided_slice %827 {offsets = [0, 0], sizes = [16, 56], strides = [1, 1]} : vector<16x64xf32> to vector<16x56xf32>
    %838 = tpu.concatenate %836, %837 in 1 : vector<16x8xf32>, vector<16x56xf32> -> vector<16x64xf32>
    %c1_502 = arith.constant 1 : index
    %c0_503 = arith.constant 0 : index
    %c0_504 = arith.constant 0 : index
    %839 = vector.load %arg11[%c1_502, %c0_503, %c0_504] : memref<9x1x64xf32, #tpu.memory_space<vmem>>, vector<1x1x64xf32>
    %840 = vector.shape_cast %839 : vector<1x1x64xf32> to vector<1x64xf32>
    %841 = vector.broadcast %840 : vector<1x64xf32> to vector<16x64xf32>
    %842 = arith.mulf %838, %841 : vector<16x64xf32>
    %843 = arith.truncf %842 : vector<16x64xf32> to vector<16x64xbf16>
    %cst_505 = arith.constant 0.000000e+00 : f32
    %844 = vector.broadcast %cst_505 : f32 to vector<16x7xf32>
    %845 = vector.extract_strided_slice %827 {offsets = [0, 0], sizes = [16, 57], strides = [1, 1]} : vector<16x64xf32> to vector<16x57xf32>
    %846 = tpu.concatenate %844, %845 in 1 : vector<16x7xf32>, vector<16x57xf32> -> vector<16x64xf32>
    %c2_506 = arith.constant 2 : index
    %c0_507 = arith.constant 0 : index
    %c0_508 = arith.constant 0 : index
    %847 = vector.load %arg11[%c2_506, %c0_507, %c0_508] : memref<9x1x64xf32, #tpu.memory_space<vmem>>, vector<1x1x64xf32>
    %848 = vector.shape_cast %847 : vector<1x1x64xf32> to vector<1x64xf32>
    %849 = vector.broadcast %848 : vector<1x64xf32> to vector<16x64xf32>
    %850 = arith.mulf %846, %849 : vector<16x64xf32>
    %851 = arith.truncf %850 : vector<16x64xf32> to vector<16x64xbf16>
    %cst_509 = arith.constant 0.000000e+00 : f32
    %852 = vector.broadcast %cst_509 : f32 to vector<16x1xf32>
    %853 = vector.extract_strided_slice %827 {offsets = [0, 0], sizes = [16, 63], strides = [1, 1]} : vector<16x64xf32> to vector<16x63xf32>
    %854 = tpu.concatenate %852, %853 in 1 : vector<16x1xf32>, vector<16x63xf32> -> vector<16x64xf32>
    %c3_510 = arith.constant 3 : index
    %c0_511 = arith.constant 0 : index
    %c0_512 = arith.constant 0 : index
    %855 = vector.load %arg11[%c3_510, %c0_511, %c0_512] : memref<9x1x64xf32, #tpu.memory_space<vmem>>, vector<1x1x64xf32>
    %856 = vector.shape_cast %855 : vector<1x1x64xf32> to vector<1x64xf32>
    %857 = vector.broadcast %856 : vector<1x64xf32> to vector<16x64xf32>
    %858 = arith.mulf %854, %857 : vector<16x64xf32>
    %859 = arith.truncf %858 : vector<16x64xf32> to vector<16x64xbf16>
    %860 = arith.truncf %827 : vector<16x64xf32> to vector<16x64xbf16>
    %cst_513 = arith.constant 0.000000e+00 : f32
    %861 = vector.broadcast %cst_513 : f32 to vector<16x1xf32>
    %862 = vector.extract_strided_slice %827 {offsets = [0, 1], sizes = [16, 63], strides = [1, 1]} : vector<16x64xf32> to vector<16x63xf32>
    %863 = tpu.concatenate %862, %861 in 1 : vector<16x63xf32>, vector<16x1xf32> -> vector<16x64xf32>
    %c5_514 = arith.constant 5 : index
    %c0_515 = arith.constant 0 : index
    %c0_516 = arith.constant 0 : index
    %864 = vector.load %arg11[%c5_514, %c0_515, %c0_516] : memref<9x1x64xf32, #tpu.memory_space<vmem>>, vector<1x1x64xf32>
    %865 = vector.shape_cast %864 : vector<1x1x64xf32> to vector<1x64xf32>
    %866 = vector.broadcast %865 : vector<1x64xf32> to vector<16x64xf32>
    %867 = arith.mulf %863, %866 : vector<16x64xf32>
    %868 = arith.truncf %867 : vector<16x64xf32> to vector<16x64xbf16>
    %cst_517 = arith.constant 0.000000e+00 : f32
    %869 = vector.broadcast %cst_517 : f32 to vector<16x7xf32>
    %870 = vector.extract_strided_slice %827 {offsets = [0, 7], sizes = [16, 57], strides = [1, 1]} : vector<16x64xf32> to vector<16x57xf32>
    %871 = tpu.concatenate %870, %869 in 1 : vector<16x57xf32>, vector<16x7xf32> -> vector<16x64xf32>
    %c6_518 = arith.constant 6 : index
    %c0_519 = arith.constant 0 : index
    %c0_520 = arith.constant 0 : index
    %872 = vector.load %arg11[%c6_518, %c0_519, %c0_520] : memref<9x1x64xf32, #tpu.memory_space<vmem>>, vector<1x1x64xf32>
    %873 = vector.shape_cast %872 : vector<1x1x64xf32> to vector<1x64xf32>
    %874 = vector.broadcast %873 : vector<1x64xf32> to vector<16x64xf32>
    %875 = arith.mulf %871, %874 : vector<16x64xf32>
    %876 = arith.truncf %875 : vector<16x64xf32> to vector<16x64xbf16>
    %cst_521 = arith.constant 0.000000e+00 : f32
    %877 = vector.broadcast %cst_521 : f32 to vector<16x8xf32>
    %878 = vector.extract_strided_slice %827 {offsets = [0, 8], sizes = [16, 56], strides = [1, 1]} : vector<16x64xf32> to vector<16x56xf32>
    %879 = tpu.concatenate %878, %877 in 1 : vector<16x56xf32>, vector<16x8xf32> -> vector<16x64xf32>
    %c7_522 = arith.constant 7 : index
    %c0_523 = arith.constant 0 : index
    %c0_524 = arith.constant 0 : index
    %880 = vector.load %arg11[%c7_522, %c0_523, %c0_524] : memref<9x1x64xf32, #tpu.memory_space<vmem>>, vector<1x1x64xf32>
    %881 = vector.shape_cast %880 : vector<1x1x64xf32> to vector<1x64xf32>
    %882 = vector.broadcast %881 : vector<1x64xf32> to vector<16x64xf32>
    %883 = arith.mulf %879, %882 : vector<16x64xf32>
    %884 = arith.truncf %883 : vector<16x64xf32> to vector<16x64xbf16>
    %cst_525 = arith.constant 0.000000e+00 : f32
    %885 = vector.broadcast %cst_525 : f32 to vector<16x9xf32>
    %886 = vector.extract_strided_slice %827 {offsets = [0, 9], sizes = [16, 55], strides = [1, 1]} : vector<16x64xf32> to vector<16x55xf32>
    %887 = tpu.concatenate %886, %885 in 1 : vector<16x55xf32>, vector<16x9xf32> -> vector<16x64xf32>
    %c8_526 = arith.constant 8 : index
    %c0_527 = arith.constant 0 : index
    %c0_528 = arith.constant 0 : index
    %888 = vector.load %arg11[%c8_526, %c0_527, %c0_528] : memref<9x1x64xf32, #tpu.memory_space<vmem>>, vector<1x1x64xf32>
    %889 = vector.shape_cast %888 : vector<1x1x64xf32> to vector<1x64xf32>
    %890 = vector.broadcast %889 : vector<1x64xf32> to vector<16x64xf32>
    %891 = arith.mulf %887, %890 : vector<16x64xf32>
    %892 = arith.truncf %891 : vector<16x64xf32> to vector<16x64xbf16>
    %893 = tpu.concatenate %835, %843, %851, %859, %860, %868, %876, %884, %892 in 0 : vector<16x64xbf16>, vector<16x64xbf16>, vector<16x64xbf16>, vector<16x64xbf16>, vector<16x64xbf16>, vector<16x64xbf16>, vector<16x64xbf16>, vector<16x64xbf16>, vector<16x64xbf16> -> vector<144x64xbf16>
    %c0_529 = arith.constant 0 : index
    %c0_530 = arith.constant 0 : index
    %894 = vector.load %arg4[%c0_529, %c0_530] : memref<64x144xbf16, #tpu.memory_space<vmem>>, vector<64x144xbf16>
    %cst_531 = arith.constant dense<0.000000e+00> : vector<64x64xf32>
    %895 = tpu.matmul %894, %893, %cst_531 {dimension_numbers = #tpu.dot_dimension_numbers<[1], [0], [0], [1], [0, 0, 1, 1], [], []>} : vector<64x144xbf16>, vector<144x64xbf16>, vector<64x64xf32> -> vector<64x64xf32>
    %c0_532 = arith.constant 0 : index
    %c0_533 = arith.constant 0 : index
    %896 = vector.load %arg5[%c0_532, %c0_533] : memref<16x1xf32, #tpu.memory_space<vmem>>, vector<16x1xf32>
    %897 = vector.broadcast %896 : vector<16x1xf32> to vector<16x256xf32>
    %898 = arith.addf %469, %897 : vector<16x256xf32>
    %899 = vector.extract_strided_slice %895 {offsets = [0, 0], sizes = [16, 64], strides = [1, 1]} : vector<64x64xf32> to vector<16x64xf32>
    %900 = arith.truncf %899 : vector<16x64xf32> to vector<16x64xbf16>
    %c0_534 = arith.constant 0 : index
    %c0_535 = arith.constant 0 : index
    %c0_536 = arith.constant 0 : index
    %901 = vector.load %arg9[%c0_534, %c0_535, %c0_536] : memref<4x64x256xbf16, #tpu.memory_space<vmem>>, vector<1x64x256xbf16>
    %902 = vector.shape_cast %901 : vector<1x64x256xbf16> to vector<64x256xbf16>
    %cst_537 = arith.constant dense<0.000000e+00> : vector<16x256xf32>
    %903 = tpu.matmul %900, %902, %cst_537 {dimension_numbers = #tpu.dot_dimension_numbers<[1], [0], [0], [1], [0, 0, 1, 1], [], []>} : vector<16x64xbf16>, vector<64x256xbf16>, vector<16x256xf32> -> vector<16x256xf32>
    %904 = arith.addf %898, %903 : vector<16x256xf32>
    %905 = vector.extract_strided_slice %895 {offsets = [16, 0], sizes = [16, 64], strides = [1, 1]} : vector<64x64xf32> to vector<16x64xf32>
    %906 = arith.truncf %905 : vector<16x64xf32> to vector<16x64xbf16>
    %c1_538 = arith.constant 1 : index
    %c0_539 = arith.constant 0 : index
    %c0_540 = arith.constant 0 : index
    %907 = vector.load %arg9[%c1_538, %c0_539, %c0_540] : memref<4x64x256xbf16, #tpu.memory_space<vmem>>, vector<1x64x256xbf16>
    %908 = vector.shape_cast %907 : vector<1x64x256xbf16> to vector<64x256xbf16>
    %cst_541 = arith.constant dense<0.000000e+00> : vector<16x256xf32>
    %909 = tpu.matmul %906, %908, %cst_541 {dimension_numbers = #tpu.dot_dimension_numbers<[1], [0], [0], [1], [0, 0, 1, 1], [], []>} : vector<16x64xbf16>, vector<64x256xbf16>, vector<16x256xf32> -> vector<16x256xf32>
    %910 = arith.addf %904, %909 : vector<16x256xf32>
    %911 = vector.extract_strided_slice %895 {offsets = [32, 0], sizes = [16, 64], strides = [1, 1]} : vector<64x64xf32> to vector<16x64xf32>
    %912 = arith.truncf %911 : vector<16x64xf32> to vector<16x64xbf16>
    %c2_542 = arith.constant 2 : index
    %c0_543 = arith.constant 0 : index
    %c0_544 = arith.constant 0 : index
    %913 = vector.load %arg9[%c2_542, %c0_543, %c0_544] : memref<4x64x256xbf16, #tpu.memory_space<vmem>>, vector<1x64x256xbf16>
    %914 = vector.shape_cast %913 : vector<1x64x256xbf16> to vector<64x256xbf16>
    %cst_545 = arith.constant dense<0.000000e+00> : vector<16x256xf32>
    %915 = tpu.matmul %912, %914, %cst_545 {dimension_numbers = #tpu.dot_dimension_numbers<[1], [0], [0], [1], [0, 0, 1, 1], [], []>} : vector<16x64xbf16>, vector<64x256xbf16>, vector<16x256xf32> -> vector<16x256xf32>
    %916 = arith.addf %910, %915 : vector<16x256xf32>
    %917 = vector.extract_strided_slice %895 {offsets = [48, 0], sizes = [16, 64], strides = [1, 1]} : vector<64x64xf32> to vector<16x64xf32>
    %918 = arith.truncf %917 : vector<16x64xf32> to vector<16x64xbf16>
    %c3_546 = arith.constant 3 : index
    %c0_547 = arith.constant 0 : index
    %c0_548 = arith.constant 0 : index
    %919 = vector.load %arg9[%c3_546, %c0_547, %c0_548] : memref<4x64x256xbf16, #tpu.memory_space<vmem>>, vector<1x64x256xbf16>
    %920 = vector.shape_cast %919 : vector<1x64x256xbf16> to vector<64x256xbf16>
    %cst_549 = arith.constant dense<0.000000e+00> : vector<16x256xf32>
    %921 = tpu.matmul %918, %920, %cst_549 {dimension_numbers = #tpu.dot_dimension_numbers<[1], [0], [0], [1], [0, 0, 1, 1], [], []>} : vector<16x64xbf16>, vector<64x256xbf16>, vector<16x256xf32> -> vector<16x256xf32>
    %922 = arith.addf %916, %921 : vector<16x256xf32>
    %c17_i32_550 = arith.constant 17 : i32
    %923 = tpu.dynamic_rotate %922 by %c17_i32_550 dim 1 : vector<16x256xf32>, i32 -> vector<16x256xf32>
    %c0_551 = arith.constant 0 : index
    %c0_552 = arith.constant 0 : index
    %c0_553 = arith.constant 0 : index
    %924 = vector.load %arg10[%c0_551, %c0_552, %c0_553] : memref<9x1x256xf32, #tpu.memory_space<vmem>>, vector<1x1x256xf32>
    %925 = vector.shape_cast %924 : vector<1x1x256xf32> to vector<1x256xf32>
    %926 = vector.broadcast %925 : vector<1x256xf32> to vector<16x256xf32>
    %927 = arith.mulf %923, %926 : vector<16x256xf32>
    %928 = arith.truncf %927 : vector<16x256xf32> to vector<16x256xbf16>
    %c16_i32_554 = arith.constant 16 : i32
    %929 = tpu.dynamic_rotate %922 by %c16_i32_554 dim 1 : vector<16x256xf32>, i32 -> vector<16x256xf32>
    %c1_555 = arith.constant 1 : index
    %c0_556 = arith.constant 0 : index
    %c0_557 = arith.constant 0 : index
    %930 = vector.load %arg10[%c1_555, %c0_556, %c0_557] : memref<9x1x256xf32, #tpu.memory_space<vmem>>, vector<1x1x256xf32>
    %931 = vector.shape_cast %930 : vector<1x1x256xf32> to vector<1x256xf32>
    %932 = vector.broadcast %931 : vector<1x256xf32> to vector<16x256xf32>
    %933 = arith.mulf %929, %932 : vector<16x256xf32>
    %934 = arith.truncf %933 : vector<16x256xf32> to vector<16x256xbf16>
    %c15_i32_558 = arith.constant 15 : i32
    %935 = tpu.dynamic_rotate %922 by %c15_i32_558 dim 1 : vector<16x256xf32>, i32 -> vector<16x256xf32>
    %c2_559 = arith.constant 2 : index
    %c0_560 = arith.constant 0 : index
    %c0_561 = arith.constant 0 : index
    %936 = vector.load %arg10[%c2_559, %c0_560, %c0_561] : memref<9x1x256xf32, #tpu.memory_space<vmem>>, vector<1x1x256xf32>
    %937 = vector.shape_cast %936 : vector<1x1x256xf32> to vector<1x256xf32>
    %938 = vector.broadcast %937 : vector<1x256xf32> to vector<16x256xf32>
    %939 = arith.mulf %935, %938 : vector<16x256xf32>
    %940 = arith.truncf %939 : vector<16x256xf32> to vector<16x256xbf16>
    %c1_i32_562 = arith.constant 1 : i32
    %941 = tpu.dynamic_rotate %922 by %c1_i32_562 dim 1 : vector<16x256xf32>, i32 -> vector<16x256xf32>
    %c3_563 = arith.constant 3 : index
    %c0_564 = arith.constant 0 : index
    %c0_565 = arith.constant 0 : index
    %942 = vector.load %arg10[%c3_563, %c0_564, %c0_565] : memref<9x1x256xf32, #tpu.memory_space<vmem>>, vector<1x1x256xf32>
    %943 = vector.shape_cast %942 : vector<1x1x256xf32> to vector<1x256xf32>
    %944 = vector.broadcast %943 : vector<1x256xf32> to vector<16x256xf32>
    %945 = arith.mulf %941, %944 : vector<16x256xf32>
    %946 = arith.truncf %945 : vector<16x256xf32> to vector<16x256xbf16>
    %947 = arith.truncf %922 : vector<16x256xf32> to vector<16x256xbf16>
    %c255_i32_566 = arith.constant 255 : i32
    %948 = tpu.dynamic_rotate %922 by %c255_i32_566 dim 1 : vector<16x256xf32>, i32 -> vector<16x256xf32>
    %c5_567 = arith.constant 5 : index
    %c0_568 = arith.constant 0 : index
    %c0_569 = arith.constant 0 : index
    %949 = vector.load %arg10[%c5_567, %c0_568, %c0_569] : memref<9x1x256xf32, #tpu.memory_space<vmem>>, vector<1x1x256xf32>
    %950 = vector.shape_cast %949 : vector<1x1x256xf32> to vector<1x256xf32>
    %951 = vector.broadcast %950 : vector<1x256xf32> to vector<16x256xf32>
    %952 = arith.mulf %948, %951 : vector<16x256xf32>
    %953 = arith.truncf %952 : vector<16x256xf32> to vector<16x256xbf16>
    %c241_i32_570 = arith.constant 241 : i32
    %954 = tpu.dynamic_rotate %922 by %c241_i32_570 dim 1 : vector<16x256xf32>, i32 -> vector<16x256xf32>
    %c6_571 = arith.constant 6 : index
    %c0_572 = arith.constant 0 : index
    %c0_573 = arith.constant 0 : index
    %955 = vector.load %arg10[%c6_571, %c0_572, %c0_573] : memref<9x1x256xf32, #tpu.memory_space<vmem>>, vector<1x1x256xf32>
    %956 = vector.shape_cast %955 : vector<1x1x256xf32> to vector<1x256xf32>
    %957 = vector.broadcast %956 : vector<1x256xf32> to vector<16x256xf32>
    %958 = arith.mulf %954, %957 : vector<16x256xf32>
    %959 = arith.truncf %958 : vector<16x256xf32> to vector<16x256xbf16>
    %c240_i32_574 = arith.constant 240 : i32
    %960 = tpu.dynamic_rotate %922 by %c240_i32_574 dim 1 : vector<16x256xf32>, i32 -> vector<16x256xf32>
    %c7_575 = arith.constant 7 : index
    %c0_576 = arith.constant 0 : index
    %c0_577 = arith.constant 0 : index
    %961 = vector.load %arg10[%c7_575, %c0_576, %c0_577] : memref<9x1x256xf32, #tpu.memory_space<vmem>>, vector<1x1x256xf32>
    %962 = vector.shape_cast %961 : vector<1x1x256xf32> to vector<1x256xf32>
    %963 = vector.broadcast %962 : vector<1x256xf32> to vector<16x256xf32>
    %964 = arith.mulf %960, %963 : vector<16x256xf32>
    %965 = arith.truncf %964 : vector<16x256xf32> to vector<16x256xbf16>
    %c239_i32_578 = arith.constant 239 : i32
    %966 = tpu.dynamic_rotate %922 by %c239_i32_578 dim 1 : vector<16x256xf32>, i32 -> vector<16x256xf32>
    %c8_579 = arith.constant 8 : index
    %c0_580 = arith.constant 0 : index
    %c0_581 = arith.constant 0 : index
    %967 = vector.load %arg10[%c8_579, %c0_580, %c0_581] : memref<9x1x256xf32, #tpu.memory_space<vmem>>, vector<1x1x256xf32>
    %968 = vector.shape_cast %967 : vector<1x1x256xf32> to vector<1x256xf32>
    %969 = vector.broadcast %968 : vector<1x256xf32> to vector<16x256xf32>
    %970 = arith.mulf %966, %969 : vector<16x256xf32>
    %971 = arith.truncf %970 : vector<16x256xf32> to vector<16x256xbf16>
    %972 = tpu.concatenate %928, %934, %940, %946, %947, %953, %959, %965, %971 in 0 : vector<16x256xbf16>, vector<16x256xbf16>, vector<16x256xbf16>, vector<16x256xbf16>, vector<16x256xbf16>, vector<16x256xbf16>, vector<16x256xbf16>, vector<16x256xbf16>, vector<16x256xbf16> -> vector<144x256xbf16>
    %c13 = arith.constant 13 : index
    %c0_582 = arith.constant 0 : index
    %c0_583 = arith.constant 0 : index
    %973 = vector.load %arg2[%c13, %c0_582, %c0_583] : memref<20x16x144xbf16, #tpu.memory_space<vmem>>, vector<1x16x144xbf16>
    %974 = vector.shape_cast %973 : vector<1x16x144xbf16> to vector<16x144xbf16>
    %cst_584 = arith.constant dense<0.000000e+00> : vector<16x256xf32>
    %975 = tpu.matmul %974, %972, %cst_584 {dimension_numbers = #tpu.dot_dimension_numbers<[1], [0], [0], [1], [0, 0, 1, 1], [], []>} : vector<16x144xbf16>, vector<144x256xbf16>, vector<16x256xf32> -> vector<16x256xf32>
    %c13_585 = arith.constant 13 : index
    %c0_586 = arith.constant 0 : index
    %c0_587 = arith.constant 0 : index
    %976 = vector.load %arg3[%c13_585, %c0_586, %c0_587] : memref<20x16x1xf32, #tpu.memory_space<vmem>>, vector<1x16x1xf32>
    %977 = vector.shape_cast %976 : vector<1x16x1xf32> to vector<16x1xf32>
    %978 = vector.broadcast %977 : vector<16x1xf32> to vector<16x256xf32>
    %979 = arith.addf %975, %978 : vector<16x256xf32>
    %cst_588 = arith.constant 0.000000e+00 : f32
    %980 = vector.broadcast %cst_588 : f32 to vector<16x256xf32>
    %981 = arith.maximumf %979, %980 : vector<16x256xf32>
    %c17_i32_589 = arith.constant 17 : i32
    %982 = tpu.dynamic_rotate %981 by %c17_i32_589 dim 1 : vector<16x256xf32>, i32 -> vector<16x256xf32>
    %c0_590 = arith.constant 0 : index
    %c0_591 = arith.constant 0 : index
    %c0_592 = arith.constant 0 : index
    %983 = vector.load %arg10[%c0_590, %c0_591, %c0_592] : memref<9x1x256xf32, #tpu.memory_space<vmem>>, vector<1x1x256xf32>
    %984 = vector.shape_cast %983 : vector<1x1x256xf32> to vector<1x256xf32>
    %985 = vector.broadcast %984 : vector<1x256xf32> to vector<16x256xf32>
    %986 = arith.mulf %982, %985 : vector<16x256xf32>
    %987 = arith.truncf %986 : vector<16x256xf32> to vector<16x256xbf16>
    %c16_i32_593 = arith.constant 16 : i32
    %988 = tpu.dynamic_rotate %981 by %c16_i32_593 dim 1 : vector<16x256xf32>, i32 -> vector<16x256xf32>
    %c1_594 = arith.constant 1 : index
    %c0_595 = arith.constant 0 : index
    %c0_596 = arith.constant 0 : index
    %989 = vector.load %arg10[%c1_594, %c0_595, %c0_596] : memref<9x1x256xf32, #tpu.memory_space<vmem>>, vector<1x1x256xf32>
    %990 = vector.shape_cast %989 : vector<1x1x256xf32> to vector<1x256xf32>
    %991 = vector.broadcast %990 : vector<1x256xf32> to vector<16x256xf32>
    %992 = arith.mulf %988, %991 : vector<16x256xf32>
    %993 = arith.truncf %992 : vector<16x256xf32> to vector<16x256xbf16>
    %c15_i32_597 = arith.constant 15 : i32
    %994 = tpu.dynamic_rotate %981 by %c15_i32_597 dim 1 : vector<16x256xf32>, i32 -> vector<16x256xf32>
    %c2_598 = arith.constant 2 : index
    %c0_599 = arith.constant 0 : index
    %c0_600 = arith.constant 0 : index
    %995 = vector.load %arg10[%c2_598, %c0_599, %c0_600] : memref<9x1x256xf32, #tpu.memory_space<vmem>>, vector<1x1x256xf32>
    %996 = vector.shape_cast %995 : vector<1x1x256xf32> to vector<1x256xf32>
    %997 = vector.broadcast %996 : vector<1x256xf32> to vector<16x256xf32>
    %998 = arith.mulf %994, %997 : vector<16x256xf32>
    %999 = arith.truncf %998 : vector<16x256xf32> to vector<16x256xbf16>
    %c1_i32_601 = arith.constant 1 : i32
    %1000 = tpu.dynamic_rotate %981 by %c1_i32_601 dim 1 : vector<16x256xf32>, i32 -> vector<16x256xf32>
    %c3_602 = arith.constant 3 : index
    %c0_603 = arith.constant 0 : index
    %c0_604 = arith.constant 0 : index
    %1001 = vector.load %arg10[%c3_602, %c0_603, %c0_604] : memref<9x1x256xf32, #tpu.memory_space<vmem>>, vector<1x1x256xf32>
    %1002 = vector.shape_cast %1001 : vector<1x1x256xf32> to vector<1x256xf32>
    %1003 = vector.broadcast %1002 : vector<1x256xf32> to vector<16x256xf32>
    %1004 = arith.mulf %1000, %1003 : vector<16x256xf32>
    %1005 = arith.truncf %1004 : vector<16x256xf32> to vector<16x256xbf16>
    %1006 = arith.truncf %981 : vector<16x256xf32> to vector<16x256xbf16>
    %c255_i32_605 = arith.constant 255 : i32
    %1007 = tpu.dynamic_rotate %981 by %c255_i32_605 dim 1 : vector<16x256xf32>, i32 -> vector<16x256xf32>
    %c5_606 = arith.constant 5 : index
    %c0_607 = arith.constant 0 : index
    %c0_608 = arith.constant 0 : index
    %1008 = vector.load %arg10[%c5_606, %c0_607, %c0_608] : memref<9x1x256xf32, #tpu.memory_space<vmem>>, vector<1x1x256xf32>
    %1009 = vector.shape_cast %1008 : vector<1x1x256xf32> to vector<1x256xf32>
    %1010 = vector.broadcast %1009 : vector<1x256xf32> to vector<16x256xf32>
    %1011 = arith.mulf %1007, %1010 : vector<16x256xf32>
    %1012 = arith.truncf %1011 : vector<16x256xf32> to vector<16x256xbf16>
    %c241_i32_609 = arith.constant 241 : i32
    %1013 = tpu.dynamic_rotate %981 by %c241_i32_609 dim 1 : vector<16x256xf32>, i32 -> vector<16x256xf32>
    %c6_610 = arith.constant 6 : index
    %c0_611 = arith.constant 0 : index
    %c0_612 = arith.constant 0 : index
    %1014 = vector.load %arg10[%c6_610, %c0_611, %c0_612] : memref<9x1x256xf32, #tpu.memory_space<vmem>>, vector<1x1x256xf32>
    %1015 = vector.shape_cast %1014 : vector<1x1x256xf32> to vector<1x256xf32>
    %1016 = vector.broadcast %1015 : vector<1x256xf32> to vector<16x256xf32>
    %1017 = arith.mulf %1013, %1016 : vector<16x256xf32>
    %1018 = arith.truncf %1017 : vector<16x256xf32> to vector<16x256xbf16>
    %c240_i32_613 = arith.constant 240 : i32
    %1019 = tpu.dynamic_rotate %981 by %c240_i32_613 dim 1 : vector<16x256xf32>, i32 -> vector<16x256xf32>
    %c7_614 = arith.constant 7 : index
    %c0_615 = arith.constant 0 : index
    %c0_616 = arith.constant 0 : index
    %1020 = vector.load %arg10[%c7_614, %c0_615, %c0_616] : memref<9x1x256xf32, #tpu.memory_space<vmem>>, vector<1x1x256xf32>
    %1021 = vector.shape_cast %1020 : vector<1x1x256xf32> to vector<1x256xf32>
    %1022 = vector.broadcast %1021 : vector<1x256xf32> to vector<16x256xf32>
    %1023 = arith.mulf %1019, %1022 : vector<16x256xf32>
    %1024 = arith.truncf %1023 : vector<16x256xf32> to vector<16x256xbf16>
    %c239_i32_617 = arith.constant 239 : i32
    %1025 = tpu.dynamic_rotate %981 by %c239_i32_617 dim 1 : vector<16x256xf32>, i32 -> vector<16x256xf32>
    %c8_618 = arith.constant 8 : index
    %c0_619 = arith.constant 0 : index
    %c0_620 = arith.constant 0 : index
    %1026 = vector.load %arg10[%c8_618, %c0_619, %c0_620] : memref<9x1x256xf32, #tpu.memory_space<vmem>>, vector<1x1x256xf32>
    %1027 = vector.shape_cast %1026 : vector<1x1x256xf32> to vector<1x256xf32>
    %1028 = vector.broadcast %1027 : vector<1x256xf32> to vector<16x256xf32>
    %1029 = arith.mulf %1025, %1028 : vector<16x256xf32>
    %1030 = arith.truncf %1029 : vector<16x256xf32> to vector<16x256xbf16>
    %1031 = tpu.concatenate %987, %993, %999, %1005, %1006, %1012, %1018, %1024, %1030 in 0 : vector<16x256xbf16>, vector<16x256xbf16>, vector<16x256xbf16>, vector<16x256xbf16>, vector<16x256xbf16>, vector<16x256xbf16>, vector<16x256xbf16>, vector<16x256xbf16>, vector<16x256xbf16> -> vector<144x256xbf16>
    %c14 = arith.constant 14 : index
    %c0_621 = arith.constant 0 : index
    %c0_622 = arith.constant 0 : index
    %1032 = vector.load %arg2[%c14, %c0_621, %c0_622] : memref<20x16x144xbf16, #tpu.memory_space<vmem>>, vector<1x16x144xbf16>
    %1033 = vector.shape_cast %1032 : vector<1x16x144xbf16> to vector<16x144xbf16>
    %cst_623 = arith.constant dense<0.000000e+00> : vector<16x256xf32>
    %1034 = tpu.matmul %1033, %1031, %cst_623 {dimension_numbers = #tpu.dot_dimension_numbers<[1], [0], [0], [1], [0, 0, 1, 1], [], []>} : vector<16x144xbf16>, vector<144x256xbf16>, vector<16x256xf32> -> vector<16x256xf32>
    %c14_624 = arith.constant 14 : index
    %c0_625 = arith.constant 0 : index
    %c0_626 = arith.constant 0 : index
    %1035 = vector.load %arg3[%c14_624, %c0_625, %c0_626] : memref<20x16x1xf32, #tpu.memory_space<vmem>>, vector<1x16x1xf32>
    %1036 = vector.shape_cast %1035 : vector<1x16x1xf32> to vector<16x1xf32>
    %1037 = vector.broadcast %1036 : vector<16x1xf32> to vector<16x256xf32>
    %1038 = arith.addf %1034, %1037 : vector<16x256xf32>
    %1039 = arith.addf %1038, %922 : vector<16x256xf32>
    %c0_627 = arith.constant 0 : index
    %c0_628 = arith.constant 0 : index
    %1040 = vector.load %arg6[%c0_627, %c0_628] : memref<16x16xbf16, #tpu.memory_space<vmem>>, vector<16x16xbf16>
    %1041 = arith.truncf %1039 : vector<16x256xf32> to vector<16x256xbf16>
    %cst_629 = arith.constant dense<0.000000e+00> : vector<16x256xf32>
    %1042 = tpu.matmul %1040, %1041, %cst_629 {dimension_numbers = #tpu.dot_dimension_numbers<[1], [0], [0], [1], [0, 0, 1, 1], [], []>} : vector<16x16xbf16>, vector<16x256xbf16>, vector<16x256xf32> -> vector<16x256xf32>
    %c0_630 = arith.constant 0 : index
    %c0_631 = arith.constant 0 : index
    %1043 = vector.load %arg7[%c0_630, %c0_631] : memref<16x1xf32, #tpu.memory_space<vmem>>, vector<16x1xf32>
    %1044 = vector.broadcast %1043 : vector<16x1xf32> to vector<16x256xf32>
    %1045 = arith.addf %1042, %1044 : vector<16x256xf32>
    %1046 = arith.negf %1045 : vector<16x256xf32>
    %1047 = math.exp %1046 : vector<16x256xf32>
    %cst_632 = arith.constant 1.000000e+00 : f32
    %1048 = vector.broadcast %cst_632 : f32 to vector<16x256xf32>
    %1049 = arith.addf %1048, %1047 : vector<16x256xf32>
    %1050 = arith.divf %1048, %1049 : vector<16x256xf32>
    %1051 = arith.mulf %352, %1050 : vector<16x256xf32>
    %1052 = arith.addf %1051, %118 : vector<16x256xf32>
    %c17_i32_633 = arith.constant 17 : i32
    %1053 = tpu.dynamic_rotate %1052 by %c17_i32_633 dim 1 : vector<16x256xf32>, i32 -> vector<16x256xf32>
    %c0_634 = arith.constant 0 : index
    %c0_635 = arith.constant 0 : index
    %c0_636 = arith.constant 0 : index
    %1054 = vector.load %arg10[%c0_634, %c0_635, %c0_636] : memref<9x1x256xf32, #tpu.memory_space<vmem>>, vector<1x1x256xf32>
    %1055 = vector.shape_cast %1054 : vector<1x1x256xf32> to vector<1x256xf32>
    %1056 = vector.broadcast %1055 : vector<1x256xf32> to vector<16x256xf32>
    %1057 = arith.mulf %1053, %1056 : vector<16x256xf32>
    %1058 = arith.truncf %1057 : vector<16x256xf32> to vector<16x256xbf16>
    %c16_i32_637 = arith.constant 16 : i32
    %1059 = tpu.dynamic_rotate %1052 by %c16_i32_637 dim 1 : vector<16x256xf32>, i32 -> vector<16x256xf32>
    %c1_638 = arith.constant 1 : index
    %c0_639 = arith.constant 0 : index
    %c0_640 = arith.constant 0 : index
    %1060 = vector.load %arg10[%c1_638, %c0_639, %c0_640] : memref<9x1x256xf32, #tpu.memory_space<vmem>>, vector<1x1x256xf32>
    %1061 = vector.shape_cast %1060 : vector<1x1x256xf32> to vector<1x256xf32>
    %1062 = vector.broadcast %1061 : vector<1x256xf32> to vector<16x256xf32>
    %1063 = arith.mulf %1059, %1062 : vector<16x256xf32>
    %1064 = arith.truncf %1063 : vector<16x256xf32> to vector<16x256xbf16>
    %c15_i32_641 = arith.constant 15 : i32
    %1065 = tpu.dynamic_rotate %1052 by %c15_i32_641 dim 1 : vector<16x256xf32>, i32 -> vector<16x256xf32>
    %c2_642 = arith.constant 2 : index
    %c0_643 = arith.constant 0 : index
    %c0_644 = arith.constant 0 : index
    %1066 = vector.load %arg10[%c2_642, %c0_643, %c0_644] : memref<9x1x256xf32, #tpu.memory_space<vmem>>, vector<1x1x256xf32>
    %1067 = vector.shape_cast %1066 : vector<1x1x256xf32> to vector<1x256xf32>
    %1068 = vector.broadcast %1067 : vector<1x256xf32> to vector<16x256xf32>
    %1069 = arith.mulf %1065, %1068 : vector<16x256xf32>
    %1070 = arith.truncf %1069 : vector<16x256xf32> to vector<16x256xbf16>
    %c1_i32_645 = arith.constant 1 : i32
    %1071 = tpu.dynamic_rotate %1052 by %c1_i32_645 dim 1 : vector<16x256xf32>, i32 -> vector<16x256xf32>
    %c3_646 = arith.constant 3 : index
    %c0_647 = arith.constant 0 : index
    %c0_648 = arith.constant 0 : index
    %1072 = vector.load %arg10[%c3_646, %c0_647, %c0_648] : memref<9x1x256xf32, #tpu.memory_space<vmem>>, vector<1x1x256xf32>
    %1073 = vector.shape_cast %1072 : vector<1x1x256xf32> to vector<1x256xf32>
    %1074 = vector.broadcast %1073 : vector<1x256xf32> to vector<16x256xf32>
    %1075 = arith.mulf %1071, %1074 : vector<16x256xf32>
    %1076 = arith.truncf %1075 : vector<16x256xf32> to vector<16x256xbf16>
    %1077 = arith.truncf %1052 : vector<16x256xf32> to vector<16x256xbf16>
    %c255_i32_649 = arith.constant 255 : i32
    %1078 = tpu.dynamic_rotate %1052 by %c255_i32_649 dim 1 : vector<16x256xf32>, i32 -> vector<16x256xf32>
    %c5_650 = arith.constant 5 : index
    %c0_651 = arith.constant 0 : index
    %c0_652 = arith.constant 0 : index
    %1079 = vector.load %arg10[%c5_650, %c0_651, %c0_652] : memref<9x1x256xf32, #tpu.memory_space<vmem>>, vector<1x1x256xf32>
    %1080 = vector.shape_cast %1079 : vector<1x1x256xf32> to vector<1x256xf32>
    %1081 = vector.broadcast %1080 : vector<1x256xf32> to vector<16x256xf32>
    %1082 = arith.mulf %1078, %1081 : vector<16x256xf32>
    %1083 = arith.truncf %1082 : vector<16x256xf32> to vector<16x256xbf16>
    %c241_i32_653 = arith.constant 241 : i32
    %1084 = tpu.dynamic_rotate %1052 by %c241_i32_653 dim 1 : vector<16x256xf32>, i32 -> vector<16x256xf32>
    %c6_654 = arith.constant 6 : index
    %c0_655 = arith.constant 0 : index
    %c0_656 = arith.constant 0 : index
    %1085 = vector.load %arg10[%c6_654, %c0_655, %c0_656] : memref<9x1x256xf32, #tpu.memory_space<vmem>>, vector<1x1x256xf32>
    %1086 = vector.shape_cast %1085 : vector<1x1x256xf32> to vector<1x256xf32>
    %1087 = vector.broadcast %1086 : vector<1x256xf32> to vector<16x256xf32>
    %1088 = arith.mulf %1084, %1087 : vector<16x256xf32>
    %1089 = arith.truncf %1088 : vector<16x256xf32> to vector<16x256xbf16>
    %c240_i32_657 = arith.constant 240 : i32
    %1090 = tpu.dynamic_rotate %1052 by %c240_i32_657 dim 1 : vector<16x256xf32>, i32 -> vector<16x256xf32>
    %c7_658 = arith.constant 7 : index
    %c0_659 = arith.constant 0 : index
    %c0_660 = arith.constant 0 : index
    %1091 = vector.load %arg10[%c7_658, %c0_659, %c0_660] : memref<9x1x256xf32, #tpu.memory_space<vmem>>, vector<1x1x256xf32>
    %1092 = vector.shape_cast %1091 : vector<1x1x256xf32> to vector<1x256xf32>
    %1093 = vector.broadcast %1092 : vector<1x256xf32> to vector<16x256xf32>
    %1094 = arith.mulf %1090, %1093 : vector<16x256xf32>
    %1095 = arith.truncf %1094 : vector<16x256xf32> to vector<16x256xbf16>
    %c239_i32_661 = arith.constant 239 : i32
    %1096 = tpu.dynamic_rotate %1052 by %c239_i32_661 dim 1 : vector<16x256xf32>, i32 -> vector<16x256xf32>
    %c8_662 = arith.constant 8 : index
    %c0_663 = arith.constant 0 : index
    %c0_664 = arith.constant 0 : index
    %1097 = vector.load %arg10[%c8_662, %c0_663, %c0_664] : memref<9x1x256xf32, #tpu.memory_space<vmem>>, vector<1x1x256xf32>
    %1098 = vector.shape_cast %1097 : vector<1x1x256xf32> to vector<1x256xf32>
    %1099 = vector.broadcast %1098 : vector<1x256xf32> to vector<16x256xf32>
    %1100 = arith.mulf %1096, %1099 : vector<16x256xf32>
    %1101 = arith.truncf %1100 : vector<16x256xf32> to vector<16x256xbf16>
    %1102 = tpu.concatenate %1058, %1064, %1070, %1076, %1077, %1083, %1089, %1095, %1101 in 0 : vector<16x256xbf16>, vector<16x256xbf16>, vector<16x256xbf16>, vector<16x256xbf16>, vector<16x256xbf16>, vector<16x256xbf16>, vector<16x256xbf16>, vector<16x256xbf16>, vector<16x256xbf16> -> vector<144x256xbf16>
    %c15 = arith.constant 15 : index
    %c0_665 = arith.constant 0 : index
    %c0_666 = arith.constant 0 : index
    %1103 = vector.load %arg2[%c15, %c0_665, %c0_666] : memref<20x16x144xbf16, #tpu.memory_space<vmem>>, vector<1x16x144xbf16>
    %1104 = vector.shape_cast %1103 : vector<1x16x144xbf16> to vector<16x144xbf16>
    %cst_667 = arith.constant dense<0.000000e+00> : vector<16x256xf32>
    %1105 = tpu.matmul %1104, %1102, %cst_667 {dimension_numbers = #tpu.dot_dimension_numbers<[1], [0], [0], [1], [0, 0, 1, 1], [], []>} : vector<16x144xbf16>, vector<144x256xbf16>, vector<16x256xf32> -> vector<16x256xf32>
    %c15_668 = arith.constant 15 : index
    %c0_669 = arith.constant 0 : index
    %c0_670 = arith.constant 0 : index
    %1106 = vector.load %arg3[%c15_668, %c0_669, %c0_670] : memref<20x16x1xf32, #tpu.memory_space<vmem>>, vector<1x16x1xf32>
    %1107 = vector.shape_cast %1106 : vector<1x16x1xf32> to vector<16x1xf32>
    %1108 = vector.broadcast %1107 : vector<16x1xf32> to vector<16x256xf32>
    %1109 = arith.addf %1105, %1108 : vector<16x256xf32>
    %cst_671 = arith.constant 0.000000e+00 : f32
    %1110 = vector.broadcast %cst_671 : f32 to vector<16x256xf32>
    %1111 = arith.maximumf %1109, %1110 : vector<16x256xf32>
    %c17_i32_672 = arith.constant 17 : i32
    %1112 = tpu.dynamic_rotate %1111 by %c17_i32_672 dim 1 : vector<16x256xf32>, i32 -> vector<16x256xf32>
    %c0_673 = arith.constant 0 : index
    %c0_674 = arith.constant 0 : index
    %c0_675 = arith.constant 0 : index
    %1113 = vector.load %arg10[%c0_673, %c0_674, %c0_675] : memref<9x1x256xf32, #tpu.memory_space<vmem>>, vector<1x1x256xf32>
    %1114 = vector.shape_cast %1113 : vector<1x1x256xf32> to vector<1x256xf32>
    %1115 = vector.broadcast %1114 : vector<1x256xf32> to vector<16x256xf32>
    %1116 = arith.mulf %1112, %1115 : vector<16x256xf32>
    %1117 = arith.truncf %1116 : vector<16x256xf32> to vector<16x256xbf16>
    %c16_i32_676 = arith.constant 16 : i32
    %1118 = tpu.dynamic_rotate %1111 by %c16_i32_676 dim 1 : vector<16x256xf32>, i32 -> vector<16x256xf32>
    %c1_677 = arith.constant 1 : index
    %c0_678 = arith.constant 0 : index
    %c0_679 = arith.constant 0 : index
    %1119 = vector.load %arg10[%c1_677, %c0_678, %c0_679] : memref<9x1x256xf32, #tpu.memory_space<vmem>>, vector<1x1x256xf32>
    %1120 = vector.shape_cast %1119 : vector<1x1x256xf32> to vector<1x256xf32>
    %1121 = vector.broadcast %1120 : vector<1x256xf32> to vector<16x256xf32>
    %1122 = arith.mulf %1118, %1121 : vector<16x256xf32>
    %1123 = arith.truncf %1122 : vector<16x256xf32> to vector<16x256xbf16>
    %c15_i32_680 = arith.constant 15 : i32
    %1124 = tpu.dynamic_rotate %1111 by %c15_i32_680 dim 1 : vector<16x256xf32>, i32 -> vector<16x256xf32>
    %c2_681 = arith.constant 2 : index
    %c0_682 = arith.constant 0 : index
    %c0_683 = arith.constant 0 : index
    %1125 = vector.load %arg10[%c2_681, %c0_682, %c0_683] : memref<9x1x256xf32, #tpu.memory_space<vmem>>, vector<1x1x256xf32>
    %1126 = vector.shape_cast %1125 : vector<1x1x256xf32> to vector<1x256xf32>
    %1127 = vector.broadcast %1126 : vector<1x256xf32> to vector<16x256xf32>
    %1128 = arith.mulf %1124, %1127 : vector<16x256xf32>
    %1129 = arith.truncf %1128 : vector<16x256xf32> to vector<16x256xbf16>
    %c1_i32_684 = arith.constant 1 : i32
    %1130 = tpu.dynamic_rotate %1111 by %c1_i32_684 dim 1 : vector<16x256xf32>, i32 -> vector<16x256xf32>
    %c3_685 = arith.constant 3 : index
    %c0_686 = arith.constant 0 : index
    %c0_687 = arith.constant 0 : index
    %1131 = vector.load %arg10[%c3_685, %c0_686, %c0_687] : memref<9x1x256xf32, #tpu.memory_space<vmem>>, vector<1x1x256xf32>
    %1132 = vector.shape_cast %1131 : vector<1x1x256xf32> to vector<1x256xf32>
    %1133 = vector.broadcast %1132 : vector<1x256xf32> to vector<16x256xf32>
    %1134 = arith.mulf %1130, %1133 : vector<16x256xf32>
    %1135 = arith.truncf %1134 : vector<16x256xf32> to vector<16x256xbf16>
    %1136 = arith.truncf %1111 : vector<16x256xf32> to vector<16x256xbf16>
    %c255_i32_688 = arith.constant 255 : i32
    %1137 = tpu.dynamic_rotate %1111 by %c255_i32_688 dim 1 : vector<16x256xf32>, i32 -> vector<16x256xf32>
    %c5_689 = arith.constant 5 : index
    %c0_690 = arith.constant 0 : index
    %c0_691 = arith.constant 0 : index
    %1138 = vector.load %arg10[%c5_689, %c0_690, %c0_691] : memref<9x1x256xf32, #tpu.memory_space<vmem>>, vector<1x1x256xf32>
    %1139 = vector.shape_cast %1138 : vector<1x1x256xf32> to vector<1x256xf32>
    %1140 = vector.broadcast %1139 : vector<1x256xf32> to vector<16x256xf32>
    %1141 = arith.mulf %1137, %1140 : vector<16x256xf32>
    %1142 = arith.truncf %1141 : vector<16x256xf32> to vector<16x256xbf16>
    %c241_i32_692 = arith.constant 241 : i32
    %1143 = tpu.dynamic_rotate %1111 by %c241_i32_692 dim 1 : vector<16x256xf32>, i32 -> vector<16x256xf32>
    %c6_693 = arith.constant 6 : index
    %c0_694 = arith.constant 0 : index
    %c0_695 = arith.constant 0 : index
    %1144 = vector.load %arg10[%c6_693, %c0_694, %c0_695] : memref<9x1x256xf32, #tpu.memory_space<vmem>>, vector<1x1x256xf32>
    %1145 = vector.shape_cast %1144 : vector<1x1x256xf32> to vector<1x256xf32>
    %1146 = vector.broadcast %1145 : vector<1x256xf32> to vector<16x256xf32>
    %1147 = arith.mulf %1143, %1146 : vector<16x256xf32>
    %1148 = arith.truncf %1147 : vector<16x256xf32> to vector<16x256xbf16>
    %c240_i32_696 = arith.constant 240 : i32
    %1149 = tpu.dynamic_rotate %1111 by %c240_i32_696 dim 1 : vector<16x256xf32>, i32 -> vector<16x256xf32>
    %c7_697 = arith.constant 7 : index
    %c0_698 = arith.constant 0 : index
    %c0_699 = arith.constant 0 : index
    %1150 = vector.load %arg10[%c7_697, %c0_698, %c0_699] : memref<9x1x256xf32, #tpu.memory_space<vmem>>, vector<1x1x256xf32>
    %1151 = vector.shape_cast %1150 : vector<1x1x256xf32> to vector<1x256xf32>
    %1152 = vector.broadcast %1151 : vector<1x256xf32> to vector<16x256xf32>
    %1153 = arith.mulf %1149, %1152 : vector<16x256xf32>
    %1154 = arith.truncf %1153 : vector<16x256xf32> to vector<16x256xbf16>
    %c239_i32_700 = arith.constant 239 : i32
    %1155 = tpu.dynamic_rotate %1111 by %c239_i32_700 dim 1 : vector<16x256xf32>, i32 -> vector<16x256xf32>
    %c8_701 = arith.constant 8 : index
    %c0_702 = arith.constant 0 : index
    %c0_703 = arith.constant 0 : index
    %1156 = vector.load %arg10[%c8_701, %c0_702, %c0_703] : memref<9x1x256xf32, #tpu.memory_space<vmem>>, vector<1x1x256xf32>
    %1157 = vector.shape_cast %1156 : vector<1x1x256xf32> to vector<1x256xf32>
    %1158 = vector.broadcast %1157 : vector<1x256xf32> to vector<16x256xf32>
    %1159 = arith.mulf %1155, %1158 : vector<16x256xf32>
    %1160 = arith.truncf %1159 : vector<16x256xf32> to vector<16x256xbf16>
    %1161 = tpu.concatenate %1117, %1123, %1129, %1135, %1136, %1142, %1148, %1154, %1160 in 0 : vector<16x256xbf16>, vector<16x256xbf16>, vector<16x256xbf16>, vector<16x256xbf16>, vector<16x256xbf16>, vector<16x256xbf16>, vector<16x256xbf16>, vector<16x256xbf16>, vector<16x256xbf16> -> vector<144x256xbf16>
    %c16 = arith.constant 16 : index
    %c0_704 = arith.constant 0 : index
    %c0_705 = arith.constant 0 : index
    %1162 = vector.load %arg2[%c16, %c0_704, %c0_705] : memref<20x16x144xbf16, #tpu.memory_space<vmem>>, vector<1x16x144xbf16>
    %1163 = vector.shape_cast %1162 : vector<1x16x144xbf16> to vector<16x144xbf16>
    %cst_706 = arith.constant dense<0.000000e+00> : vector<16x256xf32>
    %1164 = tpu.matmul %1163, %1161, %cst_706 {dimension_numbers = #tpu.dot_dimension_numbers<[1], [0], [0], [1], [0, 0, 1, 1], [], []>} : vector<16x144xbf16>, vector<144x256xbf16>, vector<16x256xf32> -> vector<16x256xf32>
    %c16_707 = arith.constant 16 : index
    %c0_708 = arith.constant 0 : index
    %c0_709 = arith.constant 0 : index
    %1165 = vector.load %arg3[%c16_707, %c0_708, %c0_709] : memref<20x16x1xf32, #tpu.memory_space<vmem>>, vector<1x16x1xf32>
    %1166 = vector.shape_cast %1165 : vector<1x16x1xf32> to vector<16x1xf32>
    %1167 = vector.broadcast %1166 : vector<16x1xf32> to vector<16x256xf32>
    %1168 = arith.addf %1164, %1167 : vector<16x256xf32>
    %1169 = arith.addf %1168, %1052 : vector<16x256xf32>
    %c17_i32_710 = arith.constant 17 : i32
    %1170 = tpu.dynamic_rotate %1169 by %c17_i32_710 dim 1 : vector<16x256xf32>, i32 -> vector<16x256xf32>
    %c0_711 = arith.constant 0 : index
    %c0_712 = arith.constant 0 : index
    %c0_713 = arith.constant 0 : index
    %1171 = vector.load %arg10[%c0_711, %c0_712, %c0_713] : memref<9x1x256xf32, #tpu.memory_space<vmem>>, vector<1x1x256xf32>
    %1172 = vector.shape_cast %1171 : vector<1x1x256xf32> to vector<1x256xf32>
    %1173 = vector.broadcast %1172 : vector<1x256xf32> to vector<16x256xf32>
    %1174 = arith.mulf %1170, %1173 : vector<16x256xf32>
    %1175 = arith.truncf %1174 : vector<16x256xf32> to vector<16x256xbf16>
    %c16_i32_714 = arith.constant 16 : i32
    %1176 = tpu.dynamic_rotate %1169 by %c16_i32_714 dim 1 : vector<16x256xf32>, i32 -> vector<16x256xf32>
    %c1_715 = arith.constant 1 : index
    %c0_716 = arith.constant 0 : index
    %c0_717 = arith.constant 0 : index
    %1177 = vector.load %arg10[%c1_715, %c0_716, %c0_717] : memref<9x1x256xf32, #tpu.memory_space<vmem>>, vector<1x1x256xf32>
    %1178 = vector.shape_cast %1177 : vector<1x1x256xf32> to vector<1x256xf32>
    %1179 = vector.broadcast %1178 : vector<1x256xf32> to vector<16x256xf32>
    %1180 = arith.mulf %1176, %1179 : vector<16x256xf32>
    %1181 = arith.truncf %1180 : vector<16x256xf32> to vector<16x256xbf16>
    %c15_i32_718 = arith.constant 15 : i32
    %1182 = tpu.dynamic_rotate %1169 by %c15_i32_718 dim 1 : vector<16x256xf32>, i32 -> vector<16x256xf32>
    %c2_719 = arith.constant 2 : index
    %c0_720 = arith.constant 0 : index
    %c0_721 = arith.constant 0 : index
    %1183 = vector.load %arg10[%c2_719, %c0_720, %c0_721] : memref<9x1x256xf32, #tpu.memory_space<vmem>>, vector<1x1x256xf32>
    %1184 = vector.shape_cast %1183 : vector<1x1x256xf32> to vector<1x256xf32>
    %1185 = vector.broadcast %1184 : vector<1x256xf32> to vector<16x256xf32>
    %1186 = arith.mulf %1182, %1185 : vector<16x256xf32>
    %1187 = arith.truncf %1186 : vector<16x256xf32> to vector<16x256xbf16>
    %c1_i32_722 = arith.constant 1 : i32
    %1188 = tpu.dynamic_rotate %1169 by %c1_i32_722 dim 1 : vector<16x256xf32>, i32 -> vector<16x256xf32>
    %c3_723 = arith.constant 3 : index
    %c0_724 = arith.constant 0 : index
    %c0_725 = arith.constant 0 : index
    %1189 = vector.load %arg10[%c3_723, %c0_724, %c0_725] : memref<9x1x256xf32, #tpu.memory_space<vmem>>, vector<1x1x256xf32>
    %1190 = vector.shape_cast %1189 : vector<1x1x256xf32> to vector<1x256xf32>
    %1191 = vector.broadcast %1190 : vector<1x256xf32> to vector<16x256xf32>
    %1192 = arith.mulf %1188, %1191 : vector<16x256xf32>
    %1193 = arith.truncf %1192 : vector<16x256xf32> to vector<16x256xbf16>
    %1194 = arith.truncf %1169 : vector<16x256xf32> to vector<16x256xbf16>
    %c255_i32_726 = arith.constant 255 : i32
    %1195 = tpu.dynamic_rotate %1169 by %c255_i32_726 dim 1 : vector<16x256xf32>, i32 -> vector<16x256xf32>
    %c5_727 = arith.constant 5 : index
    %c0_728 = arith.constant 0 : index
    %c0_729 = arith.constant 0 : index
    %1196 = vector.load %arg10[%c5_727, %c0_728, %c0_729] : memref<9x1x256xf32, #tpu.memory_space<vmem>>, vector<1x1x256xf32>
    %1197 = vector.shape_cast %1196 : vector<1x1x256xf32> to vector<1x256xf32>
    %1198 = vector.broadcast %1197 : vector<1x256xf32> to vector<16x256xf32>
    %1199 = arith.mulf %1195, %1198 : vector<16x256xf32>
    %1200 = arith.truncf %1199 : vector<16x256xf32> to vector<16x256xbf16>
    %c241_i32_730 = arith.constant 241 : i32
    %1201 = tpu.dynamic_rotate %1169 by %c241_i32_730 dim 1 : vector<16x256xf32>, i32 -> vector<16x256xf32>
    %c6_731 = arith.constant 6 : index
    %c0_732 = arith.constant 0 : index
    %c0_733 = arith.constant 0 : index
    %1202 = vector.load %arg10[%c6_731, %c0_732, %c0_733] : memref<9x1x256xf32, #tpu.memory_space<vmem>>, vector<1x1x256xf32>
    %1203 = vector.shape_cast %1202 : vector<1x1x256xf32> to vector<1x256xf32>
    %1204 = vector.broadcast %1203 : vector<1x256xf32> to vector<16x256xf32>
    %1205 = arith.mulf %1201, %1204 : vector<16x256xf32>
    %1206 = arith.truncf %1205 : vector<16x256xf32> to vector<16x256xbf16>
    %c240_i32_734 = arith.constant 240 : i32
    %1207 = tpu.dynamic_rotate %1169 by %c240_i32_734 dim 1 : vector<16x256xf32>, i32 -> vector<16x256xf32>
    %c7_735 = arith.constant 7 : index
    %c0_736 = arith.constant 0 : index
    %c0_737 = arith.constant 0 : index
    %1208 = vector.load %arg10[%c7_735, %c0_736, %c0_737] : memref<9x1x256xf32, #tpu.memory_space<vmem>>, vector<1x1x256xf32>
    %1209 = vector.shape_cast %1208 : vector<1x1x256xf32> to vector<1x256xf32>
    %1210 = vector.broadcast %1209 : vector<1x256xf32> to vector<16x256xf32>
    %1211 = arith.mulf %1207, %1210 : vector<16x256xf32>
    %1212 = arith.truncf %1211 : vector<16x256xf32> to vector<16x256xbf16>
    %c239_i32_738 = arith.constant 239 : i32
    %1213 = tpu.dynamic_rotate %1169 by %c239_i32_738 dim 1 : vector<16x256xf32>, i32 -> vector<16x256xf32>
    %c8_739 = arith.constant 8 : index
    %c0_740 = arith.constant 0 : index
    %c0_741 = arith.constant 0 : index
    %1214 = vector.load %arg10[%c8_739, %c0_740, %c0_741] : memref<9x1x256xf32, #tpu.memory_space<vmem>>, vector<1x1x256xf32>
    %1215 = vector.shape_cast %1214 : vector<1x1x256xf32> to vector<1x256xf32>
    %1216 = vector.broadcast %1215 : vector<1x256xf32> to vector<16x256xf32>
    %1217 = arith.mulf %1213, %1216 : vector<16x256xf32>
    %1218 = arith.truncf %1217 : vector<16x256xf32> to vector<16x256xbf16>
    %1219 = tpu.concatenate %1175, %1181, %1187, %1193, %1194, %1200, %1206, %1212, %1218 in 0 : vector<16x256xbf16>, vector<16x256xbf16>, vector<16x256xbf16>, vector<16x256xbf16>, vector<16x256xbf16>, vector<16x256xbf16>, vector<16x256xbf16>, vector<16x256xbf16>, vector<16x256xbf16> -> vector<144x256xbf16>
    %c17 = arith.constant 17 : index
    %c0_742 = arith.constant 0 : index
    %c0_743 = arith.constant 0 : index
    %1220 = vector.load %arg2[%c17, %c0_742, %c0_743] : memref<20x16x144xbf16, #tpu.memory_space<vmem>>, vector<1x16x144xbf16>
    %1221 = vector.shape_cast %1220 : vector<1x16x144xbf16> to vector<16x144xbf16>
    %cst_744 = arith.constant dense<0.000000e+00> : vector<16x256xf32>
    %1222 = tpu.matmul %1221, %1219, %cst_744 {dimension_numbers = #tpu.dot_dimension_numbers<[1], [0], [0], [1], [0, 0, 1, 1], [], []>} : vector<16x144xbf16>, vector<144x256xbf16>, vector<16x256xf32> -> vector<16x256xf32>
    %c17_745 = arith.constant 17 : index
    %c0_746 = arith.constant 0 : index
    %c0_747 = arith.constant 0 : index
    %1223 = vector.load %arg3[%c17_745, %c0_746, %c0_747] : memref<20x16x1xf32, #tpu.memory_space<vmem>>, vector<1x16x1xf32>
    %1224 = vector.shape_cast %1223 : vector<1x16x1xf32> to vector<16x1xf32>
    %1225 = vector.broadcast %1224 : vector<16x1xf32> to vector<16x256xf32>
    %1226 = arith.addf %1222, %1225 : vector<16x256xf32>
    %cst_748 = arith.constant 0.000000e+00 : f32
    %1227 = vector.broadcast %cst_748 : f32 to vector<16x256xf32>
    %1228 = arith.maximumf %1226, %1227 : vector<16x256xf32>
    %c17_i32_749 = arith.constant 17 : i32
    %1229 = tpu.dynamic_rotate %1228 by %c17_i32_749 dim 1 : vector<16x256xf32>, i32 -> vector<16x256xf32>
    %c0_750 = arith.constant 0 : index
    %c0_751 = arith.constant 0 : index
    %c0_752 = arith.constant 0 : index
    %1230 = vector.load %arg10[%c0_750, %c0_751, %c0_752] : memref<9x1x256xf32, #tpu.memory_space<vmem>>, vector<1x1x256xf32>
    %1231 = vector.shape_cast %1230 : vector<1x1x256xf32> to vector<1x256xf32>
    %1232 = vector.broadcast %1231 : vector<1x256xf32> to vector<16x256xf32>
    %1233 = arith.mulf %1229, %1232 : vector<16x256xf32>
    %1234 = arith.truncf %1233 : vector<16x256xf32> to vector<16x256xbf16>
    %c16_i32_753 = arith.constant 16 : i32
    %1235 = tpu.dynamic_rotate %1228 by %c16_i32_753 dim 1 : vector<16x256xf32>, i32 -> vector<16x256xf32>
    %c1_754 = arith.constant 1 : index
    %c0_755 = arith.constant 0 : index
    %c0_756 = arith.constant 0 : index
    %1236 = vector.load %arg10[%c1_754, %c0_755, %c0_756] : memref<9x1x256xf32, #tpu.memory_space<vmem>>, vector<1x1x256xf32>
    %1237 = vector.shape_cast %1236 : vector<1x1x256xf32> to vector<1x256xf32>
    %1238 = vector.broadcast %1237 : vector<1x256xf32> to vector<16x256xf32>
    %1239 = arith.mulf %1235, %1238 : vector<16x256xf32>
    %1240 = arith.truncf %1239 : vector<16x256xf32> to vector<16x256xbf16>
    %c15_i32_757 = arith.constant 15 : i32
    %1241 = tpu.dynamic_rotate %1228 by %c15_i32_757 dim 1 : vector<16x256xf32>, i32 -> vector<16x256xf32>
    %c2_758 = arith.constant 2 : index
    %c0_759 = arith.constant 0 : index
    %c0_760 = arith.constant 0 : index
    %1242 = vector.load %arg10[%c2_758, %c0_759, %c0_760] : memref<9x1x256xf32, #tpu.memory_space<vmem>>, vector<1x1x256xf32>
    %1243 = vector.shape_cast %1242 : vector<1x1x256xf32> to vector<1x256xf32>
    %1244 = vector.broadcast %1243 : vector<1x256xf32> to vector<16x256xf32>
    %1245 = arith.mulf %1241, %1244 : vector<16x256xf32>
    %1246 = arith.truncf %1245 : vector<16x256xf32> to vector<16x256xbf16>
    %c1_i32_761 = arith.constant 1 : i32
    %1247 = tpu.dynamic_rotate %1228 by %c1_i32_761 dim 1 : vector<16x256xf32>, i32 -> vector<16x256xf32>
    %c3_762 = arith.constant 3 : index
    %c0_763 = arith.constant 0 : index
    %c0_764 = arith.constant 0 : index
    %1248 = vector.load %arg10[%c3_762, %c0_763, %c0_764] : memref<9x1x256xf32, #tpu.memory_space<vmem>>, vector<1x1x256xf32>
    %1249 = vector.shape_cast %1248 : vector<1x1x256xf32> to vector<1x256xf32>
    %1250 = vector.broadcast %1249 : vector<1x256xf32> to vector<16x256xf32>
    %1251 = arith.mulf %1247, %1250 : vector<16x256xf32>
    %1252 = arith.truncf %1251 : vector<16x256xf32> to vector<16x256xbf16>
    %1253 = arith.truncf %1228 : vector<16x256xf32> to vector<16x256xbf16>
    %c255_i32_765 = arith.constant 255 : i32
    %1254 = tpu.dynamic_rotate %1228 by %c255_i32_765 dim 1 : vector<16x256xf32>, i32 -> vector<16x256xf32>
    %c5_766 = arith.constant 5 : index
    %c0_767 = arith.constant 0 : index
    %c0_768 = arith.constant 0 : index
    %1255 = vector.load %arg10[%c5_766, %c0_767, %c0_768] : memref<9x1x256xf32, #tpu.memory_space<vmem>>, vector<1x1x256xf32>
    %1256 = vector.shape_cast %1255 : vector<1x1x256xf32> to vector<1x256xf32>
    %1257 = vector.broadcast %1256 : vector<1x256xf32> to vector<16x256xf32>
    %1258 = arith.mulf %1254, %1257 : vector<16x256xf32>
    %1259 = arith.truncf %1258 : vector<16x256xf32> to vector<16x256xbf16>
    %c241_i32_769 = arith.constant 241 : i32
    %1260 = tpu.dynamic_rotate %1228 by %c241_i32_769 dim 1 : vector<16x256xf32>, i32 -> vector<16x256xf32>
    %c6_770 = arith.constant 6 : index
    %c0_771 = arith.constant 0 : index
    %c0_772 = arith.constant 0 : index
    %1261 = vector.load %arg10[%c6_770, %c0_771, %c0_772] : memref<9x1x256xf32, #tpu.memory_space<vmem>>, vector<1x1x256xf32>
    %1262 = vector.shape_cast %1261 : vector<1x1x256xf32> to vector<1x256xf32>
    %1263 = vector.broadcast %1262 : vector<1x256xf32> to vector<16x256xf32>
    %1264 = arith.mulf %1260, %1263 : vector<16x256xf32>
    %1265 = arith.truncf %1264 : vector<16x256xf32> to vector<16x256xbf16>
    %c240_i32_773 = arith.constant 240 : i32
    %1266 = tpu.dynamic_rotate %1228 by %c240_i32_773 dim 1 : vector<16x256xf32>, i32 -> vector<16x256xf32>
    %c7_774 = arith.constant 7 : index
    %c0_775 = arith.constant 0 : index
    %c0_776 = arith.constant 0 : index
    %1267 = vector.load %arg10[%c7_774, %c0_775, %c0_776] : memref<9x1x256xf32, #tpu.memory_space<vmem>>, vector<1x1x256xf32>
    %1268 = vector.shape_cast %1267 : vector<1x1x256xf32> to vector<1x256xf32>
    %1269 = vector.broadcast %1268 : vector<1x256xf32> to vector<16x256xf32>
    %1270 = arith.mulf %1266, %1269 : vector<16x256xf32>
    %1271 = arith.truncf %1270 : vector<16x256xf32> to vector<16x256xbf16>
    %c239_i32_777 = arith.constant 239 : i32
    %1272 = tpu.dynamic_rotate %1228 by %c239_i32_777 dim 1 : vector<16x256xf32>, i32 -> vector<16x256xf32>
    %c8_778 = arith.constant 8 : index
    %c0_779 = arith.constant 0 : index
    %c0_780 = arith.constant 0 : index
    %1273 = vector.load %arg10[%c8_778, %c0_779, %c0_780] : memref<9x1x256xf32, #tpu.memory_space<vmem>>, vector<1x1x256xf32>
    %1274 = vector.shape_cast %1273 : vector<1x1x256xf32> to vector<1x256xf32>
    %1275 = vector.broadcast %1274 : vector<1x256xf32> to vector<16x256xf32>
    %1276 = arith.mulf %1272, %1275 : vector<16x256xf32>
    %1277 = arith.truncf %1276 : vector<16x256xf32> to vector<16x256xbf16>
    %1278 = tpu.concatenate %1234, %1240, %1246, %1252, %1253, %1259, %1265, %1271, %1277 in 0 : vector<16x256xbf16>, vector<16x256xbf16>, vector<16x256xbf16>, vector<16x256xbf16>, vector<16x256xbf16>, vector<16x256xbf16>, vector<16x256xbf16>, vector<16x256xbf16>, vector<16x256xbf16> -> vector<144x256xbf16>
    %c18 = arith.constant 18 : index
    %c0_781 = arith.constant 0 : index
    %c0_782 = arith.constant 0 : index
    %1279 = vector.load %arg2[%c18, %c0_781, %c0_782] : memref<20x16x144xbf16, #tpu.memory_space<vmem>>, vector<1x16x144xbf16>
    %1280 = vector.shape_cast %1279 : vector<1x16x144xbf16> to vector<16x144xbf16>
    %cst_783 = arith.constant dense<0.000000e+00> : vector<16x256xf32>
    %1281 = tpu.matmul %1280, %1278, %cst_783 {dimension_numbers = #tpu.dot_dimension_numbers<[1], [0], [0], [1], [0, 0, 1, 1], [], []>} : vector<16x144xbf16>, vector<144x256xbf16>, vector<16x256xf32> -> vector<16x256xf32>
    %c18_784 = arith.constant 18 : index
    %c0_785 = arith.constant 0 : index
    %c0_786 = arith.constant 0 : index
    %1282 = vector.load %arg3[%c18_784, %c0_785, %c0_786] : memref<20x16x1xf32, #tpu.memory_space<vmem>>, vector<1x16x1xf32>
    %1283 = vector.shape_cast %1282 : vector<1x16x1xf32> to vector<16x1xf32>
    %1284 = vector.broadcast %1283 : vector<16x1xf32> to vector<16x256xf32>
    %1285 = arith.addf %1281, %1284 : vector<16x256xf32>
    %1286 = arith.addf %1285, %1169 : vector<16x256xf32>
    %c17_i32_787 = arith.constant 17 : i32
    %1287 = tpu.dynamic_rotate %1286 by %c17_i32_787 dim 1 : vector<16x256xf32>, i32 -> vector<16x256xf32>
    %c0_788 = arith.constant 0 : index
    %c0_789 = arith.constant 0 : index
    %c0_790 = arith.constant 0 : index
    %1288 = vector.load %arg10[%c0_788, %c0_789, %c0_790] : memref<9x1x256xf32, #tpu.memory_space<vmem>>, vector<1x1x256xf32>
    %1289 = vector.shape_cast %1288 : vector<1x1x256xf32> to vector<1x256xf32>
    %1290 = vector.broadcast %1289 : vector<1x256xf32> to vector<16x256xf32>
    %1291 = arith.mulf %1287, %1290 : vector<16x256xf32>
    %1292 = arith.truncf %1291 : vector<16x256xf32> to vector<16x256xbf16>
    %c16_i32_791 = arith.constant 16 : i32
    %1293 = tpu.dynamic_rotate %1286 by %c16_i32_791 dim 1 : vector<16x256xf32>, i32 -> vector<16x256xf32>
    %c1_792 = arith.constant 1 : index
    %c0_793 = arith.constant 0 : index
    %c0_794 = arith.constant 0 : index
    %1294 = vector.load %arg10[%c1_792, %c0_793, %c0_794] : memref<9x1x256xf32, #tpu.memory_space<vmem>>, vector<1x1x256xf32>
    %1295 = vector.shape_cast %1294 : vector<1x1x256xf32> to vector<1x256xf32>
    %1296 = vector.broadcast %1295 : vector<1x256xf32> to vector<16x256xf32>
    %1297 = arith.mulf %1293, %1296 : vector<16x256xf32>
    %1298 = arith.truncf %1297 : vector<16x256xf32> to vector<16x256xbf16>
    %c15_i32_795 = arith.constant 15 : i32
    %1299 = tpu.dynamic_rotate %1286 by %c15_i32_795 dim 1 : vector<16x256xf32>, i32 -> vector<16x256xf32>
    %c2_796 = arith.constant 2 : index
    %c0_797 = arith.constant 0 : index
    %c0_798 = arith.constant 0 : index
    %1300 = vector.load %arg10[%c2_796, %c0_797, %c0_798] : memref<9x1x256xf32, #tpu.memory_space<vmem>>, vector<1x1x256xf32>
    %1301 = vector.shape_cast %1300 : vector<1x1x256xf32> to vector<1x256xf32>
    %1302 = vector.broadcast %1301 : vector<1x256xf32> to vector<16x256xf32>
    %1303 = arith.mulf %1299, %1302 : vector<16x256xf32>
    %1304 = arith.truncf %1303 : vector<16x256xf32> to vector<16x256xbf16>
    %c1_i32_799 = arith.constant 1 : i32
    %1305 = tpu.dynamic_rotate %1286 by %c1_i32_799 dim 1 : vector<16x256xf32>, i32 -> vector<16x256xf32>
    %c3_800 = arith.constant 3 : index
    %c0_801 = arith.constant 0 : index
    %c0_802 = arith.constant 0 : index
    %1306 = vector.load %arg10[%c3_800, %c0_801, %c0_802] : memref<9x1x256xf32, #tpu.memory_space<vmem>>, vector<1x1x256xf32>
    %1307 = vector.shape_cast %1306 : vector<1x1x256xf32> to vector<1x256xf32>
    %1308 = vector.broadcast %1307 : vector<1x256xf32> to vector<16x256xf32>
    %1309 = arith.mulf %1305, %1308 : vector<16x256xf32>
    %1310 = arith.truncf %1309 : vector<16x256xf32> to vector<16x256xbf16>
    %1311 = arith.truncf %1286 : vector<16x256xf32> to vector<16x256xbf16>
    %c255_i32_803 = arith.constant 255 : i32
    %1312 = tpu.dynamic_rotate %1286 by %c255_i32_803 dim 1 : vector<16x256xf32>, i32 -> vector<16x256xf32>
    %c5_804 = arith.constant 5 : index
    %c0_805 = arith.constant 0 : index
    %c0_806 = arith.constant 0 : index
    %1313 = vector.load %arg10[%c5_804, %c0_805, %c0_806] : memref<9x1x256xf32, #tpu.memory_space<vmem>>, vector<1x1x256xf32>
    %1314 = vector.shape_cast %1313 : vector<1x1x256xf32> to vector<1x256xf32>
    %1315 = vector.broadcast %1314 : vector<1x256xf32> to vector<16x256xf32>
    %1316 = arith.mulf %1312, %1315 : vector<16x256xf32>
    %1317 = arith.truncf %1316 : vector<16x256xf32> to vector<16x256xbf16>
    %c241_i32_807 = arith.constant 241 : i32
    %1318 = tpu.dynamic_rotate %1286 by %c241_i32_807 dim 1 : vector<16x256xf32>, i32 -> vector<16x256xf32>
    %c6_808 = arith.constant 6 : index
    %c0_809 = arith.constant 0 : index
    %c0_810 = arith.constant 0 : index
    %1319 = vector.load %arg10[%c6_808, %c0_809, %c0_810] : memref<9x1x256xf32, #tpu.memory_space<vmem>>, vector<1x1x256xf32>
    %1320 = vector.shape_cast %1319 : vector<1x1x256xf32> to vector<1x256xf32>
    %1321 = vector.broadcast %1320 : vector<1x256xf32> to vector<16x256xf32>
    %1322 = arith.mulf %1318, %1321 : vector<16x256xf32>
    %1323 = arith.truncf %1322 : vector<16x256xf32> to vector<16x256xbf16>
    %c240_i32_811 = arith.constant 240 : i32
    %1324 = tpu.dynamic_rotate %1286 by %c240_i32_811 dim 1 : vector<16x256xf32>, i32 -> vector<16x256xf32>
    %c7_812 = arith.constant 7 : index
    %c0_813 = arith.constant 0 : index
    %c0_814 = arith.constant 0 : index
    %1325 = vector.load %arg10[%c7_812, %c0_813, %c0_814] : memref<9x1x256xf32, #tpu.memory_space<vmem>>, vector<1x1x256xf32>
    %1326 = vector.shape_cast %1325 : vector<1x1x256xf32> to vector<1x256xf32>
    %1327 = vector.broadcast %1326 : vector<1x256xf32> to vector<16x256xf32>
    %1328 = arith.mulf %1324, %1327 : vector<16x256xf32>
    %1329 = arith.truncf %1328 : vector<16x256xf32> to vector<16x256xbf16>
    %c239_i32_815 = arith.constant 239 : i32
    %1330 = tpu.dynamic_rotate %1286 by %c239_i32_815 dim 1 : vector<16x256xf32>, i32 -> vector<16x256xf32>
    %c8_816 = arith.constant 8 : index
    %c0_817 = arith.constant 0 : index
    %c0_818 = arith.constant 0 : index
    %1331 = vector.load %arg10[%c8_816, %c0_817, %c0_818] : memref<9x1x256xf32, #tpu.memory_space<vmem>>, vector<1x1x256xf32>
    %1332 = vector.shape_cast %1331 : vector<1x1x256xf32> to vector<1x256xf32>
    %1333 = vector.broadcast %1332 : vector<1x256xf32> to vector<16x256xf32>
    %1334 = arith.mulf %1330, %1333 : vector<16x256xf32>
    %1335 = arith.truncf %1334 : vector<16x256xf32> to vector<16x256xbf16>
    %1336 = tpu.concatenate %1292, %1298, %1304, %1310, %1311, %1317, %1323, %1329, %1335 in 0 : vector<16x256xbf16>, vector<16x256xbf16>, vector<16x256xbf16>, vector<16x256xbf16>, vector<16x256xbf16>, vector<16x256xbf16>, vector<16x256xbf16>, vector<16x256xbf16>, vector<16x256xbf16> -> vector<144x256xbf16>
    %c19 = arith.constant 19 : index
    %c0_819 = arith.constant 0 : index
    %c0_820 = arith.constant 0 : index
    %1337 = vector.load %arg2[%c19, %c0_819, %c0_820] : memref<20x16x144xbf16, #tpu.memory_space<vmem>>, vector<1x16x144xbf16>
    %1338 = vector.shape_cast %1337 : vector<1x16x144xbf16> to vector<16x144xbf16>
    %cst_821 = arith.constant dense<0.000000e+00> : vector<16x256xf32>
    %1339 = tpu.matmul %1338, %1336, %cst_821 {dimension_numbers = #tpu.dot_dimension_numbers<[1], [0], [0], [1], [0, 0, 1, 1], [], []>} : vector<16x144xbf16>, vector<144x256xbf16>, vector<16x256xf32> -> vector<16x256xf32>
    %c19_822 = arith.constant 19 : index
    %c0_823 = arith.constant 0 : index
    %c0_824 = arith.constant 0 : index
    %1340 = vector.load %arg3[%c19_822, %c0_823, %c0_824] : memref<20x16x1xf32, #tpu.memory_space<vmem>>, vector<1x16x1xf32>
    %1341 = vector.shape_cast %1340 : vector<1x16x1xf32> to vector<16x1xf32>
    %1342 = vector.broadcast %1341 : vector<16x1xf32> to vector<16x256xf32>
    %1343 = arith.addf %1339, %1342 : vector<16x256xf32>
    %c0_825 = arith.constant 0 : index
    %c0_826 = arith.constant 0 : index
    %c0_827 = arith.constant 0 : index
    %1344 = vector.load %arg12[%c0_825, %c0_826, %c0_827] : memref<1x16x256xf32, #tpu.memory_space<vmem>>, vector<1x16x256xf32>
    %1345 = vector.shape_cast %1344 : vector<1x16x256xf32> to vector<16x256xf32>
    %1346 = vector.shape_cast %1343 : vector<16x256xf32> to vector<1x16x256xf32>
    tpu.vector_store %arg12[%c0_825, %c0_826, %c0_827], %1346 {strides = array<i32>} : memref<1x16x256xf32, #tpu.memory_space<vmem>>, vector<1x16x256xf32>,
    return
  }
  func.func @transform_0(%arg0: i32) -> (i32, i32, i32) {
    %c0_i32 = arith.constant 0 : i32
    %c0_i32_0 = arith.constant 0 : i32
    %c0_i32_1 = arith.constant 0 : i32
    return %arg0, %c0_i32, %c0_i32_0 : i32, i32, i32
  }
  func.func @transform_1(%arg0: i32) -> (i32, i32, i32) {
    %c0_i32 = arith.constant 0 : i32
    %c0_i32_0 = arith.constant 0 : i32
    %c0_i32_1 = arith.constant 0 : i32
    %c0_i32_2 = arith.constant 0 : i32
    return %c0_i32, %c0_i32_0, %c0_i32_1 : i32, i32, i32
  }
  func.func @transform_2(%arg0: i32) -> (i32, i32, i32) {
    %c0_i32 = arith.constant 0 : i32
    %c0_i32_0 = arith.constant 0 : i32
    %c0_i32_1 = arith.constant 0 : i32
    %c0_i32_2 = arith.constant 0 : i32
    return %c0_i32, %c0_i32_0, %c0_i32_1 : i32, i32, i32
  }
  func.func @transform_3(%arg0: i32) -> (i32, i32) {
    %c0_i32 = arith.constant 0 : i32
    %c0_i32_0 = arith.constant 0 : i32
    %c0_i32_1 = arith.constant 0 : i32
    return %c0_i32, %c0_i32_0 : i32, i32
  }
  func.func @transform_4(%arg0: i32) -> (i32, i32) {
    %c0_i32 = arith.constant 0 : i32
    %c0_i32_0 = arith.constant 0 : i32
    %c0_i32_1 = arith.constant 0 : i32
    return %c0_i32, %c0_i32_0 : i32, i32
  }
  func.func @transform_5(%arg0: i32) -> (i32, i32) {
    %c0_i32 = arith.constant 0 : i32
    %c0_i32_0 = arith.constant 0 : i32
    %c0_i32_1 = arith.constant 0 : i32
    return %c0_i32, %c0_i32_0 : i32, i32
  }
  func.func @transform_6(%arg0: i32) -> (i32, i32) {
    %c0_i32 = arith.constant 0 : i32
    %c0_i32_0 = arith.constant 0 : i32
    %c0_i32_1 = arith.constant 0 : i32
    return %c0_i32, %c0_i32_0 : i32, i32
  }
  func.func @transform_7(%arg0: i32) -> (i32, i32) {
    %c0_i32 = arith.constant 0 : i32
    %c0_i32_0 = arith.constant 0 : i32
    %c0_i32_1 = arith.constant 0 : i32
    return %c0_i32, %c0_i32_0 : i32, i32
  }
  func.func @transform_8(%arg0: i32) -> (i32, i32, i32) {
    %c0_i32 = arith.constant 0 : i32
    %c0_i32_0 = arith.constant 0 : i32
    %c0_i32_1 = arith.constant 0 : i32
    %c0_i32_2 = arith.constant 0 : i32
    return %c0_i32, %c0_i32_0, %c0_i32_1 : i32, i32, i32
  }
  func.func @transform_9(%arg0: i32) -> (i32, i32, i32) {
    %c0_i32 = arith.constant 0 : i32
    %c0_i32_0 = arith.constant 0 : i32
    %c0_i32_1 = arith.constant 0 : i32
    %c0_i32_2 = arith.constant 0 : i32
    return %c0_i32, %c0_i32_0, %c0_i32_1 : i32, i32, i32
  }
  func.func @transform_10(%arg0: i32) -> (i32, i32, i32) {
    %c0_i32 = arith.constant 0 : i32
    %c0_i32_0 = arith.constant 0 : i32
    %c0_i32_1 = arith.constant 0 : i32
    %c0_i32_2 = arith.constant 0 : i32
    return %c0_i32, %c0_i32_0, %c0_i32_1 : i32, i32, i32
  }
  func.func @transform_11(%arg0: i32) -> (i32, i32, i32) {
    %c0_i32 = arith.constant 0 : i32
    %c0_i32_0 = arith.constant 0 : i32
    %c0_i32_1 = arith.constant 0 : i32
    return %arg0, %c0_i32, %c0_i32_0 : i32, i32, i32
  }
}

</mosaic_0001>

<bundles_post_ra>
// kernel: res_group_forward.1
= control target key start
LH: loop header
LB: loop body
LE: loop exit
PB: predicated region body
PF: predicated region fallthrough
CT: control target
= control target key end

     0   :  { %s6114_s17 = smov 0   ;;  %s10303_s0 = inlined_call_operand.vmem [shape: f32[2,16,256], index: 0, kind: input, shape index: {}]   ;;  %s10304_s1 = inlined_call_operand.vmem [shape: bf16[20,16,144], index: 1, kind: input, shape index: {}]   ;;  %s10305_s2 = inlined_call_operand.vmem [shape: f32[20,16,1], index: 2, kind: input, shape index: {}]   ;;  %s10306_s3 = inlined_call_operand.vmem [shape: bf16[64,144], index: 3, kind: input, shape index: {}]   ;;  %s10307_s4 = inlined_call_operand.vmem [shape: f32[16,1], index: 4, kind: input, shape index: {}]   ;;  %s10308_s5 = inlined_call_operand.vmem [shape: bf16[16,16], index: 5, kind: input, shape index: {}]   ;;  %s10309_s6 = inlined_call_operand.vmem [shape: f32[16,1], index: 6, kind: input, shape index: {}]   ;;  %s10310_s7 = inlined_call_operand.vmem [shape: bf16[256,64], index: 7, kind: input, shape index: {}]   ;;  %s10311_s8 = inlined_call_operand.vmem [shape: bf16[4,64,256], index: 8, kind: input, shape index: {}]   ;;  %s10312_s9 = inlined_call_operand.vmem [shape: f32[9,1,256], index: 9, kind: input, shape index: {}]   ;;  %s10313_s10 = inlined_call_operand.vmem [shape: f32[9,1,64], index: 10, kind: input, shape index: {}]   ;;  %s10314_s11 = inlined_call_operand.vmem [shape: f32[2,16,256], index: 11, kind: output, shape index: {}]  }
   0x1 LB: > { %s5562_s18 = sadd.s32 4294967295, %s6037_s17   ;;  %p5566_p0 = scmp.ge.s32.totalorder %s6037_s17, 1  ;;  %s6037_s17 = sphi %s6114_s17, %s21_s17  }
   0x2   : > { %p337_p1 = scmp.lt.s32.totalorder %s6037_s17, 3 }
   0x4   : > { %p338_p2 = pnand %p5566_p0, %p337_p1 }
   0x6   : > { %341 = sbr.rel (%p338_p2) target bundleno = 7944 (0x1f08), region = 64 }
   0xb   : > { %p377_p3 = scmp.lt.s32.totalorder %s5562_s18, 1  ;;  %s6039_s23 = smov 112   ;;  %v5876_v4 = vld [vmem:[%s10304_s1 + $0x4] ss:$8 sps:$4 sm:$0xff]   ;;  %vm674_vm0 = vcmask 130048   ;;  %v10315_v5 = vmov 0   ;;  %v400_v8 = vlaneseq }
   0xc   : > { %s6040_s24 = smov 113   ;;  %s6041_s25 = smov 127   ;;  %5580 = vmatprep.mubr.msk.bf16.mxu0 %vm674_vm0, %v5876_v4  ;;  %5872 = vset.pattern.permute.xlu0 %v10315_v5  ;;  %v653_v6 = vld [vmem:[%s10305_s2] sm:$0xff]  ;;  %v654_v7 = vld [vmem:[%s10305_s2 + $0x8] sm:$0xff]  ;;  %vm2642_vm9 = vcmask 457728   ;;  %vm2622_vm10 = vcmask 465920  }
   0xd   : > { %s10402_s18 = smov (!%p377_p3, %s5562_s18), 1  ;;  %s10335_s26 = smov 1   ;;  %5873 = vset.pattern.permute.xlu1 %v10315_v5  ;;  %v410_v9 = vshrl.u32 %v400_v8, 7  ;;  %v6220_v10 = vand.u32 127, %v400_v8  ;;  %v5576_v13 = vld [vmem:[%s10312_s9 + $0xe] sm:$0x3] }
   0xe   : > { %s10325_s19 = sshll.u32 %s10402_s18, 5  ;;  %s10332_s27 = smov 15   ;;  %v5575_v28 = vld [vmem:[%s10312_s9 + $0xc] sm:$0x3]  ;;  %v5574_v45 = vld [vmem:[%s10312_s9 + $0xa] sm:$0x3] }
   0xf   : > { %s6130_s22 = scalar_lea.vmem %s10303_s0, %s10325_s19  ;;  %s10330_s28 = smov 16   ;;  %v6222_v11 = vsub.s32 1, %v410_v9  ;;  %v6224_v12 = vsub.s32 0, %v410_v9  ;;  %vm595_vm1 = vcmp.lt.s32.totalorder %v6220_v10, 112  ;;  %vm563_vm2 = vcmp.lt.s32.totalorder %v6220_v10, 113 }
  0x10   : > { %v6133_v0 = vld [vmem:[%s6130_s22 + $0x8] sm:$0xff]  ;;  %v6136_v1 = vld [vmem:[%s6130_s22] sm:$0xff]  ;;  %v6143_v2 = vld [vmem:[%s6130_s22 + $0x18] sm:$0xff]  ;;  %s10326_s29 = smov 17   ;;  %s10328_s13 = smov 111   ;;  %vm531_vm3 = vcmp.lt.s32.totalorder %v6220_v10, 127 }
  0x11   : > { %591 = vrot.lane.b32.xlu1 %v6133_v0, %s6039_s23  ;;  %587 = vrot.lane.b32.xlu0 %v6136_v1, %s6039_s23  ;;  %v6146_v3 = vld [vmem:[%s6130_s22 + $0x10] sm:$0xff]  ;;  %v6231_v16 = vrot.slane %v5576_v13, %v6222_v11  ;;  %v6234_v17 = vrot.slane %v5576_v13, %v6224_v12  ;;  %v6253_v33 = vrot.slane %v5575_v28, %v6224_v12  ;;  %v5573_v62 = vld [vmem:[%s10312_s9 + $0x6] sm:$0x3]  ;;  %vm497_vm4 = vcmp.lt.s32.totalorder %v6220_v10, 1  ;;  %s6048_s30 = smov 120   ;;  %s6049_s12 = smov 121  }
  0x12   : > { %v6256_v34 = vrot.slane %v5575_v28, %v6222_v11  ;;  %v6275_v50 = vrot.slane %v5574_v45, %v6224_v12  ;;  %v6278_v51 = vrot.slane %v5574_v45, %v6222_v11  ;;  %v522_v8 = vpack.c.bf16 %v6143_v2, %v6133_v0  ;;  %s6050_s14 = smov 7   ;;  %s6051_s15 = smov 8  }
  0x13   : > { %v6299_v9 = vrot.slane %v5573_v62, %v6224_v12  ;;  %v6302_v13 = vrot.slane %v5573_v62, %v6222_v11  ;;  %vm465_vm5 = vcmp.lt.s32.totalorder %v6220_v10, 15  ;;  %vm433_vm6 = vcmp.lt.s32.totalorder %v6220_v10, 16  ;;  %s6053_s16 = smov 119  }
  0x14   : > { %vm402_vm7 = vcmp.lt.s32.totalorder %v6220_v10, 17  ;;  %vm10334_vm8 = vcmp.lt.s32.totalorder %v6220_v10, 111  ;;  %vm2602_vm11 = vcmask 515072   ;;  %vm2581_vm12 = vcmask 7168  }
  0x15   : > { %593 = vrot.lane.b32.xlu1 %v6143_v2, %s6039_s23  ;;  %589 = vrot.lane.b32.xlu0 %v6146_v3, %s6039_s23  ;;  %vm2561_vm13 = vcmask 56320   ;;  %vm2541_vm14 = vcmask 64512   ;;  %vm2522_vm15 = vcmask 72704  }
  0x19   : > { %557 = vrot.lane.b32.xlu1 %v6146_v3, %s6040_s24  ;;  %555 = vrot.lane.b32.xlu0 %v6136_v1, %s6040_s24 }
  0x1d   : > { %561 = vrot.lane.b32.xlu1 %v6143_v2, %s6040_s24  ;;  %559 = vrot.lane.b32.xlu0 %v6133_v0, %s6040_s24 }
  0x21   : > { %525 = vrot.lane.b32.xlu1 %v6146_v3, %s6041_s25  ;;  %523 = vrot.lane.b32.xlu0 %v6136_v1, %s6041_s25 }
  0x25   : > { %529 = vrot.lane.b32.xlu1 %v6143_v2, %s6041_s25  ;;  %527 = vrot.lane.b32.xlu0 %v6133_v0, %s6041_s25 }
  0x29   : > { %491 = vrot.lane.b32.xlu1 %v6146_v3, %s10335_s26  ;;  %489 = vrot.lane.b32.xlu0 %v6136_v1, %s10335_s26 }
  0x2d   : > { %495 = vrot.lane.b32.xlu1 %v6143_v2, %s10335_s26  ;;  %493 = vrot.lane.b32.xlu0 %v6133_v0, %s10335_s26 }
  0x31   : > { %459 = vrot.lane.b32.xlu1 %v6146_v3, %s10332_s27  ;;  %457 = vrot.lane.b32.xlu0 %v6136_v1, %s10332_s27 }
  0x35   : > { %463 = vrot.lane.b32.xlu1 %v6143_v2, %s10332_s27  ;;  %461 = vrot.lane.b32.xlu0 %v6133_v0, %s10332_s27 }
  0x39   : > { %427 = vrot.lane.b32.xlu1 %v6146_v3, %s10330_s28  ;;  %425 = vrot.lane.b32.xlu0 %v6136_v1, %s10330_s28 }
  0x3d   : > { %431 = vrot.lane.b32.xlu1 %v6143_v2, %s10330_s28  ;;  %429 = vrot.lane.b32.xlu0 %v6133_v0, %s10330_s28 }
  0x41   : > { %394 = vrot.lane.b32.xlu1 %v6146_v3, %s10326_s29  ;;  %392 = vrot.lane.b32.xlu0 %v6136_v1, %s10326_s29 }
  0x45   : > { %398 = vrot.lane.b32.xlu1 %v6143_v2, %s10326_s29  ;;  %396 = vrot.lane.b32.xlu0 %v6133_v0, %s10326_s29 }
  0x49   : > { %621 = vrot.lane.b32.xlu1 %v6146_v3, %s10328_s13  ;;  %619 = vrot.lane.b32.xlu0 %v6136_v1, %s10328_s13 }
  0x4d   : > { %625 = vrot.lane.b32.xlu1 %v6143_v2, %s10328_s13  ;;  %623 = vrot.lane.b32.xlu0 %v6133_v0, %s10328_s13 }
  0x51   : > { %657 = vperm.xlu0 %5872, %v653_v6   ;;  %662 = vperm.xlu1 %5873, %v654_v7  }
  0x83   : > { %v592_v14 = vpop.permute.xlu1 %591  ;;  %v588_v15 = vpop.permute.xlu0 %587 }
  0x84   : > { %v596_v18 = vsel %vm595_vm1, %v588_v15, %v592_v14  ;;  %v598_v19 = vsel %vm595_vm1, %v592_v14, %v588_v15  ;;  %v521_v14 = vpack.c.bf16 %v6146_v3, %v6136_v1 }
  0x85   : > { %v614_v24 = vmul.f32 %v6231_v16, %v598_v19  ;;  %v613_v26 = vmul.f32 %v6234_v17, %v596_v18 }
  0x87   : > { %v594_v20 = vpop.permute.xlu1 %593  ;;  %v590_v21 = vpop.permute.xlu0 %589 }
  0x88   : > { %v597_v22 = vsel %vm595_vm1, %v590_v21, %v594_v20  ;;  %v599_v23 = vsel %vm595_vm1, %v594_v20, %v590_v21 }
  0x89   : > { %v616_v25 = vmul.f32 %v6231_v16, %v599_v23  ;;  %v615_v27 = vmul.f32 %v6234_v17, %v597_v22  ;;  %v5572_v23 = vld [vmem:[%s10312_s9 + $0x4] sm:$0x3] }
  0x8a   : > { %v6323_v28 = vrot.slane %v5572_v23, %v6224_v12 }
  0x8b   : > { %v558_v29 = vpop.permute.xlu1 %557  ;;  %v556_v30 = vpop.permute.xlu0 %555  ;;  %v618_v31 = vpack.c.bf16 %v616_v25, %v614_v24  ;;  %v617_v32 = vpack.c.bf16 %v615_v27, %v613_v26 }
  0x8d   : > { %678 = vmatprep.subr.bf16.mxu0 %v618_v31 }
  0x8e   : > { %679 = vmatpush1.bf16.msra.mxu0 %v617_v32 }
  0x8f   : > { %v562_v35 = vpop.permute.xlu1 %561  ;;  %v560_v36 = vpop.permute.xlu0 %559 }
  0x90   : > { %v565_v37 = vsel %vm563_vm2, %v558_v29, %v562_v35  ;;  %v567_v38 = vsel %vm563_vm2, %v562_v35, %v558_v29  ;;  %v564_v39 = vsel %vm563_vm2, %v556_v30, %v560_v36  ;;  %v566_v40 = vsel %vm563_vm2, %v560_v36, %v556_v30 }
  0x91   : > { %v583_v41 = vmul.f32 %v6253_v33, %v565_v37  ;;  %v584_v42 = vmul.f32 %v6256_v34, %v567_v38  ;;  %v581_v43 = vmul.f32 %v6253_v33, %v564_v39  ;;  %v582_v44 = vmul.f32 %v6256_v34, %v566_v40 }
  0x92   : > { %v6326_v29 = vrot.slane %v5572_v23, %v6222_v11 }
  0x93   : > { %v526_v46 = vpop.permute.xlu1 %525  ;;  %v524_v47 = vpop.permute.xlu0 %523  ;;  %v586_v48 = vpack.c.bf16 %v584_v42, %v582_v44  ;;  %v585_v49 = vpack.c.bf16 %v583_v41, %v581_v43  ;;  %v5571_v42 = vld [vmem:[%s10312_s9 + $0x2] sm:$0x3] }
  0x95   : > { %680 = vmatprep.subr.bf16.mxu0 %v586_v48  ;;  %v6348_v48 = vrot.slane %v5571_v42, %v6222_v11 }
  0x96   : > { %681 = vmatpush1.bf16.msra.mxu0 %v585_v49 }
  0x97   : > { %v530_v52 = vpop.permute.xlu1 %529  ;;  %v528_v53 = vpop.permute.xlu0 %527 }
  0x98   : > { %v533_v54 = vsel %vm531_vm3, %v526_v46, %v530_v52  ;;  %v535_v55 = vsel %vm531_vm3, %v530_v52, %v526_v46  ;;  %v532_v56 = vsel %vm531_vm3, %v524_v47, %v528_v53  ;;  %v534_v57 = vsel %vm531_vm3, %v528_v53, %v524_v47 }
  0x99   : > { %v551_v58 = vmul.f32 %v6275_v50, %v533_v54  ;;  %v552_v59 = vmul.f32 %v6278_v51, %v535_v55  ;;  %v549_v60 = vmul.f32 %v6275_v50, %v532_v56  ;;  %v550_v61 = vmul.f32 %v6278_v51, %v534_v57 }
  0x9a   : > { %v6345_v47 = vrot.slane %v5571_v42, %v6224_v12 }
  0x9b   : > { %v492_v63 = vpop.permute.xlu1 %491  ;;  %v490_v4 = vpop.permute.xlu0 %489  ;;  %v554_v6 = vpack.c.bf16 %v552_v59, %v550_v61  ;;  %v553_v7 = vpack.c.bf16 %v551_v58, %v549_v60  ;;  %v407_v61 = vld [vmem:[%s10312_s9] sm:$0x3] }
  0x9d   : > { %682 = vmatprep.subr.bf16.mxu0 %v554_v6 }
  0x9e   : > { %683 = vmatpush1.bf16.msra.mxu0 %v553_v7  ;;  %v6367_v7 = vrot.slane %v407_v61, %v6224_v12 }
  0x9f   : > { %v496_v15 = vpop.permute.xlu1 %495  ;;  %v494_v18 = vpop.permute.xlu0 %493  ;;  %684 = vmatprep.subr.bf16.mxu0 %v522_v8  ;;  %v6370_v8 = vrot.slane %v407_v61, %v6222_v11 }
  0xa0   : > { %v499_v19 = vsel %vm497_vm4, %v492_v63, %v496_v15  ;;  %v501_v0 = vsel %vm497_vm4, %v496_v15, %v492_v63  ;;  %v498_v2 = vsel %vm497_vm4, %v490_v4, %v494_v18  ;;  %v500_v20 = vsel %vm497_vm4, %v494_v18, %v490_v4 }
  0xa1   : > { %v517_v21 = vmul.f32 %v6299_v9, %v501_v0  ;;  %v518_v22 = vmul.f32 %v6302_v13, %v499_v19  ;;  %v515_v1 = vmul.f32 %v6299_v9, %v500_v20  ;;  %v516_v3 = vmul.f32 %v6302_v13, %v498_v2 }
  0xa2   : > { %685 = vmatpush1.bf16.msra.mxu0 %v521_v14 }
  0xa3   : > { %v460_v24 = vpop.permute.xlu1 %459  ;;  %v458_v25 = vpop.permute.xlu0 %457  ;;  %v520_v26 = vpack.c.bf16 %v518_v22, %v516_v3  ;;  %v519_v27 = vpack.c.bf16 %v517_v21, %v515_v1  ;;  %v5577_v3 = vld [vmem:[%s10312_s9 + $0x10] sm:$0x3] }
  0xa5   : > { %686 = vmatprep.subr.bf16.mxu0 %v520_v26 }
  0xa6   : > { %687 = vmatpush1.bf16.msra.mxu0 %v519_v27  ;;  %v6389_v27 = vrot.slane %v5577_v3, %v6224_v12 }
  0xa7   : > { %v464_v30 = vpop.permute.xlu1 %463  ;;  %v462_v31 = vpop.permute.xlu0 %461 }
  0xa8   : > { %v467_v32 = vsel %vm465_vm5, %v460_v24, %v464_v30  ;;  %v469_v35 = vsel %vm465_vm5, %v464_v30, %v460_v24  ;;  %v466_v36 = vsel %vm465_vm5, %v458_v25, %v462_v31  ;;  %v468_v37 = vsel %vm465_vm5, %v462_v31, %v458_v25 }
  0xa9   : > { %v485_v38 = vmul.f32 %v6323_v28, %v469_v35  ;;  %v486_v39 = vmul.f32 %v6326_v29, %v467_v32  ;;  %v483_v40 = vmul.f32 %v6323_v28, %v468_v37  ;;  %v484_v41 = vmul.f32 %v6326_v29, %v466_v36 }
  0xaa   : > { %v6392_v30 = vrot.slane %v5577_v3, %v6222_v11 }
  0xab   : > { %v428_v43 = vpop.permute.xlu1 %427  ;;  %v426_v44 = vpop.permute.xlu0 %425  ;;  %v488_v45 = vpack.c.bf16 %v486_v39, %v484_v41  ;;  %v487_v46 = vpack.c.bf16 %v485_v38, %v483_v40 }
  0xad   : > { %688 = vmatprep.subr.bf16.mxu0 %v488_v45 }
  0xae   : > { %689 = vmatpush1.bf16.msra.mxu0 %v487_v46 }
  0xaf   : > { %v432_v49 = vpop.permute.xlu1 %431  ;;  %v430_v52 = vpop.permute.xlu0 %429 }
  0xb0   : > { %v435_v53 = vsel %vm433_vm6, %v428_v43, %v432_v49  ;;  %v437_v54 = vsel %vm433_vm6, %v432_v49, %v428_v43  ;;  %v434_v55 = vsel %vm433_vm6, %v426_v44, %v430_v52  ;;  %v436_v56 = vsel %vm433_vm6, %v430_v52, %v426_v44  ;;  %v5874_v43 = vld [vmem:[%s10304_s1] ss:$8 sps:$4 sm:$0xff]  }
  0xb1   : > { %v453_v57 = vmul.f32 %v6345_v47, %v437_v54  ;;  %v454_v58 = vmul.f32 %v6348_v48, %v435_v53  ;;  %v451_v59 = vmul.f32 %v6345_v47, %v436_v56  ;;  %v452_v60 = vmul.f32 %v6348_v48, %v434_v55 }
  0xb3   : > { %v395_v62 = vpop.permute.xlu1 %394  ;;  %v393_v63 = vpop.permute.xlu0 %392  ;;  %v456_v4 = vpack.c.bf16 %v454_v58, %v452_v60  ;;  %v455_v6 = vpack.c.bf16 %v453_v57, %v451_v59 }
  0xb5   : > { %690 = vmatprep.subr.bf16.mxu0 %v456_v4  ;;  %v5879_v4 = vld [vmem:[%s10304_s1 + $0x14] ss:$8 sps:$4 sm:$0xff]  }
  0xb6   : > { %691 = vmatpush1.bf16.msra.mxu0 %v455_v6  ;;  %5587 = vmatprep.mubr.msk.bf16.mxu1 %vm674_vm0, %v5879_v4  ;;  %v5583_v6 = vld [vmem:[%s10305_s2 + $0x10] sm:$0xff] }
  0xb7   : > { %v399_v14 = vpop.permute.xlu1 %398  ;;  %v397_v15 = vpop.permute.xlu0 %396 }
  0xb8   : > { %v404_v18 = vsel %vm402_vm7, %v395_v62, %v399_v14  ;;  %v406_v19 = vsel %vm402_vm7, %v399_v14, %v395_v62  ;;  %v403_v0 = vsel %vm402_vm7, %v393_v63, %v397_v15  ;;  %v405_v2 = vsel %vm402_vm7, %v397_v15, %v393_v63  ;;  %v5584_v14 = vld [vmem:[%s10305_s2 + $0x18] sm:$0xff] }
  0xb9   : > { %v421_v20 = vmul.f32 %v6367_v7, %v406_v19  ;;  %v422_v21 = vmul.f32 %v6370_v8, %v404_v18  ;;  %v419_v22 = vmul.f32 %v6367_v7, %v405_v2  ;;  %v420_v1 = vmul.f32 %v6370_v8, %v403_v0 }
  0xbb   : > { %v622_v23 = vpop.permute.xlu1 %621  ;;  %v620_v24 = vpop.permute.xlu0 %619  ;;  %v424_v25 = vpack.c.bf16 %v422_v21, %v420_v1  ;;  %v423_v26 = vpack.c.bf16 %v421_v20, %v419_v22 }
  0xbd   : > { %692 = vmatprep.subr.bf16.mxu0 %v424_v25 }
  0xbe   : > { %693 = vmatpush1.bf16.msra.mxu0 %v423_v26 }
  0xbf   : > { %v626_v31 = vpop.permute.xlu1 %625  ;;  %v624_v32 = vpop.permute.xlu0 %623 }
  0xc0   : > { %v629_v35 = vsel %vm10334_vm8, %v622_v23, %v626_v31  ;;  %v631_v36 = vsel %vm10334_vm8, %v626_v31, %v622_v23  ;;  %v628_v37 = vsel %vm10334_vm8, %v620_v24, %v624_v32  ;;  %v630_v38 = vsel %vm10334_vm8, %v624_v32, %v620_v24 }
  0xc1   : > { %v647_v12 = vmul.f32 %v6389_v27, %v629_v35  ;;  %v648_v11 = vmul.f32 %v6392_v30, %v631_v36  ;;  %v645_v39 = vmul.f32 %v6389_v27, %v628_v37  ;;  %v646_v40 = vmul.f32 %v6392_v30, %v630_v38 }
  0xc3   : > { %v650_v41 = vpack.c.bf16 %v648_v11, %v646_v40  ;;  %v649_v42 = vpack.c.bf16 %v647_v12, %v645_v39 }
  0xc5   : > { %708 = vmatprep.subr.bf16.mxu0 %v650_v41 }
  0xc6   : > { %709 = vmatpush2.bf16.msra.mxu0 %v649_v42 }
  0xc9   : > { %711 = vmatmul.mubr.bf16.vlgmr.msra.gmra.mxu0 %v5874_v43 }
  0xcc   : > { %v658_v44 = vpop.permute.xlu0 %657  ;;  %v663_v52 = vpop.permute.xlu1 %662 }
 0x189   : > { %v712_v45 = vpop.f32.mrf.mxu0 }
 0x18a   : > { %v713_v46 = vadd.f32 %v712_v45, %v658_v44 }
 0x18b   : > { %v714_v49 = vpop.f32.mrf.mxu0 }
 0x18c   : > { %v6409_v53 = vmax.f32 %v713_v46, 0.0  ;;  %v715_v55 = vadd.f32 %v714_v49, %v658_v44 }
 0x18d   : > { %v716_v54 = vpop.f32.mrf.mxu0 }
 0x18e   : > { %v717_v56 = vadd.f32 %v716_v54, %v663_v52  ;;  %835 = vrot.lane.b32.xlu1 %v6409_v53, %s6039_s23  ;;  %v6415_v60 = vmax.f32 %v715_v55, 0.0 }
 0x18f   : > { %v718_v57 = vpop.f32.mrf.mxu0 }
 0x190   : > { %v6413_v58 = vmax.f32 %v717_v56, 0.0  ;;  %v719_v59 = vadd.f32 %v718_v57, %v663_v52 }
 0x192   : > { %v6417_v61 = vmax.f32 %v719_v59, 0.0  ;;  %837 = vrot.lane.b32.xlu0 %v6413_v58, %s6039_s23  ;;  %817 = vrot.lane.b32.xlu1 %v6409_v53, %s6040_s24  ;;  %v797_v62 = vpack.c.bf16 %v6413_v58, %v6409_v53 }
 0x194   : > { %v798_v63 = vpack.c.bf16 %v6417_v61, %v6415_v60 }
 0x196   : > { %819 = vrot.lane.b32.xlu0 %v6413_v58, %s6040_s24  ;;  %799 = vrot.lane.b32.xlu1 %v6409_v53, %s6041_s25 }
 0x19a   : > { %801 = vrot.lane.b32.xlu0 %v6413_v58, %s6041_s25  ;;  %779 = vrot.lane.b32.xlu1 %v6409_v53, %s10335_s26 }
 0x19e   : > { %781 = vrot.lane.b32.xlu0 %v6413_v58, %s10335_s26  ;;  %761 = vrot.lane.b32.xlu1 %v6409_v53, %s10332_s27 }
 0x1a2   : > { %763 = vrot.lane.b32.xlu0 %v6413_v58, %s10332_s27  ;;  %743 = vrot.lane.b32.xlu1 %v6409_v53, %s10330_s28 }
 0x1a6   : > { %745 = vrot.lane.b32.xlu0 %v6413_v58, %s10330_s28  ;;  %725 = vrot.lane.b32.xlu1 %v6409_v53, %s10326_s29 }
 0x1aa   : > { %727 = vrot.lane.b32.xlu0 %v6413_v58, %s10326_s29  ;;  %839 = vrot.lane.b32.xlu1 %v6415_v60, %s6039_s23 }
 0x1ae   : > { %841 = vrot.lane.b32.xlu0 %v6417_v61, %s6039_s23  ;;  %821 = vrot.lane.b32.xlu1 %v6415_v60, %s6040_s24 }
 0x1b2   : > { %823 = vrot.lane.b32.xlu0 %v6417_v61, %s6040_s24  ;;  %803 = vrot.lane.b32.xlu1 %v6415_v60, %s6041_s25 }
 0x1b6   : > { %805 = vrot.lane.b32.xlu0 %v6417_v61, %s6041_s25  ;;  %853 = vrot.lane.b32.xlu1 %v6409_v53, %s10328_s13 }
 0x1ba   : > { %855 = vrot.lane.b32.xlu0 %v6413_v58, %s10328_s13  ;;  %783 = vrot.lane.b32.xlu1 %v6415_v60, %s10335_s26 }
 0x1be   : > { %785 = vrot.lane.b32.xlu0 %v6417_v61, %s10335_s26  ;;  %765 = vrot.lane.b32.xlu1 %v6415_v60, %s10332_s27 }
 0x1c2   : > { %767 = vrot.lane.b32.xlu0 %v6417_v61, %s10332_s27  ;;  %747 = vrot.lane.b32.xlu1 %v6415_v60, %s10330_s28 }
 0x1c6   : > { %749 = vrot.lane.b32.xlu0 %v6417_v61, %s10330_s28  ;;  %729 = vrot.lane.b32.xlu1 %v6415_v60, %s10326_s29 }
 0x1ca   : > { %731 = vrot.lane.b32.xlu0 %v6417_v61, %s10326_s29  ;;  %857 = vrot.lane.b32.xlu1 %v6415_v60, %s10328_s13 }
 0x1ce   : > { %859 = vrot.lane.b32.xlu0 %v6417_v61, %s10328_s13  ;;  %879 = vperm.xlu1 %5873, %v5583_v6  }
 0x1d2   : > { %884 = vperm.xlu0 %5872, %v5584_v14  }
 0x200   : > { %v836_v15 = vpop.permute.xlu1 %835 }
 0x204   : > { %v838_v18 = vpop.permute.xlu0 %837  ;;  %v818_v19 = vpop.permute.xlu1 %817 }
 0x208   : > { %v820_v0 = vpop.permute.xlu0 %819  ;;  %v800_v2 = vpop.permute.xlu1 %799 }
 0x20c   : > { %v802_v20 = vpop.permute.xlu0 %801  ;;  %v780_v21 = vpop.permute.xlu1 %779 }
 0x210   : > { %v782_v22 = vpop.permute.xlu0 %781  ;;  %v6495_v1 = vpop.permute.xlu1 %761 }
 0x214   : > { %v6497_v3 = vpop.permute.xlu0 %763  ;;  %v6499_v23 = vpop.permute.xlu1 %743 }
 0x218   : > { %v6501_v24 = vpop.permute.xlu0 %745  ;;  %v6503_v25 = vpop.permute.xlu1 %725 }
 0x21c   : > { %v6505_v26 = vpop.permute.xlu0 %727  ;;  %v840_v31 = vpop.permute.xlu1 %839 }
 0x21d   : > { %v843_v32 = vsel %vm595_vm1, %v836_v15, %v840_v31  ;;  %v845_v35 = vsel %vm595_vm1, %v840_v31, %v836_v15 }
 0x21e   : > { %v848_v11 = vmul.f32 %v845_v35, %v6231_v16  ;;  %v847_v40 = vmul.f32 %v843_v32, %v6234_v17 }
 0x220   : > { %v842_v36 = vpop.permute.xlu0 %841  ;;  %v822_v37 = vpop.permute.xlu1 %821 }
 0x221   : > { %v844_v38 = vsel %vm595_vm1, %v838_v18, %v842_v36  ;;  %v846_v12 = vsel %vm595_vm1, %v842_v36, %v838_v18  ;;  %v825_v42 = vsel %vm563_vm2, %v818_v19, %v822_v37  ;;  %v827_v43 = vsel %vm563_vm2, %v822_v37, %v818_v19 }
 0x222   : > { %v850_v39 = vmul.f32 %v846_v12, %v6231_v16  ;;  %v849_v41 = vmul.f32 %v844_v38, %v6234_v17  ;;  %v829_v55 = vmul.f32 %v825_v42, %v6253_v33  ;;  %v830_v56 = vmul.f32 %v827_v43, %v6256_v34 }
 0x224   : > { %v824_v44 = vpop.permute.xlu0 %823  ;;  %v804_v45 = vpop.permute.xlu1 %803  ;;  %v852_v46 = vpack.c.bf16 %v850_v39, %v848_v11  ;;  %v851_v49 = vpack.c.bf16 %v849_v41, %v847_v40 }
 0x225   : > { %v826_v52 = vsel %vm563_vm2, %v820_v0, %v824_v44  ;;  %v828_v54 = vsel %vm563_vm2, %v824_v44, %v820_v0  ;;  %v807_v4 = vsel %vm531_vm3, %v800_v2, %v804_v45  ;;  %v809_v6 = vsel %vm531_vm3, %v804_v45, %v800_v2 }
 0x226   : > { %v831_v57 = vmul.f32 %v826_v52, %v6253_v33  ;;  %v832_v59 = vmul.f32 %v828_v54, %v6256_v34  ;;  %899 = vmatprep.subr.bf16.mxu1 %v852_v46  ;;  %v811_v32 = vmul.f32 %v807_v4, %v6275_v50  ;;  %v812_v35 = vmul.f32 %v809_v6, %v6278_v51 }
 0x227   : > { %900 = vmatpush1.bf16.msra.mxu1 %v851_v49 }
 0x228   : > { %v806_v14 = vpop.permute.xlu0 %805  ;;  %v6535_v15 = vpop.permute.xlu1 %853  ;;  %v834_v18 = vpack.c.bf16 %v832_v59, %v830_v56  ;;  %v833_v19 = vpack.c.bf16 %v831_v57, %v829_v55 }
 0x229   : > { %v808_v0 = vsel %vm531_vm3, %v802_v20, %v806_v14  ;;  %v810_v31 = vsel %vm531_vm3, %v806_v14, %v802_v20 }
 0x22a   : > { %v813_v36 = vmul.f32 %v808_v0, %v6275_v50  ;;  %v814_v2 = vmul.f32 %v810_v31, %v6278_v51  ;;  %901 = vmatprep.subr.bf16.mxu1 %v834_v18 }
 0x22b   : > { %902 = vmatpush1.bf16.msra.mxu1 %v833_v19 }
 0x22c   : > { %v6545_v37 = vpop.permute.xlu0 %855  ;;  %v784_v38 = vpop.permute.xlu1 %783  ;;  %v816_v12 = vpack.c.bf16 %v814_v2, %v812_v35  ;;  %v815_v11 = vpack.c.bf16 %v813_v36, %v811_v32 }
 0x22d   : > { %v787_v39 = vsel %vm497_vm4, %v780_v21, %v784_v38  ;;  %v789_v20 = vsel %vm497_vm4, %v784_v38, %v780_v21 }
 0x22e   : > { %903 = vmatprep.subr.bf16.mxu1 %v816_v12  ;;  %v791_v44 = vmul.f32 %v789_v20, %v6299_v9  ;;  %v792_v45 = vmul.f32 %v787_v39, %v6302_v13 }
 0x22f   : > { %904 = vmatpush1.bf16.msra.mxu1 %v815_v11 }
 0x230   : > { %v786_v40 = vpop.permute.xlu0 %785  ;;  %905 = vmatprep.subr.bf16.mxu1 %v798_v63  ;;  %v766_v41 = vpop.permute.xlu1 %765 }
 0x231   : > { %v788_v42 = vsel %vm497_vm4, %v782_v22, %v786_v40  ;;  %v790_v43 = vsel %vm497_vm4, %v786_v40, %v782_v22  ;;  %v769_v60 = vsel %vm465_vm5, %v6495_v1, %v766_v41  ;;  %v771_v61 = vsel %vm465_vm5, %v766_v41, %v6495_v1 }
 0x232   : > { %v793_v46 = vmul.f32 %v790_v43, %v6299_v9  ;;  %v794_v21 = vmul.f32 %v788_v42, %v6302_v13  ;;  %v773_v56 = vmul.f32 %v771_v61, %v6323_v28  ;;  %v774_v1 = vmul.f32 %v769_v60, %v6326_v29 }
 0x233   : > { %906 = vmatpush1.bf16.msra.mxu1 %v797_v62 }
 0x234   : > { %v768_v63 = vpop.permute.xlu0 %767  ;;  %v748_v22 = vpop.permute.xlu1 %747  ;;  %v796_v49 = vpack.c.bf16 %v794_v21, %v792_v45  ;;  %v795_v52 = vpack.c.bf16 %v793_v46, %v791_v44 }
 0x235   : > { %v770_v54 = vsel %vm465_vm5, %v6497_v3, %v768_v63  ;;  %v772_v55 = vsel %vm465_vm5, %v768_v63, %v6497_v3  ;;  %v751_v58 = vsel %vm433_vm6, %v6499_v23, %v748_v22  ;;  %v753_v62 = vsel %vm433_vm6, %v748_v22, %v6499_v23 }
 0x236   : > { %v775_v57 = vmul.f32 %v772_v55, %v6323_v28  ;;  %v776_v53 = vmul.f32 %v770_v54, %v6326_v29  ;;  %907 = vmatprep.subr.bf16.mxu1 %v796_v49  ;;  %v755_v19 = vmul.f32 %v753_v62, %v6345_v47  ;;  %v756_v0 = vmul.f32 %v751_v58, %v6348_v48  ;;  %v5877_v49 = vld [vmem:[%s10304_s1 + $0x10] ss:$8 sps:$4 sm:$0xff]  }
 0x237   : > { %908 = vmatpush1.bf16.msra.mxu1 %v795_v52  ;;  %v6028_v62 = vld [vmem:[%s6130_s22 + $0x10] sm:$0xff] }
 0x238   : > { %v750_v59 = vpop.permute.xlu0 %749  ;;  %v730_v3 = vpop.permute.xlu1 %729  ;;  %v778_v4 = vpack.c.bf16 %v776_v53, %v774_v1  ;;  %v777_v6 = vpack.c.bf16 %v775_v57, %v773_v56  ;;  %v6027_v56 = vld [vmem:[%s6130_s22] sm:$0xff] }
 0x239   : > { %v752_v14 = vsel %vm433_vm6, %v6501_v24, %v750_v59  ;;  %v754_v18 = vsel %vm433_vm6, %v750_v59, %v6501_v24  ;;  %v733_v32 = vsel %vm402_vm7, %v6503_v25, %v730_v3  ;;  %v735_v35 = vsel %vm402_vm7, %v730_v3, %v6503_v25 }
 0x23a   : > { %v757_v31 = vmul.f32 %v754_v18, %v6345_v47  ;;  %v758_v23 = vmul.f32 %v752_v14, %v6348_v48  ;;  %909 = vmatprep.subr.bf16.mxu1 %v778_v4  ;;  %v737_v39 = vmul.f32 %v735_v35, %v6367_v7  ;;  %v738_v20 = vmul.f32 %v733_v32, %v6370_v8  ;;  %v5591_v32 = vld [vmem:[%s10305_s2 + $0x28] sm:$0xff] }
 0x23b   : > { %910 = vmatpush1.bf16.msra.mxu1 %v777_v6  ;;  %v6029_v6 = vld [vmem:[%s6130_s22 + $0x8] sm:$0xff] }
 0x23c   : > { %v732_v36 = vpop.permute.xlu0 %731  ;;  %v858_v24 = vpop.permute.xlu1 %857  ;;  %v760_v2 = vpack.c.bf16 %v758_v23, %v756_v0  ;;  %v759_v38 = vpack.c.bf16 %v757_v31, %v755_v19  ;;  %v6030_v19 = vld [vmem:[%s6130_s22 + $0x18] sm:$0xff]  ;;  %v5880_v31 = vld [vmem:[%s10304_s1 + $0x24] ss:$8 sps:$4 sm:$0xff]   ;;  %s6052_s22 = smov 9  }
 0x23d   : > { %v734_v12 = vsel %vm402_vm7, %v6505_v26, %v732_v36  ;;  %v736_v11 = vsel %vm402_vm7, %v732_v36, %v6505_v26  ;;  %v861_v41 = vsel %vm10334_vm8, %v6535_v15, %v858_v24  ;;  %v863_v42 = vsel %vm10334_vm8, %v858_v24, %v6535_v15  ;;  %5594 = vmatprep.mubr.msk.bf16.mxu0 %vm674_vm0, %v5880_v31  ;;  %v5590_v23 = vld [vmem:[%s10305_s2 + $0x20] sm:$0xff] }
 0x23e   : > { %v739_v40 = vmul.f32 %v736_v11, %v6367_v7  ;;  %v740_v25 = vmul.f32 %v734_v12, %v6370_v8  ;;  %911 = vmatprep.subr.bf16.mxu1 %v760_v2  ;;  %v865_v21 = vmul.f32 %v861_v41, %v6389_v27  ;;  %v866_v60 = vmul.f32 %v863_v42, %v6392_v30 }
 0x23f   : > { %912 = vmatpush1.bf16.msra.mxu1 %v759_v38 }
 0x240   : > { %v860_v43 = vpop.permute.xlu0 %859  ;;  %v742_v26 = vpack.c.bf16 %v740_v25, %v738_v20  ;;  %v741_v44 = vpack.c.bf16 %v739_v40, %v737_v39 }
 0x241   : > { %v862_v45 = vsel %vm10334_vm8, %v6545_v37, %v860_v43  ;;  %v864_v46 = vsel %vm10334_vm8, %v860_v43, %v6545_v37 }
 0x242   : > { %v867_v61 = vmul.f32 %v862_v45, %v6389_v27  ;;  %v868_v15 = vmul.f32 %v864_v46, %v6392_v30  ;;  %913 = vmatprep.subr.bf16.mxu1 %v742_v26 }
 0x243   : > { %914 = vmatpush1.bf16.msra.mxu1 %v741_v44 }
 0x244   : > { %v870_v63 = vpack.c.bf16 %v868_v15, %v866_v60  ;;  %v869_v22 = vpack.c.bf16 %v867_v61, %v865_v21 }
 0x246   : > { %929 = vmatprep.subr.bf16.mxu1 %v870_v63 }
 0x247   : > { %930 = vmatpush2.bf16.msra.mxu1 %v869_v22 }
 0x249   : > { %v880_v37 = vpop.permute.xlu1 %879 }
 0x24a   : > { %932 = vmatmul.mubr.bf16.vlgmr.msra.gmra.mxu1 %v5877_v49 }
 0x24d   : > { %v885_v57 = vpop.permute.xlu0 %884 }
 0x30a   : > { %v933_v52 = vpop.f32.mrf.mxu1 }
 0x30b   : > { %v934_v54 = vadd.f32 %v933_v52, %v880_v37 }
 0x30c   : > { %v935_v55 = vpop.f32.mrf.mxu1 }
 0x30d   : > { %v6633_v1 = vadd.f32 %v6027_v56, %v934_v54  ;;  %v936_v3 = vadd.f32 %v935_v55, %v880_v37 }
 0x30e   : > { %v937_v53 = vpop.f32.mrf.mxu1 }
 0x30f   : > { %v938_v58 = vadd.f32 %v937_v53, %v885_v57  ;;  %1056 = vrot.lane.b32.xlu1 %v6633_v1, %s6039_s23  ;;  %v6665_v14 = vadd.f32 %v6029_v6, %v936_v3 }
 0x310   : > { %v939_v4 = vpop.f32.mrf.mxu1 }
 0x311   : > { %v6638_v59 = vadd.f32 %v6028_v62, %v938_v58  ;;  %10340 = vst [vmem:[#allocation2_spill] sm:$0xff] %v6665_v14  ;;  %v940_v18 = vadd.f32 %v939_v4, %v885_v57 }
 0x313   : > { %1058 = vrot.lane.b32.xlu0 %v6638_v59, %s6039_s23  ;;  %1038 = vrot.lane.b32.xlu1 %v6633_v1, %s6040_s24  ;;  %v6672_v0 = vadd.f32 %v6030_v19, %v940_v18 }
 0x315   : > { %10341 = vst [vmem:[#allocation3_spill] sm:$0xff] %v6672_v0 }
 0x317   : > { %1040 = vrot.lane.b32.xlu0 %v6638_v59, %s6040_s24  ;;  %1020 = vrot.lane.b32.xlu1 %v6633_v1, %s6041_s25 }
 0x31b   : > { %1022 = vrot.lane.b32.xlu0 %v6638_v59, %s6041_s25  ;;  %1000 = vrot.lane.b32.xlu1 %v6633_v1, %s10335_s26 }
 0x31f   : > { %1002 = vrot.lane.b32.xlu0 %v6638_v59, %s10335_s26  ;;  %982 = vrot.lane.b32.xlu1 %v6633_v1, %s10332_s27 }
 0x323   : > { %984 = vrot.lane.b32.xlu0 %v6638_v59, %s10332_s27  ;;  %964 = vrot.lane.b32.xlu1 %v6633_v1, %s10330_s28 }
 0x327   : > { %966 = vrot.lane.b32.xlu0 %v6638_v59, %s10330_s28  ;;  %946 = vrot.lane.b32.xlu1 %v6633_v1, %s10326_s29 }
 0x32b   : > { %948 = vrot.lane.b32.xlu0 %v6638_v59, %s10326_s29  ;;  %1060 = vrot.lane.b32.xlu1 %v6665_v14, %s6039_s23 }
 0x32f   : > { %1062 = vrot.lane.b32.xlu0 %v6672_v0, %s6039_s23  ;;  %1042 = vrot.lane.b32.xlu1 %v6665_v14, %s6040_s24 }
 0x333   : > { %1044 = vrot.lane.b32.xlu0 %v6672_v0, %s6040_s24  ;;  %1024 = vrot.lane.b32.xlu1 %v6665_v14, %s6041_s25 }
 0x337   : > { %1026 = vrot.lane.b32.xlu0 %v6672_v0, %s6041_s25  ;;  %1074 = vrot.lane.b32.xlu1 %v6633_v1, %s10328_s13 }
 0x33b   : > { %1076 = vrot.lane.b32.xlu0 %v6638_v59, %s10328_s13  ;;  %1004 = vrot.lane.b32.xlu1 %v6665_v14, %s10335_s26 }
 0x33f   : > { %1006 = vrot.lane.b32.xlu0 %v6672_v0, %s10335_s26  ;;  %986 = vrot.lane.b32.xlu1 %v6665_v14, %s10332_s27 }
 0x343   : > { %988 = vrot.lane.b32.xlu0 %v6672_v0, %s10332_s27  ;;  %968 = vrot.lane.b32.xlu1 %v6665_v14, %s10330_s28 }
 0x347   : > { %970 = vrot.lane.b32.xlu0 %v6672_v0, %s10330_s28  ;;  %950 = vrot.lane.b32.xlu1 %v6665_v14, %s10326_s29 }
 0x34b   : > { %952 = vrot.lane.b32.xlu0 %v6672_v0, %s10326_s29  ;;  %1078 = vrot.lane.b32.xlu1 %v6665_v14, %s10328_s13 }
 0x34f   : > { %1080 = vrot.lane.b32.xlu0 %v6672_v0, %s10328_s13  ;;  %1100 = vperm.xlu1 %5873, %v5590_v23  }
 0x353   : > { %1105 = vperm.xlu0 %5872, %v5591_v32  }
 0x381   : > { %v1057_v35 = vpop.permute.xlu1 %1056 }
 0x385   : > { %v1059_v36 = vpop.permute.xlu0 %1058  ;;  %v1039_v24 = vpop.permute.xlu1 %1038 }
 0x389   : > { %v1041_v2 = vpop.permute.xlu0 %1040  ;;  %v1021_v38 = vpop.permute.xlu1 %1020 }
 0x38d   : > { %v1023_v12 = vpop.permute.xlu0 %1022  ;;  %v1001_v11 = vpop.permute.xlu1 %1000 }
 0x391   : > { %v1003_v39 = vpop.permute.xlu0 %1002  ;;  %v6718_v20 = vpop.permute.xlu1 %982 }
 0x395   : > { %v6720_v40 = vpop.permute.xlu0 %984  ;;  %v6722_v25 = vpop.permute.xlu1 %964 }
 0x399   : > { %v6724_v41 = vpop.permute.xlu0 %966  ;;  %v6726_v42 = vpop.permute.xlu1 %946 }
 0x39d   : > { %v6728_v43 = vpop.permute.xlu0 %948  ;;  %v1061_v26 = vpop.permute.xlu1 %1060 }
 0x39e   : > { %v1064_v44 = vsel %vm595_vm1, %v1057_v35, %v1061_v26  ;;  %v1066_v45 = vsel %vm595_vm1, %v1061_v26, %v1057_v35 }
 0x39f   : > { %v1068_v15 = vmul.f32 %v1064_v44, %v6234_v17  ;;  %v1069_v63 = vmul.f32 %v1066_v45, %v6231_v16 }
 0x3a1   : > { %v1063_v46 = vpop.permute.xlu0 %1062  ;;  %v1043_v21 = vpop.permute.xlu1 %1042 }
 0x3a2   : > { %v1065_v60 = vsel %vm595_vm1, %v1059_v36, %v1063_v46  ;;  %v1067_v61 = vsel %vm595_vm1, %v1063_v46, %v1059_v36  ;;  %v1046_v37 = vsel %vm563_vm2, %v1039_v24, %v1043_v21  ;;  %v1048_v52 = vsel %vm563_vm2, %v1043_v21, %v1039_v24 }
 0x3a3   : > { %v1070_v22 = vmul.f32 %v1065_v60, %v6234_v17  ;;  %v1071_v49 = vmul.f32 %v1067_v61, %v6231_v16  ;;  %v1050_v62 = vmul.f32 %v1046_v37, %v6253_v33  ;;  %v1051_v3 = vmul.f32 %v1048_v52, %v6256_v34 }
 0x3a4   : > { %v6803_v52 = vpack.c.bf16 %v6638_v59, %v6633_v1 }
 0x3a5   : > { %v6746_v54 = vpack.c.bf16 %v1070_v22, %v1068_v15  ;;  %v1045_v55 = vpop.permute.xlu0 %1044  ;;  %v1025_v56 = vpop.permute.xlu1 %1024  ;;  %v6748_v57 = vpack.c.bf16 %v1071_v49, %v1069_v63 }
 0x3a6   : > { %v1047_v53 = vsel %vm563_vm2, %v1041_v2, %v1045_v55  ;;  %v1049_v58 = vsel %vm563_vm2, %v1045_v55, %v1041_v2  ;;  %v1028_v18 = vsel %vm531_vm3, %v1021_v38, %v1025_v56  ;;  %v1030_v19 = vsel %vm531_vm3, %v1025_v56, %v1021_v38 }
 0x3a7   : > { %v1052_v4 = vmul.f32 %v1047_v53, %v6253_v33  ;;  %v1053_v6 = vmul.f32 %v1049_v58, %v6256_v34  ;;  %1120 = vmatprep.subr.bf16.mxu0 %v6748_v57  ;;  %v1032_v2 = vmul.f32 %v1028_v18, %v6275_v50  ;;  %v1033_v26 = vmul.f32 %v1030_v19, %v6278_v51 }
 0x3a8   : > { %1121 = vmatpush1.bf16.msra.mxu0 %v6746_v54 }
 0x3a9   : > { %v6764_v31 = vpack.c.bf16 %v1052_v4, %v1050_v62  ;;  %v1027_v23 = vpop.permute.xlu0 %1026  ;;  %v6766_v32 = vpop.permute.xlu1 %1074  ;;  %v6768_v35 = vpack.c.bf16 %v1053_v6, %v1051_v3 }
 0x3aa   : > { %v1029_v36 = vsel %vm531_vm3, %v1023_v12, %v1027_v23  ;;  %v1031_v24 = vsel %vm531_vm3, %v1027_v23, %v1023_v12  ;;  %v6789_v12 = vpack.c.bf16 %v6672_v0, %v6665_v14 }
 0x3ab   : > { %v1034_v38 = vmul.f32 %v1029_v36, %v6275_v50  ;;  %v1035_v44 = vmul.f32 %v1031_v24, %v6278_v51  ;;  %1122 = vmatprep.subr.bf16.mxu0 %v6768_v35 }
 0x3ac   : > { %1123 = vmatpush1.bf16.msra.mxu0 %v6764_v31 }
 0x3ad   : > { %v6780_v45 = vpack.c.bf16 %v1034_v38, %v1032_v2  ;;  %v6782_v46 = vpop.permute.xlu0 %1076  ;;  %v1005_v21 = vpop.permute.xlu1 %1004  ;;  %v6784_v60 = vpack.c.bf16 %v1035_v44, %v1033_v26 }
 0x3ae   : > { %v1008_v61 = vsel %vm497_vm4, %v1001_v11, %v1005_v21  ;;  %v1010_v15 = vsel %vm497_vm4, %v1005_v21, %v1001_v11 }
 0x3af   : > { %1124 = vmatprep.subr.bf16.mxu0 %v6784_v60  ;;  %v1012_v55 = vmul.f32 %v1010_v15, %v6299_v9  ;;  %v1013_v11 = vmul.f32 %v1008_v61, %v6302_v13 }
 0x3b0   : > { %1125 = vmatpush1.bf16.msra.mxu0 %v6780_v45 }
 0x3b1   : > { %v1007_v63 = vpop.permute.xlu0 %1006  ;;  %1126 = vmatprep.subr.bf16.mxu0 %v6789_v12  ;;  %v987_v22 = vpop.permute.xlu1 %986 }
 0x3b2   : > { %v1009_v49 = vsel %vm497_vm4, %v1003_v39, %v1007_v63  ;;  %v1011_v37 = vsel %vm497_vm4, %v1007_v63, %v1003_v39  ;;  %v990_v58 = vsel %vm465_vm5, %v6718_v20, %v987_v22  ;;  %v992_v39 = vsel %vm465_vm5, %v987_v22, %v6718_v20 }
 0x3b3   : > { %v1014_v56 = vmul.f32 %v1011_v37, %v6299_v9  ;;  %v1015_v53 = vmul.f32 %v1009_v49, %v6302_v13  ;;  %v994_v23 = vmul.f32 %v992_v39, %v6323_v28  ;;  %v995_v20 = vmul.f32 %v990_v58, %v6326_v29 }
 0x3b4   : > { %1127 = vmatpush1.bf16.msra.mxu0 %v6803_v52 }
 0x3b5   : > { %v6816_v62 = vpack.c.bf16 %v1014_v56, %v1012_v55  ;;  %v989_v3 = vpop.permute.xlu0 %988  ;;  %v969_v4 = vpop.permute.xlu1 %968  ;;  %v6818_v6 = vpack.c.bf16 %v1015_v53, %v1013_v11 }
 0x3b6   : > { %v991_v18 = vsel %vm465_vm5, %v6720_v40, %v989_v3  ;;  %v993_v19 = vsel %vm465_vm5, %v989_v3, %v6720_v40  ;;  %v972_v2 = vsel %vm433_vm6, %v6722_v25, %v969_v4  ;;  %v974_v26 = vsel %vm433_vm6, %v969_v4, %v6722_v25 }
 0x3b7   : > { %v996_v36 = vmul.f32 %v993_v19, %v6323_v28  ;;  %v997_v24 = vmul.f32 %v991_v18, %v6326_v29  ;;  %1128 = vmatprep.subr.bf16.mxu0 %v6818_v6  ;;  %v976_v63 = vmul.f32 %v974_v26, %v6345_v47  ;;  %v977_v25 = vmul.f32 %v972_v2, %v6348_v48 }
 0x3b8   : > { %1129 = vmatpush1.bf16.msra.mxu0 %v6816_v62 }
 0x3b9   : > { %v6838_v40 = vpack.c.bf16 %v996_v36, %v994_v23  ;;  %v971_v38 = vpop.permute.xlu0 %970  ;;  %v951_v44 = vpop.permute.xlu1 %950  ;;  %v6840_v21 = vpack.c.bf16 %v997_v24, %v995_v20 }
 0x3ba   : > { %v973_v61 = vsel %vm433_vm6, %v6724_v41, %v971_v38  ;;  %v975_v15 = vsel %vm433_vm6, %v971_v38, %v6724_v41  ;;  %v954_v37 = vsel %vm402_vm7, %v6726_v42, %v951_v44  ;;  %v956_v55 = vsel %vm402_vm7, %v951_v44, %v6726_v42 }
 0x3bb   : > { %10342 = vst [vmem:[#allocation4_spill] sm:$0xff] %v6838_v40  ;;  %10343 = vst [vmem:[#allocation5_spill] sm:$0xff] %v6840_v21  ;;  %v978_v22 = vmul.f32 %v975_v15, %v6345_v47  ;;  %v979_v49 = vmul.f32 %v973_v61, %v6348_v48  ;;  %1130 = vmatprep.subr.bf16.mxu0 %v6840_v21  ;;  %v958_v3 = vmul.f32 %v956_v55, %v6367_v7 }
 0x3bc   : > { %1131 = vmatpush1.bf16.msra.mxu0 %v6838_v40  ;;  %v959_v42 = vmul.f32 %v954_v37, %v6370_v8 }
 0x3bd   : > { %v6860_v41 = vpack.c.bf16 %v978_v22, %v976_v63  ;;  %v953_v11 = vpop.permute.xlu0 %952  ;;  %v1079_v56 = vpop.permute.xlu1 %1078  ;;  %v6862_v53 = vpack.c.bf16 %v979_v49, %v977_v25 }
 0x3be   : > { %v955_v58 = vsel %vm402_vm7, %v6728_v43, %v953_v11  ;;  %v957_v39 = vsel %vm402_vm7, %v953_v11, %v6728_v43  ;;  %v1082_v19 = vsel %vm10334_vm8, %v6766_v32, %v1079_v56  ;;  %v1084_v23 = vsel %vm10334_vm8, %v1079_v56, %v6766_v32 }
 0x3bf   : > { %10344 = vst [vmem:[#allocation6_spill] sm:$0xff] %v6860_v41  ;;  %10345 = vst [vmem:[#allocation7_spill] sm:$0xff] %v6862_v53  ;;  %v960_v4 = vmul.f32 %v957_v39, %v6367_v7  ;;  %v961_v18 = vmul.f32 %v955_v58, %v6370_v8  ;;  %1132 = vmatprep.subr.bf16.mxu0 %v6862_v53  ;;  %v1086_v26 = vmul.f32 %v1082_v19, %v6389_v27 }
 0x3c0   : > { %1133 = vmatpush1.bf16.msra.mxu0 %v6860_v41  ;;  %v1087_v38 = vmul.f32 %v1084_v23, %v6392_v30 }
 0x3c1   : > { %v6882_v43 = vpack.c.bf16 %v960_v4, %v958_v3  ;;  %v1081_v20 = vpop.permute.xlu0 %1080  ;;  %v6884_v36 = vpack.c.bf16 %v961_v18, %v959_v42 }
 0x3c2   : > { %v1083_v24 = vsel %vm10334_vm8, %v6782_v46, %v1081_v20  ;;  %v1085_v2 = vsel %vm10334_vm8, %v1081_v20, %v6782_v46  ;;  %v5882_v46 = vld [vmem:[%s10304_s1 + $0x20] ss:$8 sps:$4 sm:$0xff]   ;;  %v5883_v20 = vld [vmem:[%s10304_s1 + $0x34] ss:$8 sps:$4 sm:$0xff]  }
 0x3c3   : > { %10346 = vst [vmem:[#allocation8_spill] sm:$0xff] %v6882_v43  ;;  %10347 = vst [vmem:[#allocation9_spill] sm:$0xff] %v6884_v36  ;;  %v1088_v32 = vmul.f32 %v1083_v24, %v6389_v27  ;;  %v1089_v44 = vmul.f32 %v1085_v2, %v6392_v30  ;;  %1134 = vmatprep.subr.bf16.mxu0 %v6884_v36  ;;  %5601 = vmatprep.mubr.msk.bf16.mxu1 %vm674_vm0, %v5883_v20  ;;  %v5597_v24 = vld [vmem:[%s10305_s2 + $0x30] sm:$0xff]  ;;  %v5598_v2 = vld [vmem:[%s10305_s2 + $0x38] sm:$0xff] }
 0x3c4   : > { %1135 = vmatpush1.bf16.msra.mxu0 %v6882_v43 }
 0x3c5   : > { %v6898_v61 = vpack.c.bf16 %v1088_v32, %v1086_v26  ;;  %v6900_v15 = vpack.c.bf16 %v1089_v44, %v1087_v38 }
 0x3c7   : > { %10348 = vst [vmem:[#allocation10_spill] sm:$0xff] %v6898_v61  ;;  %10349 = vst [vmem:[#allocation11_spill] sm:$0xff] %v6900_v15  ;;  %1150 = vmatprep.subr.bf16.mxu0 %v6900_v15 }
 0x3c8   : > { %1151 = vmatpush2.bf16.msra.mxu0 %v6898_v61 }
 0x3ca   : > { %v1101_v63 = vpop.permute.xlu1 %1100 }
 0x3cb   : > { %1153 = vmatmul.mubr.bf16.vlgmr.msra.gmra.mxu0 %v5882_v46 }
 0x3ce   : > { %v1106_v55 = vpop.permute.xlu0 %1105 }
 0x48b   : > { %v1154_v25 = vpop.f32.mrf.mxu0 }
 0x48c   : > { %v1155_v22 = vadd.f32 %v1154_v25, %v1101_v63 }
 0x48d   : > { %v1156_v49 = vpop.f32.mrf.mxu0 }
 0x48e   : > { %v6907_v37 = vmax.f32 %v1155_v22, 0.0  ;;  %v1157_v56 = vadd.f32 %v1156_v49, %v1101_v63 }
 0x48f   : > { %v1158_v11 = vpop.f32.mrf.mxu0 }
 0x490   : > { %v1159_v58 = vadd.f32 %v1158_v11, %v1106_v55  ;;  %1277 = vrot.lane.b32.xlu1 %v6907_v37, %s6039_s23  ;;  %v6913_v4 = vmax.f32 %v1157_v56, 0.0 }
 0x491   : > { %v1160_v39 = vpop.f32.mrf.mxu0 }
 0x492   : > { %v6911_v3 = vmax.f32 %v1159_v58, 0.0  ;;  %v1161_v42 = vadd.f32 %v1160_v39, %v1106_v55 }
 0x494   : > { %v6915_v18 = vmax.f32 %v1161_v42, 0.0  ;;  %1279 = vrot.lane.b32.xlu0 %v6911_v3, %s6039_s23  ;;  %1259 = vrot.lane.b32.xlu1 %v6907_v37, %s6040_s24 }
 0x498   : > { %1261 = vrot.lane.b32.xlu0 %v6911_v3, %s6040_s24  ;;  %1241 = vrot.lane.b32.xlu1 %v6907_v37, %s6041_s25 }
 0x49c   : > { %1243 = vrot.lane.b32.xlu0 %v6911_v3, %s6041_s25  ;;  %1221 = vrot.lane.b32.xlu1 %v6907_v37, %s10335_s26 }
 0x4a0   : > { %1223 = vrot.lane.b32.xlu0 %v6911_v3, %s10335_s26  ;;  %1203 = vrot.lane.b32.xlu1 %v6907_v37, %s10332_s27 }
 0x4a4   : > { %1205 = vrot.lane.b32.xlu0 %v6911_v3, %s10332_s27  ;;  %1185 = vrot.lane.b32.xlu1 %v6907_v37, %s10330_s28 }
 0x4a8   : > { %1187 = vrot.lane.b32.xlu0 %v6911_v3, %s10330_s28  ;;  %1167 = vrot.lane.b32.xlu1 %v6907_v37, %s10326_s29 }
 0x4ac   : > { %1169 = vrot.lane.b32.xlu0 %v6911_v3, %s10326_s29  ;;  %1281 = vrot.lane.b32.xlu1 %v6913_v4, %s6039_s23 }
 0x4b0   : > { %1283 = vrot.lane.b32.xlu0 %v6915_v18, %s6039_s23  ;;  %1263 = vrot.lane.b32.xlu1 %v6913_v4, %s6040_s24 }
 0x4b4   : > { %1265 = vrot.lane.b32.xlu0 %v6915_v18, %s6040_s24  ;;  %1245 = vrot.lane.b32.xlu1 %v6913_v4, %s6041_s25 }
 0x4b8   : > { %1247 = vrot.lane.b32.xlu0 %v6915_v18, %s6041_s25  ;;  %1295 = vrot.lane.b32.xlu1 %v6907_v37, %s10328_s13 }
 0x4bc   : > { %1297 = vrot.lane.b32.xlu0 %v6911_v3, %s10328_s13  ;;  %1225 = vrot.lane.b32.xlu1 %v6913_v4, %s10335_s26 }
 0x4c0   : > { %1227 = vrot.lane.b32.xlu0 %v6915_v18, %s10335_s26  ;;  %1207 = vrot.lane.b32.xlu1 %v6913_v4, %s10332_s27 }
 0x4c4   : > { %1209 = vrot.lane.b32.xlu0 %v6915_v18, %s10332_s27  ;;  %1189 = vrot.lane.b32.xlu1 %v6913_v4, %s10330_s28 }
 0x4c8   : > { %1191 = vrot.lane.b32.xlu0 %v6915_v18, %s10330_s28  ;;  %1171 = vrot.lane.b32.xlu1 %v6913_v4, %s10326_s29 }
 0x4cc   : > { %1173 = vrot.lane.b32.xlu0 %v6915_v18, %s10326_s29  ;;  %1299 = vrot.lane.b32.xlu1 %v6913_v4, %s10328_s13 }
 0x4d0   : > { %1301 = vrot.lane.b32.xlu0 %v6915_v18, %s10328_s13  ;;  %1321 = vperm.xlu1 %5873, %v5597_v24  }
 0x4d4   : > { %1326 = vperm.xlu0 %5872, %v5598_v2  }
 0x502   : > { %v1278_v26 = vpop.permute.xlu1 %1277 }
 0x506   : > { %v1280_v38 = vpop.permute.xlu0 %1279  ;;  %v1260_v32 = vpop.permute.xlu1 %1259 }
 0x50a   : > { %v1262_v44 = vpop.permute.xlu0 %1261  ;;  %v1242_v46 = vpop.permute.xlu1 %1241 }
 0x50e   : > { %v1244_v63 = vpop.permute.xlu0 %1243  ;;  %v1222_v25 = vpop.permute.xlu1 %1221 }
 0x512   : > { %v1224_v22 = vpop.permute.xlu0 %1223  ;;  %v6993_v49 = vpop.permute.xlu1 %1203 }
 0x516   : > { %v6995_v55 = vpop.permute.xlu0 %1205  ;;  %v6997_v11 = vpop.permute.xlu1 %1185 }
 0x51a   : > { %v6999_v56 = vpop.permute.xlu0 %1187  ;;  %v7001_v58 = vpop.permute.xlu1 %1167 }
 0x51e   : > { %v7003_v39 = vpop.permute.xlu0 %1169  ;;  %v1282_v42 = vpop.permute.xlu1 %1281 }
 0x51f   : > { %v1285_v20 = vsel %vm595_vm1, %v1278_v26, %v1282_v42  ;;  %v1287_v24 = vsel %vm595_vm1, %v1282_v42, %v1278_v26 }
 0x520   : > { %v1289_v61 = vmul.f32 %v1285_v20, %v6234_v17  ;;  %v1290_v15 = vmul.f32 %v1287_v24, %v6231_v16 }
 0x522   : > { %v1284_v2 = vpop.permute.xlu0 %1283  ;;  %v1264_v5 = vpop.permute.xlu1 %1263 }
 0x523   : > { %v1286_v19 = vsel %vm595_vm1, %v1280_v38, %v1284_v2  ;;  %v1288_v23 = vsel %vm595_vm1, %v1284_v2, %v1280_v38  ;;  %v1267_v41 = vsel %vm563_vm2, %v1260_v32, %v1264_v5  ;;  %v1269_v26 = vsel %vm563_vm2, %v1264_v5, %v1260_v32 }
 0x524   : > { %v1291_v43 = vmul.f32 %v1286_v19, %v6234_v17  ;;  %v1292_v36 = vmul.f32 %v1288_v23, %v6231_v16  ;;  %v1271_v19 = vmul.f32 %v1267_v41, %v6253_v33  ;;  %v1272_v23 = vmul.f32 %v1269_v26, %v6256_v34 }
 0x526   : > { %v1293_v42 = vpack.c.bf16 %v1291_v43, %v1289_v61  ;;  %v1266_v53 = vpop.permute.xlu0 %1265  ;;  %v1246_v40 = vpop.permute.xlu1 %1245  ;;  %v1294_v21 = vpack.c.bf16 %v1292_v36, %v1290_v15 }
 0x527   : > { %v1268_v38 = vsel %vm563_vm2, %v1262_v44, %v1266_v53  ;;  %v1270_v20 = vsel %vm563_vm2, %v1266_v53, %v1262_v44  ;;  %v1249_v5 = vsel %vm531_vm3, %v1242_v46, %v1246_v40  ;;  %v1251_v43 = vsel %vm531_vm3, %v1246_v40, %v1242_v46 }
 0x528   : > { %v1273_v24 = vmul.f32 %v1268_v38, %v6253_v33  ;;  %v1274_v2 = vmul.f32 %v1270_v20, %v6256_v34  ;;  %1341 = vmatprep.subr.bf16.mxu1 %v1294_v21  ;;  %v1253_v21 = vmul.f32 %v1249_v5, %v6275_v50  ;;  %v1254_v44 = vmul.f32 %v1251_v43, %v6278_v51 }
 0x529   : > { %1342 = vmatpush1.bf16.msra.mxu1 %v1293_v42 }
 0x52a   : > { %v1275_v36 = vpack.c.bf16 %v1273_v24, %v1271_v19  ;;  %v1248_v61 = vpop.permute.xlu0 %1247  ;;  %v7033_v15 = vpop.permute.xlu1 %1295  ;;  %v1276_v53 = vpack.c.bf16 %v1274_v2, %v1272_v23  ;;  %v10350_v24 = vpack.c.bf16 %v6915_v18, %v6913_v4 }
 0x52b   : > { %v1250_v41 = vsel %vm531_vm3, %v1244_v63, %v1248_v61  ;;  %v1252_v32 = vsel %vm531_vm3, %v1248_v61, %v1244_v63 }
 0x52c   : > { %v1255_v26 = vmul.f32 %v1250_v41, %v6275_v50  ;;  %v1256_v40 = vmul.f32 %v1252_v32, %v6278_v51  ;;  %1343 = vmatprep.subr.bf16.mxu1 %v1276_v53  ;;  %v10351_v41 = vpack.c.bf16 %v6911_v3, %v6907_v37 }
 0x52d   : > { %1344 = vmatpush1.bf16.msra.mxu1 %v1275_v36 }
 0x52e   : > { %v1257_v46 = vpack.c.bf16 %v1255_v26, %v1253_v21  ;;  %v7043_v42 = vpop.permute.xlu0 %1297  ;;  %v1226_v38 = vpop.permute.xlu1 %1225  ;;  %v1258_v20 = vpack.c.bf16 %v1256_v40, %v1254_v44 }
 0x52f   : > { %v1229_v19 = vsel %vm497_vm4, %v1222_v25, %v1226_v38  ;;  %v1231_v63 = vsel %vm497_vm4, %v1226_v38, %v1222_v25 }
 0x530   : > { %1345 = vmatprep.subr.bf16.mxu1 %v1258_v20  ;;  %v1233_v36 = vmul.f32 %v1231_v63, %v6299_v9  ;;  %v1234_v61 = vmul.f32 %v1229_v19, %v6302_v13 }
 0x531   : > { %1346 = vmatpush1.bf16.msra.mxu1 %v1257_v46 }
 0x532   : > { %v1228_v23 = vpop.permute.xlu0 %1227  ;;  %1347 = vmatprep.subr.bf16.mxu1 %v10350_v24  ;;  %v1208_v2 = vpop.permute.xlu1 %1207 }
 0x533   : > { %v1230_v5 = vsel %vm497_vm4, %v1224_v22, %v1228_v23  ;;  %v1232_v43 = vsel %vm497_vm4, %v1228_v23, %v1224_v22  ;;  %v1211_v4 = vsel %vm465_vm5, %v6993_v49, %v1208_v2  ;;  %v1213_v18 = vsel %vm465_vm5, %v1208_v2, %v6993_v49 }
 0x534   : > { %v1235_v53 = vmul.f32 %v1232_v43, %v6299_v9  ;;  %v1236_v25 = vmul.f32 %v1230_v5, %v6302_v13  ;;  %v1215_v46 = vmul.f32 %v1213_v18, %v6323_v28  ;;  %v1216_v49 = vmul.f32 %v1211_v4, %v6326_v29 }
 0x535   : > { %1348 = vmatpush1.bf16.msra.mxu1 %v10351_v41 }
 0x536   : > { %v1237_v22 = vpack.c.bf16 %v1235_v53, %v1233_v36  ;;  %v1210_v32 = vpop.permute.xlu0 %1209  ;;  %v1190_v21 = vpop.permute.xlu1 %1189  ;;  %v1238_v44 = vpack.c.bf16 %v1236_v25, %v1234_v61 }
 0x537   : > { %v1212_v26 = vsel %vm465_vm5, %v6995_v55, %v1210_v32  ;;  %v1214_v40 = vsel %vm465_vm5, %v1210_v32, %v6995_v55  ;;  %v1193_v3 = vsel %vm433_vm6, %v6997_v11, %v1190_v21  ;;  %v1195_v20 = vsel %vm433_vm6, %v1190_v21, %v6997_v11 }
 0x538   : > { %v1217_v38 = vmul.f32 %v1214_v40, %v6323_v28  ;;  %v1218_v37 = vmul.f32 %v1212_v26, %v6326_v29  ;;  %1349 = vmatprep.subr.bf16.mxu1 %v1238_v44  ;;  %v1197_v5 = vmul.f32 %v1195_v20, %v6345_v47  ;;  %v1198_v43 = vmul.f32 %v1193_v3, %v6348_v48 }
 0x539   : > { %1350 = vmatpush1.bf16.msra.mxu1 %v1237_v22 }
 0x53a   : > { %v1219_v19 = vpack.c.bf16 %v1217_v38, %v1215_v46  ;;  %v1192_v55 = vpop.permute.xlu0 %1191  ;;  %v1172_v63 = vpop.permute.xlu1 %1171  ;;  %v1220_v23 = vpack.c.bf16 %v1218_v37, %v1216_v49 }
 0x53b   : > { %v1194_v24 = vsel %vm433_vm6, %v6999_v56, %v1192_v55  ;;  %v1196_v2 = vsel %vm433_vm6, %v1192_v55, %v6999_v56  ;;  %v1175_v61 = vsel %vm402_vm7, %v7001_v58, %v1172_v63  ;;  %v1177_v53 = vsel %vm402_vm7, %v1172_v63, %v7001_v58 }
 0x53c   : > { %v1199_v36 = vmul.f32 %v1196_v2, %v6345_v47  ;;  %v1200_v11 = vmul.f32 %v1194_v24, %v6348_v48  ;;  %1351 = vmatprep.subr.bf16.mxu1 %v1220_v23  ;;  %v1179_v32 = vmul.f32 %v1177_v53, %v6367_v7  ;;  %v1180_v21 = vmul.f32 %v1175_v61, %v6370_v8  ;;  %v5885_v23 = vld [vmem:[%s10304_s1 + $0x30] ss:$8 sps:$4 sm:$0xff]  }
 0x53d   : > { %1352 = vmatpush1.bf16.msra.mxu1 %v1219_v19 }
 0x53e   : > { %v1201_v25 = vpack.c.bf16 %v1199_v36, %v1197_v5  ;;  %v1174_v56 = vpop.permute.xlu0 %1173  ;;  %v1300_v4 = vpop.permute.xlu1 %1299  ;;  %v1202_v18 = vpack.c.bf16 %v1200_v11, %v1198_v43 }
 0x53f   : > { %v1176_v41 = vsel %vm402_vm7, %v7003_v39, %v1174_v56  ;;  %v1178_v22 = vsel %vm402_vm7, %v1174_v56, %v7003_v39  ;;  %v1303_v26 = vsel %vm10334_vm8, %v7033_v15, %v1300_v4  ;;  %v1305_v40 = vsel %vm10334_vm8, %v1300_v4, %v7033_v15 }
 0x540   : > { %v1181_v44 = vmul.f32 %v1178_v22, %v6367_v7  ;;  %v1182_v58 = vmul.f32 %v1176_v41, %v6370_v8  ;;  %1353 = vmatprep.subr.bf16.mxu1 %v1202_v18  ;;  %v1307_v3 = vmul.f32 %v1303_v26, %v6389_v27  ;;  %v1308_v20 = vmul.f32 %v1305_v40, %v6392_v30  ;;  %v5886_v22 = vld [vmem:[%s10304_s1 + $0x44] ss:$8 sps:$4 sm:$0xff]  }
 0x541   : > { %1354 = vmatpush1.bf16.msra.mxu1 %v1201_v25  ;;  %5608 = vmatprep.mubr.msk.bf16.mxu0 %vm674_vm0, %v5886_v22 }
 0x542   : > { %v1183_v46 = vpack.c.bf16 %v1181_v44, %v1179_v32  ;;  %v1302_v39 = vpop.permute.xlu0 %1301  ;;  %v1184_v49 = vpack.c.bf16 %v1182_v58, %v1180_v21  ;;  %v5604_v32 = vld [vmem:[%s10305_s2 + $0x40] sm:$0xff]  ;;  %v5605_v21 = vld [vmem:[%s10305_s2 + $0x48] sm:$0xff] }
 0x543   : > { %v1304_v38 = vsel %vm10334_vm8, %v7043_v42, %v1302_v39  ;;  %v1306_v37 = vsel %vm10334_vm8, %v1302_v39, %v7043_v42  ;;  %v5618_v44 = vld [vmem:[%s10305_s2 + $0x60] sm:$0xff]  ;;  %v5619_v58 = vld [vmem:[%s10305_s2 + $0x68] sm:$0xff] }
 0x544   : > { %v1309_v19 = vmul.f32 %v1304_v38, %v6389_v27  ;;  %v1310_v15 = vmul.f32 %v1306_v37, %v6392_v30  ;;  %1355 = vmatprep.subr.bf16.mxu1 %v1184_v49 }
 0x545   : > { %1356 = vmatpush1.bf16.msra.mxu1 %v1183_v46 }
 0x546   : > { %v1311_v55 = vpack.c.bf16 %v1309_v19, %v1307_v3  ;;  %v1312_v63 = vpack.c.bf16 %v1310_v15, %v1308_v20 }
 0x548   : > { %1371 = vmatprep.subr.bf16.mxu1 %v1312_v63 }
 0x549   : > { %1372 = vmatpush2.bf16.msra.mxu1 %v1311_v55 }
 0x54b   : > { %v1322_v42 = vpop.permute.xlu1 %1321 }
 0x54c   : > { %1374 = vmatmul.mubr.bf16.vlgmr.msra.gmra.mxu1 %v5885_v23 }
 0x54f   : > { %v1327_v36 = vpop.permute.xlu0 %1326 }
 0x60c   : > { %v1375_v24 = vpop.f32.mrf.mxu1 }
 0x60d   : > { %v1376_v2 = vadd.f32 %v1375_v24, %v1322_v42 }
 0x60e   : > { %v1377_v5 = vpop.f32.mrf.mxu1 }
 0x60f   : > { %v7131_v43 = vadd.f32 %v1376_v2, %v6633_v1  ;;  %v1378_v25 = vadd.f32 %v1377_v5, %v1322_v42 }
 0x610   : > { %v1379_v11 = vpop.f32.mrf.mxu1 }
 0x611   : > { %v1380_v61 = vadd.f32 %v1379_v11, %v1327_v36  ;;  %1498 = vrot.lane.b32.xlu1 %v7131_v43, %s6039_s23  ;;  %v7163_v4 = vadd.f32 %v1378_v25, %v6665_v14 }
 0x612   : > { %v1381_v56 = vpop.f32.mrf.mxu1 }
 0x613   : > { %v7136_v53 = vadd.f32 %v1380_v61, %v6638_v59  ;;  %v1382_v18 = vadd.f32 %v1381_v56, %v1327_v36 }
 0x615   : > { %1500 = vrot.lane.b32.xlu0 %v7136_v53, %s6039_s23  ;;  %1480 = vrot.lane.b32.xlu1 %v7131_v43, %s6040_s24  ;;  %v7170_v41 = vadd.f32 %v1382_v18, %v6672_v0 }
 0x617   : > { %10352 = vst [vmem:[#allocation12_spill] sm:$0xff] %v7170_v41 }
 0x619   : > { %1482 = vrot.lane.b32.xlu0 %v7136_v53, %s6040_s24  ;;  %1462 = vrot.lane.b32.xlu1 %v7131_v43, %s6041_s25 }
 0x61d   : > { %1464 = vrot.lane.b32.xlu0 %v7136_v53, %s6041_s25  ;;  %1442 = vrot.lane.b32.xlu1 %v7131_v43, %s10335_s26 }
 0x621   : > { %1444 = vrot.lane.b32.xlu0 %v7136_v53, %s10335_s26  ;;  %1424 = vrot.lane.b32.xlu1 %v7131_v43, %s10332_s27 }
 0x625   : > { %1426 = vrot.lane.b32.xlu0 %v7136_v53, %s10332_s27  ;;  %1406 = vrot.lane.b32.xlu1 %v7131_v43, %s10330_s28 }
 0x629   : > { %1408 = vrot.lane.b32.xlu0 %v7136_v53, %s10330_s28  ;;  %1388 = vrot.lane.b32.xlu1 %v7131_v43, %s10326_s29 }
 0x62d   : > { %1390 = vrot.lane.b32.xlu0 %v7136_v53, %s10326_s29  ;;  %1502 = vrot.lane.b32.xlu1 %v7163_v4, %s6039_s23 }
 0x631   : > { %1504 = vrot.lane.b32.xlu0 %v7170_v41, %s6039_s23  ;;  %1484 = vrot.lane.b32.xlu1 %v7163_v4, %s6040_s24 }
 0x635   : > { %1486 = vrot.lane.b32.xlu0 %v7170_v41, %s6040_s24  ;;  %1466 = vrot.lane.b32.xlu1 %v7163_v4, %s6041_s25 }
 0x639   : > { %1468 = vrot.lane.b32.xlu0 %v7170_v41, %s6041_s25  ;;  %1516 = vrot.lane.b32.xlu1 %v7131_v43, %s10328_s13 }
 0x63d   : > { %1518 = vrot.lane.b32.xlu0 %v7136_v53, %s10328_s13  ;;  %1446 = vrot.lane.b32.xlu1 %v7163_v4, %s10335_s26 }
 0x641   : > { %1448 = vrot.lane.b32.xlu0 %v7170_v41, %s10335_s26  ;;  %1428 = vrot.lane.b32.xlu1 %v7163_v4, %s10332_s27 }
 0x645   : > { %1430 = vrot.lane.b32.xlu0 %v7170_v41, %s10332_s27  ;;  %1410 = vrot.lane.b32.xlu1 %v7163_v4, %s10330_s28 }
 0x649   : > { %1412 = vrot.lane.b32.xlu0 %v7170_v41, %s10330_s28  ;;  %1392 = vrot.lane.b32.xlu1 %v7163_v4, %s10326_s29 }
 0x64d   : > { %1394 = vrot.lane.b32.xlu0 %v7170_v41, %s10326_s29  ;;  %1520 = vrot.lane.b32.xlu1 %v7163_v4, %s10328_s13 }
 0x651   : > { %1522 = vrot.lane.b32.xlu0 %v7170_v41, %s10328_s13  ;;  %1542 = vperm.xlu1 %5873, %v5604_v32  }
 0x655   : > { %1547 = vperm.xlu0 %5872, %v5605_v21   ;;  %1838 = vperm.xlu1 %5873, %v5618_v44  }
 0x659   : > { %1843 = vperm.xlu0 %5872, %v5619_v58  }
 0x683   : > { %v1499_v26 = vpop.permute.xlu1 %1498 }
 0x687   : > { %v1501_v40 = vpop.permute.xlu0 %1500  ;;  %v1481_v46 = vpop.permute.xlu1 %1480 }
 0x68b   : > { %v1483_v39 = vpop.permute.xlu0 %1482  ;;  %v1463_v49 = vpop.permute.xlu1 %1462 }
 0x68f   : > { %v1465_v38 = vpop.permute.xlu0 %1464  ;;  %v1443_v37 = vpop.permute.xlu1 %1442 }
 0x693   : > { %v1445_v3 = vpop.permute.xlu0 %1444  ;;  %v7222_v20 = vpop.permute.xlu1 %1424 }
 0x697   : > { %v7224_v19 = vpop.permute.xlu0 %1426  ;;  %v7226_v15 = vpop.permute.xlu1 %1406 }
 0x69b   : > { %v7228_v55 = vpop.permute.xlu0 %1408  ;;  %v7230_v63 = vpop.permute.xlu1 %1388 }
 0x69f   : > { %v7232_v23 = vpop.permute.xlu0 %1390  ;;  %v1503_v42 = vpop.permute.xlu1 %1502 }
 0x6a0   : > { %v1506_v24 = vsel %vm595_vm1, %v1499_v26, %v1503_v42  ;;  %v1508_v2 = vsel %vm595_vm1, %v1503_v42, %v1499_v26 }
 0x6a1   : > { %v1510_v25 = vmul.f32 %v1506_v24, %v6234_v17  ;;  %v1511_v56 = vmul.f32 %v1508_v2, %v6231_v16 }
 0x6a3   : > { %v1505_v5 = vpop.permute.xlu0 %1504  ;;  %v1485_v36 = vpop.permute.xlu1 %1484 }
 0x6a4   : > { %v1507_v11 = vsel %vm595_vm1, %v1501_v40, %v1505_v5  ;;  %v1509_v61 = vsel %vm595_vm1, %v1505_v5, %v1501_v40  ;;  %v1488_v32 = vsel %vm563_vm2, %v1481_v46, %v1485_v36  ;;  %v1490_v21 = vsel %vm563_vm2, %v1485_v36, %v1481_v46 }
 0x6a5   : > { %v1512_v18 = vmul.f32 %v1507_v11, %v6234_v17  ;;  %v1513_v22 = vmul.f32 %v1509_v61, %v6231_v16  ;;  %v1492_v2 = vmul.f32 %v1488_v32, %v6253_v33  ;;  %v1493_v5 = vmul.f32 %v1490_v21, %v6256_v34 }
 0x6a7   : > { %v1514_v44 = vpack.c.bf16 %v1512_v18, %v1510_v25  ;;  %v1487_v58 = vpop.permute.xlu0 %1486  ;;  %v1467_v26 = vpop.permute.xlu1 %1466  ;;  %v1515_v42 = vpack.c.bf16 %v1513_v22, %v1511_v56 }
 0x6a8   : > { %v1489_v40 = vsel %vm563_vm2, %v1483_v39, %v1487_v58  ;;  %v1491_v24 = vsel %vm563_vm2, %v1487_v58, %v1483_v39  ;;  %v1470_v46 = vsel %vm531_vm3, %v1463_v49, %v1467_v26  ;;  %v1472_v36 = vsel %vm531_vm3, %v1467_v26, %v1463_v49 }
 0x6a9   : > { %v1494_v11 = vmul.f32 %v1489_v40, %v6253_v33  ;;  %v1495_v61 = vmul.f32 %v1491_v24, %v6256_v34  ;;  %1562 = vmatprep.subr.bf16.mxu0 %v1515_v42  ;;  %v1474_v21 = vmul.f32 %v1470_v46, %v6275_v50  ;;  %v1475_v58 = vmul.f32 %v1472_v36, %v6278_v51 }
 0x6aa   : > { %1563 = vmatpush1.bf16.msra.mxu0 %v1514_v44 }
 0x6ab   : > { %v1496_v25 = vpack.c.bf16 %v1494_v11, %v1492_v2  ;;  %v1469_v56 = vpop.permute.xlu0 %1468  ;;  %v7262_v18 = vpop.permute.xlu1 %1516  ;;  %v1497_v39 = vpack.c.bf16 %v1495_v61, %v1493_v5  ;;  %v1461_v2 = vpack.c.bf16 %v7170_v41, %v7163_v4 }
 0x6ac   : > { %v1471_v22 = vsel %vm531_vm3, %v1465_v38, %v1469_v56  ;;  %v1473_v32 = vsel %vm531_vm3, %v1469_v56, %v1465_v38 }
 0x6ad   : > { %v1476_v42 = vmul.f32 %v1471_v22, %v6275_v50  ;;  %v1477_v49 = vmul.f32 %v1473_v32, %v6278_v51  ;;  %1564 = vmatprep.subr.bf16.mxu0 %v1497_v39 }
 0x6ae   : > { %1565 = vmatpush1.bf16.msra.mxu0 %v1496_v25  ;;  %v1460_v25 = vpack.c.bf16 %v7136_v53, %v7131_v43 }
 0x6af   : > { %v1478_v44 = vpack.c.bf16 %v1476_v42, %v1474_v21  ;;  %v7272_v26 = vpop.permute.xlu0 %1518  ;;  %v1447_v40 = vpop.permute.xlu1 %1446  ;;  %v1479_v24 = vpack.c.bf16 %v1477_v49, %v1475_v58 }
 0x6b0   : > { %v1450_v38 = vsel %vm497_vm4, %v1443_v37, %v1447_v40  ;;  %v1452_v5 = vsel %vm497_vm4, %v1447_v40, %v1443_v37 }
 0x6b1   : > { %1566 = vmatprep.subr.bf16.mxu0 %v1479_v24  ;;  %v1454_v56 = vmul.f32 %v1452_v5, %v6299_v9  ;;  %v1455_v39 = vmul.f32 %v1450_v38, %v6302_v13 }
 0x6b2   : > { %1567 = vmatpush1.bf16.msra.mxu0 %v1478_v44 }
 0x6b3   : > { %v1449_v11 = vpop.permute.xlu0 %1448  ;;  %1568 = vmatprep.subr.bf16.mxu0 %v1461_v2  ;;  %v1429_v61 = vpop.permute.xlu1 %1428 }
 0x6b4   : > { %v1451_v46 = vsel %vm497_vm4, %v1445_v3, %v1449_v11  ;;  %v1453_v36 = vsel %vm497_vm4, %v1449_v11, %v1445_v3  ;;  %v1432_v32 = vsel %vm465_vm5, %v7222_v20, %v1429_v61  ;;  %v1434_v21 = vsel %vm465_vm5, %v1429_v61, %v7222_v20 }
 0x6b5   : > { %v1456_v22 = vmul.f32 %v1453_v36, %v6299_v9  ;;  %v1457_v37 = vmul.f32 %v1451_v46, %v6302_v13  ;;  %v1436_v24 = vmul.f32 %v1434_v21, %v6323_v28  ;;  %v1437_v2 = vmul.f32 %v1432_v32, %v6326_v29 }
 0x6b6   : > { %1569 = vmatpush1.bf16.msra.mxu0 %v1460_v25 }
 0x6b7   : > { %v1458_v3 = vpack.c.bf16 %v1456_v22, %v1454_v56  ;;  %v1431_v58 = vpop.permute.xlu0 %1430  ;;  %v1411_v42 = vpop.permute.xlu1 %1410  ;;  %v1459_v49 = vpack.c.bf16 %v1457_v37, %v1455_v39 }
 0x6b8   : > { %v1433_v44 = vsel %vm465_vm5, %v7224_v19, %v1431_v58  ;;  %v1435_v40 = vsel %vm465_vm5, %v1431_v58, %v7224_v19  ;;  %v1414_v5 = vsel %vm433_vm6, %v7226_v15, %v1411_v42  ;;  %v1416_v11 = vsel %vm433_vm6, %v1411_v42, %v7226_v15 }
 0x6b9   : > { %v1438_v38 = vmul.f32 %v1435_v40, %v6323_v28  ;;  %v1439_v20 = vmul.f32 %v1433_v44, %v6326_v29  ;;  %1570 = vmatprep.subr.bf16.mxu0 %v1459_v49  ;;  %v1418_v39 = vmul.f32 %v1416_v11, %v6345_v47  ;;  %v1419_v22 = vmul.f32 %v1414_v5, %v6348_v48 }
 0x6ba   : > { %1571 = vmatpush1.bf16.msra.mxu0 %v1458_v3 }
 0x6bb   : > { %v1440_v61 = vpack.c.bf16 %v1438_v38, %v1436_v24  ;;  %v1413_v19 = vpop.permute.xlu0 %1412  ;;  %v1393_v46 = vpop.permute.xlu1 %1392  ;;  %v1441_v36 = vpack.c.bf16 %v1439_v20, %v1437_v2 }
 0x6bc   : > { %v1415_v25 = vsel %vm433_vm6, %v7228_v55, %v1413_v19  ;;  %v1417_v56 = vsel %vm433_vm6, %v1413_v19, %v7228_v55  ;;  %v1396_v32 = vsel %vm402_vm7, %v7230_v63, %v1393_v46  ;;  %v1398_v21 = vsel %vm402_vm7, %v1393_v46, %v7230_v63 }
 0x6bd   : > { %v1420_v37 = vmul.f32 %v1417_v56, %v6345_v47  ;;  %v1421_v15 = vmul.f32 %v1415_v25, %v6348_v48  ;;  %1572 = vmatprep.subr.bf16.mxu0 %v1441_v36  ;;  %v1400_v40 = vmul.f32 %v1398_v21, %v6367_v7  ;;  %v1401_v24 = vmul.f32 %v1396_v32, %v6370_v8 }
 0x6be   : > { %1573 = vmatpush1.bf16.msra.mxu0 %v1440_v61 }
 0x6bf   : > { %v1422_v3 = vpack.c.bf16 %v1420_v37, %v1418_v39  ;;  %v1395_v55 = vpop.permute.xlu0 %1394  ;;  %v1521_v58 = vpop.permute.xlu1 %1520  ;;  %v1423_v42 = vpack.c.bf16 %v1421_v15, %v1419_v22  ;;  %v5888_v22 = vld [vmem:[%s10304_s1 + $0x40] ss:$8 sps:$4 sm:$0xff]  }
 0x6c0   : > { %v1397_v49 = vsel %vm402_vm7, %v7232_v23, %v1395_v55  ;;  %v1399_v44 = vsel %vm402_vm7, %v1395_v55, %v7232_v23  ;;  %v1524_v38 = vsel %vm10334_vm8, %v7262_v18, %v1521_v58  ;;  %v1526_v20 = vsel %vm10334_vm8, %v1521_v58, %v7262_v18  ;;  %v10355_v37 = vld [vmem:[#allocation7_spill] sm:$0xff] }
 0x6c1   : > { %v1402_v2 = vmul.f32 %v1399_v44, %v6367_v7  ;;  %v1403_v63 = vmul.f32 %v1397_v49, %v6370_v8  ;;  %1574 = vmatprep.subr.bf16.mxu0 %v1423_v42  ;;  %v1528_v46 = vmul.f32 %v1524_v38, %v6389_v27  ;;  %v1529_v36 = vmul.f32 %v1526_v20, %v6392_v30 }
 0x6c2   : > { %1575 = vmatpush1.bf16.msra.mxu0 %v1422_v3 }
 0x6c3   : > { %v1404_v5 = vpack.c.bf16 %v1402_v2, %v1400_v40  ;;  %v1523_v23 = vpop.permute.xlu0 %1522  ;;  %v1405_v11 = vpack.c.bf16 %v1403_v63, %v1401_v24 }
 0x6c4   : > { %v1525_v61 = vsel %vm10334_vm8, %v7272_v26, %v1523_v23  ;;  %v1527_v19 = vsel %vm10334_vm8, %v1523_v23, %v7272_v26  ;;  %v5889_v26 = vld [vmem:[%s10304_s1 + $0x64] ss:$8 sps:$4 sm:$0xff]  }
 0x6c5   : > { %v1530_v25 = vmul.f32 %v1525_v61, %v6389_v27  ;;  %v1531_v18 = vmul.f32 %v1527_v19, %v6392_v30  ;;  %1576 = vmatprep.subr.bf16.mxu0 %v1405_v11 }
 0x6c6   : > { %1577 = vmatpush1.bf16.msra.mxu0 %v1404_v5 }
 0x6c7   : > { %v1532_v56 = vpack.c.bf16 %v1530_v25, %v1528_v46  ;;  %v1533_v39 = vpack.c.bf16 %v1531_v18, %v1529_v36  ;;  %v5892_v18 = vld [vmem:[%s10304_s1 + $0x54] ss:$8 sps:$4 sm:$0xff]  }
 0x6c8   : > { %5615 = vmatprep.mubr.msk.bf16.mxu1 %vm674_vm0, %v5892_v18 }
 0x6c9   : > { %1592 = vmatprep.subr.bf16.mxu0 %v1533_v39 }
 0x6ca   : > { %1593 = vmatpush2.bf16.msra.mxu0 %v1532_v56 }
 0x6cb   : > { %1858 = vmatprep.subr.bf16.mxu0 %v6748_v57  ;;  %v10353_v57 = vld [vmem:[#allocation5_spill] sm:$0xff] }
 0x6cd   : > { %1595 = vmatmul.mubr.bf16.vlgmr.msra.gmra.mxu0 %v5888_v22 }
 0x6ce   : > { %1859 = vmatpush1.bf16.msra.mxu0 %v6746_v54  ;;  %5622 = vmatprep.mubr.msk.bf16.mxu0 %vm674_vm0, %v5889_v26  ;;  %v10354_v54 = vld [vmem:[#allocation4_spill] sm:$0xff] }
 0x6cf   : > { %1860 = vmatprep.subr.bf16.mxu0 %v6768_v35  ;;  %v10356_v35 = vld [vmem:[#allocation6_spill] sm:$0xff] }
 0x6d0   : > { %v1548_v3 = vpop.permute.xlu0 %1547 }
 0x6d2   : > { %1861 = vmatpush1.bf16.msra.mxu0 %v6764_v31  ;;  %v10357_v31 = vld [vmem:[#allocation9_spill] sm:$0xff] }
 0x6d3   : > { %1862 = vmatprep.subr.bf16.mxu0 %v6784_v60  ;;  %v10358_v60 = vld [vmem:[#allocation8_spill] sm:$0xff] }
 0x6d4   : > { %v1844_v19 = vpop.permute.xlu0 %1843 }
 0x6d6   : > { %1863 = vmatpush1.bf16.msra.mxu0 %v6780_v45  ;;  %v10359_v45 = vld [vmem:[#allocation11_spill] sm:$0xff] }
 0x6d7   : > { %1864 = vmatprep.subr.bf16.mxu0 %v6789_v12  ;;  %v5891_v12 = vld [vmem:[%s10304_s1 + $0x60] ss:$8 sps:$4 sm:$0xff]  }
 0x6da   : > { %1865 = vmatpush1.bf16.msra.mxu0 %v6803_v52  ;;  %v10360_v52 = vld [vmem:[#allocation10_spill] sm:$0xff] }
 0x6db   : > { %1866 = vmatprep.subr.bf16.mxu0 %v6818_v6 }
 0x6de   : > { %1867 = vmatpush1.bf16.msra.mxu0 %v6816_v62  ;;  %v1543_v62 = vpop.permute.xlu1 %1542 }
 0x6df   : > { %1868 = vmatprep.subr.bf16.mxu0 %v10353_v57 }
 0x6e2   : > { %1869 = vmatpush1.bf16.msra.mxu0 %v10354_v54  ;;  %v1839_v23 = vpop.permute.xlu1 %1838 }
 0x6e3   : > { %1870 = vmatprep.subr.bf16.mxu0 %v10355_v37 }
 0x6e6   : > { %1871 = vmatpush1.bf16.msra.mxu0 %v10356_v35 }
 0x6e7   : > { %1872 = vmatprep.subr.bf16.mxu0 %v10357_v31 }
 0x6ea   : > { %1873 = vmatpush1.bf16.msra.mxu0 %v10358_v60 }
 0x6eb   : > { %1888 = vmatprep.subr.bf16.mxu0 %v10359_v45  ;;  %v5625_v45 = vld [vmem:[%s10305_s2 + $0x70] sm:$0xff] }
 0x6ee   : > { %1889 = vmatpush2.bf16.msra.mxu0 %v10360_v52 }
 0x6f1   : > { %1891 = vmatmul.mubr.bf16.vlgmr.msra.gmra.mxu0 %v5891_v12 }
 0x78d   : > { %v1596_v6 = vpop.f32.mrf.mxu0 }
 0x78e   : > { %v1597_v15 = vadd.f32 %v1596_v6, %v1543_v62 }
 0x78f   : > { %v1598_v32 = vpop.f32.mrf.mxu0 }
 0x790   : > { %v7382_v21 = vmax.f32 %v1597_v15, 0.0  ;;  %v1599_v58 = vadd.f32 %v1598_v32, %v1543_v62  ;;  %v5626_v62 = vld [vmem:[%s10305_s2 + $0x78] sm:$0xff] }
 0x791   : > { %v1600_v55 = vpop.f32.mrf.mxu0 }
 0x792   : > { %v1601_v42 = vadd.f32 %v1600_v55, %v1548_v3  ;;  %1719 = vrot.lane.b32.xlu1 %v7382_v21, %s6039_s23  ;;  %v7388_v24 = vmax.f32 %v1599_v58, 0.0 }
 0x793   : > { %v1602_v49 = vpop.f32.mrf.mxu0 }
 0x794   : > { %v7386_v44 = vmax.f32 %v1601_v42, 0.0  ;;  %v1603_v40 = vadd.f32 %v1602_v49, %v1548_v3 }
 0x796   : > { %v7390_v2 = vmax.f32 %v1603_v40, 0.0  ;;  %1721 = vrot.lane.b32.xlu0 %v7386_v44, %s6039_s23  ;;  %1701 = vrot.lane.b32.xlu1 %v7382_v21, %s6040_s24 }
 0x79a   : > { %1703 = vrot.lane.b32.xlu0 %v7386_v44, %s6040_s24  ;;  %1683 = vrot.lane.b32.xlu1 %v7382_v21, %s6041_s25 }
 0x79e   : > { %1685 = vrot.lane.b32.xlu0 %v7386_v44, %s6041_s25  ;;  %1663 = vrot.lane.b32.xlu1 %v7382_v21, %s10335_s26 }
 0x7a2   : > { %1665 = vrot.lane.b32.xlu0 %v7386_v44, %s10335_s26  ;;  %1645 = vrot.lane.b32.xlu1 %v7382_v21, %s10332_s27 }
 0x7a6   : > { %1647 = vrot.lane.b32.xlu0 %v7386_v44, %s10332_s27  ;;  %1627 = vrot.lane.b32.xlu1 %v7382_v21, %s10330_s28 }
 0x7aa   : > { %1629 = vrot.lane.b32.xlu0 %v7386_v44, %s10330_s28  ;;  %1609 = vrot.lane.b32.xlu1 %v7382_v21, %s10326_s29 }
 0x7ae   : > { %1611 = vrot.lane.b32.xlu0 %v7386_v44, %s10326_s29  ;;  %1737 = vrot.lane.b32.xlu1 %v7382_v21, %s10328_s13 }
 0x7b1   : > { %v1892_v20 = vpop.f32.mrf.mxu0 }
 0x7b2   : > { %1739 = vrot.lane.b32.xlu0 %v7386_v44, %s10328_s13  ;;  %1723 = vrot.lane.b32.xlu1 %v7388_v24, %s6039_s23  ;;  %v1893_v11 = vadd.f32 %v1892_v20, %v1839_v23 }
 0x7b3   : > { %v1894_v5 = vpop.f32.mrf.mxu0 }
 0x7b4   : > { %v7456_v46 = vmax.f32 %v1893_v11, 0.0  ;;  %v1895_v56 = vadd.f32 %v1894_v5, %v1839_v23 }
 0x7b5   : > { %v1896_v61 = vpop.f32.mrf.mxu0 }
 0x7b6   : > { %1725 = vrot.lane.b32.xlu0 %v7390_v2, %s6039_s23  ;;  %1705 = vrot.lane.b32.xlu1 %v7388_v24, %s6040_s24  ;;  %v1897_v36 = vadd.f32 %v1896_v61, %v1844_v19  ;;  %v7492_v22 = vmax.f32 %v1895_v56, 0.0 }
 0x7b7   : > { %v1898_v39 = vpop.f32.mrf.mxu0 }
 0x7b8   : > { %v7462_v25 = vmax.f32 %v1897_v36, 0.0  ;;  %v1899_v26 = vadd.f32 %v1898_v39, %v1844_v19 }
 0x7ba   : > { %1707 = vrot.lane.b32.xlu0 %v7390_v2, %s6040_s24  ;;  %1687 = vrot.lane.b32.xlu1 %v7388_v24, %s6041_s25  ;;  %v7498_v57 = vmax.f32 %v1899_v26, 0.0 }
 0x7be   : > { %1689 = vrot.lane.b32.xlu0 %v7390_v2, %s6041_s25  ;;  %1667 = vrot.lane.b32.xlu1 %v7388_v24, %s10335_s26 }
 0x7c2   : > { %1669 = vrot.lane.b32.xlu0 %v7390_v2, %s10335_s26  ;;  %1649 = vrot.lane.b32.xlu1 %v7388_v24, %s10332_s27 }
 0x7c6   : > { %1651 = vrot.lane.b32.xlu0 %v7390_v2, %s10332_s27  ;;  %1631 = vrot.lane.b32.xlu1 %v7388_v24, %s10330_s28 }
 0x7ca   : > { %1633 = vrot.lane.b32.xlu0 %v7390_v2, %s10330_s28  ;;  %1613 = vrot.lane.b32.xlu1 %v7388_v24, %s10326_s29 }
 0x7ce   : > { %1615 = vrot.lane.b32.xlu0 %v7390_v2, %s10326_s29  ;;  %1741 = vrot.lane.b32.xlu1 %v7388_v24, %s10328_s13 }
 0x7d2   : > { %1743 = vrot.lane.b32.xlu0 %v7390_v2, %s10328_s13  ;;  %2015 = vrot.lane.b32.xlu1 %v7456_v46, %s6039_s23 }
 0x7d6   : > { %2017 = vrot.lane.b32.xlu0 %v7462_v25, %s6039_s23  ;;  %1997 = vrot.lane.b32.xlu1 %v7456_v46, %s6040_s24 }
 0x7da   : > { %1999 = vrot.lane.b32.xlu0 %v7462_v25, %s6040_s24  ;;  %1979 = vrot.lane.b32.xlu1 %v7456_v46, %s6041_s25 }
 0x7de   : > { %1981 = vrot.lane.b32.xlu0 %v7462_v25, %s6041_s25  ;;  %1959 = vrot.lane.b32.xlu1 %v7456_v46, %s10335_s26 }
 0x7e2   : > { %1961 = vrot.lane.b32.xlu0 %v7462_v25, %s10335_s26  ;;  %1941 = vrot.lane.b32.xlu1 %v7456_v46, %s10332_s27 }
 0x7e6   : > { %1943 = vrot.lane.b32.xlu0 %v7462_v25, %s10332_s27  ;;  %1923 = vrot.lane.b32.xlu1 %v7456_v46, %s10330_s28 }
 0x7ea   : > { %1925 = vrot.lane.b32.xlu0 %v7462_v25, %s10330_s28  ;;  %1905 = vrot.lane.b32.xlu1 %v7456_v46, %s10326_s29 }
 0x7ee   : > { %1907 = vrot.lane.b32.xlu0 %v7462_v25, %s10326_s29  ;;  %2019 = vrot.lane.b32.xlu1 %v7492_v22, %s6039_s23 }
 0x7f2   : > { %2021 = vrot.lane.b32.xlu0 %v7498_v57, %s6039_s23  ;;  %2001 = vrot.lane.b32.xlu1 %v7492_v22, %s6040_s24 }
 0x7f6   : > { %2003 = vrot.lane.b32.xlu0 %v7498_v57, %s6040_s24  ;;  %1983 = vrot.lane.b32.xlu1 %v7492_v22, %s6041_s25 }
 0x7fa   : > { %1985 = vrot.lane.b32.xlu0 %v7498_v57, %s6041_s25  ;;  %2033 = vrot.lane.b32.xlu1 %v7456_v46, %s10328_s13 }
 0x7fe   : > { %2035 = vrot.lane.b32.xlu0 %v7462_v25, %s10328_s13  ;;  %1963 = vrot.lane.b32.xlu1 %v7492_v22, %s10335_s26 }
 0x802   : > { %1965 = vrot.lane.b32.xlu0 %v7498_v57, %s10335_s26  ;;  %1945 = vrot.lane.b32.xlu1 %v7492_v22, %s10332_s27 }
 0x804   : > { %v1720_v54 = vpop.permute.xlu1 %1719 }
 0x806   : > { %1947 = vrot.lane.b32.xlu0 %v7498_v57, %s10332_s27  ;;  %1927 = vrot.lane.b32.xlu1 %v7492_v22, %s10330_s28 }
 0x808   : > { %v1722_v37 = vpop.permute.xlu0 %1721  ;;  %v1702_v35 = vpop.permute.xlu1 %1701 }
 0x80a   : > { %1929 = vrot.lane.b32.xlu0 %v7498_v57, %s10330_s28  ;;  %1909 = vrot.lane.b32.xlu1 %v7492_v22, %s10326_s29 }
 0x80c   : > { %v1704_v31 = vpop.permute.xlu0 %1703  ;;  %v1684_v60 = vpop.permute.xlu1 %1683 }
 0x80e   : > { %1911 = vrot.lane.b32.xlu0 %v7498_v57, %s10326_s29  ;;  %2037 = vrot.lane.b32.xlu1 %v7492_v22, %s10328_s13 }
 0x810   : > { %v1686_v12 = vpop.permute.xlu0 %1685  ;;  %v7535_v52 = vpop.permute.xlu1 %1663 }
 0x812   : > { %2039 = vrot.lane.b32.xlu0 %v7498_v57, %s10328_s13  ;;  %2059 = vperm.xlu1 %5873, %v5625_v45  }
 0x814   : > { %v1666_v6 = vpop.permute.xlu0 %1665  ;;  %v7542_v15 = vpop.permute.xlu1 %1645 }
 0x816   : > { %2064 = vperm.xlu0 %5872, %v5626_v62  }
 0x818   : > { %v7544_v32 = vpop.permute.xlu0 %1647  ;;  %v7546_v3 = vpop.permute.xlu1 %1627 }
 0x81c   : > { %v7548_v55 = vpop.permute.xlu0 %1629  ;;  %v7550_v58 = vpop.permute.xlu1 %1609 }
 0x820   : > { %v7552_v42 = vpop.permute.xlu0 %1611  ;;  %v7554_v49 = vpop.permute.xlu1 %1737 }
 0x824   : > { %v7556_v40 = vpop.permute.xlu0 %1739  ;;  %v1724_v20 = vpop.permute.xlu1 %1723 }
 0x825   : > { %v1727_v5 = vsel %vm595_vm1, %v1720_v54, %v1724_v20  ;;  %v1729_v23 = vsel %vm595_vm1, %v1724_v20, %v1720_v54 }
 0x826   : > { %v1731_v18 = vmul.f32 %v1727_v5, %v6234_v17  ;;  %v1732_v56 = vmul.f32 %v1729_v23, %v6231_v16 }
 0x828   : > { %v1726_v11 = vpop.permute.xlu0 %1725  ;;  %v1706_v61 = vpop.permute.xlu1 %1705 }
 0x829   : > { %v1728_v19 = vsel %vm595_vm1, %v1722_v37, %v1726_v11  ;;  %v1730_v36 = vsel %vm595_vm1, %v1726_v11, %v1722_v37  ;;  %v1709_v45 = vsel %vm563_vm2, %v1702_v35, %v1706_v61  ;;  %v1711_v54 = vsel %vm563_vm2, %v1706_v61, %v1702_v35 }
 0x82a   : > { %v1733_v39 = vmul.f32 %v1728_v19, %v6234_v17  ;;  %v1734_v26 = vmul.f32 %v1730_v36, %v6231_v16  ;;  %v1713_v23 = vmul.f32 %v1709_v45, %v6253_v33  ;;  %v1714_v11 = vmul.f32 %v1711_v54, %v6256_v34 }
 0x82c   : > { %v1735_v62 = vpack.c.bf16 %v1733_v39, %v1731_v18  ;;  %v1708_v20 = vpop.permute.xlu0 %1707  ;;  %v1688_v63 = vpop.permute.xlu1 %1687  ;;  %v1736_v38 = vpack.c.bf16 %v1734_v26, %v1732_v56 }
 0x82d   : > { %v1710_v37 = vsel %vm563_vm2, %v1704_v31, %v1708_v20  ;;  %v1712_v5 = vsel %vm563_vm2, %v1708_v20, %v1704_v31  ;;  %v1691_v35 = vsel %vm531_vm3, %v1684_v60, %v1688_v63  ;;  %v1693_v61 = vsel %vm531_vm3, %v1688_v63, %v1684_v60 }
 0x82e   : > { %v1715_v19 = vmul.f32 %v1710_v37, %v6253_v33  ;;  %v1716_v36 = vmul.f32 %v1712_v5, %v6256_v34  ;;  %1783 = vmatprep.subr.bf16.mxu1 %v1736_v38  ;;  %v1695_v54 = vmul.f32 %v1691_v35, %v6275_v50  ;;  %v1696_v38 = vmul.f32 %v1693_v61, %v6278_v51 }
 0x82f   : > { %1784 = vmatpush1.bf16.msra.mxu1 %v1735_v62 }
 0x830   : > { %v1717_v18 = vpack.c.bf16 %v1715_v19, %v1713_v23  ;;  %v1690_v56 = vpop.permute.xlu0 %1689  ;;  %v1668_v39 = vpop.permute.xlu1 %1667  ;;  %v1718_v31 = vpack.c.bf16 %v1716_v36, %v1714_v11 }
 0x831   : > { %v1692_v26 = vsel %vm531_vm3, %v1686_v12, %v1690_v56  ;;  %v1694_v45 = vsel %vm531_vm3, %v1690_v56, %v1686_v12  ;;  %v1671_v23 = vsel %vm497_vm4, %v7535_v52, %v1668_v39  ;;  %v1673_v36 = vsel %vm497_vm4, %v1668_v39, %v7535_v52 }
 0x832   : > { %v1697_v20 = vmul.f32 %v1692_v26, %v6275_v50  ;;  %v1698_v37 = vmul.f32 %v1694_v45, %v6278_v51  ;;  %1785 = vmatprep.subr.bf16.mxu1 %v1718_v31  ;;  %v1676_v35 = vmul.f32 %v1671_v23, %v6302_v13 }
 0x833   : > { %1786 = vmatpush1.bf16.msra.mxu1 %v1717_v18  ;;  %v10361_v18 = vpack.c.bf16 %v7390_v2, %v7388_v24  ;;  %v1675_v24 = vmul.f32 %v1673_v36, %v6299_v9  ;;  %v10362_v2 = vpack.c.bf16 %v7386_v44, %v7382_v21 }
 0x834   : > { %v1699_v63 = vpack.c.bf16 %v1697_v20, %v1695_v54  ;;  %v1670_v60 = vpop.permute.xlu0 %1669  ;;  %v1650_v62 = vpop.permute.xlu1 %1649  ;;  %v1700_v5 = vpack.c.bf16 %v1698_v37, %v1696_v38 }
 0x835   : > { %v1672_v12 = vsel %vm497_vm4, %v1666_v6, %v1670_v60  ;;  %v1674_v11 = vsel %vm497_vm4, %v1670_v60, %v1666_v6  ;;  %v1653_v6 = vsel %vm465_vm5, %v7542_v15, %v1650_v62  ;;  %v1655_v54 = vsel %vm465_vm5, %v1650_v62, %v7542_v15 }
 0x836   : > { %v1678_v19 = vmul.f32 %v1672_v12, %v6302_v13  ;;  %1787 = vmatprep.subr.bf16.mxu1 %v1700_v5  ;;  %v1677_v31 = vmul.f32 %v1674_v11, %v6299_v9  ;;  %v1658_v38 = vmul.f32 %v1653_v6, %v6326_v29  ;;  %v1657_v5 = vmul.f32 %v1655_v54, %v6323_v28 }
 0x837   : > { %1788 = vmatpush1.bf16.msra.mxu1 %v1699_v63 }
 0x838   : > { %v1652_v61 = vpop.permute.xlu0 %1651  ;;  %1789 = vmatprep.subr.bf16.mxu1 %v10361_v18  ;;  %v1632_v56 = vpop.permute.xlu1 %1631  ;;  %v1680_v45 = vpack.c.bf16 %v1678_v19, %v1676_v35  ;;  %v1679_v63 = vpack.c.bf16 %v1677_v31, %v1675_v24 }
 0x839   : > { %v1654_v26 = vsel %vm465_vm5, %v7544_v32, %v1652_v61  ;;  %v1656_v52 = vsel %vm465_vm5, %v1652_v61, %v7544_v32  ;;  %v1635_v60 = vsel %vm433_vm6, %v7546_v3, %v1632_v56  ;;  %v1637_v23 = vsel %vm433_vm6, %v1632_v56, %v7546_v3 }
 0x83a   : > { %v1660_v39 = vmul.f32 %v1654_v26, %v6326_v29  ;;  %v1659_v32 = vmul.f32 %v1656_v52, %v6323_v28  ;;  %v1640_v12 = vmul.f32 %v1635_v60, %v6348_v48  ;;  %v1639_v31 = vmul.f32 %v1637_v23, %v6345_v47 }
 0x83b   : > { %1790 = vmatpush1.bf16.msra.mxu1 %v10362_v2 }
 0x83c   : > { %v1634_v20 = vpop.permute.xlu0 %1633  ;;  %v1614_v37 = vpop.permute.xlu1 %1613  ;;  %1791 = vmatprep.subr.bf16.mxu1 %v1680_v45  ;;  %v1662_v62 = vpack.c.bf16 %v1660_v39, %v1658_v38  ;;  %v1661_v36 = vpack.c.bf16 %v1659_v32, %v1657_v5 }
 0x83d   : > { %v1636_v21 = vsel %vm433_vm6, %v7548_v55, %v1634_v20  ;;  %v1638_v44 = vsel %vm433_vm6, %v1634_v20, %v7548_v55  ;;  %v1617_v55 = vsel %vm402_vm7, %v7550_v58, %v1614_v37  ;;  %v1619_v6 = vsel %vm402_vm7, %v1614_v37, %v7550_v58 }
 0x83e   : > { %v1642_v15 = vmul.f32 %v1636_v21, %v6348_v48  ;;  %v1641_v35 = vmul.f32 %v1638_v44, %v6345_v47  ;;  %v1622_v26 = vmul.f32 %v1617_v55, %v6370_v8  ;;  %v1621_v20 = vmul.f32 %v1619_v6, %v6367_v7 }
 0x83f   : > { %1792 = vmatpush1.bf16.msra.mxu1 %v1679_v63 }
 0x840   : > { %v1616_v11 = vpop.permute.xlu0 %1615  ;;  %v1742_v19 = vpop.permute.xlu1 %1741  ;;  %1793 = vmatprep.subr.bf16.mxu1 %v1662_v62  ;;  %v1644_v56 = vpack.c.bf16 %v1642_v15, %v1640_v12  ;;  %v1643_v45 = vpack.c.bf16 %v1641_v35, %v1639_v31  ;;  %v5895_v12 = vld [vmem:[%s10304_s1 + $0x74] ss:$8 sps:$4 sm:$0xff]  }
 0x841   : > { %v1618_v61 = vsel %vm402_vm7, %v7552_v42, %v1616_v11  ;;  %v1620_v3 = vsel %vm402_vm7, %v1616_v11, %v7552_v42  ;;  %v1747_v42 = vsel %vm10334_vm8, %v1742_v19, %v7554_v49  ;;  %v1745_v37 = vsel %vm10334_vm8, %v7554_v49, %v1742_v19  ;;  %v5894_v49 = vld [vmem:[%s10304_s1 + $0x50] ss:$8 sps:$4 sm:$0xff]  }
 0x842   : > { %v1624_v18 = vmul.f32 %v1618_v61, %v6370_v8  ;;  %v1623_v24 = vmul.f32 %v1620_v3, %v6367_v7  ;;  %v1750_v63 = vmul.f32 %v1747_v42, %v6392_v30 }
 0x843   : > { %1794 = vmatpush1.bf16.msra.mxu1 %v1661_v36 }
 0x844   : > { %v1744_v52 = vpop.permute.xlu0 %1743  ;;  %v2016_v39 = vpop.permute.xlu1 %2015  ;;  %1795 = vmatprep.subr.bf16.mxu1 %v1644_v56  ;;  %v1626_v38 = vpack.c.bf16 %v1624_v18, %v1622_v26  ;;  %v1625_v21 = vpack.c.bf16 %v1623_v24, %v1621_v20 }
 0x845   : > { %v1748_v2 = vsel %vm10334_vm8, %v1744_v52, %v7556_v40  ;;  %v1746_v58 = vsel %vm10334_vm8, %v7556_v40, %v1744_v52  ;;  %v1749_v40 = vmul.f32 %v1745_v37, %v6389_v27 }
 0x846   : > { %v1752_v54 = vmul.f32 %v1748_v2, %v6392_v30  ;;  %v1751_v44 = vmul.f32 %v1746_v58, %v6389_v27 }
 0x847   : > { %1796 = vmatpush1.bf16.msra.mxu1 %v1643_v45 }
 0x848   : > { %v2018_v32 = vpop.permute.xlu0 %2017  ;;  %v1998_v60 = vpop.permute.xlu1 %1997  ;;  %1797 = vmatprep.subr.bf16.mxu1 %v1626_v38  ;;  %v1754_v15 = vpack.c.bf16 %v1752_v54, %v1750_v63  ;;  %v1753_v23 = vpack.c.bf16 %v1751_v44, %v1749_v40 }
 0x84b   : > { %1798 = vmatpush1.bf16.msra.mxu1 %v1625_v21 }
 0x84c   : > { %v2000_v62 = vpop.permute.xlu0 %1999  ;;  %v1980_v5 = vpop.permute.xlu1 %1979  ;;  %1813 = vmatprep.subr.bf16.mxu1 %v1754_v15 }
 0x84f   : > { %1814 = vmatpush2.bf16.msra.mxu1 %v1753_v23 }
 0x850   : > { %v1982_v11 = vpop.permute.xlu0 %1981  ;;  %v1960_v19 = vpop.permute.xlu1 %1959 }
 0x852   : > { %1816 = vmatmul.mubr.bf16.vlgmr.msra.gmra.mxu1 %v5894_v49 }
 0x853   : > { %5629 = vmatprep.mubr.msk.bf16.mxu1 %vm674_vm0, %v5895_v12 }
 0x854   : > { %v1962_v36 = vpop.permute.xlu0 %1961  ;;  %v7685_v35 = vpop.permute.xlu1 %1941 }
 0x858   : > { %v7687_v55 = vpop.permute.xlu0 %1943  ;;  %v7689_v61 = vpop.permute.xlu1 %1923 }
 0x85c   : > { %v7691_v3 = vpop.permute.xlu0 %1925  ;;  %v7693_v18 = vpop.permute.xlu1 %1905 }
 0x860   : > { %v7695_v56 = vpop.permute.xlu0 %1907  ;;  %v2020_v31 = vpop.permute.xlu1 %2019 }
 0x861   : > { %v2023_v6 = vsel %vm595_vm1, %v2016_v39, %v2020_v31  ;;  %v2025_v26 = vsel %vm595_vm1, %v2020_v31, %v2016_v39 }
 0x862   : > { %v2027_v2 = vmul.f32 %v2023_v6, %v6234_v17  ;;  %v2028_v58 = vmul.f32 %v2025_v26, %v6231_v16 }
 0x864   : > { %v2022_v52 = vpop.permute.xlu0 %2021  ;;  %v2002_v45 = vpop.permute.xlu1 %2001 }
 0x865   : > { %v2024_v24 = vsel %vm595_vm1, %v2018_v32, %v2022_v52  ;;  %v2026_v42 = vsel %vm595_vm1, %v2022_v52, %v2018_v32  ;;  %v2005_v20 = vsel %vm563_vm2, %v1998_v60, %v2002_v45  ;;  %v2007_v39 = vsel %vm563_vm2, %v2002_v45, %v1998_v60 }
 0x866   : > { %v2029_v54 = vmul.f32 %v2024_v24, %v6234_v17  ;;  %v2030_v38 = vmul.f32 %v2026_v42, %v6231_v16  ;;  %v2009_v40 = vmul.f32 %v2005_v20, %v6253_v33  ;;  %v2010_v23 = vmul.f32 %v2007_v39, %v6256_v34 }
 0x868   : > { %v2031_v37 = vpack.c.bf16 %v2029_v54, %v2027_v2  ;;  %v2004_v63 = vpop.permute.xlu0 %2003  ;;  %v1984_v21 = vpop.permute.xlu1 %1983  ;;  %v2032_v44 = vpack.c.bf16 %v2030_v38, %v2028_v58 }
 0x869   : > { %v2006_v32 = vsel %vm563_vm2, %v2000_v62, %v2004_v63  ;;  %v2008_v15 = vsel %vm563_vm2, %v2004_v63, %v2000_v62  ;;  %v1987_v60 = vsel %vm531_vm3, %v1980_v5, %v1984_v21  ;;  %v1989_v31 = vsel %vm531_vm3, %v1984_v21, %v1980_v5 }
 0x86a   : > { %v2011_v49 = vmul.f32 %v2006_v32, %v6253_v33  ;;  %v2012_v12 = vmul.f32 %v2008_v15, %v6256_v34  ;;  %2079 = vmatprep.subr.bf16.mxu1 %v2032_v44  ;;  %v1991_v42 = vmul.f32 %v1987_v60, %v6275_v50  ;;  %v1992_v2 = vmul.f32 %v1989_v31, %v6278_v51 }
 0x86b   : > { %2080 = vmatpush1.bf16.msra.mxu1 %v2031_v37  ;;  %v1978_v37 = vpack.c.bf16 %v7498_v57, %v7492_v22 }
 0x86c   : > { %v2013_v6 = vpack.c.bf16 %v2011_v49, %v2009_v40  ;;  %v1986_v26 = vpop.permute.xlu0 %1985  ;;  %v7725_v52 = vpop.permute.xlu1 %2033  ;;  %v2014_v62 = vpack.c.bf16 %v2012_v12, %v2010_v23  ;;  %v1977_v40 = vpack.c.bf16 %v7462_v25, %v7456_v46 }
 0x86d   : > { %v1988_v45 = vsel %vm531_vm3, %v1982_v11, %v1986_v26  ;;  %v1990_v24 = vsel %vm531_vm3, %v1986_v26, %v1982_v11 }
 0x86e   : > { %v1993_v58 = vmul.f32 %v1988_v45, %v6275_v50  ;;  %v1994_v5 = vmul.f32 %v1990_v24, %v6278_v51  ;;  %2081 = vmatprep.subr.bf16.mxu1 %v2014_v62 }
 0x86f   : > { %2082 = vmatpush1.bf16.msra.mxu1 %v2013_v6 }
 0x870   : > { %v1995_v54 = vpack.c.bf16 %v1993_v58, %v1991_v42  ;;  %v7735_v38 = vpop.permute.xlu0 %2035  ;;  %v1964_v20 = vpop.permute.xlu1 %1963  ;;  %v1996_v39 = vpack.c.bf16 %v1994_v5, %v1992_v2 }
 0x871   : > { %v1967_v11 = vsel %vm497_vm4, %v1960_v19, %v1964_v20  ;;  %v1969_v63 = vsel %vm497_vm4, %v1964_v20, %v1960_v19 }
 0x872   : > { %2083 = vmatprep.subr.bf16.mxu1 %v1996_v39  ;;  %v1971_v22 = vmul.f32 %v1969_v63, %v6299_v9  ;;  %v1972_v57 = vmul.f32 %v1967_v11, %v6302_v13 }
 0x873   : > { %2084 = vmatpush1.bf16.msra.mxu1 %v1995_v54 }
 0x874   : > { %v1966_v21 = vpop.permute.xlu0 %1965  ;;  %v1946_v44 = vpop.permute.xlu1 %1945  ;;  %2085 = vmatprep.subr.bf16.mxu1 %v1978_v37 }
 0x875   : > { %v1968_v32 = vsel %vm497_vm4, %v1962_v36, %v1966_v21  ;;  %v1970_v15 = vsel %vm497_vm4, %v1966_v21, %v1962_v36  ;;  %v1949_v49 = vsel %vm465_vm5, %v7685_v35, %v1946_v44  ;;  %v1951_v12 = vsel %vm465_vm5, %v1946_v44, %v7685_v35 }
 0x876   : > { %v1973_v23 = vmul.f32 %v1970_v15, %v6299_v9  ;;  %v1974_v19 = vmul.f32 %v1968_v32, %v6302_v13  ;;  %v1953_v26 = vmul.f32 %v1951_v12, %v6323_v28  ;;  %v1954_v62 = vmul.f32 %v1949_v49, %v6326_v29 }
 0x877   : > { %2086 = vmatpush1.bf16.msra.mxu1 %v1977_v40 }
 0x878   : > { %v1975_v36 = vpack.c.bf16 %v1973_v23, %v1971_v22  ;;  %v1948_v60 = vpop.permute.xlu0 %1947  ;;  %v1928_v46 = vpop.permute.xlu1 %1927  ;;  %v1976_v25 = vpack.c.bf16 %v1974_v19, %v1972_v57 }
 0x879   : > { %v1950_v31 = vsel %vm465_vm5, %v7687_v55, %v1948_v60  ;;  %v1952_v6 = vsel %vm465_vm5, %v1948_v60, %v7687_v55  ;;  %v1931_v24 = vsel %vm433_vm6, %v7689_v61, %v1928_v46  ;;  %v1933_v42 = vsel %vm433_vm6, %v1928_v46, %v7689_v61 }
 0x87a   : > { %v1955_v45 = vmul.f32 %v1952_v6, %v6323_v28  ;;  %v1956_v35 = vmul.f32 %v1950_v31, %v6326_v29  ;;  %2087 = vmatprep.subr.bf16.mxu1 %v1976_v25  ;;  %v1935_v39 = vmul.f32 %v1933_v42, %v6345_v47  ;;  %v1936_v37 = vmul.f32 %v1931_v24, %v6348_v48 }
 0x87b   : > { %2088 = vmatpush1.bf16.msra.mxu1 %v1975_v36 }
 0x87c   : > { %v1957_v2 = vpack.c.bf16 %v1955_v45, %v1953_v26  ;;  %v1930_v55 = vpop.permute.xlu0 %1929  ;;  %v1910_v58 = vpop.permute.xlu1 %1909  ;;  %v1958_v5 = vpack.c.bf16 %v1956_v35, %v1954_v62  ;;  %v5897_v35 = vld [vmem:[%s10304_s1 + $0x70] ss:$8 sps:$4 sm:$0xff]  }
 0x87d   : > { %v1932_v54 = vsel %vm433_vm6, %v7691_v3, %v1930_v55  ;;  %v1934_v20 = vsel %vm433_vm6, %v1930_v55, %v7691_v3  ;;  %v1913_v63 = vsel %vm402_vm7, %v7693_v18, %v1910_v58  ;;  %v1915_v21 = vsel %vm402_vm7, %v1910_v58, %v7693_v18 }
 0x87e   : > { %v1937_v11 = vmul.f32 %v1934_v20, %v6345_v47  ;;  %v1938_v61 = vmul.f32 %v1932_v54, %v6348_v48  ;;  %2089 = vmatprep.subr.bf16.mxu1 %v1958_v5  ;;  %v1917_v57 = vmul.f32 %v1915_v21, %v6367_v7  ;;  %v1918_v23 = vmul.f32 %v1913_v63, %v6370_v8 }
 0x87f   : > { %2090 = vmatpush1.bf16.msra.mxu1 %v1957_v2 }
 0x880   : > { %v1939_v44 = vpack.c.bf16 %v1937_v11, %v1935_v39  ;;  %v1912_v3 = vpop.permute.xlu0 %1911  ;;  %v2038_v32 = vpop.permute.xlu1 %2037  ;;  %v1940_v15 = vpack.c.bf16 %v1938_v61, %v1936_v37 }
 0x881   : > { %v1914_v40 = vsel %vm402_vm7, %v7695_v56, %v1912_v3  ;;  %v1916_v22 = vsel %vm402_vm7, %v1912_v3, %v7695_v56  ;;  %v2041_v49 = vsel %vm10334_vm8, %v7725_v52, %v2038_v32  ;;  %v2043_v12 = vsel %vm10334_vm8, %v2038_v32, %v7725_v52 }
 0x882   : > { %v1919_v19 = vmul.f32 %v1916_v22, %v6367_v7  ;;  %v1920_v18 = vmul.f32 %v1914_v40, %v6370_v8  ;;  %2091 = vmatprep.subr.bf16.mxu1 %v1940_v15  ;;  %v2045_v31 = vmul.f32 %v2041_v49, %v6389_v27  ;;  %v2046_v6 = vmul.f32 %v2043_v12, %v6392_v30  ;;  %v5898_v15 = vld [vmem:[%s10304_s1 + $0x84] ss:$8 sps:$4 sm:$0xff]   ;;  %v5901_v22 = vld [vmem:[%s10310_s7 + $0x78] sm:$0xff]  }
 0x883   : > { %2092 = vmatpush1.bf16.msra.mxu1 %v1939_v44  ;;  %5636 = vmatprep.mubr.msk.bf16.mxu0 %vm674_vm0, %v5898_v15  ;;  %v5632_v40 = vld [vmem:[%s10305_s2 + $0x80] sm:$0xff]  ;;  %v5905_v49 = vld [vmem:[%s10310_s7 + $0x68] sm:$0xff]  }
 0x884   : > { %v1921_v36 = vpack.c.bf16 %v1919_v19, %v1917_v57  ;;  %v2040_v56 = vpop.permute.xlu0 %2039  ;;  %v1922_v60 = vpack.c.bf16 %v1920_v18, %v1918_v23  ;;  %v5902_v57 = vld [vmem:[%s10310_s7 + $0x38] sm:$0xff]   ;;  %v5903_v23 = vld [vmem:[%s10310_s7 + $0x70] sm:$0xff]   ;;  %v5633_v19 = vld [vmem:[%s10305_s2 + $0x88] sm:$0xff] }
 0x885   : > { %v2042_v46 = vsel %vm10334_vm8, %v7735_v38, %v2040_v56  ;;  %v2044_v25 = vsel %vm10334_vm8, %v2040_v56, %v7735_v38  ;;  %v5904_v18 = vld [vmem:[%s10310_s7 + $0x30] sm:$0xff]   ;;  %v5906_v12 = vld [vmem:[%s10310_s7 + $0x28] sm:$0xff]   ;;  %v5908_v56 = vld [vmem:[%s10310_s7 + $0x20] sm:$0xff]  }
 0x886   : > { %v2047_v26 = vmul.f32 %v2042_v46, %v6389_v27  ;;  %v2048_v52 = vmul.f32 %v2044_v25, %v6392_v30  ;;  %2093 = vmatprep.subr.bf16.mxu1 %v1922_v60  ;;  %v5909_v60 = vld [vmem:[%s10310_s7 + $0x58] sm:$0xff]  }
 0x887   : > { %2094 = vmatpush1.bf16.msra.mxu1 %v1921_v36  ;;  %v5907_v36 = vld [vmem:[%s10310_s7 + $0x60] sm:$0xff]   ;;  %v5910_v46 = vld [vmem:[%s10310_s7 + $0x18] sm:$0xff]  }
 0x888   : > { %v2049_v62 = vpack.c.bf16 %v2047_v26, %v2045_v31  ;;  %v2050_v45 = vpack.c.bf16 %v2048_v52, %v2046_v6 }
 0x88a   : > { %2109 = vmatprep.subr.bf16.mxu1 %v2050_v45 }
 0x88b   : > { %2110 = vmatpush2.bf16.msra.mxu1 %v2049_v62 }
 0x88c   : > { %5827 = vmatprep.subr.bf16.mxu1 %v5901_v22 }
 0x88d   : > { %v2060_v55 = vpop.permute.xlu1 %2059 }
 0x88e   : > { %2112 = vmatmul.mubr.bf16.vlgmr.msra.gmra.mxu1 %v5897_v35 }
 0x88f   : > { %5828 = vmatpush3.bf16.msra.mxu1 %v5902_v57 }
 0x890   : > { %5829 = vmatprep.subr.bf16.mxu1 %v5903_v23 }
 0x891   : > { %v2065_v39 = vpop.permute.xlu0 %2064 }
 0x893   : > { %5830 = vmatpush3.bf16.msra.mxu1 %v5904_v18 }
 0x894   : > { %5831 = vmatprep.subr.bf16.mxu1 %v5905_v49 }
 0x897   : > { %5832 = vmatpush3.bf16.msra.mxu1 %v5906_v12 }
 0x898   : > { %5833 = vmatprep.subr.bf16.mxu1 %v5907_v36 }
 0x89b   : > { %5834 = vmatpush3.bf16.msra.mxu1 %v5908_v56 }
 0x89c   : > { %5835 = vmatprep.subr.bf16.mxu1 %v5909_v60 }
 0x89f   : > { %5836 = vmatpush3.bf16.msra.mxu1 %v5910_v46 }
 0x912   : > { %v7820_v38 = vpop.f32.mrf.mxu1 }
 0x914   : > { %v7822_v24 = vpop.f32.mrf.mxu1 }
 0x916   : > { %v7824_v42 = vpop.f32.mrf.mxu1 }
 0x918   : > { %v7826_v2 = vpop.f32.mrf.mxu1 }
 0x94e   : > { %v2113_v58 = vpop.f32.mrf.mxu1 }
 0x94f   : > { %v2114_v5 = vadd.f32 %v2113_v58, %v2060_v55 }
 0x950   : > { %v2115_v54 = vpop.f32.mrf.mxu1 }
 0x951   : > { %v7829_v20 = vadd.f32 %v2114_v5, %v6633_v1  ;;  %v2116_v63 = vadd.f32 %v2115_v54, %v2060_v55 }
 0x952   : > { %v2117_v37 = vpop.f32.mrf.mxu1 }
 0x953   : > { %v2118_v11 = vadd.f32 %v2117_v37, %v2065_v39  ;;  %2236 = vrot.lane.b32.xlu1 %v7829_v20, %s6039_s23  ;;  %v7861_v44 = vadd.f32 %v2116_v63, %v6665_v14 }
 0x954   : > { %v2119_v21 = vpop.f32.mrf.mxu1 }
 0x955   : > { %v7834_v61 = vadd.f32 %v2118_v11, %v6638_v59  ;;  %v2120_v3 = vadd.f32 %v2119_v21, %v2065_v39 }
 0x957   : > { %2238 = vrot.lane.b32.xlu0 %v7834_v61, %s6039_s23  ;;  %2218 = vrot.lane.b32.xlu1 %v7829_v20, %s6040_s24  ;;  %v7868_v32 = vadd.f32 %v2120_v3, %v6672_v0 }
 0x95b   : > { %2220 = vrot.lane.b32.xlu0 %v7834_v61, %s6040_s24  ;;  %2200 = vrot.lane.b32.xlu1 %v7829_v20, %s6041_s25 }
 0x95f   : > { %2202 = vrot.lane.b32.xlu0 %v7834_v61, %s6041_s25  ;;  %2180 = vrot.lane.b32.xlu1 %v7829_v20, %s10335_s26 }
 0x963   : > { %2182 = vrot.lane.b32.xlu0 %v7834_v61, %s10335_s26  ;;  %2162 = vrot.lane.b32.xlu1 %v7829_v20, %s10332_s27 }
 0x967   : > { %2164 = vrot.lane.b32.xlu0 %v7834_v61, %s10332_s27  ;;  %2144 = vrot.lane.b32.xlu1 %v7829_v20, %s10330_s28 }
 0x96b   : > { %2146 = vrot.lane.b32.xlu0 %v7834_v61, %s10330_s28  ;;  %2126 = vrot.lane.b32.xlu1 %v7829_v20, %s10326_s29 }
 0x96f   : > { %2128 = vrot.lane.b32.xlu0 %v7834_v61, %s10326_s29  ;;  %2240 = vrot.lane.b32.xlu1 %v7861_v44, %s6039_s23 }
 0x973   : > { %2242 = vrot.lane.b32.xlu0 %v7868_v32, %s6039_s23  ;;  %2222 = vrot.lane.b32.xlu1 %v7861_v44, %s6040_s24 }
 0x977   : > { %2224 = vrot.lane.b32.xlu0 %v7868_v32, %s6040_s24  ;;  %2204 = vrot.lane.b32.xlu1 %v7861_v44, %s6041_s25 }
 0x97b   : > { %2206 = vrot.lane.b32.xlu0 %v7868_v32, %s6041_s25  ;;  %2254 = vrot.lane.b32.xlu1 %v7829_v20, %s10328_s13 }
 0x97f   : > { %2256 = vrot.lane.b32.xlu0 %v7834_v61, %s10328_s13  ;;  %2184 = vrot.lane.b32.xlu1 %v7861_v44, %s10335_s26 }
 0x983   : > { %2186 = vrot.lane.b32.xlu0 %v7868_v32, %s10335_s26  ;;  %2166 = vrot.lane.b32.xlu1 %v7861_v44, %s10332_s27 }
 0x987   : > { %2168 = vrot.lane.b32.xlu0 %v7868_v32, %s10332_s27  ;;  %2148 = vrot.lane.b32.xlu1 %v7861_v44, %s10330_s28  ;;  %s10367_s27 = smov 111  }
 0x98b   : > { %2150 = vrot.lane.b32.xlu0 %v7868_v32, %s10330_s28  ;;  %2130 = vrot.lane.b32.xlu1 %v7861_v44, %s10326_s29  ;;  %s10365_s28 = smov 16  }
 0x98f   : > { %2132 = vrot.lane.b32.xlu0 %v7868_v32, %s10326_s29  ;;  %2258 = vrot.lane.b32.xlu1 %v7861_v44, %s10328_s13  ;;  %s10378_s29 = smov 1  }
 0x993   : > { %2260 = vrot.lane.b32.xlu0 %v7868_v32, %s10328_s13  ;;  %2280 = vperm.xlu1 %5873, %v5632_v40   ;;  %s10366_s13 = smov 17  }
 0x997   : > { %2285 = vperm.xlu0 %5872, %v5633_v19  }
 0x9c5   : > { %v2237_v25 = vpop.permute.xlu1 %2236 }
 0x9c9   : > { %v2239_v31 = vpop.permute.xlu0 %2238  ;;  %v2219_v6 = vpop.permute.xlu1 %2218 }
 0x9cd   : > { %v2221_v26 = vpop.permute.xlu0 %2220  ;;  %v2201_v52 = vpop.permute.xlu1 %2200 }
 0x9d1   : > { %v2203_v62 = vpop.permute.xlu0 %2202  ;;  %v2181_v45 = vpop.permute.xlu1 %2180 }
 0x9d5   : > { %v2183_v35 = vpop.permute.xlu0 %2182  ;;  %v7944_v55 = vpop.permute.xlu1 %2162 }
 0x9d9   : > { %v7946_v58 = vpop.permute.xlu0 %2164  ;;  %v7948_v5 = vpop.permute.xlu1 %2144 }
 0x9dd   : > { %v7950_v54 = vpop.permute.xlu0 %2146  ;;  %v7952_v39 = vpop.permute.xlu1 %2126 }
 0x9e1   : > { %v7954_v37 = vpop.permute.xlu0 %2128  ;;  %v2241_v11 = vpop.permute.xlu1 %2240 }
 0x9e2   : > { %v2244_v63 = vsel %vm595_vm1, %v2237_v25, %v2241_v11  ;;  %v2246_v21 = vsel %vm595_vm1, %v2241_v11, %v2237_v25 }
 0x9e3   : > { %v2248_v57 = vmul.f32 %v2244_v63, %v6234_v17  ;;  %v2249_v23 = vmul.f32 %v2246_v21, %v6231_v16 }
 0x9e5   : > { %v2243_v3 = vpop.permute.xlu0 %2242  ;;  %v2223_v15 = vpop.permute.xlu1 %2222 }
 0x9e6   : > { %v2245_v40 = vsel %vm595_vm1, %v2239_v31, %v2243_v3  ;;  %v2247_v22 = vsel %vm595_vm1, %v2243_v3, %v2239_v31  ;;  %v2226_v49 = vsel %vm563_vm2, %v2219_v6, %v2223_v15  ;;  %v2228_v12 = vsel %vm563_vm2, %v2223_v15, %v2219_v6 }
 0x9e7   : > { %v2250_v19 = vmul.f32 %v2245_v40, %v6234_v17  ;;  %v2251_v18 = vmul.f32 %v2247_v22, %v6231_v16  ;;  %v2230_v11 = vmul.f32 %v2226_v49, %v6253_v33  ;;  %v2231_v63 = vmul.f32 %v2228_v12, %v6256_v34 }
 0x9e9   : > { %v2252_v36 = vpack.c.bf16 %v2250_v19, %v2248_v57  ;;  %v2225_v56 = vpop.permute.xlu0 %2224  ;;  %v2205_v60 = vpop.permute.xlu1 %2204  ;;  %v2253_v46 = vpack.c.bf16 %v2251_v18, %v2249_v23 }
 0x9ea   : > { %v2227_v25 = vsel %vm563_vm2, %v2221_v26, %v2225_v56  ;;  %v2229_v31 = vsel %vm563_vm2, %v2225_v56, %v2221_v26  ;;  %v2208_v6 = vsel %vm531_vm3, %v2201_v52, %v2205_v60  ;;  %v2210_v15 = vsel %vm531_vm3, %v2205_v60, %v2201_v52 }
 0x9eb   : > { %v2232_v21 = vmul.f32 %v2227_v25, %v6253_v33  ;;  %v2233_v3 = vmul.f32 %v2229_v31, %v6256_v34  ;;  %2300 = vmatprep.subr.bf16.mxu0 %v2253_v46  ;;  %v2212_v18 = vmul.f32 %v2208_v6, %v6275_v50  ;;  %v2213_v49 = vmul.f32 %v2210_v15, %v6278_v51 }
 0x9ec   : > { %2301 = vmatpush1.bf16.msra.mxu0 %v2252_v36  ;;  %v2199_v25 = vpack.c.bf16 %v7868_v32, %v7861_v44  ;;  %v2198_v6 = vpack.c.bf16 %v7834_v61, %v7829_v20 }
 0x9ed   : > { %v2234_v40 = vpack.c.bf16 %v2232_v21, %v2230_v11  ;;  %v2207_v22 = vpop.permute.xlu0 %2206  ;;  %v7984_v57 = vpop.permute.xlu1 %2254  ;;  %v2235_v26 = vpack.c.bf16 %v2233_v3, %v2231_v63 }
 0x9ee   : > { %v2209_v23 = vsel %vm531_vm3, %v2203_v62, %v2207_v22  ;;  %v2211_v19 = vsel %vm531_vm3, %v2207_v22, %v2203_v62 }
 0x9ef   : > { %v2214_v12 = vmul.f32 %v2209_v23, %v6275_v50  ;;  %v2215_v52 = vmul.f32 %v2211_v19, %v6278_v51  ;;  %2302 = vmatprep.subr.bf16.mxu0 %v2235_v26 }
 0x9f0   : > { %2303 = vmatpush1.bf16.msra.mxu0 %v2234_v40 }
 0x9f1   : > { %v2216_v36 = vpack.c.bf16 %v2214_v12, %v2212_v18  ;;  %v7994_v56 = vpop.permute.xlu0 %2256  ;;  %v2185_v60 = vpop.permute.xlu1 %2184  ;;  %v2217_v46 = vpack.c.bf16 %v2215_v52, %v2213_v49 }
 0x9f2   : > { %v2188_v62 = vsel %vm497_vm4, %v2181_v45, %v2185_v60  ;;  %v2190_v31 = vsel %vm497_vm4, %v2185_v60, %v2181_v45 }
 0x9f3   : > { %2304 = vmatprep.subr.bf16.mxu0 %v2217_v46  ;;  %v2192_v15 = vmul.f32 %v2190_v31, %v6299_v9  ;;  %v2193_v40 = vmul.f32 %v2188_v62, %v6302_v13 }
 0x9f4   : > { %2305 = vmatpush1.bf16.msra.mxu0 %v2216_v36 }
 0x9f5   : > { %v2187_v11 = vpop.permute.xlu0 %2186  ;;  %2306 = vmatprep.subr.bf16.mxu0 %v2199_v25  ;;  %v2167_v63 = vpop.permute.xlu1 %2166 }
 0x9f6   : > { %v2189_v21 = vsel %vm497_vm4, %v2183_v35, %v2187_v11  ;;  %v2191_v3 = vsel %vm497_vm4, %v2187_v11, %v2183_v35  ;;  %v2170_v26 = vsel %vm465_vm5, %v7944_v55, %v2167_v63  ;;  %v2172_v23 = vsel %vm465_vm5, %v2167_v63, %v7944_v55 }
 0x9f7   : > { %v2194_v22 = vmul.f32 %v2191_v3, %v6299_v9  ;;  %v2195_v45 = vmul.f32 %v2189_v21, %v6302_v13  ;;  %v2174_v36 = vmul.f32 %v2172_v23, %v6323_v28  ;;  %v2175_v60 = vmul.f32 %v2170_v26, %v6326_v29 }
 0x9f8   : > { %2307 = vmatpush1.bf16.msra.mxu0 %v2198_v6 }
 0x9f9   : > { %v2196_v35 = vpack.c.bf16 %v2194_v22, %v2192_v15  ;;  %v2169_v19 = vpop.permute.xlu0 %2168  ;;  %v2149_v18 = vpop.permute.xlu1 %2148  ;;  %v2197_v49 = vpack.c.bf16 %v2195_v45, %v2193_v40 }
 0x9fa   : > { %v2171_v12 = vsel %vm465_vm5, %v7946_v58, %v2169_v19  ;;  %v2173_v52 = vsel %vm465_vm5, %v2169_v19, %v7946_v58  ;;  %v2152_v25 = vsel %vm433_vm6, %v7948_v5, %v2149_v18  ;;  %v2154_v62 = vsel %vm433_vm6, %v2149_v18, %v7948_v5 }
 0x9fb   : > { %v2176_v46 = vmul.f32 %v2173_v52, %v6323_v28  ;;  %v2177_v55 = vmul.f32 %v2171_v12, %v6326_v29  ;;  %2308 = vmatprep.subr.bf16.mxu0 %v2197_v49  ;;  %v2156_v6 = vmul.f32 %v2154_v62, %v6345_v47  ;;  %v2157_v15 = vmul.f32 %v2152_v25, %v6348_v48 }
 0x9fc   : > { %2309 = vmatpush1.bf16.msra.mxu0 %v2196_v35 }
 0x9fd   : > { %v2178_v31 = vpack.c.bf16 %v2176_v46, %v2174_v36  ;;  %v2151_v58 = vpop.permute.xlu0 %2150  ;;  %v2131_v11 = vpop.permute.xlu1 %2130  ;;  %v2179_v63 = vpack.c.bf16 %v2177_v55, %v2175_v60 }
 0x9fe   : > { %v2153_v21 = vsel %vm433_vm6, %v7950_v54, %v2151_v58  ;;  %v2155_v3 = vsel %vm433_vm6, %v2151_v58, %v7950_v54  ;;  %v2134_v22 = vsel %vm402_vm7, %v7952_v39, %v2131_v11  ;;  %v2136_v45 = vsel %vm402_vm7, %v2131_v11, %v7952_v39 }
 0x9ff   : > { %v2158_v40 = vmul.f32 %v2155_v3, %v6345_v47  ;;  %v2159_v5 = vmul.f32 %v2153_v21, %v6348_v48  ;;  %2310 = vmatprep.subr.bf16.mxu0 %v2179_v63  ;;  %v2138_v49 = vmul.f32 %v2136_v45, %v6367_v7  ;;  %v2139_v12 = vmul.f32 %v2134_v22, %v6370_v8  ;;  %v5900_v3 = vld [vmem:[%s10304_s1 + $0x80] ss:$8 sps:$4 sm:$0xff]  }
 0xa00   : > { %2311 = vmatpush1.bf16.msra.mxu0 %v2178_v31  ;;  %v5915_v22 = vld [vmem:[%s10310_s7 + $0x40] sm:$0xff]  }
 0xa01   : > { %v2160_v26 = vpack.c.bf16 %v2158_v40, %v2156_v6  ;;  %v2133_v54 = vpop.permute.xlu0 %2132  ;;  %v2259_v23 = vpop.permute.xlu1 %2258  ;;  %v2161_v35 = vpack.c.bf16 %v2159_v5, %v2157_v15  ;;  %v10363_v6 = vmov 0   ;;  %v5912_v15 = vld [vmem:[%s10310_s7 + $0x10] sm:$0xff]   ;;  %v5913_v40 = vld [vmem:[%s10310_s7 + $0x48] sm:$0xff]   ;;  %v5916_v45 = vld [vmem:[%s10310_s7] sm:$0xff]  }
 0xa02   : > { %v2135_v19 = vsel %vm402_vm7, %v7954_v37, %v2133_v54  ;;  %v2137_v18 = vsel %vm402_vm7, %v2133_v54, %v7954_v37  ;;  %v2262_v36 = vsel %vm10334_vm8, %v7984_v57, %v2259_v23  ;;  %v2264_v60 = vsel %vm10334_vm8, %v2259_v23, %v7984_v57  ;;  %v5914_v5 = vld [vmem:[%s10310_s7 + $0x8] sm:$0xff]  }
 0xa03   : > { %v2140_v52 = vmul.f32 %v2137_v18, %v6367_v7  ;;  %v2141_v39 = vmul.f32 %v2135_v19, %v6370_v8  ;;  %2312 = vmatprep.subr.bf16.mxu0 %v2161_v35  ;;  %v2266_v31 = vmul.f32 %v2262_v36, %v6389_v27  ;;  %v2267_v58 = vmul.f32 %v2264_v60, %v6392_v30 }
 0xa04   : > { %2313 = vmatpush1.bf16.msra.mxu0 %v2160_v26 }
 0xa05   : > { %v2142_v46 = vpack.c.bf16 %v2140_v52, %v2138_v49  ;;  %v2261_v37 = vpop.permute.xlu0 %2260  ;;  %v2143_v55 = vpack.c.bf16 %v2141_v39, %v2139_v12 }
 0xa06   : > { %v2263_v25 = vsel %vm10334_vm8, %v7994_v56, %v2261_v37  ;;  %v2265_v62 = vsel %vm10334_vm8, %v2261_v37, %v7994_v56  ;;  %v5911_v56 = vld [vmem:[%s10310_s7 + $0x50] sm:$0xff]   ;;  %vm2662_vm8 = vcmask 449536  }
 0xa07   : > { %v2268_v11 = vmul.f32 %v2263_v25, %v6389_v27  ;;  %v2269_v57 = vmul.f32 %v2265_v62, %v6392_v30  ;;  %2314 = vmatprep.subr.bf16.mxu0 %v2143_v55  ;;  %5837 = vmatprep.subr.bf16.mxu1 %v5911_v56 }
 0xa08   : > { %2315 = vmatpush1.bf16.msra.mxu0 %v2142_v46  ;;  %5838 = vmatpush3.bf16.msra.mxu1 %v5912_v15 }
 0xa09   : > { %v2270_v63 = vpack.c.bf16 %v2268_v11, %v2266_v31  ;;  %v2271_v21 = vpack.c.bf16 %v2269_v57, %v2267_v58  ;;  %5839 = vmatprep.subr.bf16.mxu1 %v5913_v40  ;;  %v5917_v58 = vld [vmem:[%s10304_s1 + $0x94] ss:$8 sps:$4 sm:$0xff]  }
 0xa0a   : > { %v5670_v11 = vld [vmem:[%s10305_s2 + $0x90] sm:$0xff]  ;;  %v5671_v57 = vld [vmem:[%s10305_s2 + $0x98] sm:$0xff] }
 0xa0b   : > { %2330 = vmatprep.subr.bf16.mxu0 %v2271_v21  ;;  %v8148_v21 = vld [vmem:[%s10313_s10 + $0x7] ss:$0 sm:$0xff] }
 0xa0c   : > { %2331 = vmatpush2.bf16.msra.mxu0 %v2270_v63  ;;  %5840 = vmatpush3.bf16.msra.mxu1 %v5914_v5 }
 0xa0d   : > { %2866 = vmatprep.subr.bf16.mxu0 %v10363_v6  ;;  %5841 = vmatprep.subr.bf16.mxu1 %v5915_v22 }
 0xa0e   : > { %v2281_v19 = vpop.permute.xlu1 %2280 }
 0xa0f   : > { %2333 = vmatmul.mubr.bf16.vlgmr.msra.gmra.mxu0 %v5900_v3 }
 0xa10   : > { %5842 = vmatpush3.bf16.msra.mxu1 %v5916_v45  ;;  %v8157_v45 = vld [vmem:[%s10313_s10 + $0x6] ss:$0 sm:$0xff] }
 0xa11   : > { %2704 = vmatprep.subr.bf16.mxu1 %v10363_v6 }
 0xa12   : > { %v2286_v35 = vpop.permute.xlu0 %2285 }
 0xacf   : > { %v2334_v26 = vpop.f32.mrf.mxu0 }
 0xad0   : > { %v2335_v39 = vadd.f32 %v2334_v26, %v2281_v19 }
 0xad1   : > { %v2336_v54 = vpop.f32.mrf.mxu0 }
 0xad2   : > { %v2337_v12 = vadd.f32 %v2336_v54, %v2281_v19 }
 0xad3   : > { %v2338_v23 = vpop.f32.mrf.mxu0 }
 0xad4   : > { %v2339_v18 = vadd.f32 %v2338_v23, %v2286_v35 }
 0xad5   : > { %v2340_v49 = vpop.f32.mrf.mxu0 }
 0xad6   : > { %v2341_v52 = vadd.f32 %v2340_v49, %v2286_v35  ;;  %v2343_v60 = vpack.c.bf16 %v2339_v18, %v2335_v39 }
 0xad8   : > { %v2344_v36 = vpack.c.bf16 %v2341_v52, %v2337_v12  ;;  %v8166_v12 = vld [vmem:[%s10313_s10 + $0x5] ss:$0 sm:$0xff] }
 0xada   : > { %2505 = vmatprep.mubr.bf16.mxu1 %v2344_v36 }
 0xadb   : > { %2506 = vmatmul.mubr.bf16.vlgmr.msra.gmra.mxu1 %v2343_v60 }
 0xadc   : > { %5674 = vmatprep.mubr.msk.bf16.mxu1 %vm674_vm0, %v5917_v58 }
 0xb9b   : > { %v5843_v46 = vpop.f32.mrf.mxu1 }
 0xb9d   : > { %v5844_v37 = vpop.f32.mrf.mxu1 }
 0xb9e   : > { %v8099_v55 = vadd.f32 %v5844_v37, %v5843_v46 }
 0xb9f   : > { %v5846_v25 = vpop.f32.mrf.mxu1 }
 0xba0   : > { %2636 = vrot.lane.b32.xlu1 %v8099_v55, %s6048_s30 }
 0xba1   : > { %v5847_v62 = vpop.f32.mrf.mxu1 }
 0xba2   : > { %v8103_v31 = vadd.f32 %v5847_v62, %v5846_v25 }
 0xba4   : > { %2638 = vrot.lane.b32.xlu0 %v8103_v31, %s6048_s30  ;;  %2616 = vrot.lane.b32.xlu1 %v8099_v55, %s6049_s12 }
 0xba8   : > { %2618 = vrot.lane.b32.xlu0 %v8103_v31, %s6049_s12  ;;  %2596 = vrot.lane.b32.xlu1 %v8099_v55, %s6041_s25 }
 0xbac   : > { %2598 = vrot.lane.b32.xlu0 %v8103_v31, %s6041_s25  ;;  %2575 = vrot.lane.b32.xlu1 %v8099_v55, %s10335_s26 }
 0xbb0   : > { %2577 = vrot.lane.b32.xlu0 %v8103_v31, %s10335_s26  ;;  %2555 = vrot.lane.b32.xlu1 %v8099_v55, %s6050_s14 }
 0xbb4   : > { %2557 = vrot.lane.b32.xlu0 %v8103_v31, %s6050_s14  ;;  %2535 = vrot.lane.b32.xlu1 %v8099_v55, %s6051_s15 }
 0xbb8   : > { %2537 = vrot.lane.b32.xlu0 %v8103_v31, %s6051_s15  ;;  %2516 = vrot.lane.b32.xlu1 %v8099_v55, %s6052_s22 }
 0xbbc   : > { %2518 = vrot.lane.b32.xlu0 %v8103_v31, %s6052_s22  ;;  %2656 = vrot.lane.b32.xlu1 %v8099_v55, %s6053_s16 }
 0xbc0   : > { %2658 = vrot.lane.b32.xlu0 %v8103_v31, %s6053_s16  ;;  %2684 = vperm.xlu1 %5873, %v5670_v11  }
 0xbc4   : > { %2689 = vperm.xlu0 %5872, %v5671_v57  }
 0xc12   : > { %v2637_v63 = vpop.permute.xlu1 %2636 }
 0xc13   : > { %v2643_v3 = vsel %vm2642_vm9, %v2637_v63, 0.0  ;;  %v8178_v63 = vld [vmem:[%s10313_s10 + $0x3] ss:$0 sm:$0xff] }
 0xc14   : > { %v2653_v5 = vmul.f32 %v8148_v21, %v2643_v3 }
 0xc16   : > { %v2639_v56 = vpop.permute.xlu0 %2638  ;;  %v2617_v15 = vpop.permute.xlu1 %2616 }
 0xc17   : > { %v2644_v40 = vsel %vm2642_vm9, %v2639_v56, 0.0  ;;  %v2623_v26 = vsel %vm2622_vm10, %v2617_v15, 0.0 }
 0xc18   : > { %v2654_v22 = vmul.f32 %v8148_v21, %v2644_v40  ;;  %v2633_v18 = vmul.f32 %v8157_v45, %v2623_v26 }
 0xc1a   : > { %v2655_v54 = vpack.c.bf16 %v2654_v22, %v2653_v5  ;;  %v2619_v23 = vpop.permute.xlu0 %2618  ;;  %v2597_v35 = vpop.permute.xlu1 %2596  ;;  %v2595_v5 = vpack.c.bf16 %v8103_v31, %v8099_v55 }
 0xc1b   : > { %v2624_v19 = vsel %vm2622_vm10, %v2619_v23, 0.0  ;;  %v2603_v52 = vsel %vm2602_vm11, %v2597_v35, 0.0 }
 0xc1c   : > { %v2634_v49 = vmul.f32 %v8157_v45, %v2624_v19  ;;  %2705 = vmatpush1.bf16.msra.mxu1 %v2655_v54  ;;  %v2613_v37 = vmul.f32 %v8166_v12, %v2603_v52  ;;  %v8190_v54 = vld [vmem:[%s10313_s10 + $0x2] ss:$0 sm:$0xff] }
 0xc1d   : > { %2706 = vmatprep.subr.bf16.mxu1 %v10363_v6 }
 0xc1e   : > { %v2635_v39 = vpack.c.bf16 %v2634_v49, %v2633_v18  ;;  %v2599_v36 = vpop.permute.xlu0 %2598  ;;  %v2576_v60 = vpop.permute.xlu1 %2575 }
 0xc1f   : > { %v2604_v46 = vsel %vm2602_vm11, %v2599_v36, 0.0  ;;  %v2582_v3 = vsel %vm2581_vm12, 0.0, %v2576_v60  ;;  %v8200_v36 = vld [vmem:[%s10313_s10 + $0x1] ss:$0 sm:$0xff] }
 0xc20   : > { %v2614_v25 = vmul.f32 %v8166_v12, %v2604_v46  ;;  %2707 = vmatpush1.bf16.msra.mxu1 %v2635_v39  ;;  %v2592_v26 = vmul.f32 %v8178_v63, %v2582_v3 }
 0xc21   : > { %2708 = vmatprep.subr.bf16.mxu1 %v10363_v6 }
 0xc22   : > { %v2615_v62 = vpack.c.bf16 %v2614_v25, %v2613_v37  ;;  %v2578_v58 = vpop.permute.xlu0 %2577  ;;  %v2556_v11 = vpop.permute.xlu1 %2555 }
 0xc23   : > { %v2583_v57 = vsel %vm2581_vm12, 0.0, %v2578_v58  ;;  %v2562_v23 = vsel %vm2561_vm13, 0.0, %v2556_v11  ;;  %v8210_v11 = vld [vmem:[%s10313_s10] ss:$0 sm:$0xff] }
 0xc24   : > { %2709 = vmatpush1.bf16.msra.mxu1 %v2615_v62  ;;  %v2593_v56 = vmul.f32 %v8178_v63, %v2583_v57  ;;  %v2572_v52 = vmul.f32 %v8190_v54, %v2562_v23 }
 0xc25   : > { %2710 = vmatprep.subr.bf16.mxu1 %v10363_v6 }
 0xc26   : > { %v2558_v15 = vpop.permute.xlu0 %2557  ;;  %v2536_v40 = vpop.permute.xlu1 %2535  ;;  %v2594_v35 = vpack.c.bf16 %v2593_v56, %v2592_v26  ;;  %v8220_v26 = vld [vmem:[%s10313_s10 + $0x8] ss:$0 sm:$0xff] }
 0xc27   : > { %v2563_v22 = vsel %vm2561_vm13, 0.0, %v2558_v15  ;;  %v2542_v60 = vsel %vm2541_vm14, 0.0, %v2536_v40 }
 0xc28   : > { %2711 = vmatpush1.bf16.msra.mxu1 %v2595_v5  ;;  %v2573_v19 = vmul.f32 %v8190_v54, %v2563_v22  ;;  %v2552_v58 = vmul.f32 %v8200_v36, %v2542_v60 }
 0xc29   : > { %2712 = vmatprep.subr.bf16.mxu1 %v10363_v6 }
 0xc2a   : > { %v2538_v18 = vpop.permute.xlu0 %2537  ;;  %v2517_v39 = vpop.permute.xlu1 %2516  ;;  %v2574_v46 = vpack.c.bf16 %v2573_v19, %v2572_v52  ;;  %v5919_v52 = vld [vmem:[%s10304_s1 + $0x90] ss:$8 sps:$4 sm:$0xff]  }
 0xc2b   : > { %v2543_v49 = vsel %vm2541_vm14, 0.0, %v2538_v18  ;;  %v2523_v57 = vsel %vm2522_vm15, 0.0, %v2517_v39 }
 0xc2c   : > { %2713 = vmatpush1.bf16.msra.mxu1 %v2594_v35  ;;  %v2553_v37 = vmul.f32 %v8200_v36, %v2543_v49  ;;  %v2532_v22 = vmul.f32 %v8210_v11, %v2523_v57 }
 0xc2d   : > { %2714 = vmatprep.subr.bf16.mxu1 %v10363_v6 }
 0xc2e   : > { %v2519_v25 = vpop.permute.xlu0 %2518  ;;  %v2554_v3 = vpack.c.bf16 %v2553_v37, %v2552_v58  ;;  %v2657_v15 = vpop.permute.xlu1 %2656 }
 0xc2f   : > { %v2524_v62 = vsel %vm2522_vm15, 0.0, %v2519_v25  ;;  %v2663_v23 = vsel %vm2662_vm8, %v2657_v15, 0.0 }
 0xc30   : > { %2715 = vmatpush1.bf16.msra.mxu1 %v2574_v46  ;;  %v2533_v56 = vmul.f32 %v8210_v11, %v2524_v62  ;;  %v2673_v18 = vmul.f32 %v8220_v26, %v2663_v23 }
 0xc31   : > { %2716 = vmatprep.subr.bf16.mxu1 %v10363_v6 }
 0xc32   : > { %v2659_v40 = vpop.permute.xlu0 %2658  ;;  %v2534_v35 = vpack.c.bf16 %v2533_v56, %v2532_v22  ;;  %v5678_v22 = vld [vmem:[%s10305_s2 + $0xa8] sm:$0xff] }
 0xc33   : > { %v2664_v5 = vsel %vm2662_vm8, %v2659_v40, 0.0  ;;  %v5920_v40 = vld [vmem:[%s10304_s1 + $0xa4] ss:$8 sps:$4 sm:$0xff]  }
 0xc34   : > { %2717 = vmatpush1.bf16.msra.mxu1 %v2554_v3  ;;  %v2674_v19 = vmul.f32 %v8220_v26, %v2664_v5  ;;  %v5677_v5 = vld [vmem:[%s10305_s2 + $0xa0] sm:$0xff]  ;;  %5681 = vmatprep.mubr.msk.bf16.mxu0 %vm674_vm0, %v5920_v40 }
 0xc35   : > { %2718 = vmatprep.subr.bf16.mxu1 %v10363_v6 }
 0xc36   : > { %v2675_v49 = vpack.c.bf16 %v2674_v19, %v2673_v18 }
 0xc38   : > { %2719 = vmatpush1.bf16.msra.mxu1 %v2534_v35 }
 0xc39   : > { %2734 = vmatprep.subr.bf16.mxu1 %v10363_v6 }
 0xc3b   : > { %v2685_v39 = vpop.permute.xlu1 %2684 }
 0xc3c   : > { %2735 = vmatpush2.bf16.msra.mxu1 %v2675_v49 }
 0xc3d   : > { %3028 = vmatprep.subr.bf16.mxu1 %v10363_v6 }
 0xc3f   : > { %2737 = vmatmul.mubr.bf16.vlgmr.msra.gmra.mxu1 %v5919_v52  ;;  %v2690_v62 = vpop.permute.xlu0 %2689 }
 0xcff   : > { %v2738_v60 = vpop.f32.mrf.mxu1 }
 0xd00   : > { %v2739_v46 = vadd.f32 %v2738_v60, %v2685_v39 }
 0xd01   : > { %v2740_v37 = vpop.f32.mrf.mxu1 }
 0xd02   : > { %v8231_v25 = vmax.f32 %v2739_v46, 0.0 }
 0xd03   : > { %v2741_v58 = vpop.f32.mrf.mxu1 }
 0xd04   : > { %v2742_v57 = vadd.f32 %v2741_v58, %v2690_v62  ;;  %2816 = vrot.lane.b32.xlu1 %v8231_v25, %s6048_s30 }
 0xd05   : > { %v2743_v3 = vpop.f32.mrf.mxu1 }
 0xd06   : > { %v2746_v56 = vmax.f32 %v2742_v57, 0.0 }
 0xd08   : > { %2818 = vrot.lane.b32.xlu0 %v2746_v56, %s6048_s30  ;;  %2805 = vrot.lane.b32.xlu1 %v8231_v25, %s6049_s12  ;;  %v2793_v15 = vpack.c.bf16 %v2746_v56, %v8231_v25 }
 0xd0c   : > { %2807 = vrot.lane.b32.xlu0 %v2746_v56, %s6049_s12  ;;  %2794 = vrot.lane.b32.xlu1 %v8231_v25, %s6041_s25 }
 0xd10   : > { %2796 = vrot.lane.b32.xlu0 %v2746_v56, %s6041_s25  ;;  %2782 = vrot.lane.b32.xlu1 %v8231_v25, %s10335_s26 }
 0xd14   : > { %2784 = vrot.lane.b32.xlu0 %v2746_v56, %s10335_s26  ;;  %2771 = vrot.lane.b32.xlu1 %v8231_v25, %s6050_s14 }
 0xd18   : > { %2773 = vrot.lane.b32.xlu0 %v2746_v56, %s6050_s14  ;;  %2760 = vrot.lane.b32.xlu1 %v8231_v25, %s6051_s15 }
 0xd1c   : > { %2762 = vrot.lane.b32.xlu0 %v2746_v56, %s6051_s15  ;;  %2749 = vrot.lane.b32.xlu1 %v8231_v25, %s6052_s22 }
 0xd20   : > { %2751 = vrot.lane.b32.xlu0 %v2746_v56, %s6052_s22  ;;  %2827 = vrot.lane.b32.xlu1 %v8231_v25, %s6053_s16 }
 0xd24   : > { %2829 = vrot.lane.b32.xlu0 %v2746_v56, %s6053_s16  ;;  %2846 = vperm.xlu1 %5873, %v5677_v5  }
 0xd28   : > { %2851 = vperm.xlu0 %5872, %v5678_v22  }
 0xd76   : > { %v2817_v23 = vpop.permute.xlu1 %2816 }
 0xd77   : > { %v2822_v35 = vsel %vm2642_vm9, %v2817_v23, 0.0 }
 0xd78   : > { %v2824_v52 = vmul.f32 %v8148_v21, %v2822_v35 }
 0xd7a   : > { %v2819_v19 = vpop.permute.xlu0 %2818  ;;  %v2806_v18 = vpop.permute.xlu1 %2805 }
 0xd7b   : > { %v2823_v49 = vsel %vm2642_vm9, %v2819_v19, 0.0  ;;  %v2811_v60 = vsel %vm2622_vm10, %v2806_v18, 0.0 }
 0xd7c   : > { %v2825_v39 = vmul.f32 %v8148_v21, %v2823_v49  ;;  %v2813_v58 = vmul.f32 %v8157_v45, %v2811_v60 }
 0xd7e   : > { %v2826_v46 = vpack.c.bf16 %v2825_v39, %v2824_v52  ;;  %v2808_v37 = vpop.permute.xlu0 %2807  ;;  %v2795_v25 = vpop.permute.xlu1 %2794 }
 0xd7f   : > { %v2812_v62 = vsel %vm2622_vm10, %v2808_v37, 0.0  ;;  %v2800_v3 = vsel %vm2602_vm11, %v2795_v25, 0.0 }
 0xd80   : > { %v2814_v57 = vmul.f32 %v8157_v45, %v2812_v62  ;;  %2867 = vmatpush1.bf16.msra.mxu0 %v2826_v46  ;;  %v2802_v23 = vmul.f32 %v8166_v12, %v2800_v3 }
 0xd81   : > { %2868 = vmatprep.subr.bf16.mxu0 %v10363_v6 }
 0xd82   : > { %v2815_v56 = vpack.c.bf16 %v2814_v57, %v2813_v58  ;;  %v2797_v40 = vpop.permute.xlu0 %2796  ;;  %v2783_v5 = vpop.permute.xlu1 %2782 }
 0xd83   : > { %v2801_v22 = vsel %vm2602_vm11, %v2797_v40, 0.0  ;;  %v2788_v39 = vsel %vm2581_vm12, 0.0, %v2783_v5 }
 0xd84   : > { %v2803_v35 = vmul.f32 %v8166_v12, %v2801_v22  ;;  %2869 = vmatpush1.bf16.msra.mxu0 %v2815_v56  ;;  %v2790_v62 = vmul.f32 %v8178_v63, %v2788_v39 }
 0xd85   : > { %2870 = vmatprep.subr.bf16.mxu0 %v10363_v6 }
 0xd86   : > { %v2804_v19 = vpack.c.bf16 %v2803_v35, %v2802_v23  ;;  %v2785_v18 = vpop.permute.xlu0 %2784  ;;  %v2772_v49 = vpop.permute.xlu1 %2771 }
 0xd87   : > { %v2789_v52 = vsel %vm2581_vm12, 0.0, %v2785_v18  ;;  %v2777_v58 = vsel %vm2561_vm13, 0.0, %v2772_v49 }
 0xd88   : > { %2871 = vmatpush1.bf16.msra.mxu0 %v2804_v19  ;;  %v2791_v60 = vmul.f32 %v8178_v63, %v2789_v52  ;;  %v2779_v5 = vmul.f32 %v8190_v54, %v2777_v58 }
 0xd89   : > { %2872 = vmatprep.subr.bf16.mxu0 %v10363_v6 }
 0xd8a   : > { %v2774_v46 = vpop.permute.xlu0 %2773  ;;  %v2761_v37 = vpop.permute.xlu1 %2760  ;;  %v2792_v57 = vpack.c.bf16 %v2791_v60, %v2790_v62 }
 0xd8b   : > { %v2778_v25 = vsel %vm2561_vm13, 0.0, %v2774_v46  ;;  %v2766_v23 = vsel %vm2541_vm14, 0.0, %v2761_v37 }
 0xd8c   : > { %2873 = vmatpush1.bf16.msra.mxu0 %v2793_v15  ;;  %v2780_v3 = vmul.f32 %v8190_v54, %v2778_v25  ;;  %v2768_v49 = vmul.f32 %v8200_v36, %v2766_v23 }
 0xd8d   : > { %2874 = vmatprep.subr.bf16.mxu0 %v10363_v6 }
 0xd8e   : > { %v2763_v56 = vpop.permute.xlu0 %2762  ;;  %v2750_v22 = vpop.permute.xlu1 %2749  ;;  %v2781_v35 = vpack.c.bf16 %v2780_v3, %v2779_v5  ;;  %v5922_v5 = vld [vmem:[%s10304_s1 + $0xa0] ss:$8 sps:$4 sm:$0xff]  }
 0xd8f   : > { %v2767_v40 = vsel %vm2541_vm14, 0.0, %v2763_v56  ;;  %v2755_v52 = vsel %vm2522_vm15, 0.0, %v2750_v22 }
 0xd90   : > { %2875 = vmatpush1.bf16.msra.mxu0 %v2792_v57  ;;  %v2769_v15 = vmul.f32 %v8200_v36, %v2767_v40  ;;  %v2757_v62 = vmul.f32 %v8210_v11, %v2755_v52 }
 0xd91   : > { %2876 = vmatprep.subr.bf16.mxu0 %v10363_v6 }
 0xd92   : > { %v2752_v19 = vpop.permute.xlu0 %2751  ;;  %v2770_v39 = vpack.c.bf16 %v2769_v15, %v2768_v49  ;;  %v2828_v46 = vpop.permute.xlu1 %2827 }
 0xd93   : > { %v2756_v18 = vsel %vm2522_vm15, 0.0, %v2752_v19  ;;  %v2833_v58 = vsel %vm2662_vm8, %v2828_v46, 0.0  ;;  %v5685_v46 = vld [vmem:[%s10305_s2 + $0xb8] sm:$0xff] }
 0xd94   : > { %2877 = vmatpush1.bf16.msra.mxu0 %v2781_v35  ;;  %v2758_v60 = vmul.f32 %v8210_v11, %v2756_v18  ;;  %v2835_v56 = vmul.f32 %v8220_v26, %v2833_v58 }
 0xd95   : > { %2878 = vmatprep.subr.bf16.mxu0 %v10363_v6 }
 0xd96   : > { %v2830_v37 = vpop.permute.xlu0 %2829  ;;  %v2759_v57 = vpack.c.bf16 %v2758_v60, %v2757_v62 }
 0xd97   : > { %v2834_v25 = vsel %vm2662_vm8, %v2830_v37, 0.0 }
 0xd98   : > { %2879 = vmatpush1.bf16.msra.mxu0 %v2770_v39  ;;  %v2836_v3 = vmul.f32 %v8220_v26, %v2834_v25 }
 0xd99   : > { %2880 = vmatprep.subr.bf16.mxu0 %v10363_v6 }
 0xd9a   : > { %v2837_v40 = vpack.c.bf16 %v2836_v3, %v2835_v56 }
 0xd9c   : > { %2881 = vmatpush1.bf16.msra.mxu0 %v2759_v57 }
 0xd9d   : > { %2896 = vmatprep.subr.bf16.mxu0 %v10363_v6 }
 0xd9f   : > { %v2847_v22 = vpop.permute.xlu1 %2846 }
 0xda0   : > { %2897 = vmatpush2.bf16.msra.mxu0 %v2837_v40 }
 0xda1   : > { %3190 = vmatprep.subr.bf16.mxu0 %v10363_v6 }
 0xda3   : > { %2899 = vmatmul.mubr.bf16.vlgmr.msra.gmra.mxu0 %v5922_v5  ;;  %v2852_v18 = vpop.permute.xlu0 %2851 }
 0xe63   : > { %v2900_v23 = vpop.f32.mrf.mxu0 }
 0xe64   : > { %v2901_v35 = vadd.f32 %v2900_v23, %v2847_v22 }
 0xe65   : > { %v2902_v15 = vpop.f32.mrf.mxu0 }
 0xe66   : > { %v8313_v19 = vadd.f32 %v8099_v55, %v2901_v35  ;;  %v5923_v55 = vld [vmem:[%s10304_s1 + $0xb4] ss:$8 sps:$4 sm:$0xff]  }
 0xe67   : > { %v2903_v49 = vpop.f32.mrf.mxu0  ;;  %5688 = vmatprep.mubr.msk.bf16.mxu1 %vm674_vm0, %v5923_v55 }
 0xe68   : > { %v2904_v52 = vadd.f32 %v2903_v49, %v2852_v18  ;;  %2978 = vrot.lane.b32.xlu1 %v8313_v19, %s6048_s30 }
 0xe69   : > { %v2905_v39 = vpop.f32.mrf.mxu0 }
 0xe6a   : > { %v8318_v60 = vadd.f32 %v8103_v31, %v2904_v52  ;;  %v5684_v31 = vld [vmem:[%s10305_s2 + $0xb0] sm:$0xff] }
 0xe6c   : > { %2980 = vrot.lane.b32.xlu0 %v8318_v60, %s6048_s30  ;;  %2967 = vrot.lane.b32.xlu1 %v8313_v19, %s6049_s12 }
 0xe70   : > { %2969 = vrot.lane.b32.xlu0 %v8318_v60, %s6049_s12  ;;  %2956 = vrot.lane.b32.xlu1 %v8313_v19, %s6041_s25 }
 0xe74   : > { %2958 = vrot.lane.b32.xlu0 %v8318_v60, %s6041_s25  ;;  %2944 = vrot.lane.b32.xlu1 %v8313_v19, %s10335_s26 }
 0xe78   : > { %2946 = vrot.lane.b32.xlu0 %v8318_v60, %s10335_s26  ;;  %2933 = vrot.lane.b32.xlu1 %v8313_v19, %s6050_s14 }
 0xe7c   : > { %2935 = vrot.lane.b32.xlu0 %v8318_v60, %s6050_s14  ;;  %2922 = vrot.lane.b32.xlu1 %v8313_v19, %s6051_s15 }
 0xe80   : > { %2924 = vrot.lane.b32.xlu0 %v8318_v60, %s6051_s15  ;;  %2911 = vrot.lane.b32.xlu1 %v8313_v19, %s6052_s22 }
 0xe84   : > { %2913 = vrot.lane.b32.xlu0 %v8318_v60, %s6052_s22  ;;  %2989 = vrot.lane.b32.xlu1 %v8313_v19, %s6053_s16 }
 0xe88   : > { %2991 = vrot.lane.b32.xlu0 %v8318_v60, %s6053_s16  ;;  %3008 = vperm.xlu1 %5873, %v5684_v31  }
 0xe8c   : > { %3013 = vperm.xlu0 %5872, %v5685_v46  }
 0xeda   : > { %v2979_v37 = vpop.permute.xlu1 %2978 }
 0xedb   : > { %v2984_v25 = vsel %vm2642_vm9, %v2979_v37, 0.0 }
 0xedc   : > { %v2986_v3 = vmul.f32 %v8148_v21, %v2984_v25 }
 0xede   : > { %v2981_v62 = vpop.permute.xlu0 %2980  ;;  %v2968_v58 = vpop.permute.xlu1 %2967 }
 0xedf   : > { %v2985_v57 = vsel %vm2642_vm9, %v2981_v62, 0.0  ;;  %v2973_v40 = vsel %vm2622_vm10, %v2968_v58, 0.0 }
 0xee0   : > { %v2987_v56 = vmul.f32 %v8148_v21, %v2985_v57  ;;  %v2975_v15 = vmul.f32 %v8157_v45, %v2973_v40 }
 0xee2   : > { %v2988_v5 = vpack.c.bf16 %v2987_v56, %v2986_v3  ;;  %v2970_v22 = vpop.permute.xlu0 %2969  ;;  %v2957_v23 = vpop.permute.xlu1 %2956 }
 0xee3   : > { %v2974_v35 = vsel %vm2622_vm10, %v2970_v22, 0.0  ;;  %v2962_v49 = vsel %vm2602_vm11, %v2957_v23, 0.0  ;;  %v2955_v22 = vpack.c.bf16 %v8318_v60, %v8313_v19 }
 0xee4   : > { %v2976_v18 = vmul.f32 %v8157_v45, %v2974_v35  ;;  %3029 = vmatpush1.bf16.msra.mxu1 %v2988_v5  ;;  %v2964_v46 = vmul.f32 %v8166_v12, %v2962_v49 }
 0xee5   : > { %3030 = vmatprep.subr.bf16.mxu1 %v10363_v6 }
 0xee6   : > { %v2977_v52 = vpack.c.bf16 %v2976_v18, %v2975_v15  ;;  %v2959_v39 = vpop.permute.xlu0 %2958  ;;  %v2945_v55 = vpop.permute.xlu1 %2944 }
 0xee7   : > { %v2963_v31 = vsel %vm2602_vm11, %v2959_v39, 0.0  ;;  %v2950_v3 = vsel %vm2581_vm12, 0.0, %v2945_v55 }
 0xee8   : > { %v2965_v37 = vmul.f32 %v8166_v12, %v2963_v31  ;;  %3031 = vmatpush1.bf16.msra.mxu1 %v2977_v52  ;;  %v2952_v35 = vmul.f32 %v8178_v63, %v2950_v3 }
 0xee9   : > { %3032 = vmatprep.subr.bf16.mxu1 %v10363_v6 }
 0xeea   : > { %v2966_v25 = vpack.c.bf16 %v2965_v37, %v2964_v46  ;;  %v2947_v62 = vpop.permute.xlu0 %2946  ;;  %v2934_v58 = vpop.permute.xlu1 %2933 }
 0xeeb   : > { %v2951_v57 = vsel %vm2581_vm12, 0.0, %v2947_v62  ;;  %v2939_v15 = vsel %vm2561_vm13, 0.0, %v2934_v58 }
 0xeec   : > { %3033 = vmatpush1.bf16.msra.mxu1 %v2966_v25  ;;  %v2953_v56 = vmul.f32 %v8178_v63, %v2951_v57  ;;  %v2941_v55 = vmul.f32 %v8190_v54, %v2939_v15 }
 0xeed   : > { %3034 = vmatprep.subr.bf16.mxu1 %v10363_v6 }
 0xeee   : > { %v2936_v40 = vpop.permute.xlu0 %2935  ;;  %v2923_v5 = vpop.permute.xlu1 %2922  ;;  %v2954_v18 = vpack.c.bf16 %v2953_v56, %v2952_v35 }
 0xeef   : > { %v2940_v23 = vsel %vm2561_vm13, 0.0, %v2936_v40  ;;  %v2928_v46 = vsel %vm2541_vm14, 0.0, %v2923_v5 }
 0xef0   : > { %3035 = vmatpush1.bf16.msra.mxu1 %v2955_v22  ;;  %v2942_v49 = vmul.f32 %v8190_v54, %v2940_v23  ;;  %v2930_v57 = vmul.f32 %v8200_v36, %v2928_v46 }
 0xef1   : > { %3036 = vmatprep.subr.bf16.mxu1 %v10363_v6 }
 0xef2   : > { %v2925_v52 = vpop.permute.xlu0 %2924  ;;  %v2912_v31 = vpop.permute.xlu1 %2911  ;;  %v2943_v37 = vpack.c.bf16 %v2942_v49, %v2941_v55  ;;  %v5925_v55 = vld [vmem:[%s10304_s1 + $0xb0] ss:$8 sps:$4 sm:$0xff]  }
 0xef3   : > { %v2929_v39 = vsel %vm2541_vm14, 0.0, %v2925_v52  ;;  %v2917_v3 = vsel %vm2522_vm15, 0.0, %v2912_v31 }
 0xef4   : > { %3037 = vmatpush1.bf16.msra.mxu1 %v2954_v18  ;;  %v2931_v25 = vmul.f32 %v8200_v36, %v2929_v39  ;;  %v2919_v35 = vmul.f32 %v8210_v11, %v2917_v3 }
 0xef5   : > { %3038 = vmatprep.subr.bf16.mxu1 %v10363_v6 }
 0xef6   : > { %v2914_v62 = vpop.permute.xlu0 %2913  ;;  %v2932_v56 = vpack.c.bf16 %v2931_v25, %v2930_v57  ;;  %v2990_v22 = vpop.permute.xlu1 %2989 }
 0xef7   : > { %v2918_v58 = vsel %vm2522_vm15, 0.0, %v2914_v62  ;;  %v2995_v15 = vsel %vm2662_vm8, %v2990_v22, 0.0 }
 0xef8   : > { %3039 = vmatpush1.bf16.msra.mxu1 %v2943_v37  ;;  %v2920_v40 = vmul.f32 %v8210_v11, %v2918_v58  ;;  %v2997_v52 = vmul.f32 %v8220_v26, %v2995_v15 }
 0xef9   : > { %3040 = vmatprep.subr.bf16.mxu1 %v10363_v6 }
 0xefa   : > { %v2992_v5 = vpop.permute.xlu0 %2991  ;;  %v2921_v18 = vpack.c.bf16 %v2920_v40, %v2919_v35  ;;  %v5692_v35 = vld [vmem:[%s10305_s2 + $0xc8] sm:$0xff] }
 0xefb   : > { %v2996_v23 = vsel %vm2662_vm8, %v2992_v5, 0.0  ;;  %v5926_v5 = vld [vmem:[%s10304_s1 + $0xc4] ss:$8 sps:$4 sm:$0xff]  }
 0xefc   : > { %3041 = vmatpush1.bf16.msra.mxu1 %v2932_v56  ;;  %v2998_v49 = vmul.f32 %v8220_v26, %v2996_v23  ;;  %v5691_v23 = vld [vmem:[%s10305_s2 + $0xc0] sm:$0xff]  ;;  %5695 = vmatprep.mubr.msk.bf16.mxu0 %vm674_vm0, %v5926_v5 }
 0xefd   : > { %3042 = vmatprep.subr.bf16.mxu1 %v10363_v6 }
 0xefe   : > { %v2999_v39 = vpack.c.bf16 %v2998_v49, %v2997_v52 }
 0xf00   : > { %3043 = vmatpush1.bf16.msra.mxu1 %v2921_v18 }
 0xf01   : > { %3058 = vmatprep.subr.bf16.mxu1 %v10363_v6 }
 0xf03   : > { %v3009_v31 = vpop.permute.xlu1 %3008 }
 0xf04   : > { %3059 = vmatpush2.bf16.msra.mxu1 %v2999_v39 }
 0xf05   : > { %3380 = vmatprep.subr.bf16.mxu1 %v10363_v6 }
 0xf07   : > { %3061 = vmatmul.mubr.bf16.vlgmr.msra.gmra.mxu1 %v5925_v55  ;;  %v3014_v58 = vpop.permute.xlu0 %3013 }
 0xfc7   : > { %v3062_v46 = vpop.f32.mrf.mxu1 }
 0xfc8   : > { %v3063_v37 = vadd.f32 %v3062_v46, %v3009_v31 }
 0xfc9   : > { %v3064_v25 = vpop.f32.mrf.mxu1 }
 0xfca   : > { %v8406_v62 = vmax.f32 %v3063_v37, 0.0 }
 0xfcb   : > { %v3065_v57 = vpop.f32.mrf.mxu1 }
 0xfcc   : > { %v3066_v3 = vadd.f32 %v3065_v57, %v3014_v58  ;;  %3140 = vrot.lane.b32.xlu1 %v8406_v62, %s6048_s30 }
 0xfcd   : > { %v3067_v56 = vpop.f32.mrf.mxu1 }
 0xfce   : > { %v3070_v40 = vmax.f32 %v3066_v3, 0.0 }
 0xfd0   : > { %3142 = vrot.lane.b32.xlu0 %v3070_v40, %s6048_s30  ;;  %3129 = vrot.lane.b32.xlu1 %v8406_v62, %s6049_s12  ;;  %v3117_v22 = vpack.c.bf16 %v3070_v40, %v8406_v62 }
 0xfd4   : > { %3131 = vrot.lane.b32.xlu0 %v3070_v40, %s6049_s12  ;;  %3118 = vrot.lane.b32.xlu1 %v8406_v62, %s6041_s25 }
 0xfd8   : > { %3120 = vrot.lane.b32.xlu0 %v3070_v40, %s6041_s25  ;;  %3106 = vrot.lane.b32.xlu1 %v8406_v62, %s10335_s26 }
 0xfdc   : > { %3108 = vrot.lane.b32.xlu0 %v3070_v40, %s10335_s26  ;;  %3095 = vrot.lane.b32.xlu1 %v8406_v62, %s6050_s14 }
 0xfe0   : > { %3097 = vrot.lane.b32.xlu0 %v3070_v40, %s6050_s14  ;;  %3084 = vrot.lane.b32.xlu1 %v8406_v62, %s6051_s15 }
 0xfe4   : > { %3086 = vrot.lane.b32.xlu0 %v3070_v40, %s6051_s15  ;;  %3073 = vrot.lane.b32.xlu1 %v8406_v62, %s6052_s22 }
 0xfe8   : > { %3075 = vrot.lane.b32.xlu0 %v3070_v40, %s6052_s22  ;;  %3151 = vrot.lane.b32.xlu1 %v8406_v62, %s6053_s16 }
 0xfec   : > { %3153 = vrot.lane.b32.xlu0 %v3070_v40, %s6053_s16  ;;  %3170 = vperm.xlu1 %5873, %v5691_v23  }
 0xff0   : > { %3175 = vperm.xlu0 %5872, %v5692_v35  }
0x103e   : > { %v3141_v15 = vpop.permute.xlu1 %3140 }
0x103f   : > { %v3146_v18 = vsel %vm2642_vm9, %v3141_v15, 0.0 }
0x1040   : > { %v3148_v55 = vmul.f32 %v8148_v21, %v3146_v18 }
0x1042   : > { %v3143_v49 = vpop.permute.xlu0 %3142  ;;  %v3130_v52 = vpop.permute.xlu1 %3129 }
0x1043   : > { %v3147_v39 = vsel %vm2642_vm9, %v3143_v49, 0.0  ;;  %v3135_v46 = vsel %vm2622_vm10, %v3130_v52, 0.0 }
0x1044   : > { %v3149_v31 = vmul.f32 %v8148_v21, %v3147_v39  ;;  %v3137_v57 = vmul.f32 %v8157_v45, %v3135_v46 }
0x1046   : > { %v3150_v37 = vpack.c.bf16 %v3149_v31, %v3148_v55  ;;  %v3132_v25 = vpop.permute.xlu0 %3131  ;;  %v3119_v62 = vpop.permute.xlu1 %3118 }
0x1047   : > { %v3136_v58 = vsel %vm2622_vm10, %v3132_v25, 0.0  ;;  %v3124_v56 = vsel %vm2602_vm11, %v3119_v62, 0.0 }
0x1048   : > { %v3138_v3 = vmul.f32 %v8157_v45, %v3136_v58  ;;  %3191 = vmatpush1.bf16.msra.mxu0 %v3150_v37  ;;  %v3126_v15 = vmul.f32 %v8166_v12, %v3124_v56 }
0x1049   : > { %3192 = vmatprep.subr.bf16.mxu0 %v10363_v6 }
0x104a   : > { %v3139_v40 = vpack.c.bf16 %v3138_v3, %v3137_v57  ;;  %v3121_v5 = vpop.permute.xlu0 %3120  ;;  %v3107_v23 = vpop.permute.xlu1 %3106 }
0x104b   : > { %v3125_v35 = vsel %vm2602_vm11, %v3121_v5, 0.0  ;;  %v3112_v31 = vsel %vm2581_vm12, 0.0, %v3107_v23 }
0x104c   : > { %v3127_v18 = vmul.f32 %v8166_v12, %v3125_v35  ;;  %3193 = vmatpush1.bf16.msra.mxu0 %v3139_v40  ;;  %v3114_v58 = vmul.f32 %v8178_v63, %v3112_v31 }
0x104d   : > { %3194 = vmatprep.subr.bf16.mxu0 %v10363_v6 }
0x104e   : > { %v3128_v49 = vpack.c.bf16 %v3127_v18, %v3126_v15  ;;  %v3109_v52 = vpop.permute.xlu0 %3108  ;;  %v3096_v39 = vpop.permute.xlu1 %3095 }
0x104f   : > { %v3113_v55 = vsel %vm2581_vm12, 0.0, %v3109_v52  ;;  %v3101_v57 = vsel %vm2561_vm13, 0.0, %v3096_v39 }
0x1050   : > { %3195 = vmatpush1.bf16.msra.mxu0 %v3128_v49  ;;  %v3115_v46 = vmul.f32 %v8178_v63, %v3113_v55  ;;  %v3103_v23 = vmul.f32 %v8190_v54, %v3101_v57 }
0x1051   : > { %3196 = vmatprep.subr.bf16.mxu0 %v10363_v6 }
0x1052   : > { %v3098_v37 = vpop.permute.xlu0 %3097  ;;  %v3085_v25 = vpop.permute.xlu1 %3084  ;;  %v3116_v3 = vpack.c.bf16 %v3115_v46, %v3114_v58 }
0x1053   : > { %v3102_v62 = vsel %vm2561_vm13, 0.0, %v3098_v37  ;;  %v3090_v15 = vsel %vm2541_vm14, 0.0, %v3085_v25 }
0x1054   : > { %3197 = vmatpush1.bf16.msra.mxu0 %v3117_v22  ;;  %v3104_v56 = vmul.f32 %v8190_v54, %v3102_v62  ;;  %v3092_v39 = vmul.f32 %v8200_v36, %v3090_v15 }
0x1055   : > { %3198 = vmatprep.subr.bf16.mxu0 %v10363_v6 }
0x1056   : > { %v3087_v40 = vpop.permute.xlu0 %3086  ;;  %v3074_v35 = vpop.permute.xlu1 %3073  ;;  %v3105_v18 = vpack.c.bf16 %v3104_v56, %v3103_v23  ;;  %v5928_v23 = vld [vmem:[%s10304_s1 + $0xc0] ss:$8 sps:$4 sm:$0xff]  }
0x1057   : > { %v3091_v5 = vsel %vm2541_vm14, 0.0, %v3087_v40  ;;  %v3079_v55 = vsel %vm2522_vm15, 0.0, %v3074_v35 }
0x1058   : > { %3199 = vmatpush1.bf16.msra.mxu0 %v3116_v3  ;;  %v3093_v22 = vmul.f32 %v8200_v36, %v3091_v5  ;;  %v3081_v58 = vmul.f32 %v8210_v11, %v3079_v55 }
0x1059   : > { %3200 = vmatprep.subr.bf16.mxu0 %v10363_v6 }
0x105a   : > { %v3076_v49 = vpop.permute.xlu0 %3075  ;;  %v3094_v31 = vpack.c.bf16 %v3093_v22, %v3092_v39  ;;  %v3152_v37 = vpop.permute.xlu1 %3151 }
0x105b   : > { %v3080_v52 = vsel %vm2522_vm15, 0.0, %v3076_v49  ;;  %v3157_v57 = vsel %vm2662_vm8, %v3152_v37, 0.0  ;;  %v3445_v37 = vld [vmem:[%s10307_s4] sm:$0xff] }
0x105c   : > { %3201 = vmatpush1.bf16.msra.mxu0 %v3105_v18  ;;  %v3082_v46 = vmul.f32 %v8210_v11, %v3080_v52  ;;  %v3159_v40 = vmul.f32 %v8220_v26, %v3157_v57  ;;  %v5946_v57 = vld [vmem:[%s10311_s8 + $0x24] ss:$8 sps:$4 sm:$0xff]  }
0x105d   : > { %3202 = vmatprep.subr.bf16.mxu0 %v10363_v6 }
0x105e   : > { %v3154_v25 = vpop.permute.xlu0 %3153  ;;  %v3083_v3 = vpack.c.bf16 %v3082_v46, %v3081_v58  ;;  %v5943_v58 = vld [vmem:[%s10311_s8 + $0x34] ss:$8 sps:$4 sm:$0xff]  }
0x105f   : > { %v3158_v62 = vsel %vm2662_vm8, %v3154_v25, 0.0  ;;  %v3446_v25 = vld [vmem:[%s10307_s4 + $0x8] sm:$0xff] }
0x1060   : > { %3203 = vmatpush1.bf16.msra.mxu0 %v3094_v31  ;;  %v3160_v56 = vmul.f32 %v8220_v26, %v3158_v62  ;;  %v5941_v62 = vld [vmem:[%s10311_s8 + $0x30] ss:$8 sps:$4 sm:$0xff]  }
0x1061   : > { %3204 = vmatprep.subr.bf16.mxu0 %v10363_v6 }
0x1062   : > { %v3161_v5 = vpack.c.bf16 %v3160_v56, %v3159_v40  ;;  %v5949_v56 = vld [vmem:[%s10311_s8 + $0x14] ss:$8 sps:$4 sm:$0xff]   ;;  %v5947_v40 = vld [vmem:[%s10311_s8 + $0x10] ss:$8 sps:$4 sm:$0xff]  }
0x1064   : > { %3205 = vmatpush1.bf16.msra.mxu0 %v3083_v3  ;;  %v5944_v3 = vld [vmem:[%s10311_s8 + $0x20] ss:$8 sps:$4 sm:$0xff]  }
0x1065   : > { %3220 = vmatprep.subr.bf16.mxu0 %v10363_v6 }
0x1067   : > { %v3171_v35 = vpop.permute.xlu1 %3170 }
0x1068   : > { %3221 = vmatpush2.bf16.msra.mxu0 %v3161_v5 }
0x1069   : > { %3522 = vmatprep.subr.bf16.mxu0 %v5943_v58 }
0x106b   : > { %3223 = vmatmul.mubr.bf16.vlgmr.msra.gmra.mxu0 %v5928_v23  ;;  %v3176_v52 = vpop.permute.xlu0 %3175 }
0x106c   : > { %3546 = vmatprep.mubr.bf16.mxu0 %v10363_v6  ;;  %3523 = vmatpush1.bf16.msra.mxu0 %v5941_v62 }
0x106d   : > { %3524 = vmatprep.subr.bf16.mxu0 %v5946_v57 }
0x1070   : > { %3525 = vmatpush1.bf16.msra.mxu0 %v5944_v3 }
0x1071   : > { %3526 = vmatprep.subr.bf16.mxu0 %v5949_v56 }
0x1074   : > { %3527 = vmatpush1.bf16.msra.mxu0 %v5947_v40 }
0x112b   : > { %v3224_v15 = vpop.f32.mrf.mxu0 }
0x112c   : > { %v3225_v18 = vadd.f32 %v3224_v15, %v3171_v35 }
0x112d   : > { %v3226_v22 = vpop.f32.mrf.mxu0 }
0x112e   : > { %v8488_v49 = vadd.f32 %v3225_v18, %v8313_v19 }
0x112f   : > { %v3227_v39 = vpop.f32.mrf.mxu0 }
0x1130   : > { %v3228_v55 = vadd.f32 %v3227_v39, %v3176_v52  ;;  %3302 = vrot.lane.b32.xlu1 %v8488_v49, %s6048_s30 }
0x1131   : > { %v3229_v31 = vpop.f32.mrf.mxu0 }
0x1132   : > { %v8493_v46 = vadd.f32 %v3228_v55, %v8318_v60  ;;  %v5929_v60 = vld [vmem:[%s10306_s3 + $0x4] ss:$8 sps:$4 sm:$0xff]  }
0x1133   : > { %5704 = vmatprep.mubr.msk.bf16.mxu1 %vm674_vm0, %v5929_v60 }
0x1134   : > { %3304 = vrot.lane.b32.xlu0 %v8493_v46, %s6048_s30  ;;  %3291 = vrot.lane.b32.xlu1 %v8488_v49, %s6049_s12  ;;  %v3279_v19 = vpack.c.bf16 %v8493_v46, %v8488_v49 }
0x1138   : > { %3293 = vrot.lane.b32.xlu0 %v8493_v46, %s6049_s12  ;;  %3280 = vrot.lane.b32.xlu1 %v8488_v49, %s6041_s25 }
0x113c   : > { %3282 = vrot.lane.b32.xlu0 %v8493_v46, %s6041_s25  ;;  %3268 = vrot.lane.b32.xlu1 %v8488_v49, %s10335_s26 }
0x1140   : > { %3270 = vrot.lane.b32.xlu0 %v8493_v46, %s10335_s26  ;;  %3257 = vrot.lane.b32.xlu1 %v8488_v49, %s6050_s14 }
0x1144   : > { %3259 = vrot.lane.b32.xlu0 %v8493_v46, %s6050_s14  ;;  %3246 = vrot.lane.b32.xlu1 %v8488_v49, %s6051_s15 }
0x1148   : > { %3248 = vrot.lane.b32.xlu0 %v8493_v46, %s6051_s15  ;;  %3235 = vrot.lane.b32.xlu1 %v8488_v49, %s6052_s22 }
0x114c   : > { %3237 = vrot.lane.b32.xlu0 %v8493_v46, %s6052_s22  ;;  %3313 = vrot.lane.b32.xlu1 %v8488_v49, %s6053_s16  ;;  %s10364_s22 = smov 15  }
0x1150   : > { %3315 = vrot.lane.b32.xlu0 %v8493_v46, %s6053_s16  ;;  %3449 = vperm.xlu1 %5873, %v3445_v37  }
0x1154   : > { %3454 = vperm.xlu0 %5872, %v3446_v25  }
0x11a2   : > { %v3303_v5 = vpop.permute.xlu1 %3302 }
0x11a3   : > { %v3308_v23 = vsel %vm2642_vm9, %v3303_v5, 0.0 }
0x11a4   : > { %v3310_v22 = vmul.f32 %v8148_v21, %v3308_v23 }
0x11a6   : > { %v3305_v35 = vpop.permute.xlu0 %3304  ;;  %v3292_v15 = vpop.permute.xlu1 %3291 }
0x11a7   : > { %v3309_v18 = vsel %vm2642_vm9, %v3305_v35, 0.0  ;;  %v3297_v39 = vsel %vm2622_vm10, %v3292_v15, 0.0  ;;  %vm10368_vm9 = vcmp.lt.s32.totalorder %v6220_v10, 111 }
0x11a8   : > { %v3311_v52 = vmul.f32 %v8148_v21, %v3309_v18  ;;  %v3299_v25 = vmul.f32 %v8157_v45, %v3297_v39 }
0x11aa   : > { %v3312_v55 = vpack.c.bf16 %v3311_v52, %v3310_v22  ;;  %v3294_v31 = vpop.permute.xlu0 %3293  ;;  %v3281_v60 = vpop.permute.xlu1 %3280 }
0x11ab   : > { %v3298_v37 = vsel %vm2622_vm10, %v3294_v31, 0.0  ;;  %v3286_v58 = vsel %vm2602_vm11, %v3281_v60, 0.0  ;;  %vm10369_vm10 = vmmov %vm10368_vm9 }
0x11ac   : > { %v3300_v62 = vmul.f32 %v8157_v45, %v3298_v37  ;;  %3381 = vmatpush1.bf16.msra.mxu1 %v3312_v55  ;;  %v3288_v40 = vmul.f32 %v8166_v12, %v3286_v58 }
0x11ad   : > { %3382 = vmatprep.subr.bf16.mxu1 %v10363_v6 }
0x11ae   : > { %v3301_v57 = vpack.c.bf16 %v3300_v62, %v3299_v25  ;;  %v3283_v3 = vpop.permute.xlu0 %3282  ;;  %v3269_v56 = vpop.permute.xlu1 %3268 }
0x11af   : > { %v3287_v21 = vsel %vm2602_vm11, %v3283_v3, 0.0  ;;  %v3274_v18 = vsel %vm2581_vm12, 0.0, %v3269_v56  ;;  %vm10370_vm11 = vmmov %vm10368_vm9 }
0x11b0   : > { %v3289_v5 = vmul.f32 %v8166_v12, %v3287_v21  ;;  %3383 = vmatpush1.bf16.msra.mxu1 %v3301_v57  ;;  %v3276_v12 = vmul.f32 %v8178_v63, %v3274_v18 }
0x11b1   : > { %3384 = vmatprep.subr.bf16.mxu1 %v10363_v6 }
0x11b2   : > { %v3290_v23 = vpack.c.bf16 %v3289_v5, %v3288_v40  ;;  %v3271_v35 = vpop.permute.xlu0 %3270  ;;  %v3258_v45 = vpop.permute.xlu1 %3257 }
0x11b3   : > { %v3275_v15 = vsel %vm2581_vm12, 0.0, %v3271_v35  ;;  %v3263_v31 = vsel %vm2561_vm13, 0.0, %v3258_v45  ;;  %vm10371_vm12 = vmmov %vm10368_vm9 }
0x11b4   : > { %3385 = vmatpush1.bf16.msra.mxu1 %v3290_v23  ;;  %v3277_v22 = vmul.f32 %v8178_v63, %v3275_v15  ;;  %v3265_v58 = vmul.f32 %v8190_v54, %v3263_v31  ;;  %v5938_v31 = vld [vmem:[%s10306_s3 + $0x34] ss:$8 sps:$4 sm:$0xff]  }
0x11b5   : > { %3386 = vmatprep.subr.bf16.mxu1 %v10363_v6 }
0x11b6   : > { %v3260_v52 = vpop.permute.xlu0 %3259  ;;  %v3247_v39 = vpop.permute.xlu1 %3246  ;;  %v3278_v60 = vpack.c.bf16 %v3277_v22, %v3276_v12  ;;  %v5937_v12 = vld [vmem:[%s10306_s3 + $0x20] ss:$8 sps:$4 sm:$0xff]  }
0x11b7   : > { %v3264_v55 = vsel %vm2561_vm13, 0.0, %v3260_v52  ;;  %v3252_v63 = vsel %vm2541_vm14, 0.0, %v3247_v39  ;;  %v5931_v39 = vld [vmem:[%s10306_s3] ss:$8 sps:$4 sm:$0xff]   ;;  %vm10374_vm13 = vmmov %vm10368_vm9 }
0x11b8   : > { %3387 = vmatpush1.bf16.msra.mxu1 %v3279_v19  ;;  %v3266_v37 = vmul.f32 %v8190_v54, %v3264_v55  ;;  %v3254_v56 = vmul.f32 %v8200_v36, %v3252_v63  ;;  %v5935_v55 = vld [vmem:[%s10306_s3 + $0x24] ss:$8 sps:$4 sm:$0xff]  }
0x11b9   : > { %3388 = vmatprep.subr.bf16.mxu1 %v10363_v6 }
0x11ba   : > { %v3249_v25 = vpop.permute.xlu0 %3248  ;;  %v3236_v57 = vpop.permute.xlu1 %3235  ;;  %v3267_v49 = vpack.c.bf16 %v3266_v37, %v3265_v58  ;;  %v5952_v37 = vld [vmem:[%s10311_s8 + $0x4] ss:$8 sps:$4 sm:$0xff]  }
0x11bb   : > { %v3253_v62 = vsel %vm2541_vm14, 0.0, %v3249_v25  ;;  %v3241_v21 = vsel %vm2522_vm15, 0.0, %v3236_v57  ;;  %v5950_v25 = vld [vmem:[%s10311_s8] ss:$8 sps:$4 sm:$0xff]   ;;  %3528 = vmatprep.subr.bf16.mxu0 %v5952_v37  ;;  %vm10375_vm14 = vmmov %vm10368_vm9 }
0x11bc   : > { %3389 = vmatpush1.bf16.msra.mxu1 %v3278_v60  ;;  %v3255_v46 = vmul.f32 %v8200_v36, %v3253_v62  ;;  %v3243_v45 = vmul.f32 %v8210_v11, %v3241_v21  ;;  %v5940_v60 = vld [vmem:[%s10306_s3 + $0x30] ss:$8 sps:$4 sm:$0xff]   ;;  %3529 = vmatpush1.bf16.msra.mxu0 %v5950_v25  ;;  %v5955_v62 = vld [vmem:[%s10311_s8 + $0x74] ss:$8 sps:$4 sm:$0xff]   ;;  %v5956_v21 = vld [vmem:[%s10311_s8 + $0x60] ss:$8 sps:$4 sm:$0xff]  }
0x11bd   : > { %3390 = vmatprep.subr.bf16.mxu1 %v10363_v6  ;;  %3622 = vmatprep.subr.bf16.mxu0 %v5955_v62  ;;  %v5971_v25 = vld [vmem:[%s10311_s8 + $0x90] ss:$8 sps:$4 sm:$0xff]  }
0x11be   : > { %v3238_v19 = vpop.permute.xlu0 %3237  ;;  %v3256_v54 = vpack.c.bf16 %v3255_v46, %v3254_v56  ;;  %v3314_v5 = vpop.permute.xlu1 %3313 }
0x11bf   : > { %v3242_v3 = vsel %vm2522_vm15, 0.0, %v3238_v19  ;;  %v3319_v15 = vsel %vm2662_vm8, %v3314_v5, 0.0  ;;  %v5958_v19 = vld [vmem:[%s10311_s8 + $0x64] ss:$8 sps:$4 sm:$0xff]   ;;  %vm10376_vm15 = vmmov %vm10368_vm9 }
0x11c0   : > { %3391 = vmatpush1.bf16.msra.mxu1 %v3267_v49  ;;  %v3244_v40 = vmul.f32 %v8210_v11, %v3242_v3  ;;  %v3321_v22 = vmul.f32 %v8220_v26, %v3319_v15  ;;  %v5932_v11 = vld [vmem:[%s10306_s3 + $0x14] ss:$8 sps:$4 sm:$0xff]   ;;  %v5953_v49 = vld [vmem:[%s10311_s8 + $0x70] ss:$8 sps:$4 sm:$0xff]   ;;  %v5962_v15 = vld [vmem:[%s10311_s8 + $0x40] ss:$8 sps:$4 sm:$0xff]  }
0x11c1   : > { %3392 = vmatprep.subr.bf16.mxu1 %v10363_v6 }
0x11c2   : > { %v3316_v23 = vpop.permute.xlu0 %3315  ;;  %v3245_v36 = vpack.c.bf16 %v3244_v40, %v3243_v45 }
0x11c3   : > { %v3320_v35 = vsel %vm2662_vm8, %v3316_v23, 0.0  ;;  %vm3510_vm8 = vcmask 523264   ;;  %v5959_v23 = vld [vmem:[%s10311_s8 + $0x50] ss:$8 sps:$4 sm:$0xff]  }
0x11c4   : > { %3393 = vmatpush1.bf16.msra.mxu1 %v3256_v54  ;;  %v3322_v18 = vmul.f32 %v8220_v26, %v3320_v35  ;;  %v5934_v26 = vld [vmem:[%s10306_s3 + $0x10] ss:$8 sps:$4 sm:$0xff]   ;;  %v5961_v54 = vld [vmem:[%s10311_s8 + $0x54] ss:$8 sps:$4 sm:$0xff]   ;;  %v5964_v35 = vld [vmem:[%s10311_s8 + $0x44] ss:$8 sps:$4 sm:$0xff]  }
0x11c5   : > { %3394 = vmatprep.subr.bf16.mxu1 %v10363_v6 }
0x11c6   : > { %v3323_v52 = vpack.c.bf16 %v3322_v18, %v3321_v22  ;;  %v5967_v18 = vld [vmem:[%s10311_s8 + $0xb4] ss:$8 sps:$4 sm:$0xff]  }
0x11c8   : > { %3395 = vmatpush1.bf16.msra.mxu1 %v3245_v36 }
0x11c9   : > { %3410 = vmatprep.subr.bf16.mxu1 %v10363_v6 }
0x11cc   : > { %3411 = vmatpush2.bf16.msra.mxu1 %v3323_v52  ;;  %v5965_v52 = vld [vmem:[%s10311_s8 + $0xb0] ss:$8 sps:$4 sm:$0xff]  }
0x11cf   : > { %3413 = vmatmul.mubr.bf16.vlgmr.msra.gmra.mxu1 %v5931_v39 }
0x11d0   : > { %5705 = vmatprep.mubr.msk.bf16.mxu1 %vm674_vm0, %v5932_v11 }
0x11d7   : > { %3421 = vmatmul.mubr.bf16.gmra.mxu1 %v5934_v26  ;;  %v5970_v26 = vld [vmem:[%s10311_s8 + $0xa4] ss:$8 sps:$4 sm:$0xff]  }
0x11d8   : > { %5706 = vmatprep.mubr.msk.bf16.mxu1 %vm674_vm0, %v5935_v55 }
0x11df   : > { %3429 = vmatmul.mubr.bf16.gmra.mxu1 %v5937_v12  ;;  %v5968_v12 = vld [vmem:[%s10311_s8 + $0xa0] ss:$8 sps:$4 sm:$0xff]  }
0x11e0   : > { %5707 = vmatprep.mubr.msk.bf16.mxu1 %vm674_vm0, %v5938_v31 }
0x11e7   : > { %3437 = vmatmul.mubr.bf16.gmra.mxu1 %v5940_v60  ;;  %v5973_v60 = vld [vmem:[%s10311_s8 + $0x94] ss:$8 sps:$4 sm:$0xff]  }
0x128f   : > { %v3414_v58 = vpop.f32.mrf.mxu1 }
0x1291   : > { %v3416_v57 = vpop.f32.mrf.mxu1 }
0x1293   : > { %v3417_v63 = vpop.f32.mrf.mxu1 }
0x1294   : > { %v3461_v46 = vpack.c.bf16 %v3417_v63, %v3414_v58  ;;  %v5976_v58 = vld [vmem:[%s10311_s8 + $0x84] ss:$8 sps:$4 sm:$0xff]   ;;  %v5974_v63 = vld [vmem:[%s10311_s8 + $0x80] ss:$8 sps:$4 sm:$0xff]  }
0x1295   : > { %v3419_v3 = vpop.f32.mrf.mxu1 }
0x1296   : > { %5716 = vmatmul.mubr.msk.bf16.vlgmr.msra.gmra.mxu0 %vm3510_vm8, %v3461_v46  ;;  %v5977_v46 = vld [vmem:[%s10311_s8 + $0xf0] ss:$8 sps:$4 sm:$0xff]   ;;  %v5982_v3 = vld [vmem:[%s10311_s8 + $0xe4] ss:$8 sps:$4 sm:$0xff]  }
0x1297   : > { %3623 = vmatpush1.bf16.msra.mxu0 %v5953_v49  ;;  %v3422_v56 = vpop.f32.mrf.mxu1  ;;  %3646 = vmatprep.mubr.bf16.mxu0 %v10363_v6  ;;  %v5979_v49 = vld [vmem:[%s10311_s8 + $0xf4] ss:$8 sps:$4 sm:$0xff]  }
0x1298   : > { %3624 = vmatprep.subr.bf16.mxu0 %v5958_v19 }
0x1299   : > { %v3424_v40 = vpop.f32.mrf.mxu1 }
0x129a   : > { %v5988_v40 = vld [vmem:[%s10311_s8 + $0xc4] ss:$8 sps:$4 sm:$0xff]  }
0x129b   : > { %3625 = vmatpush1.bf16.msra.mxu0 %v5956_v21  ;;  %v3425_v5 = vpop.f32.mrf.mxu1  ;;  %v5985_v21 = vld [vmem:[%s10311_s8 + $0xd4] ss:$8 sps:$4 sm:$0xff]  }
0x129c   : > { %3626 = vmatprep.subr.bf16.mxu0 %v5961_v54  ;;  %v3561_v11 = vpack.c.bf16 %v3425_v5, %v3422_v56  ;;  %v5980_v56 = vld [vmem:[%s10311_s8 + $0xe0] ss:$8 sps:$4 sm:$0xff]   ;;  %v5983_v54 = vld [vmem:[%s10311_s8 + $0xd0] ss:$8 sps:$4 sm:$0xff]  }
0x129d   : > { %v3427_v45 = vpop.f32.mrf.mxu1  ;;  %v5986_v5 = vld [vmem:[%s10311_s8 + $0xc0] ss:$8 sps:$4 sm:$0xff]  }
0x129f   : > { %3627 = vmatpush1.bf16.msra.mxu0 %v5959_v23  ;;  %v3430_v36 = vpop.f32.mrf.mxu1 }
0x12a0   : > { %3628 = vmatprep.subr.bf16.mxu0 %v5964_v35 }
0x12a1   : > { %v3432_v22 = vpop.f32.mrf.mxu1 }
0x12a3   : > { %3629 = vmatpush1.bf16.msra.mxu0 %v5962_v15  ;;  %v3433_v39 = vpop.f32.mrf.mxu1 }
0x12a4   : > { %3722 = vmatprep.subr.bf16.mxu0 %v5967_v18  ;;  %v3661_v19 = vpack.c.bf16 %v3433_v39, %v3430_v36 }
0x12a5   : > { %v3435_v55 = vpop.f32.mrf.mxu1 }
0x12a6   : > { %5733 = vmatmul.mubr.msk.bf16.vlgmr.msra.gmra.mxu0 %vm3510_vm8, %v3561_v11 }
0x12a7   : > { %3723 = vmatpush1.bf16.msra.mxu0 %v5965_v52  ;;  %3746 = vmatprep.mubr.bf16.mxu0 %v10363_v6  ;;  %v3438_v31 = vpop.f32.mrf.mxu1 }
0x12a8   : > { %3724 = vmatprep.subr.bf16.mxu0 %v5970_v26  ;;  %v3450_v26 = vpop.permute.xlu1 %3449 }
0x12a9   : > { %v3440_v37 = vpop.f32.mrf.mxu1 }
0x12ab   : > { %3725 = vmatpush1.bf16.msra.mxu0 %v5968_v12  ;;  %v3441_v62 = vpop.f32.mrf.mxu1  ;;  %v3457_v12 = vadd.f32 %v3450_v26, %v7829_v20 }
0x12ac   : > { %3726 = vmatprep.subr.bf16.mxu0 %v5973_v60  ;;  %v3761_v23 = vpack.c.bf16 %v3441_v62, %v3438_v31  ;;  %v3455_v60 = vpop.permute.xlu0 %3454 }
0x12ad   : > { %v3443_v57 = vpop.f32.mrf.mxu1  ;;  %v3459_v31 = vadd.f32 %v3455_v60, %v7834_v61  ;;  %v3458_v61 = vadd.f32 %v3450_v26, %v7861_v44 }
0x12af   : > { %3727 = vmatpush1.bf16.msra.mxu0 %v5971_v25 }
0x12b0   : > { %3728 = vmatprep.subr.bf16.mxu0 %v5976_v58 }
0x12b3   : > { %3729 = vmatpush1.bf16.msra.mxu0 %v5974_v63 }
0x12b4   : > { %3822 = vmatprep.subr.bf16.mxu0 %v5979_v49 }
0x12b6   : > { %5750 = vmatmul.mubr.msk.bf16.vlgmr.msra.gmra.mxu0 %vm3510_vm8, %v3661_v19 }
0x12b7   : > { %3823 = vmatpush1.bf16.msra.mxu0 %v5977_v46  ;;  %3846 = vmatprep.mubr.bf16.mxu0 %v10363_v6 }
0x12b8   : > { %3824 = vmatprep.subr.bf16.mxu0 %v5982_v3 }
0x12bb   : > { %3825 = vmatpush1.bf16.msra.mxu0 %v5980_v56 }
0x12bc   : > { %3826 = vmatprep.subr.bf16.mxu0 %v5985_v21 }
0x12bf   : > { %3827 = vmatpush1.bf16.msra.mxu0 %v5983_v54 }
0x12c0   : > { %3828 = vmatprep.subr.bf16.mxu0 %v5988_v40  ;;  %v3460_v40 = vadd.f32 %v3455_v60, %v7868_v32 }
0x12c3   : > { %3829 = vmatpush1.bf16.msra.mxu0 %v5986_v5 }
0x12c6   : > { %5767 = vmatmul.mubr.msk.bf16.vlgmr.msra.gmra.mxu0 %vm3510_vm8, %v3761_v23  ;;  %vm10377_vm8 = vmmov %vm10368_vm9 }
0x1356   : > { %v3548_v35 = vpop.f32.mrf.mxu0 }
0x1357   : > { %v3557_v25 = vadd.f32 %v3548_v35, %v3457_v12 }
0x1358   : > { %v3550_v45 = vpop.f32.mrf.mxu0 }
0x1359   : > { %v3558_v54 = vadd.f32 %v3550_v45, %v3458_v61 }
0x135a   : > { %v3552_v15 = vpop.f32.mrf.mxu0 }
0x135b   : > { %v3559_v57 = vadd.f32 %v3552_v15, %v3459_v31 }
0x135c   : > { %v3554_v36 = vpop.f32.mrf.mxu0 }
0x135d   : > { %v3560_v23 = vadd.f32 %v3554_v36, %v3460_v40  ;;  %v5991_v36 = vld [vmem:[%s10304_s1 + $0xd4] ss:$8 sps:$4 sm:$0xff]  }
0x135e   : > { %5774 = vmatprep.mubr.msk.bf16.mxu1 %vm674_vm0, %v5991_v36 }
0x1366   : > { %v3648_v18 = vpop.f32.mrf.mxu0 }
0x1367   : > { %v3657_v62 = vadd.f32 %v3648_v18, %v3557_v25 }
0x1368   : > { %v3650_v22 = vpop.f32.mrf.mxu0 }
0x1369   : > { %v3658_v5 = vadd.f32 %v3650_v22, %v3558_v54  ;;  %v5770_v22 = vld [vmem:[%s10305_s2 + $0xd0] sm:$0xff] }
0x136a   : > { %v3652_v52 = vpop.f32.mrf.mxu0 }
0x136b   : > { %v3659_v46 = vadd.f32 %v3652_v52, %v3559_v57  ;;  %v5771_v52 = vld [vmem:[%s10305_s2 + $0xd8] sm:$0xff] }
0x136c   : > { %v3654_v39 = vpop.f32.mrf.mxu0 }
0x136d   : > { %v3660_v15 = vadd.f32 %v3654_v39, %v3560_v23 }
0x1376   : > { %v3748_v11 = vpop.f32.mrf.mxu0 }
0x1377   : > { %v3757_v63 = vadd.f32 %v3748_v11, %v3657_v62 }
0x1378   : > { %v3750_v55 = vpop.f32.mrf.mxu0 }
0x1379   : > { %v3758_v35 = vadd.f32 %v3750_v55, %v3658_v5 }
0x137a   : > { %v3752_v37 = vpop.f32.mrf.mxu0 }
0x137b   : > { %v3759_v56 = vadd.f32 %v3752_v37, %v3659_v46 }
0x137c   : > { %v3754_v58 = vpop.f32.mrf.mxu0 }
0x137d   : > { %v3760_v18 = vadd.f32 %v3754_v58, %v3660_v15 }
0x1386   : > { %v3848_v49 = vpop.f32.mrf.mxu0 }
0x1387   : > { %v8709_v19 = vadd.f32 %v3848_v49, %v3757_v63 }
0x1388   : > { %v3850_v3 = vpop.f32.mrf.mxu0 }
0x1389   : > { %3971 = vrot.lane.b32.xlu1 %v8709_v19, %s6039_s23  ;;  %v8741_v44 = vadd.f32 %v3850_v3, %v3758_v35 }
0x138a   : > { %v3852_v21 = vpop.f32.mrf.mxu0 }
0x138b   : > { %v8713_v20 = vadd.f32 %v3852_v21, %v3759_v56 }
0x138c   : > { %v3854_v45 = vpop.f32.mrf.mxu0 }
0x138d   : > { %3953 = vrot.lane.b32.xlu1 %v8709_v19, %s6040_s24  ;;  %3973 = vrot.lane.b32.xlu0 %v8713_v20, %s6039_s23  ;;  %v8747_v32 = vadd.f32 %v3854_v45, %v3760_v18 }
0x1391   : > { %3935 = vrot.lane.b32.xlu1 %v8709_v19, %s6041_s25  ;;  %3955 = vrot.lane.b32.xlu0 %v8713_v20, %s6040_s24 }
0x1395   : > { %3915 = vrot.lane.b32.xlu1 %v8709_v19, %s10335_s26  ;;  %3937 = vrot.lane.b32.xlu0 %v8713_v20, %s6041_s25 }
0x1399   : > { %3897 = vrot.lane.b32.xlu1 %v8709_v19, %s10364_s22  ;;  %3917 = vrot.lane.b32.xlu0 %v8713_v20, %s10335_s26 }
0x139d   : > { %3879 = vrot.lane.b32.xlu1 %v8709_v19, %s10365_s28  ;;  %3899 = vrot.lane.b32.xlu0 %v8713_v20, %s10364_s22 }
0x13a1   : > { %3861 = vrot.lane.b32.xlu1 %v8709_v19, %s10366_s13  ;;  %3881 = vrot.lane.b32.xlu0 %v8713_v20, %s10365_s28 }
0x13a5   : > { %3975 = vrot.lane.b32.xlu1 %v8741_v44, %s6039_s23  ;;  %3863 = vrot.lane.b32.xlu0 %v8713_v20, %s10366_s13 }
0x13a9   : > { %3957 = vrot.lane.b32.xlu1 %v8741_v44, %s6040_s24  ;;  %3977 = vrot.lane.b32.xlu0 %v8747_v32, %s6039_s23 }
0x13ad   : > { %3939 = vrot.lane.b32.xlu1 %v8741_v44, %s6041_s25  ;;  %3959 = vrot.lane.b32.xlu0 %v8747_v32, %s6040_s24 }
0x13b1   : > { %3989 = vrot.lane.b32.xlu1 %v8709_v19, %s10367_s27  ;;  %3941 = vrot.lane.b32.xlu0 %v8747_v32, %s6041_s25 }
0x13b5   : > { %3919 = vrot.lane.b32.xlu1 %v8741_v44, %s10335_s26  ;;  %3991 = vrot.lane.b32.xlu0 %v8713_v20, %s10367_s27 }
0x13b9   : > { %3901 = vrot.lane.b32.xlu1 %v8741_v44, %s10364_s22  ;;  %3921 = vrot.lane.b32.xlu0 %v8747_v32, %s10335_s26 }
0x13bd   : > { %3883 = vrot.lane.b32.xlu1 %v8741_v44, %s10365_s28  ;;  %3903 = vrot.lane.b32.xlu0 %v8747_v32, %s10364_s22 }
0x13c1   : > { %3865 = vrot.lane.b32.xlu1 %v8741_v44, %s10366_s13  ;;  %3885 = vrot.lane.b32.xlu0 %v8747_v32, %s10365_s28 }
0x13c5   : > { %3993 = vrot.lane.b32.xlu1 %v8741_v44, %s10367_s27  ;;  %3867 = vrot.lane.b32.xlu0 %v8747_v32, %s10366_s13 }
0x13c9   : > { %4015 = vperm.xlu1 %5873, %v5770_v22   ;;  %3995 = vrot.lane.b32.xlu0 %v8747_v32, %s10367_s27 }
0x13cd   : > { %4020 = vperm.xlu0 %5872, %v5771_v52  }
0x13fb   : > { %v3972_v39 = vpop.permute.xlu1 %3971 }
0x13ff   : > { %v3954_v11 = vpop.permute.xlu1 %3953  ;;  %v3974_v26 = vpop.permute.xlu0 %3973 }
0x1403   : > { %v3936_v55 = vpop.permute.xlu1 %3935  ;;  %v3956_v12 = vpop.permute.xlu0 %3955 }
0x1407   : > { %v3916_v60 = vpop.permute.xlu1 %3915  ;;  %v3938_v37 = vpop.permute.xlu0 %3937 }
0x140b   : > { %v8793_v25 = vpop.permute.xlu1 %3897  ;;  %v3918_v31 = vpop.permute.xlu0 %3917 }
0x140f   : > { %v8795_v62 = vpop.permute.xlu1 %3879  ;;  %v8797_v58 = vpop.permute.xlu0 %3899 }
0x1413   : > { %v8799_v57 = vpop.permute.xlu1 %3861  ;;  %v8801_v63 = vpop.permute.xlu0 %3881 }
0x1417   : > { %v3976_v49 = vpop.permute.xlu1 %3975  ;;  %v8803_v46 = vpop.permute.xlu0 %3863 }
0x1418   : > { %v3979_v3 = vsel %vm595_vm1, %v3972_v39, %v3976_v49  ;;  %v3981_v56 = vsel %vm595_vm1, %v3976_v49, %v3972_v39 }
0x1419   : > { %v3983_v5 = vmul.f32 %v3979_v3, %v6234_v17  ;;  %v3984_v23 = vmul.f32 %v3981_v56, %v6231_v16 }
0x141b   : > { %v3958_v21 = vpop.permute.xlu1 %3957  ;;  %v3978_v61 = vpop.permute.xlu0 %3977 }
0x141c   : > { %v3980_v54 = vsel %vm595_vm1, %v3974_v26, %v3978_v61  ;;  %v3982_v40 = vsel %vm595_vm1, %v3978_v61, %v3974_v26  ;;  %v3961_v45 = vsel %vm563_vm2, %v3954_v11, %v3958_v21  ;;  %v3963_v18 = vsel %vm563_vm2, %v3958_v21, %v3954_v11 }
0x141d   : > { %v3985_v35 = vmul.f32 %v3980_v54, %v6234_v17  ;;  %v3986_v15 = vmul.f32 %v3982_v40, %v6231_v16  ;;  %v3965_v3 = vmul.f32 %v3961_v45, %v6253_v33  ;;  %v3966_v56 = vmul.f32 %v3963_v18, %v6256_v34 }
0x141f   : > { %v3987_v36 = vpack.c.bf16 %v3985_v35, %v3983_v5  ;;  %v3940_v22 = vpop.permute.xlu1 %3939  ;;  %v3960_v52 = vpop.permute.xlu0 %3959  ;;  %v3988_v39 = vpack.c.bf16 %v3986_v15, %v3984_v23 }
0x1420   : > { %v3962_v26 = vsel %vm563_vm2, %v3956_v12, %v3960_v52  ;;  %v3964_v49 = vsel %vm563_vm2, %v3960_v52, %v3956_v12  ;;  %v3943_v11 = vsel %vm531_vm3, %v3936_v55, %v3940_v22  ;;  %v3945_v21 = vsel %vm531_vm3, %v3940_v22, %v3936_v55 }
0x1421   : > { %v3967_v61 = vmul.f32 %v3962_v26, %v6253_v33  ;;  %v3968_v54 = vmul.f32 %v3964_v49, %v6256_v34  ;;  %4035 = vmatprep.subr.bf16.mxu1 %v3988_v39  ;;  %v3947_v45 = vmul.f32 %v3943_v11, %v6275_v50  ;;  %v3948_v18 = vmul.f32 %v3945_v21, %v6278_v51 }
0x1422   : > { %4036 = vmatpush1.bf16.msra.mxu1 %v3987_v36  ;;  %v3934_v49 = vpack.c.bf16 %v8747_v32, %v8741_v44  ;;  %v3933_v21 = vpack.c.bf16 %v8713_v20, %v8709_v19 }
0x1423   : > { %v3969_v40 = vpack.c.bf16 %v3967_v61, %v3965_v3  ;;  %v8833_v5 = vpop.permute.xlu1 %3989  ;;  %v3942_v12 = vpop.permute.xlu0 %3941  ;;  %v3970_v23 = vpack.c.bf16 %v3968_v54, %v3966_v56 }
0x1424   : > { %v3944_v35 = vsel %vm531_vm3, %v3938_v37, %v3942_v12  ;;  %v3946_v15 = vsel %vm531_vm3, %v3942_v12, %v3938_v37 }
0x1425   : > { %v3949_v52 = vmul.f32 %v3944_v35, %v6275_v50  ;;  %v3950_v55 = vmul.f32 %v3946_v15, %v6278_v51  ;;  %4037 = vmatprep.subr.bf16.mxu1 %v3970_v23 }
0x1426   : > { %4038 = vmatpush1.bf16.msra.mxu1 %v3969_v40 }
0x1427   : > { %v3951_v36 = vpack.c.bf16 %v3949_v52, %v3947_v45  ;;  %v3920_v22 = vpop.permute.xlu1 %3919  ;;  %v8843_v39 = vpop.permute.xlu0 %3991  ;;  %v3952_v26 = vpack.c.bf16 %v3950_v55, %v3948_v18 }
0x1428   : > { %v3923_v37 = vsel %vm497_vm4, %v3916_v60, %v3920_v22  ;;  %v3925_v3 = vsel %vm497_vm4, %v3920_v22, %v3916_v60 }
0x1429   : > { %4039 = vmatprep.subr.bf16.mxu1 %v3952_v26  ;;  %v3927_v40 = vmul.f32 %v3925_v3, %v6299_v9  ;;  %v3928_v12 = vmul.f32 %v3923_v37, %v6302_v13 }
0x142a   : > { %4040 = vmatpush1.bf16.msra.mxu1 %v3951_v36 }
0x142b   : > { %v3902_v56 = vpop.permute.xlu1 %3901  ;;  %v3922_v61 = vpop.permute.xlu0 %3921  ;;  %4041 = vmatprep.subr.bf16.mxu1 %v3934_v49 }
0x142c   : > { %v3924_v54 = vsel %vm497_vm4, %v3918_v31, %v3922_v61  ;;  %v3926_v11 = vsel %vm497_vm4, %v3922_v61, %v3918_v31  ;;  %v3905_v35 = vsel %vm465_vm5, %v8793_v25, %v3902_v56  ;;  %v3907_v15 = vsel %vm465_vm5, %v3902_v56, %v8793_v25 }
0x142d   : > { %v3929_v23 = vmul.f32 %v3926_v11, %v6299_v9  ;;  %v3930_v60 = vmul.f32 %v3924_v54, %v6302_v13  ;;  %v3909_v22 = vmul.f32 %v3907_v15, %v6323_v28  ;;  %v3910_v26 = vmul.f32 %v3905_v35, %v6326_v29 }
0x142e   : > { %4042 = vmatpush1.bf16.msra.mxu1 %v3933_v21 }
0x142f   : > { %v3931_v31 = vpack.c.bf16 %v3929_v23, %v3927_v40  ;;  %v3884_v45 = vpop.permute.xlu1 %3883  ;;  %v3904_v18 = vpop.permute.xlu0 %3903  ;;  %v3932_v52 = vpack.c.bf16 %v3930_v60, %v3928_v12 }
0x1430   : > { %v3906_v55 = vsel %vm465_vm5, %v8797_v58, %v3904_v18  ;;  %v3908_v36 = vsel %vm465_vm5, %v3904_v18, %v8797_v58  ;;  %v3887_v37 = vsel %vm433_vm6, %v8795_v62, %v3884_v45  ;;  %v3889_v3 = vsel %vm433_vm6, %v3884_v45, %v8795_v62 }
0x1431   : > { %v3911_v49 = vmul.f32 %v3908_v36, %v6323_v28  ;;  %v3912_v25 = vmul.f32 %v3906_v55, %v6326_v29  ;;  %4043 = vmatprep.subr.bf16.mxu1 %v3932_v52  ;;  %v3891_v40 = vmul.f32 %v3889_v3, %v6345_v47  ;;  %v3892_v12 = vmul.f32 %v3887_v37, %v6348_v48 }
0x1432   : > { %4044 = vmatpush1.bf16.msra.mxu1 %v3931_v31 }
0x1433   : > { %v3913_v56 = vpack.c.bf16 %v3911_v49, %v3909_v22  ;;  %v3866_v58 = vpop.permute.xlu1 %3865  ;;  %v3886_v61 = vpop.permute.xlu0 %3885  ;;  %v3914_v54 = vpack.c.bf16 %v3912_v25, %v3910_v26 }
0x1434   : > { %v3888_v11 = vsel %vm433_vm6, %v8801_v63, %v3886_v61  ;;  %v3890_v21 = vsel %vm433_vm6, %v3886_v61, %v8801_v63  ;;  %v3869_v60 = vsel %vm402_vm7, %v8799_v57, %v3866_v58  ;;  %v3871_v35 = vsel %vm402_vm7, %v3866_v58, %v8799_v57 }
0x1435   : > { %v3893_v23 = vmul.f32 %v3890_v21, %v6345_v47  ;;  %v3894_v62 = vmul.f32 %v3888_v11, %v6348_v48  ;;  %4045 = vmatprep.subr.bf16.mxu1 %v3914_v54  ;;  %v3873_v55 = vmul.f32 %v3871_v35, %v6367_v7  ;;  %v3874_v36 = vmul.f32 %v3869_v60, %v6370_v8 }
0x1436   : > { %4046 = vmatpush1.bf16.msra.mxu1 %v3913_v56 }
0x1437   : > { %v3895_v15 = vpack.c.bf16 %v3893_v23, %v3891_v40  ;;  %v3994_v63 = vpop.permute.xlu1 %3993  ;;  %v3868_v31 = vpop.permute.xlu0 %3867  ;;  %v3896_v45 = vpack.c.bf16 %v3894_v62, %v3892_v12  ;;  %v5989_v40 = vld [vmem:[%s10304_s1 + $0xd0] ss:$8 sps:$4 sm:$0xff]  }
0x1438   : > { %v3870_v18 = vsel %vm402_vm7, %v8803_v46, %v3868_v31  ;;  %v3872_v52 = vsel %vm402_vm7, %v3868_v31, %v8803_v46  ;;  %v3997_v26 = vsel %vm10368_vm9, %v8833_v5, %v3994_v63  ;;  %v3999_v49 = vsel %vm10369_vm10, %v3994_v63, %v8833_v5  ;;  %vm10382_vm9 = vmmov %vm10377_vm8 }
0x1439   : > { %v3875_v22 = vmul.f32 %v3872_v52, %v6367_v7  ;;  %v3876_v57 = vmul.f32 %v3870_v18, %v6370_v8  ;;  %4047 = vmatprep.subr.bf16.mxu1 %v3896_v45  ;;  %v4001_v58 = vmul.f32 %v3997_v26, %v6389_v27  ;;  %v4002_v61 = vmul.f32 %v3999_v49, %v6392_v30  ;;  %v5992_v26 = vld [vmem:[%s10304_s1 + $0xe4] ss:$8 sps:$4 sm:$0xff]   ;;  %vm10383_vm10 = vmmov %vm10377_vm8 }
0x143a   : > { %4048 = vmatpush1.bf16.msra.mxu1 %v3895_v15  ;;  %5781 = vmatprep.mubr.msk.bf16.mxu0 %vm674_vm0, %v5992_v26  ;;  %v5777_v49 = vld [vmem:[%s10305_s2 + $0xe0] sm:$0xff] }
0x143b   : > { %v3877_v25 = vpack.c.bf16 %v3875_v22, %v3873_v55  ;;  %v3996_v46 = vpop.permute.xlu0 %3995  ;;  %v3878_v37 = vpack.c.bf16 %v3876_v57, %v3874_v36 }
0x143c   : > { %v3998_v3 = vsel %vm10370_vm11, %v8843_v39, %v3996_v46  ;;  %v4000_v56 = vsel %vm10371_vm12, %v3996_v46, %v8843_v39  ;;  %v4307_v46 = vld [vmem:[%s10309_s6] sm:$0xff]  ;;  %vm10384_vm11 = vmmov %vm10377_vm8 }
0x143d   : > { %v4003_v54 = vmul.f32 %v3998_v3, %v6389_v27  ;;  %v4004_v5 = vmul.f32 %v4000_v56, %v6392_v30  ;;  %4049 = vmatprep.subr.bf16.mxu1 %v3878_v37  ;;  %v4308_v37 = vld [vmem:[%s10309_s6 + $0x8] sm:$0xff]  ;;  %v5611_v3 = vld [vmem:[%s10305_s2 + $0x50] sm:$0xff]  ;;  %v5612_v56 = vld [vmem:[%s10305_s2 + $0x58] sm:$0xff] }
0x143e   : > { %4050 = vmatpush1.bf16.msra.mxu1 %v3877_v25  ;;  %v5778_v25 = vld [vmem:[%s10305_s2 + $0xe8] sm:$0xff]  ;;  %vm10385_vm12 = vmmov %vm10377_vm8 }
0x143f   : > { %v4005_v11 = vpack.c.bf16 %v4003_v54, %v4001_v58  ;;  %v4006_v21 = vpack.c.bf16 %v4004_v5, %v4002_v61 }
0x1441   : > { %4065 = vmatprep.subr.bf16.mxu1 %v4006_v21 }
0x1442   : > { %4066 = vmatpush2.bf16.msra.mxu1 %v4005_v11 }
0x1444   : > { %v4016_v39 = vpop.permute.xlu1 %4015 }
0x1445   : > { %4068 = vmatmul.mubr.bf16.vlgmr.msra.gmra.mxu1 %v5989_v40 }
0x1448   : > { %v4021_v35 = vpop.permute.xlu0 %4020 }
0x1505   : > { %v4069_v12 = vpop.f32.mrf.mxu1 }
0x1506   : > { %v4070_v23 = vadd.f32 %v4069_v12, %v4016_v39 }
0x1507   : > { %v4071_v62 = vpop.f32.mrf.mxu1 }
0x1508   : > { %v8928_v60 = vmax.f32 %v4070_v23, 0.0  ;;  %v4072_v63 = vadd.f32 %v4071_v62, %v4016_v39 }
0x1509   : > { %v4073_v15 = vpop.f32.mrf.mxu1 }
0x150a   : > { %v4074_v31 = vadd.f32 %v4073_v15, %v4021_v35  ;;  %4192 = vrot.lane.b32.xlu1 %v8928_v60, %s6039_s23  ;;  %v8934_v55 = vmax.f32 %v4072_v63, 0.0 }
0x150b   : > { %v4075_v45 = vpop.f32.mrf.mxu1 }
0x150c   : > { %v8932_v18 = vmax.f32 %v4074_v31, 0.0  ;;  %v4076_v52 = vadd.f32 %v4075_v45, %v4021_v35 }
0x150e   : > { %v8936_v36 = vmax.f32 %v4076_v52, 0.0  ;;  %4194 = vrot.lane.b32.xlu0 %v8932_v18, %s6039_s23  ;;  %4174 = vrot.lane.b32.xlu1 %v8928_v60, %s6040_s24 }
0x1512   : > { %4176 = vrot.lane.b32.xlu0 %v8932_v18, %s6040_s24  ;;  %4156 = vrot.lane.b32.xlu1 %v8928_v60, %s6041_s25 }
0x1516   : > { %4158 = vrot.lane.b32.xlu0 %v8932_v18, %s6041_s25  ;;  %4136 = vrot.lane.b32.xlu1 %v8928_v60, %s10335_s26 }
0x151a   : > { %4138 = vrot.lane.b32.xlu0 %v8932_v18, %s10335_s26  ;;  %4118 = vrot.lane.b32.xlu1 %v8928_v60, %s10364_s22 }
0x151e   : > { %4120 = vrot.lane.b32.xlu0 %v8932_v18, %s10364_s22  ;;  %4100 = vrot.lane.b32.xlu1 %v8928_v60, %s10365_s28 }
0x1522   : > { %4102 = vrot.lane.b32.xlu0 %v8932_v18, %s10365_s28  ;;  %4082 = vrot.lane.b32.xlu1 %v8928_v60, %s10366_s13 }
0x1526   : > { %4084 = vrot.lane.b32.xlu0 %v8932_v18, %s10366_s13  ;;  %4196 = vrot.lane.b32.xlu1 %v8934_v55, %s6039_s23 }
0x152a   : > { %4198 = vrot.lane.b32.xlu0 %v8936_v36, %s6039_s23  ;;  %4178 = vrot.lane.b32.xlu1 %v8934_v55, %s6040_s24 }
0x152e   : > { %4180 = vrot.lane.b32.xlu0 %v8936_v36, %s6040_s24  ;;  %4160 = vrot.lane.b32.xlu1 %v8934_v55, %s6041_s25 }
0x1532   : > { %4162 = vrot.lane.b32.xlu0 %v8936_v36, %s6041_s25  ;;  %4210 = vrot.lane.b32.xlu1 %v8928_v60, %s10367_s27 }
0x1536   : > { %4212 = vrot.lane.b32.xlu0 %v8932_v18, %s10367_s27  ;;  %4140 = vrot.lane.b32.xlu1 %v8934_v55, %s10335_s26 }
0x153a   : > { %4142 = vrot.lane.b32.xlu0 %v8936_v36, %s10335_s26  ;;  %4122 = vrot.lane.b32.xlu1 %v8934_v55, %s10364_s22  ;;  %s10400_s26 = sshll.u32 %s10402_s18, 5 }
0x153b   : > { %s386_s14 = scalar_lea.vmem %s10314_s11, %s10400_s26 }
0x153e   : > { %4124 = vrot.lane.b32.xlu0 %v8936_v36, %s10364_s22  ;;  %4104 = vrot.lane.b32.xlu1 %v8934_v55, %s10365_s28 }
0x1542   : > { %4106 = vrot.lane.b32.xlu0 %v8936_v36, %s10365_s28  ;;  %4086 = vrot.lane.b32.xlu1 %v8934_v55, %s10366_s13 }
0x1546   : > { %4088 = vrot.lane.b32.xlu0 %v8936_v36, %s10366_s13  ;;  %4214 = vrot.lane.b32.xlu1 %v8934_v55, %s10367_s27 }
0x154a   : > { %4216 = vrot.lane.b32.xlu0 %v8936_v36, %s10367_s27  ;;  %4236 = vperm.xlu1 %5873, %v5777_v49  }
0x154e   : > { %4241 = vperm.xlu0 %5872, %v5778_v25   ;;  %4311 = vperm.xlu1 %5873, %v4307_v46  }
0x1552   : > { %4316 = vperm.xlu0 %5872, %v4308_v37   ;;  %1763 = vperm.xlu1 %5873, %v5611_v3  }
0x1556   : > { %1768 = vperm.xlu0 %5872, %v5612_v56  }
0x157c   : > { %v4193_v58 = vpop.permute.xlu1 %4192 }
0x1580   : > { %v4195_v61 = vpop.permute.xlu0 %4194  ;;  %v4175_v54 = vpop.permute.xlu1 %4174 }
0x1584   : > { %v4177_v5 = vpop.permute.xlu0 %4176  ;;  %v4157_v11 = vpop.permute.xlu1 %4156 }
0x1588   : > { %v4159_v21 = vpop.permute.xlu0 %4158  ;;  %v4137_v40 = vpop.permute.xlu1 %4136 }
0x158c   : > { %v4139_v39 = vpop.permute.xlu0 %4138  ;;  %v9026_v12 = vpop.permute.xlu1 %4118 }
0x1590   : > { %v9028_v23 = vpop.permute.xlu0 %4120  ;;  %v9030_v62 = vpop.permute.xlu1 %4100 }
0x1594   : > { %v9032_v35 = vpop.permute.xlu0 %4102  ;;  %v9034_v15 = vpop.permute.xlu1 %4082 }
0x1598   : > { %v9036_v63 = vpop.permute.xlu0 %4084  ;;  %v4197_v31 = vpop.permute.xlu1 %4196 }
0x1599   : > { %v4200_v45 = vsel %vm595_vm1, %v4193_v58, %v4197_v31  ;;  %v4202_v52 = vsel %vm595_vm1, %v4197_v31, %v4193_v58 }
0x159a   : > { %v4204_v37 = vmul.f32 %v4200_v45, %v6234_v17  ;;  %v4205_v3 = vmul.f32 %v4202_v52, %v6231_v16 }
0x159c   : > { %v4199_v26 = vpop.permute.xlu0 %4198  ;;  %v4179_v49 = vpop.permute.xlu1 %4178 }
0x159d   : > { %v4201_v25 = vsel %vm595_vm1, %v4195_v61, %v4199_v26  ;;  %v4203_v46 = vsel %vm595_vm1, %v4199_v26, %v4195_v61  ;;  %v4182_v57 = vsel %vm563_vm2, %v4175_v54, %v4179_v49  ;;  %v4184_v58 = vsel %vm563_vm2, %v4179_v49, %v4175_v54 }
0x159e   : > { %v4206_v56 = vmul.f32 %v4201_v25, %v6234_v17  ;;  %v4207_v22 = vmul.f32 %v4203_v46, %v6231_v16  ;;  %v4186_v52 = vmul.f32 %v4182_v57, %v6253_v33  ;;  %v4187_v26 = vmul.f32 %v4184_v58, %v6256_v34 }
0x15a0   : > { %v4208_v31 = vpack.c.bf16 %v4206_v56, %v4204_v37  ;;  %v4181_v0 = vpop.permute.xlu0 %4180  ;;  %v4161_v14 = vpop.permute.xlu1 %4160  ;;  %v4209_v41 = vpack.c.bf16 %v4207_v22, %v4205_v3 }
0x15a1   : > { %v4183_v61 = vsel %vm563_vm2, %v4177_v5, %v4181_v0  ;;  %v4185_v45 = vsel %vm563_vm2, %v4181_v0, %v4177_v5  ;;  %v4164_v54 = vsel %vm531_vm3, %v4157_v11, %v4161_v14  ;;  %v4166_v22 = vsel %vm531_vm3, %v4161_v14, %v4157_v11 }
0x15a2   : > { %v4188_v25 = vmul.f32 %v4183_v61, %v6253_v33  ;;  %v4189_v46 = vmul.f32 %v4185_v45, %v6256_v34  ;;  %4256 = vmatprep.subr.bf16.mxu0 %v4209_v41  ;;  %v4168_v41 = vmul.f32 %v4164_v54, %v6275_v50  ;;  %v4169_v56 = vmul.f32 %v4166_v22, %v6278_v51 }
0x15a3   : > { %4257 = vmatpush1.bf16.msra.mxu0 %v4208_v31 }
0x15a4   : > { %v4190_v49 = vpack.c.bf16 %v4188_v25, %v4186_v52  ;;  %v4163_v37 = vpop.permute.xlu0 %4162  ;;  %v9066_v3 = vpop.permute.xlu1 %4210  ;;  %v4191_v0 = vpack.c.bf16 %v4189_v46, %v4187_v26  ;;  %v10372_v25 = vpack.c.bf16 %v8936_v36, %v8934_v55 }
0x15a5   : > { %v4165_v57 = vsel %vm531_vm3, %v4159_v21, %v4163_v37  ;;  %v4167_v5 = vsel %vm531_vm3, %v4163_v37, %v4159_v21 }
0x15a6   : > { %v4170_v58 = vmul.f32 %v4165_v57, %v6275_v50  ;;  %v4171_v14 = vmul.f32 %v4167_v5, %v6278_v51  ;;  %4258 = vmatprep.subr.bf16.mxu0 %v4191_v0  ;;  %v10373_v57 = vpack.c.bf16 %v8932_v18, %v8928_v60 }
0x15a7   : > { %4259 = vmatpush1.bf16.msra.mxu0 %v4190_v49 }
0x15a8   : > { %v4172_v11 = vpack.c.bf16 %v4170_v58, %v4168_v41  ;;  %v9076_v31 = vpop.permute.xlu0 %4212  ;;  %v4141_v61 = vpop.permute.xlu1 %4140  ;;  %v4173_v45 = vpack.c.bf16 %v4171_v14, %v4169_v56 }
0x15a9   : > { %v4144_v52 = vsel %vm497_vm4, %v4137_v40, %v4141_v61  ;;  %v4146_v21 = vsel %vm497_vm4, %v4141_v61, %v4137_v40 }
0x15aa   : > { %4260 = vmatprep.subr.bf16.mxu0 %v4173_v45  ;;  %v4148_v49 = vmul.f32 %v4146_v21, %v6299_v9  ;;  %v4149_v37 = vmul.f32 %v4144_v52, %v6302_v13 }
0x15ab   : > { %4261 = vmatpush1.bf16.msra.mxu0 %v4172_v11 }
0x15ac   : > { %v4143_v26 = vpop.permute.xlu0 %4142  ;;  %4262 = vmatprep.subr.bf16.mxu0 %v10372_v25  ;;  %v4123_v46 = vpop.permute.xlu1 %4122 }
0x15ad   : > { %v4145_v54 = vsel %vm497_vm4, %v4139_v39, %v4143_v26  ;;  %v4147_v22 = vsel %vm497_vm4, %v4143_v26, %v4139_v39  ;;  %v4126_v55 = vsel %vm465_vm5, %v9026_v12, %v4123_v46  ;;  %v4128_v36 = vsel %vm465_vm5, %v4123_v46, %v9026_v12 }
0x15ae   : > { %v4150_v0 = vmul.f32 %v4147_v22, %v6299_v9  ;;  %v4151_v40 = vmul.f32 %v4145_v54, %v6302_v13  ;;  %v4130_v11 = vmul.f32 %v4128_v36, %v6323_v28  ;;  %v4131_v12 = vmul.f32 %v4126_v55, %v6326_v29 }
0x15af   : > { %4263 = vmatpush1.bf16.msra.mxu0 %v10373_v57 }
0x15b0   : > { %v4152_v39 = vpack.c.bf16 %v4150_v0, %v4148_v49  ;;  %v4125_v5 = vpop.permute.xlu0 %4124  ;;  %v4105_v41 = vpop.permute.xlu1 %4104  ;;  %v4153_v56 = vpack.c.bf16 %v4151_v40, %v4149_v37 }
0x15b1   : > { %v4127_v58 = vsel %vm465_vm5, %v9028_v23, %v4125_v5  ;;  %v4129_v14 = vsel %vm465_vm5, %v4125_v5, %v9028_v23  ;;  %v4108_v18 = vsel %vm433_vm6, %v9030_v62, %v4105_v41  ;;  %v4110_v45 = vsel %vm433_vm6, %v4105_v41, %v9030_v62 }
0x15b2   : > { %v4132_v61 = vmul.f32 %v4129_v14, %v6323_v28  ;;  %v4133_v60 = vmul.f32 %v4127_v58, %v6326_v29  ;;  %4264 = vmatprep.subr.bf16.mxu0 %v4153_v56  ;;  %v4112_v54 = vmul.f32 %v4110_v45, %v6345_v47  ;;  %v4113_v22 = vmul.f32 %v4108_v18, %v6348_v48 }
0x15b3   : > { %4265 = vmatpush1.bf16.msra.mxu0 %v4152_v39 }
0x15b4   : > { %v4134_v52 = vpack.c.bf16 %v4132_v61, %v4130_v11  ;;  %v4107_v23 = vpop.permute.xlu0 %4106  ;;  %v4087_v21 = vpop.permute.xlu1 %4086  ;;  %v4135_v26 = vpack.c.bf16 %v4133_v60, %v4131_v12 }
0x15b5   : > { %v4109_v25 = vsel %vm433_vm6, %v9032_v35, %v4107_v23  ;;  %v4111_v46 = vsel %vm433_vm6, %v4107_v23, %v9032_v35  ;;  %v4090_v37 = vsel %vm402_vm7, %v9034_v15, %v4087_v21  ;;  %v4092_v0 = vsel %vm402_vm7, %v4087_v21, %v9034_v15 }
0x15b6   : > { %v4114_v49 = vmul.f32 %v4111_v46, %v6345_v47  ;;  %v4115_v62 = vmul.f32 %v4109_v25, %v6348_v48  ;;  %4266 = vmatprep.subr.bf16.mxu0 %v4135_v26  ;;  %v4094_v5 = vmul.f32 %v4092_v0, %v6367_v7  ;;  %v4095_v41 = vmul.f32 %v4090_v37, %v6370_v8  ;;  %v5994_v26 = vld [vmem:[%s10304_s1 + $0xe0] ss:$8 sps:$4 sm:$0xff]  }
0x15b7   : > { %4267 = vmatpush1.bf16.msra.mxu0 %v4134_v52 }
0x15b8   : > { %v4116_v40 = vpack.c.bf16 %v4114_v49, %v4112_v54  ;;  %v4089_v35 = vpop.permute.xlu0 %4088  ;;  %v4215_v55 = vpop.permute.xlu1 %4214  ;;  %v4117_v36 = vpack.c.bf16 %v4115_v62, %v4113_v22 }
0x15b9   : > { %v4091_v57 = vsel %vm402_vm7, %v9036_v63, %v4089_v35  ;;  %v4093_v39 = vsel %vm402_vm7, %v4089_v35, %v9036_v63  ;;  %v4218_v58 = vsel %vm10374_vm13, %v9066_v3, %v4215_v55  ;;  %v4220_v14 = vsel %vm10375_vm14, %v4215_v55, %v9066_v3  ;;  %vm10386_vm13 = vmmov %vm10377_vm8 }
0x15ba   : > { %v4096_v56 = vmul.f32 %v4093_v39, %v6367_v7  ;;  %v4097_v15 = vmul.f32 %v4091_v57, %v6370_v8  ;;  %4268 = vmatprep.subr.bf16.mxu0 %v4117_v36  ;;  %v4222_v18 = vmul.f32 %v4218_v58, %v6389_v27  ;;  %v4223_v45 = vmul.f32 %v4220_v14, %v6392_v30  ;;  %vm10387_vm14 = vmmov %vm10377_vm8 }
0x15bb   : > { %4269 = vmatpush1.bf16.msra.mxu0 %v4116_v40 }
0x15bc   : > { %v4098_v11 = vpack.c.bf16 %v4096_v56, %v4094_v5  ;;  %v4217_v63 = vpop.permute.xlu0 %4216  ;;  %v4099_v12 = vpack.c.bf16 %v4097_v15, %v4095_v41  ;;  %v5995_v5 = vld [vmem:[%s10308_s5] sm:$0xff]  }
0x15bd   : > { %v4219_v61 = vsel %vm10376_vm15, %v9076_v31, %v4217_v63  ;;  %v4221_v60 = vsel %vm10377_vm8, %v4217_v63, %v9076_v31  ;;  %vm10388_vm15 = vmmov %vm10377_vm8 }
0x15be   : > { %v4224_v52 = vmul.f32 %v4219_v61, %v6389_v27  ;;  %v4225_v3 = vmul.f32 %v4221_v60, %v6392_v30  ;;  %4270 = vmatprep.subr.bf16.mxu0 %v4099_v12 }
0x15bf   : > { %4271 = vmatpush1.bf16.msra.mxu0 %v4098_v11 }
0x15c0   : > { %v4226_v23 = vpack.c.bf16 %v4224_v52, %v4222_v18  ;;  %v4227_v21 = vpack.c.bf16 %v4225_v3, %v4223_v45 }
0x15c2   : > { %4286 = vmatprep.subr.bf16.mxu0 %v4227_v21 }
0x15c3   : > { %4287 = vmatpush2.bf16.msra.mxu0 %v4226_v23 }
0x15c5   : > { %v4237_v46 = vpop.permute.xlu1 %4236 }
0x15c6   : > { %4289 = vmatmul.mubr.bf16.vlgmr.msra.gmra.mxu0 %v5994_v26 }
0x15c7   : > { %4359 = vmatprep.mubr.bf16.mxu0 %v10363_v6 }
0x15c9   : > { %v4242_v54 = vpop.permute.xlu0 %4241  ;;  %v4312_v41 = vpop.permute.xlu1 %4311 }
0x15cd   : > { %v1764_v23 = vpop.permute.xlu1 %1763 }
0x15ce   : > { %v1818_v21 = vadd.f32 %v7820_v38, %v1764_v23 }
0x1686   : > { %v4290_v31 = vpop.f32.mrf.mxu0 }
0x1687   : > { %v4291_v37 = vadd.f32 %v4290_v31, %v4237_v46  ;;  %v1826_v31 = vadd.f32 %v1818_v21, %v7131_v43 }
0x1688   : > { %v4292_v25 = vpop.f32.mrf.mxu0 }
0x1689   : > { %v4293_v49 = vadd.f32 %v4292_v25, %v4237_v46  ;;  %v4299_v57 = vadd.f32 %v4291_v37, %v8709_v19 }
0x168a   : > { %v4294_v22 = vpop.f32.mrf.mxu0 }
0x168b   : > { %v4295_v62 = vadd.f32 %v4294_v22, %v4242_v54  ;;  %v4300_v55 = vadd.f32 %v4293_v49, %v8741_v44  ;;  %v4317_v44 = vpop.permute.xlu0 %4316 }
0x168c   : > { %v4296_v0 = vpop.f32.mrf.mxu0 }
0x168d   : > { %v4297_v40 = vadd.f32 %v4296_v0, %v4242_v54  ;;  %v4301_v35 = vadd.f32 %v4295_v62, %v8713_v20 }
0x168f   : > { %v4302_v36 = vadd.f32 %v4297_v40, %v8747_v32  ;;  %v4305_v6 = vpack.c.bf16 %v4301_v35, %v4299_v57  ;;  %v1769_v26 = vpop.permute.xlu0 %1768 }
0x1690   : > { %v1822_v25 = vadd.f32 %v7824_v42, %v1769_v26  ;;  %v1824_v35 = vadd.f32 %v7826_v2, %v1769_v26 }
0x1691   : > { %v4306_v39 = vpack.c.bf16 %v4302_v36, %v4300_v55 }
0x1692   : > { %v1828_v49 = vadd.f32 %v1822_v25, %v7136_v53 }
0x1693   : > { %4341 = vmatprep.subr.bf16.mxu0 %v4306_v39  ;;  %v10380_v39 = vld [vmem:[#allocation2_spill] sm:$0xff] }
0x1694   : > { %4342 = vmatpush1.bf16.msra.mxu0 %v4305_v6  ;;  %v10381_v6 = vld [vmem:[#allocation3_spill] sm:$0xff] }
0x1697   : > { %5783 = vmatmul.mubr.msk.bf16.vlgmr.msra.gmra.mxu0 %vm674_vm0, %v5995_v5 }
0x1757   : > { %v4361_v56 = vpop.f32.mrf.mxu0 }
0x1758   : > { %v4362_v15 = vadd.f32 %v4361_v56, %v4312_v41  ;;  %v5790_v56 = vld [vmem:[%s10305_s2 + $0xf0] sm:$0xff] }
0x1759   : > { %v4363_v20 = vpop.f32.mrf.mxu0 }
0x175a   : > { %v5784_v58 = vmul.f32 -1.442695, %v4362_v15  ;;  %v4364_v11 = vadd.f32 %v4363_v20, %v4312_v41  ;;  %v5996_v41 = vld [vmem:[%s10304_s1 + $0xf4] ss:$8 sps:$4 sm:$0xff]  }
0x175b   : > { %v4365_v14 = vpop.f32.mrf.mxu0  ;;  %5794 = vmatprep.mubr.msk.bf16.mxu1 %vm674_vm0, %v5996_v41  ;;  %v5791_v15 = vld [vmem:[%s10305_s2 + $0xf8] sm:$0xff] }
0x175c   : > { %6011 = vpow2.f32 %v5784_v58  ;;  %v4366_v32 = vadd.f32 %v4365_v14, %v4317_v44  ;;  %v5785_v60 = vmul.f32 -1.442695, %v4364_v11 }
0x175d   : > { %v4367_v12 = vpop.f32.mrf.mxu0 }
0x175e   : > { %v5786_v19 = vmul.f32 -1.442695, %v4366_v32  ;;  %v4368_v18 = vadd.f32 %v4367_v12, %v4317_v44 }
0x1760   : > { %6013 = vpow2.f32 %v5786_v19  ;;  %v5787_v3 = vmul.f32 -1.442695, %v4368_v18 }
0x1769   : > { %v6012_v63 = vpop.eup %6011 }
0x176a   : > { %v4382_v61 = vadd.f32 1.0, %v6012_v63 }
0x176c   : > { %6015 = vrcp.f32 %v4382_v61 }
0x176d   : > { %v6014_v45 = vpop.eup %6013  ;;  %6017 = vpow2.f32 %v5785_v60 }
0x176e   : > { %v4384_v52 = vadd.f32 1.0, %v6014_v45 }
0x1770   : > { %6019 = vrcp.f32 %v4384_v52 }
0x1771   : > { %6021 = vpow2.f32 %v5787_v3 }
0x1779   : > { %v6016_v46 = vpop.eup %6015 }
0x177a   : > { %v4394_v54 = vmul.f32 %v6016_v46, %v1826_v31  ;;  %v6018_v22 = vpop.eup %6017 }
0x177b   : > { %v4383_v38 = vadd.f32 1.0, %v6018_v22 }
0x177c   : > { %v9177_v62 = vadd.f32 %v4394_v54, %v6633_v1  ;;  %v1820_v1 = vadd.f32 %v7822_v24, %v1764_v23  ;;  %v10379_v24 = vld [vmem:[#allocation12_spill] sm:$0xff] }
0x177d   : > { %v6020_v37 = vpop.eup %6019  ;;  %6023 = vrcp.f32 %v4383_v38  ;;  %v1829_v57 = vadd.f32 %v1824_v35, %v10379_v24 }
0x177e   : > { %v4396_v0 = vmul.f32 %v6020_v37, %v1828_v49  ;;  %4512 = vrot.lane.b32.xlu1 %v9177_v62, %s6039_s23  ;;  %v6022_v43 = vpop.eup %6021  ;;  %v1827_v42 = vadd.f32 %v1820_v1, %v7163_v4 }
0x177f   : > { %v4385_v53 = vadd.f32 1.0, %v6022_v43 }
0x1780   : > { %v9182_v40 = vadd.f32 %v4396_v0, %v6638_v59 }
0x1781   : > { %6025 = vrcp.f32 %v4385_v53 }
0x1782   : > { %4514 = vrot.lane.b32.xlu0 %v9182_v40, %s6039_s23  ;;  %4494 = vrot.lane.b32.xlu1 %v9177_v62, %s6040_s24 }
0x1786   : > { %4496 = vrot.lane.b32.xlu0 %v9182_v40, %s6040_s24  ;;  %4476 = vrot.lane.b32.xlu1 %v9177_v62, %s6041_s25 }
0x178a   : > { %4478 = vrot.lane.b32.xlu0 %v9182_v40, %s6041_s25  ;;  %4456 = vrot.lane.b32.xlu1 %v9177_v62, %s10378_s29  ;;  %v6024_v59 = vpop.eup %6023 }
0x178b   : > { %v4395_v55 = vmul.f32 %v6024_v59, %v1827_v42 }
0x178d   : > { %v9213_v4 = vadd.f32 %v4395_v55, %v10380_v39 }
0x178e   : > { %4458 = vrot.lane.b32.xlu0 %v9182_v40, %s10378_s29  ;;  %4438 = vrot.lane.b32.xlu1 %v9177_v62, %s10364_s22  ;;  %v6026_v36 = vpop.eup %6025 }
0x178f   : > { %v4397_v2 = vmul.f32 %v6026_v36, %v1829_v57 }
0x1791   : > { %v9220_v5 = vadd.f32 %v4397_v2, %v10381_v6 }
0x1792   : > { %4440 = vrot.lane.b32.xlu0 %v9182_v40, %s10364_s22  ;;  %4420 = vrot.lane.b32.xlu1 %v9177_v62, %s10365_s28 }
0x1796   : > { %4422 = vrot.lane.b32.xlu0 %v9182_v40, %s10365_s28  ;;  %4402 = vrot.lane.b32.xlu1 %v9177_v62, %s10366_s13 }
0x179a   : > { %4404 = vrot.lane.b32.xlu0 %v9182_v40, %s10366_s13  ;;  %4516 = vrot.lane.b32.xlu1 %v9213_v4, %s6039_s23 }
0x179e   : > { %4518 = vrot.lane.b32.xlu0 %v9220_v5, %s6039_s23  ;;  %4498 = vrot.lane.b32.xlu1 %v9213_v4, %s6040_s24 }
0x17a2   : > { %4500 = vrot.lane.b32.xlu0 %v9220_v5, %s6040_s24  ;;  %4480 = vrot.lane.b32.xlu1 %v9213_v4, %s6041_s25 }
0x17a6   : > { %4482 = vrot.lane.b32.xlu0 %v9220_v5, %s6041_s25  ;;  %4530 = vrot.lane.b32.xlu1 %v9177_v62, %s10367_s27 }
0x17aa   : > { %4532 = vrot.lane.b32.xlu0 %v9182_v40, %s10367_s27  ;;  %4460 = vrot.lane.b32.xlu1 %v9213_v4, %s10378_s29 }
0x17ae   : > { %4462 = vrot.lane.b32.xlu0 %v9220_v5, %s10378_s29  ;;  %4442 = vrot.lane.b32.xlu1 %v9213_v4, %s10364_s22 }
0x17b2   : > { %4444 = vrot.lane.b32.xlu0 %v9220_v5, %s10364_s22  ;;  %4424 = vrot.lane.b32.xlu1 %v9213_v4, %s10365_s28 }
0x17b6   : > { %4426 = vrot.lane.b32.xlu0 %v9220_v5, %s10365_s28  ;;  %4406 = vrot.lane.b32.xlu1 %v9213_v4, %s10366_s13 }
0x17ba   : > { %4408 = vrot.lane.b32.xlu0 %v9220_v5, %s10366_s13  ;;  %4534 = vrot.lane.b32.xlu1 %v9213_v4, %s10367_s27 }
0x17be   : > { %4536 = vrot.lane.b32.xlu0 %v9220_v5, %s10367_s27  ;;  %4556 = vperm.xlu1 %5873, %v5790_v56  }
0x17c2   : > { %4561 = vperm.xlu0 %5872, %v5791_v15  }
0x17f0   : > { %v4513_v20 = vpop.permute.xlu1 %4512 }
0x17f4   : > { %v4515_v58 = vpop.permute.xlu0 %4514  ;;  %v4495_v44 = vpop.permute.xlu1 %4494 }
0x17f8   : > { %v4497_v14 = vpop.permute.xlu0 %4496  ;;  %v4477_v32 = vpop.permute.xlu1 %4476 }
0x17fc   : > { %v4479_v19 = vpop.permute.xlu0 %4478  ;;  %v4457_v11 = vpop.permute.xlu1 %4456 }
0x1800   : > { %v4459_v63 = vpop.permute.xlu0 %4458  ;;  %v9266_v12 = vpop.permute.xlu1 %4438 }
0x1804   : > { %v9268_v61 = vpop.permute.xlu0 %4440  ;;  %v9270_v60 = vpop.permute.xlu1 %4420 }
0x1808   : > { %v9272_v18 = vpop.permute.xlu0 %4422  ;;  %v9274_v45 = vpop.permute.xlu1 %4402 }
0x180c   : > { %v9276_v52 = vpop.permute.xlu0 %4404  ;;  %v4517_v3 = vpop.permute.xlu1 %4516 }
0x180d   : > { %v4520_v23 = vsel %vm595_vm1, %v4513_v20, %v4517_v3  ;;  %v4522_v21 = vsel %vm595_vm1, %v4517_v3, %v4513_v20 }
0x180e   : > { %v4524_v54 = vmul.f32 %v4520_v23, %v6234_v17  ;;  %v4525_v22 = vmul.f32 %v4522_v21, %v6231_v16 }
0x1810   : > { %v4519_v26 = vpop.permute.xlu0 %4518  ;;  %v4499_v31 = vpop.permute.xlu1 %4498 }
0x1811   : > { %v4521_v25 = vsel %vm595_vm1, %v4515_v58, %v4519_v26  ;;  %v4523_v46 = vsel %vm595_vm1, %v4519_v26, %v4515_v58  ;;  %v4502_v0 = vsel %vm563_vm2, %v4495_v44, %v4499_v31  ;;  %v4504_v38 = vsel %vm563_vm2, %v4499_v31, %v4495_v44 }
0x1812   : > { %v4526_v49 = vmul.f32 %v4521_v25, %v6234_v17  ;;  %v4527_v37 = vmul.f32 %v4523_v46, %v6231_v16  ;;  %v4506_v55 = vmul.f32 %v4502_v0, %v6253_v33  ;;  %v4507_v36 = vmul.f32 %v4504_v38, %v6256_v34 }
0x1813   : > { %v4475_v25 = vpack.c.bf16 %v9220_v5, %v9213_v4  ;;  %v4474_v0 = vpack.c.bf16 %v9182_v40, %v9177_v62 }
0x1814   : > { %v4528_v43 = vpack.c.bf16 %v4526_v49, %v4524_v54  ;;  %v4501_v53 = vpop.permute.xlu0 %4500  ;;  %v4481_v1 = vpop.permute.xlu1 %4480  ;;  %v4529_v59 = vpack.c.bf16 %v4527_v37, %v4525_v22 }
0x1815   : > { %v4503_v42 = vsel %vm563_vm2, %v4497_v14, %v4501_v53  ;;  %v4505_v35 = vsel %vm563_vm2, %v4501_v53, %v4497_v14  ;;  %v4484_v39 = vsel %vm531_vm3, %v4477_v32, %v4481_v1  ;;  %v4486_v2 = vsel %vm531_vm3, %v4481_v1, %v4477_v32 }
0x1816   : > { %v4508_v24 = vmul.f32 %v4503_v42, %v6253_v33  ;;  %v4509_v57 = vmul.f32 %v4505_v35, %v6256_v34  ;;  %4576 = vmatprep.subr.bf16.mxu1 %v4529_v59  ;;  %v4488_v44 = vmul.f32 %v4484_v39, %v6275_v50  ;;  %v4489_v14 = vmul.f32 %v4486_v2, %v6278_v51 }
0x1817   : > { %4577 = vmatpush1.bf16.msra.mxu1 %v4528_v43 }
0x1818   : > { %v4510_v6 = vpack.c.bf16 %v4508_v24, %v4506_v55  ;;  %v4483_v41 = vpop.permute.xlu0 %4482  ;;  %v9306_v56 = vpop.permute.xlu1 %4530  ;;  %v4511_v15 = vpack.c.bf16 %v4509_v57, %v4507_v36 }
0x1819   : > { %v4485_v20 = vsel %vm531_vm3, %v4479_v19, %v4483_v41  ;;  %v4487_v58 = vsel %vm531_vm3, %v4483_v41, %v4479_v19 }
0x181a   : > { %v4490_v3 = vmul.f32 %v4485_v20, %v6275_v50  ;;  %v4491_v32 = vmul.f32 %v4487_v58, %v6278_v51  ;;  %4578 = vmatprep.subr.bf16.mxu1 %v4511_v15 }
0x181b   : > { %4579 = vmatpush1.bf16.msra.mxu1 %v4510_v6 }
0x181c   : > { %v4492_v23 = vpack.c.bf16 %v4490_v3, %v4488_v44  ;;  %v9316_v21 = vpop.permute.xlu0 %4532  ;;  %v4461_v26 = vpop.permute.xlu1 %4460  ;;  %v4493_v31 = vpack.c.bf16 %v4491_v32, %v4489_v14 }
0x181d   : > { %v4464_v19 = vsel %vm497_vm4, %v4457_v11, %v4461_v26  ;;  %v4466_v46 = vsel %vm497_vm4, %v4461_v26, %v4457_v11 }
0x181e   : > { %4580 = vmatprep.subr.bf16.mxu1 %v4493_v31  ;;  %v4468_v38 = vmul.f32 %v4466_v46, %v6299_v9  ;;  %v4469_v43 = vmul.f32 %v4464_v19, %v6302_v13 }
0x181f   : > { %4581 = vmatpush1.bf16.msra.mxu1 %v4492_v23 }
0x1820   : > { %v4463_v54 = vpop.permute.xlu0 %4462  ;;  %4582 = vmatprep.subr.bf16.mxu1 %v4475_v25  ;;  %v4443_v22 = vpop.permute.xlu1 %4442 }
0x1821   : > { %v4465_v49 = vsel %vm497_vm4, %v4459_v63, %v4463_v54  ;;  %v4467_v37 = vsel %vm497_vm4, %v4463_v54, %v4459_v63  ;;  %v4446_v1 = vsel %vm465_vm5, %v9266_v12, %v4443_v22  ;;  %v4448_v59 = vsel %vm465_vm5, %v4443_v22, %v9266_v12 }
0x1822   : > { %v4470_v53 = vmul.f32 %v4467_v37, %v6299_v9  ;;  %v4471_v11 = vmul.f32 %v4465_v49, %v6302_v13  ;;  %v4450_v57 = vmul.f32 %v4448_v59, %v6323_v28  ;;  %v4451_v39 = vmul.f32 %v4446_v1, %v6326_v29 }
0x1823   : > { %4583 = vmatpush1.bf16.msra.mxu1 %v4474_v0 }
0x1824   : > { %v4472_v63 = vpack.c.bf16 %v4470_v53, %v4468_v38  ;;  %v4445_v42 = vpop.permute.xlu0 %4444  ;;  %v4425_v35 = vpop.permute.xlu1 %4424  ;;  %v4473_v55 = vpack.c.bf16 %v4471_v11, %v4469_v43 }
0x1825   : > { %v4447_v36 = vsel %vm465_vm5, %v9268_v61, %v4445_v42  ;;  %v4449_v24 = vsel %vm465_vm5, %v4445_v42, %v9268_v61  ;;  %v4428_v6 = vsel %vm433_vm6, %v9270_v60, %v4425_v35  ;;  %v4430_v41 = vsel %vm433_vm6, %v4425_v35, %v9270_v60 }
0x1826   : > { %v4452_v2 = vmul.f32 %v4449_v24, %v6323_v28  ;;  %v4453_v12 = vmul.f32 %v4447_v36, %v6326_v29  ;;  %4584 = vmatprep.subr.bf16.mxu1 %v4473_v55  ;;  %v4432_v3 = vmul.f32 %v4430_v41, %v6345_v47  ;;  %v4433_v32 = vmul.f32 %v4428_v6, %v6348_v48  ;;  %v5998_v24 = vld [vmem:[%s10304_s1 + $0xf0] ss:$8 sps:$4 sm:$0xff]  }
0x1827   : > { %4585 = vmatpush1.bf16.msra.mxu1 %v4472_v63 }
0x1828   : > { %v4454_v15 = vpack.c.bf16 %v4452_v2, %v4450_v57  ;;  %v4427_v61 = vpop.permute.xlu0 %4426  ;;  %v4407_v20 = vpop.permute.xlu1 %4406  ;;  %v4455_v58 = vpack.c.bf16 %v4453_v12, %v4451_v39 }
0x1829   : > { %v4429_v44 = vsel %vm433_vm6, %v9272_v18, %v4427_v61  ;;  %v4431_v14 = vsel %vm433_vm6, %v4427_v61, %v9272_v18  ;;  %v4410_v26 = vsel %vm402_vm7, %v9274_v45, %v4407_v20  ;;  %v4412_v31 = vsel %vm402_vm7, %v4407_v20, %v9274_v45 }
0x182a   : > { %v4434_v23 = vmul.f32 %v4431_v14, %v6345_v47  ;;  %v4435_v60 = vmul.f32 %v4429_v44, %v6348_v48  ;;  %4586 = vmatprep.subr.bf16.mxu1 %v4455_v58  ;;  %v4414_v49 = vmul.f32 %v4412_v31, %v6367_v7  ;;  %v4415_v37 = vmul.f32 %v4410_v26, %v6370_v8  ;;  %v5797_v26 = vld [vmem:[%s10305_s2 + $0x100] sm:$0xff]  ;;  %v5798_v31 = vld [vmem:[%s10305_s2 + $0x108] sm:$0xff] }
0x182b   : > { %4587 = vmatpush1.bf16.msra.mxu1 %v4454_v15 }
0x182c   : > { %v4436_v25 = vpack.c.bf16 %v4434_v23, %v4432_v3  ;;  %v4409_v18 = vpop.permute.xlu0 %4408  ;;  %v4535_v19 = vpop.permute.xlu1 %4534  ;;  %v4437_v46 = vpack.c.bf16 %v4435_v60, %v4433_v32  ;;  %v5999_v60 = vld [vmem:[%s10304_s1 + $0x104] ss:$8 sps:$4 sm:$0xff]  }
0x182d   : > { %v4411_v54 = vsel %vm402_vm7, %v9276_v52, %v4409_v18  ;;  %v4413_v22 = vsel %vm402_vm7, %v4409_v18, %v9276_v52  ;;  %v4538_v38 = vsel %vm10382_vm9, %v9306_v56, %v4535_v19  ;;  %v4540_v43 = vsel %vm10383_vm10, %v4535_v19, %v9306_v56  ;;  %5801 = vmatprep.mubr.msk.bf16.mxu0 %vm674_vm0, %v5999_v60  ;;  %vm10389_vm9 = vmmov %vm10377_vm8 }
0x182e   : > { %v4416_v0 = vmul.f32 %v4413_v22, %v6367_v7  ;;  %v4417_v45 = vmul.f32 %v4411_v54, %v6370_v8  ;;  %4588 = vmatprep.subr.bf16.mxu1 %v4437_v46  ;;  %v4542_v63 = vmul.f32 %v4538_v38, %v6389_v27  ;;  %v4543_v42 = vmul.f32 %v4540_v43, %v6392_v30  ;;  %vm10390_vm10 = vmmov %vm10377_vm8 }
0x182f   : > { %4589 = vmatpush1.bf16.msra.mxu1 %v4436_v25 }
0x1830   : > { %v4418_v53 = vpack.c.bf16 %v4416_v0, %v4414_v49  ;;  %v4537_v52 = vpop.permute.xlu0 %4536  ;;  %v4419_v11 = vpack.c.bf16 %v4417_v45, %v4415_v37 }
0x1831   : > { %v4539_v1 = vsel %vm10384_vm11, %v9316_v21, %v4537_v52  ;;  %v4541_v59 = vsel %vm10385_vm12, %v4537_v52, %v9316_v21  ;;  %vm10391_vm11 = vmmov %vm10377_vm8 }
0x1832   : > { %v4544_v35 = vmul.f32 %v4539_v1, %v6389_v27  ;;  %v4545_v56 = vmul.f32 %v4541_v59, %v6392_v30  ;;  %4590 = vmatprep.subr.bf16.mxu1 %v4419_v11  ;;  %vm10392_vm12 = vmmov %vm10377_vm8 }
0x1833   : > { %4591 = vmatpush1.bf16.msra.mxu1 %v4418_v53 }
0x1834   : > { %v4546_v55 = vpack.c.bf16 %v4544_v35, %v4542_v63  ;;  %v4547_v36 = vpack.c.bf16 %v4545_v56, %v4543_v42 }
0x1836   : > { %4606 = vmatprep.subr.bf16.mxu1 %v4547_v36 }
0x1837   : > { %4607 = vmatpush2.bf16.msra.mxu1 %v4546_v55 }
0x1839   : > { %v4557_v21 = vpop.permute.xlu1 %4556 }
0x183a   : > { %4609 = vmatmul.mubr.bf16.vlgmr.msra.gmra.mxu1 %v5998_v24 }
0x183d   : > { %v4562_v6 = vpop.permute.xlu0 %4561 }
0x18fa   : > { %v4610_v57 = vpop.f32.mrf.mxu1 }
0x18fb   : > { %v4611_v39 = vadd.f32 %v4610_v57, %v4557_v21 }
0x18fc   : > { %v4612_v2 = vpop.f32.mrf.mxu1 }
0x18fd   : > { %v9401_v12 = vmax.f32 %v4611_v39, 0.0  ;;  %v4613_v15 = vadd.f32 %v4612_v2, %v4557_v21 }
0x18fe   : > { %v4614_v41 = vpop.f32.mrf.mxu1 }
0x18ff   : > { %v4615_v61 = vadd.f32 %v4614_v41, %v4562_v6  ;;  %4733 = vrot.lane.b32.xlu1 %v9401_v12, %s6039_s23  ;;  %v9407_v14 = vmax.f32 %v4613_v15, 0.0 }
0x1900   : > { %v4616_v20 = vpop.f32.mrf.mxu1 }
0x1901   : > { %v9405_v58 = vmax.f32 %v4615_v61, 0.0  ;;  %v4617_v44 = vadd.f32 %v4616_v20, %v4562_v6 }
0x1903   : > { %v9409_v3 = vmax.f32 %v4617_v44, 0.0  ;;  %4735 = vrot.lane.b32.xlu0 %v9405_v58, %s6039_s23  ;;  %4715 = vrot.lane.b32.xlu1 %v9401_v12, %s6040_s24  ;;  %v4695_v32 = vpack.c.bf16 %v9405_v58, %v9401_v12 }
0x1905   : > { %v4696_v23 = vpack.c.bf16 %v9409_v3, %v9407_v14 }
0x1907   : > { %4717 = vrot.lane.b32.xlu0 %v9405_v58, %s6040_s24  ;;  %4697 = vrot.lane.b32.xlu1 %v9401_v12, %s6041_s25 }
0x190b   : > { %4699 = vrot.lane.b32.xlu0 %v9405_v58, %s6041_s25  ;;  %4677 = vrot.lane.b32.xlu1 %v9401_v12, %s10378_s29 }
0x190f   : > { %4679 = vrot.lane.b32.xlu0 %v9405_v58, %s10378_s29  ;;  %4659 = vrot.lane.b32.xlu1 %v9401_v12, %s10364_s22 }
0x1913   : > { %4661 = vrot.lane.b32.xlu0 %v9405_v58, %s10364_s22  ;;  %4641 = vrot.lane.b32.xlu1 %v9401_v12, %s10365_s28 }
0x1917   : > { %4643 = vrot.lane.b32.xlu0 %v9405_v58, %s10365_s28  ;;  %4623 = vrot.lane.b32.xlu1 %v9401_v12, %s10366_s13 }
0x191b   : > { %4625 = vrot.lane.b32.xlu0 %v9405_v58, %s10366_s13  ;;  %4737 = vrot.lane.b32.xlu1 %v9407_v14, %s6039_s23 }
0x191f   : > { %4739 = vrot.lane.b32.xlu0 %v9409_v3, %s6039_s23  ;;  %4719 = vrot.lane.b32.xlu1 %v9407_v14, %s6040_s24 }
0x1923   : > { %4721 = vrot.lane.b32.xlu0 %v9409_v3, %s6040_s24  ;;  %4701 = vrot.lane.b32.xlu1 %v9407_v14, %s6041_s25 }
0x1927   : > { %4703 = vrot.lane.b32.xlu0 %v9409_v3, %s6041_s25  ;;  %4751 = vrot.lane.b32.xlu1 %v9401_v12, %s10367_s27 }
0x192b   : > { %4753 = vrot.lane.b32.xlu0 %v9405_v58, %s10367_s27  ;;  %4681 = vrot.lane.b32.xlu1 %v9407_v14, %s10378_s29 }
0x192f   : > { %4683 = vrot.lane.b32.xlu0 %v9409_v3, %s10378_s29  ;;  %4663 = vrot.lane.b32.xlu1 %v9407_v14, %s10364_s22 }
0x1933   : > { %4665 = vrot.lane.b32.xlu0 %v9409_v3, %s10364_s22  ;;  %4645 = vrot.lane.b32.xlu1 %v9407_v14, %s10365_s28 }
0x1937   : > { %4647 = vrot.lane.b32.xlu0 %v9409_v3, %s10365_s28  ;;  %4627 = vrot.lane.b32.xlu1 %v9407_v14, %s10366_s13 }
0x193b   : > { %4629 = vrot.lane.b32.xlu0 %v9409_v3, %s10366_s13  ;;  %4755 = vrot.lane.b32.xlu1 %v9407_v14, %s10367_s27 }
0x193f   : > { %4757 = vrot.lane.b32.xlu0 %v9409_v3, %s10367_s27  ;;  %4777 = vperm.xlu1 %5873, %v5797_v26  }
0x1943   : > { %4782 = vperm.xlu0 %5872, %v5798_v31  }
0x1971   : > { %v4734_v25 = vpop.permute.xlu1 %4733 }
0x1975   : > { %v4736_v18 = vpop.permute.xlu0 %4735  ;;  %v4716_v19 = vpop.permute.xlu1 %4715 }
0x1979   : > { %v4718_v46 = vpop.permute.xlu0 %4717  ;;  %v4698_v54 = vpop.permute.xlu1 %4697 }
0x197d   : > { %v4700_v22 = vpop.permute.xlu0 %4699  ;;  %v4678_v49 = vpop.permute.xlu1 %4677 }
0x1981   : > { %v4680_v37 = vpop.permute.xlu0 %4679  ;;  %v9487_v0 = vpop.permute.xlu1 %4659 }
0x1985   : > { %v9489_v45 = vpop.permute.xlu0 %4661  ;;  %v9491_v38 = vpop.permute.xlu1 %4641 }
0x1989   : > { %v9493_v43 = vpop.permute.xlu0 %4643  ;;  %v9495_v53 = vpop.permute.xlu1 %4623 }
0x198d   : > { %v9497_v52 = vpop.permute.xlu0 %4625  ;;  %v4738_v11 = vpop.permute.xlu1 %4737 }
0x198e   : > { %v4741_v1 = vsel %vm595_vm1, %v4734_v25, %v4738_v11  ;;  %v4743_v59 = vsel %vm595_vm1, %v4738_v11, %v4734_v25 }
0x198f   : > { %v4745_v55 = vmul.f32 %v4741_v1, %v6234_v17  ;;  %v4746_v36 = vmul.f32 %v4743_v59, %v6231_v16 }
0x1991   : > { %v4740_v63 = vpop.permute.xlu0 %4739  ;;  %v4720_v42 = vpop.permute.xlu1 %4719 }
0x1992   : > { %v4742_v35 = vsel %vm595_vm1, %v4736_v18, %v4740_v63  ;;  %v4744_v56 = vsel %vm595_vm1, %v4740_v63, %v4736_v18  ;;  %v4723_v57 = vsel %vm563_vm2, %v4716_v19, %v4720_v42  ;;  %v4725_v39 = vsel %vm563_vm2, %v4720_v42, %v4716_v19 }
0x1993   : > { %v4747_v24 = vmul.f32 %v4742_v35, %v6234_v17  ;;  %v4748_v21 = vmul.f32 %v4744_v56, %v6231_v16  ;;  %v4727_v44 = vmul.f32 %v4723_v57, %v6253_v33  ;;  %v4728_v60 = vmul.f32 %v4725_v39, %v6256_v34 }
0x1995   : > { %v4749_v2 = vpack.c.bf16 %v4747_v24, %v4745_v55  ;;  %v4722_v6 = vpop.permute.xlu0 %4721  ;;  %v4702_v41 = vpop.permute.xlu1 %4701  ;;  %v4750_v15 = vpack.c.bf16 %v4748_v21, %v4746_v36 }
0x1996   : > { %v4724_v61 = vsel %vm563_vm2, %v4718_v46, %v4722_v6  ;;  %v4726_v20 = vsel %vm563_vm2, %v4722_v6, %v4718_v46  ;;  %v4705_v25 = vsel %vm531_vm3, %v4698_v54, %v4702_v41  ;;  %v4707_v18 = vsel %vm531_vm3, %v4702_v41, %v4698_v54 }
0x1997   : > { %v4729_v26 = vmul.f32 %v4724_v61, %v6253_v33  ;;  %v4730_v31 = vmul.f32 %v4726_v20, %v6256_v34  ;;  %4797 = vmatprep.subr.bf16.mxu0 %v4750_v15  ;;  %v4709_v42 = vmul.f32 %v4705_v25, %v6275_v50  ;;  %v4710_v35 = vmul.f32 %v4707_v18, %v6278_v51 }
0x1998   : > { %4798 = vmatpush1.bf16.msra.mxu0 %v4749_v2 }
0x1999   : > { %v4731_v19 = vpack.c.bf16 %v4729_v26, %v4727_v44  ;;  %v4704_v11 = vpop.permute.xlu0 %4703  ;;  %v9527_v1 = vpop.permute.xlu1 %4751  ;;  %v4732_v46 = vpack.c.bf16 %v4730_v31, %v4728_v60 }
0x199a   : > { %v4706_v59 = vsel %vm531_vm3, %v4700_v22, %v4704_v11  ;;  %v4708_v63 = vsel %vm531_vm3, %v4704_v11, %v4700_v22 }
0x199b   : > { %v4711_v56 = vmul.f32 %v4706_v59, %v6275_v50  ;;  %v4712_v54 = vmul.f32 %v4708_v63, %v6278_v51  ;;  %4799 = vmatprep.subr.bf16.mxu0 %v4732_v46 }
0x199c   : > { %4800 = vmatpush1.bf16.msra.mxu0 %v4731_v19 }
0x199d   : > { %v4713_v55 = vpack.c.bf16 %v4711_v56, %v4709_v42  ;;  %v9537_v36 = vpop.permute.xlu0 %4753  ;;  %v4682_v24 = vpop.permute.xlu1 %4681  ;;  %v4714_v21 = vpack.c.bf16 %v4712_v54, %v4710_v35 }
0x199e   : > { %v4685_v57 = vsel %vm497_vm4, %v4678_v49, %v4682_v24  ;;  %v4687_v22 = vsel %vm497_vm4, %v4682_v24, %v4678_v49 }
0x199f   : > { %4801 = vmatprep.subr.bf16.mxu0 %v4714_v21  ;;  %v4689_v15 = vmul.f32 %v4687_v22, %v6299_v9  ;;  %v4690_v61 = vmul.f32 %v4685_v57, %v6302_v13 }
0x19a0   : > { %4802 = vmatpush1.bf16.msra.mxu0 %v4713_v55 }
0x19a1   : > { %v4684_v39 = vpop.permute.xlu0 %4683  ;;  %4803 = vmatprep.subr.bf16.mxu0 %v4696_v23  ;;  %v4664_v2 = vpop.permute.xlu1 %4663 }
0x19a2   : > { %v4686_v6 = vsel %vm497_vm4, %v4680_v37, %v4684_v39  ;;  %v4688_v41 = vsel %vm497_vm4, %v4684_v39, %v4680_v37  ;;  %v4667_v14 = vsel %vm465_vm5, %v9487_v0, %v4664_v2  ;;  %v4669_v3 = vsel %vm465_vm5, %v4664_v2, %v9487_v0 }
0x19a3   : > { %v4691_v20 = vmul.f32 %v4688_v41, %v6299_v9  ;;  %v4692_v49 = vmul.f32 %v4686_v6, %v6302_v13  ;;  %v4671_v25 = vmul.f32 %v4669_v3, %v6323_v28  ;;  %v4672_v0 = vmul.f32 %v4667_v14, %v6326_v29 }
0x19a4   : > { %4804 = vmatpush1.bf16.msra.mxu0 %v4695_v32 }
0x19a5   : > { %v4693_v23 = vpack.c.bf16 %v4691_v20, %v4689_v15  ;;  %v4666_v37 = vpop.permute.xlu0 %4665  ;;  %v4646_v44 = vpop.permute.xlu1 %4645  ;;  %v4694_v60 = vpack.c.bf16 %v4692_v49, %v4690_v61 }
0x19a6   : > { %v4668_v26 = vsel %vm465_vm5, %v9489_v45, %v4666_v37  ;;  %v4670_v31 = vsel %vm465_vm5, %v4666_v37, %v9489_v45  ;;  %v4649_v58 = vsel %vm433_vm6, %v9491_v38, %v4646_v44  ;;  %v4651_v32 = vsel %vm433_vm6, %v4646_v44, %v9491_v38 }
0x19a7   : > { %v4673_v18 = vmul.f32 %v4670_v31, %v6323_v28  ;;  %v4674_v12 = vmul.f32 %v4668_v26, %v6326_v29  ;;  %4805 = vmatprep.subr.bf16.mxu0 %v4694_v60  ;;  %v4653_v42 = vmul.f32 %v4651_v32, %v6345_v47  ;;  %v4654_v35 = vmul.f32 %v4649_v58, %v6348_v48  ;;  %v6001_v31 = vld [vmem:[%s10304_s1 + $0x100] ss:$8 sps:$4 sm:$0xff]  }
0x19a8   : > { %4806 = vmatpush1.bf16.msra.mxu0 %v4693_v23 }
0x19a9   : > { %v4675_v19 = vpack.c.bf16 %v4673_v18, %v4671_v25  ;;  %v4648_v45 = vpop.permute.xlu0 %4647  ;;  %v4628_v11 = vpop.permute.xlu1 %4627  ;;  %v4676_v46 = vpack.c.bf16 %v4674_v12, %v4672_v0 }
0x19aa   : > { %v4650_v59 = vsel %vm433_vm6, %v9493_v43, %v4648_v45  ;;  %v4652_v63 = vsel %vm433_vm6, %v4648_v45, %v9493_v43  ;;  %v4631_v54 = vsel %vm402_vm7, %v9495_v53, %v4628_v11  ;;  %v4633_v55 = vsel %vm402_vm7, %v4628_v11, %v9495_v53 }
0x19ab   : > { %v4655_v56 = vmul.f32 %v4652_v63, %v6345_v47  ;;  %v4656_v38 = vmul.f32 %v4650_v59, %v6348_v48  ;;  %4807 = vmatprep.subr.bf16.mxu0 %v4676_v46  ;;  %v4635_v2 = vmul.f32 %v4633_v55, %v6367_v7  ;;  %v4636_v6 = vmul.f32 %v4631_v54, %v6370_v8  ;;  %v5805_v63 = vld [vmem:[%s10305_s2 + $0x118] sm:$0xff] }
0x19ac   : > { %4808 = vmatpush1.bf16.msra.mxu0 %v4675_v19 }
0x19ad   : > { %v4657_v24 = vpack.c.bf16 %v4655_v56, %v4653_v42  ;;  %v4630_v43 = vpop.permute.xlu0 %4629  ;;  %v4756_v21 = vpop.permute.xlu1 %4755  ;;  %v4658_v57 = vpack.c.bf16 %v4656_v38, %v4654_v35 }
0x19ae   : > { %v4632_v22 = vsel %vm402_vm7, %v9497_v52, %v4630_v43  ;;  %v4634_v39 = vsel %vm402_vm7, %v4630_v43, %v9497_v52  ;;  %v4759_v15 = vsel %vm10386_vm13, %v9527_v1, %v4756_v21  ;;  %v4761_v61 = vsel %vm10387_vm14, %v4756_v21, %v9527_v1  ;;  %vm10393_vm13 = vmmov %vm10377_vm8 }
0x19af   : > { %v4637_v41 = vmul.f32 %v4634_v39, %v6367_v7  ;;  %v4638_v53 = vmul.f32 %v4632_v22, %v6370_v8  ;;  %4809 = vmatprep.subr.bf16.mxu0 %v4658_v57  ;;  %v4763_v23 = vmul.f32 %v4759_v15, %v6389_v27  ;;  %v4764_v37 = vmul.f32 %v4761_v61, %v6392_v30  ;;  %vm10394_vm14 = vmmov %vm10377_vm8 }
0x19b0   : > { %4810 = vmatpush1.bf16.msra.mxu0 %v4657_v24 }
0x19b1   : > { %v4639_v20 = vpack.c.bf16 %v4637_v41, %v4635_v2  ;;  %v4758_v52 = vpop.permute.xlu0 %4757  ;;  %v4640_v49 = vpack.c.bf16 %v4638_v53, %v4636_v6 }
0x19b2   : > { %v4760_v14 = vsel %vm10388_vm15, %v9537_v36, %v4758_v52  ;;  %v4762_v3 = vsel %vm10377_vm8, %v4758_v52, %v9537_v36  ;;  %vm10395_vm15 = vmmov %vm10377_vm8 }
0x19b3   : > { %v4765_v44 = vmul.f32 %v4760_v14, %v6389_v27  ;;  %v4766_v1 = vmul.f32 %v4762_v3, %v6392_v30  ;;  %4811 = vmatprep.subr.bf16.mxu0 %v4640_v49 }
0x19b4   : > { %4812 = vmatpush1.bf16.msra.mxu0 %v4639_v20 }
0x19b5   : > { %v4767_v60 = vpack.c.bf16 %v4765_v44, %v4763_v23  ;;  %v4768_v26 = vpack.c.bf16 %v4766_v1, %v4764_v37 }
0x19b7   : > { %4827 = vmatprep.subr.bf16.mxu0 %v4768_v26 }
0x19b8   : > { %4828 = vmatpush2.bf16.msra.mxu0 %v4767_v60 }
0x19ba   : > { %v4778_v36 = vpop.permute.xlu1 %4777 }
0x19bb   : > { %4830 = vmatmul.mubr.bf16.vlgmr.msra.gmra.mxu0 %v6001_v31 }
0x19be   : > { %v4783_v58 = vpop.permute.xlu0 %4782 }
0x1a7b   : > { %v4831_v25 = vpop.f32.mrf.mxu0 }
0x1a7c   : > { %v4832_v0 = vadd.f32 %v4831_v25, %v4778_v36 }
0x1a7d   : > { %v4833_v18 = vpop.f32.mrf.mxu0 }
0x1a7e   : > { %v9625_v12 = vadd.f32 %v4832_v0, %v9177_v62  ;;  %v4834_v62 = vadd.f32 %v4833_v18, %v4778_v36 }
0x1a7f   : > { %v4835_v32 = vpop.f32.mrf.mxu0 }
0x1a80   : > { %v4836_v19 = vadd.f32 %v4835_v32, %v4783_v58  ;;  %4954 = vrot.lane.b32.xlu1 %v9625_v12, %s6039_s23  ;;  %v9657_v11 = vadd.f32 %v4834_v62, %v9213_v4  ;;  %v6002_v4 = vld [vmem:[%s10304_s1 + $0x114] ss:$8 sps:$4 sm:$0xff]  }
0x1a81   : > { %5808 = vmatprep.mubr.msk.bf16.mxu1 %vm674_vm0, %v6002_v4 }
0x1a82   : > { %v9630_v45 = vadd.f32 %v4836_v19, %v9182_v40  ;;  %v4837_v40 = vpop.f32.mrf.mxu0 }
0x1a83   : > { %v4838_v46 = vadd.f32 %v4837_v40, %v4783_v58 }
0x1a84   : > { %4956 = vrot.lane.b32.xlu0 %v9630_v45, %s6039_s23  ;;  %4936 = vrot.lane.b32.xlu1 %v9625_v12, %s6040_s24 }
0x1a85   : > { %v9664_v59 = vadd.f32 %v4838_v46, %v9220_v5  ;;  %v5804_v5 = vld [vmem:[%s10305_s2 + $0x110] sm:$0xff] }
0x1a88   : > { %4938 = vrot.lane.b32.xlu0 %v9630_v45, %s6040_s24  ;;  %4918 = vrot.lane.b32.xlu1 %v9625_v12, %s6041_s25 }
0x1a8c   : > { %4920 = vrot.lane.b32.xlu0 %v9630_v45, %s6041_s25  ;;  %4898 = vrot.lane.b32.xlu1 %v9625_v12, %s10378_s29 }
0x1a90   : > { %4900 = vrot.lane.b32.xlu0 %v9630_v45, %s10378_s29  ;;  %4880 = vrot.lane.b32.xlu1 %v9625_v12, %s10364_s22 }
0x1a94   : > { %4882 = vrot.lane.b32.xlu0 %v9630_v45, %s10364_s22  ;;  %4862 = vrot.lane.b32.xlu1 %v9625_v12, %s10365_s28 }
0x1a98   : > { %4864 = vrot.lane.b32.xlu0 %v9630_v45, %s10365_s28  ;;  %4844 = vrot.lane.b32.xlu1 %v9625_v12, %s10366_s13 }
0x1a9c   : > { %4846 = vrot.lane.b32.xlu0 %v9630_v45, %s10366_s13  ;;  %4958 = vrot.lane.b32.xlu1 %v9657_v11, %s6039_s23 }
0x1aa0   : > { %4960 = vrot.lane.b32.xlu0 %v9664_v59, %s6039_s23  ;;  %4940 = vrot.lane.b32.xlu1 %v9657_v11, %s6040_s24 }
0x1aa4   : > { %4942 = vrot.lane.b32.xlu0 %v9664_v59, %s6040_s24  ;;  %4922 = vrot.lane.b32.xlu1 %v9657_v11, %s6041_s25 }
0x1aa8   : > { %4924 = vrot.lane.b32.xlu0 %v9664_v59, %s6041_s25  ;;  %4972 = vrot.lane.b32.xlu1 %v9625_v12, %s10367_s27 }
0x1aac   : > { %4974 = vrot.lane.b32.xlu0 %v9630_v45, %s10367_s27  ;;  %4902 = vrot.lane.b32.xlu1 %v9657_v11, %s10378_s29 }
0x1ab0   : > { %4904 = vrot.lane.b32.xlu0 %v9664_v59, %s10378_s29  ;;  %4884 = vrot.lane.b32.xlu1 %v9657_v11, %s10364_s22 }
0x1ab4   : > { %4886 = vrot.lane.b32.xlu0 %v9664_v59, %s10364_s22  ;;  %4866 = vrot.lane.b32.xlu1 %v9657_v11, %s10365_s28 }
0x1ab8   : > { %4868 = vrot.lane.b32.xlu0 %v9664_v59, %s10365_s28  ;;  %4848 = vrot.lane.b32.xlu1 %v9657_v11, %s10366_s13 }
0x1abc   : > { %4850 = vrot.lane.b32.xlu0 %v9664_v59, %s10366_s13  ;;  %4976 = vrot.lane.b32.xlu1 %v9657_v11, %s10367_s27 }
0x1ac0   : > { %4978 = vrot.lane.b32.xlu0 %v9664_v59, %s10367_s27  ;;  %4998 = vperm.xlu1 %5873, %v5804_v5  }
0x1ac4   : > { %5003 = vperm.xlu0 %5872, %v5805_v63  }
0x1af2   : > { %v4955_v42 = vpop.permute.xlu1 %4954 }
0x1af6   : > { %v4957_v35 = vpop.permute.xlu0 %4956  ;;  %v4937_v56 = vpop.permute.xlu1 %4936 }
0x1afa   : > { %v4939_v38 = vpop.permute.xlu0 %4938  ;;  %v4919_v54 = vpop.permute.xlu1 %4918 }
0x1afe   : > { %v4921_v55 = vpop.permute.xlu0 %4920  ;;  %v4899_v24 = vpop.permute.xlu1 %4898 }
0x1b02   : > { %v4901_v43 = vpop.permute.xlu0 %4900  ;;  %v9710_v21 = vpop.permute.xlu1 %4880 }
0x1b06   : > { %v9712_v57 = vpop.permute.xlu0 %4882  ;;  %v9714_v22 = vpop.permute.xlu1 %4862 }
0x1b0a   : > { %v9716_v39 = vpop.permute.xlu0 %4864  ;;  %v9718_v2 = vpop.permute.xlu1 %4844 }
0x1b0e   : > { %v9720_v6 = vpop.permute.xlu0 %4846  ;;  %v4959_v41 = vpop.permute.xlu1 %4958 }
0x1b0f   : > { %v4962_v53 = vsel %vm595_vm1, %v4955_v42, %v4959_v41  ;;  %v4964_v15 = vsel %vm595_vm1, %v4959_v41, %v4955_v42 }
0x1b10   : > { %v4966_v14 = vmul.f32 %v4962_v53, %v6234_v17  ;;  %v4967_v3 = vmul.f32 %v4964_v15, %v6231_v16 }
0x1b12   : > { %v4961_v61 = vpop.permute.xlu0 %4960  ;;  %v4941_v20 = vpop.permute.xlu1 %4940 }
0x1b13   : > { %v4963_v52 = vsel %vm595_vm1, %v4957_v35, %v4961_v61  ;;  %v4965_v49 = vsel %vm595_vm1, %v4961_v61, %v4957_v35  ;;  %v4944_v44 = vsel %vm563_vm2, %v4937_v56, %v4941_v20  ;;  %v4946_v1 = vsel %vm563_vm2, %v4941_v20, %v4937_v56 }
0x1b14   : > { %v4968_v23 = vmul.f32 %v4963_v52, %v6234_v17  ;;  %v4969_v37 = vmul.f32 %v4965_v49, %v6231_v16  ;;  %v4948_v18 = vmul.f32 %v4944_v44, %v6253_v33  ;;  %v4949_v58 = vmul.f32 %v4946_v1, %v6256_v34 }
0x1b15   : > { %v4917_v52 = vpack.c.bf16 %v9664_v59, %v9657_v11  ;;  %v4916_v44 = vpack.c.bf16 %v9630_v45, %v9625_v12 }
0x1b16   : > { %v4970_v60 = vpack.c.bf16 %v4968_v23, %v4966_v14  ;;  %v4943_v26 = vpop.permute.xlu0 %4942  ;;  %v4923_v31 = vpop.permute.xlu1 %4922  ;;  %v4971_v36 = vpack.c.bf16 %v4969_v37, %v4967_v3 }
0x1b17   : > { %v4945_v25 = vsel %vm563_vm2, %v4939_v38, %v4943_v26  ;;  %v4947_v0 = vsel %vm563_vm2, %v4943_v26, %v4939_v38  ;;  %v4926_v62 = vsel %vm531_vm3, %v4919_v54, %v4923_v31  ;;  %v4928_v40 = vsel %vm531_vm3, %v4923_v31, %v4919_v54 }
0x1b18   : > { %v4950_v32 = vmul.f32 %v4945_v25, %v6253_v33  ;;  %v4951_v19 = vmul.f32 %v4947_v0, %v6256_v34  ;;  %5018 = vmatprep.subr.bf16.mxu1 %v4971_v36  ;;  %v4930_v56 = vmul.f32 %v4926_v62, %v6275_v50  ;;  %v4931_v38 = vmul.f32 %v4928_v40, %v6278_v51 }
0x1b19   : > { %5019 = vmatpush1.bf16.msra.mxu1 %v4970_v60 }
0x1b1a   : > { %v4952_v46 = vpack.c.bf16 %v4950_v32, %v4948_v18  ;;  %v4925_v4 = vpop.permute.xlu0 %4924  ;;  %v9750_v5 = vpop.permute.xlu1 %4972  ;;  %v4953_v63 = vpack.c.bf16 %v4951_v19, %v4949_v58 }
0x1b1b   : > { %v4927_v42 = vsel %vm531_vm3, %v4921_v55, %v4925_v4  ;;  %v4929_v35 = vsel %vm531_vm3, %v4925_v4, %v4921_v55 }
0x1b1c   : > { %v4932_v41 = vmul.f32 %v4927_v42, %v6275_v50  ;;  %v4933_v54 = vmul.f32 %v4929_v35, %v6278_v51  ;;  %5020 = vmatprep.subr.bf16.mxu1 %v4953_v63 }
0x1b1d   : > { %5021 = vmatpush1.bf16.msra.mxu1 %v4952_v46 }
0x1b1e   : > { %v4934_v53 = vpack.c.bf16 %v4932_v41, %v4930_v56  ;;  %v9760_v15 = vpop.permute.xlu0 %4974  ;;  %v4903_v61 = vpop.permute.xlu1 %4902  ;;  %v4935_v20 = vpack.c.bf16 %v4933_v54, %v4931_v38 }
0x1b1f   : > { %v4906_v55 = vsel %vm497_vm4, %v4899_v24, %v4903_v61  ;;  %v4908_v49 = vsel %vm497_vm4, %v4903_v61, %v4899_v24 }
0x1b20   : > { %5022 = vmatprep.subr.bf16.mxu1 %v4935_v20  ;;  %v4910_v1 = vmul.f32 %v4908_v49, %v6299_v9  ;;  %v4911_v60 = vmul.f32 %v4906_v55, %v6302_v13 }
0x1b21   : > { %5023 = vmatpush1.bf16.msra.mxu1 %v4934_v53 }
0x1b22   : > { %v4905_v14 = vpop.permute.xlu0 %4904  ;;  %5024 = vmatprep.subr.bf16.mxu1 %v4917_v52  ;;  %v4885_v3 = vpop.permute.xlu1 %4884 }
0x1b23   : > { %v4907_v23 = vsel %vm497_vm4, %v4901_v43, %v4905_v14  ;;  %v4909_v37 = vsel %vm497_vm4, %v4905_v14, %v4901_v43  ;;  %v4888_v31 = vsel %vm465_vm5, %v9710_v21, %v4885_v3  ;;  %v4890_v36 = vsel %vm465_vm5, %v4885_v3, %v9710_v21 }
0x1b24   : > { %v4912_v26 = vmul.f32 %v4909_v37, %v6299_v9  ;;  %v4913_v24 = vmul.f32 %v4907_v23, %v6302_v13  ;;  %v4892_v19 = vmul.f32 %v4890_v36, %v6323_v28  ;;  %v4893_v62 = vmul.f32 %v4888_v31, %v6326_v29 }
0x1b25   : > { %5025 = vmatpush1.bf16.msra.mxu1 %v4916_v44 }
0x1b26   : > { %v4914_v43 = vpack.c.bf16 %v4912_v26, %v4910_v1  ;;  %v4887_v25 = vpop.permute.xlu0 %4886  ;;  %v4867_v0 = vpop.permute.xlu1 %4866  ;;  %v4915_v18 = vpack.c.bf16 %v4913_v24, %v4911_v60 }
0x1b27   : > { %v4889_v58 = vsel %vm465_vm5, %v9712_v57, %v4887_v25  ;;  %v4891_v32 = vsel %vm465_vm5, %v4887_v25, %v9712_v57  ;;  %v4870_v46 = vsel %vm433_vm6, %v9714_v22, %v4867_v0  ;;  %v4872_v4 = vsel %vm433_vm6, %v4867_v0, %v9714_v22 }
0x1b28   : > { %v4894_v40 = vmul.f32 %v4891_v32, %v6323_v28  ;;  %v4895_v21 = vmul.f32 %v4889_v58, %v6326_v29  ;;  %5026 = vmatprep.subr.bf16.mxu1 %v4915_v18  ;;  %v4874_v41 = vmul.f32 %v4872_v4, %v6345_v47  ;;  %v4875_v54 = vmul.f32 %v4870_v46, %v6348_v48  ;;  %v6004_v32 = vld [vmem:[%s10304_s1 + $0x110] ss:$8 sps:$4 sm:$0xff]  }
0x1b29   : > { %5027 = vmatpush1.bf16.msra.mxu1 %v4914_v43 }
0x1b2a   : > { %v4896_v63 = vpack.c.bf16 %v4894_v40, %v4892_v19  ;;  %v4869_v57 = vpop.permute.xlu0 %4868  ;;  %v4849_v42 = vpop.permute.xlu1 %4848  ;;  %v4897_v35 = vpack.c.bf16 %v4895_v21, %v4893_v62 }
0x1b2b   : > { %v4871_v56 = vsel %vm433_vm6, %v9716_v39, %v4869_v57  ;;  %v4873_v38 = vsel %vm433_vm6, %v4869_v57, %v9716_v39  ;;  %v4852_v61 = vsel %vm402_vm7, %v9718_v2, %v4849_v42  ;;  %v4854_v20 = vsel %vm402_vm7, %v4849_v42, %v9718_v2 }
0x1b2c   : > { %v4876_v53 = vmul.f32 %v4873_v38, %v6345_v47  ;;  %v4877_v22 = vmul.f32 %v4871_v56, %v6348_v48  ;;  %5028 = vmatprep.subr.bf16.mxu1 %v4897_v35  ;;  %v4856_v23 = vmul.f32 %v4854_v20, %v6367_v7  ;;  %v4857_v37 = vmul.f32 %v4852_v61, %v6370_v8  ;;  %v5811_v61 = vld [vmem:[%s10305_s2 + $0x120] sm:$0xff]  ;;  %v5812_v20 = vld [vmem:[%s10305_s2 + $0x128] sm:$0xff] }
0x1b2d   : > { %5029 = vmatpush1.bf16.msra.mxu1 %v4896_v63 }
0x1b2e   : > { %v4878_v52 = vpack.c.bf16 %v4876_v53, %v4874_v41  ;;  %v4851_v39 = vpop.permute.xlu0 %4850  ;;  %v4977_v55 = vpop.permute.xlu1 %4976  ;;  %v4879_v49 = vpack.c.bf16 %v4877_v22, %v4875_v54  ;;  %v6005_v22 = vld [vmem:[%s10304_s1 + $0x124] ss:$8 sps:$4 sm:$0xff]  }
0x1b2f   : > { %v4853_v14 = vsel %vm402_vm7, %v9720_v6, %v4851_v39  ;;  %v4855_v3 = vsel %vm402_vm7, %v4851_v39, %v9720_v6  ;;  %v4980_v1 = vsel %vm10389_vm9, %v9750_v5, %v4977_v55  ;;  %v4982_v60 = vsel %vm10390_vm10, %v4977_v55, %v9750_v5  ;;  %5815 = vmatprep.mubr.msk.bf16.mxu0 %vm674_vm0, %v6005_v22 }
0x1b30   : > { %v4858_v44 = vmul.f32 %v4855_v3, %v6367_v7  ;;  %v4859_v2 = vmul.f32 %v4853_v14, %v6370_v8  ;;  %5030 = vmatprep.subr.bf16.mxu1 %v4879_v49  ;;  %v4984_v43 = vmul.f32 %v4980_v1, %v6389_v27  ;;  %v4985_v25 = vmul.f32 %v4982_v60, %v6392_v30 }
0x1b31   : > { %5031 = vmatpush1.bf16.msra.mxu1 %v4878_v52 }
0x1b32   : > { %v4860_v26 = vpack.c.bf16 %v4858_v44, %v4856_v23  ;;  %v4979_v6 = vpop.permute.xlu0 %4978  ;;  %v4861_v24 = vpack.c.bf16 %v4859_v2, %v4857_v37 }
0x1b33   : > { %v4981_v31 = vsel %vm10391_vm11, %v9760_v15, %v4979_v6  ;;  %v4983_v36 = vsel %vm10392_vm12, %v4979_v6, %v9760_v15 }
0x1b34   : > { %v4986_v0 = vmul.f32 %v4981_v31, %v6389_v27  ;;  %v4987_v5 = vmul.f32 %v4983_v36, %v6392_v30  ;;  %5032 = vmatprep.subr.bf16.mxu1 %v4861_v24 }
0x1b35   : > { %5033 = vmatpush1.bf16.msra.mxu1 %v4860_v26 }
0x1b36   : > { %v4988_v18 = vpack.c.bf16 %v4986_v0, %v4984_v43  ;;  %v4989_v58 = vpack.c.bf16 %v4987_v5, %v4985_v25 }
0x1b38   : > { %5048 = vmatprep.subr.bf16.mxu1 %v4989_v58 }
0x1b39   : > { %5049 = vmatpush2.bf16.msra.mxu1 %v4988_v18 }
0x1b3b   : > { %v4999_v15 = vpop.permute.xlu1 %4998 }
0x1b3c   : > { %5051 = vmatmul.mubr.bf16.vlgmr.msra.gmra.mxu1 %v6004_v32 }
0x1b3f   : > { %v5004_v46 = vpop.permute.xlu0 %5003 }
0x1bfc   : > { %v5052_v19 = vpop.f32.mrf.mxu1 }
0x1bfd   : > { %v5053_v62 = vadd.f32 %v5052_v19, %v4999_v15 }
0x1bfe   : > { %v5054_v40 = vpop.f32.mrf.mxu1 }
0x1bff   : > { %v9845_v21 = vmax.f32 %v5053_v62, 0.0  ;;  %v5055_v63 = vadd.f32 %v5054_v40, %v4999_v15 }
0x1c00   : > { %v5056_v4 = vpop.f32.mrf.mxu1 }
0x1c01   : > { %v5057_v57 = vadd.f32 %v5056_v4, %v5004_v46  ;;  %5175 = vrot.lane.b32.xlu1 %v9845_v21, %s6039_s23  ;;  %v9851_v38 = vmax.f32 %v5055_v63, 0.0 }
0x1c02   : > { %v5058_v42 = vpop.f32.mrf.mxu1 }
0x1c03   : > { %v9849_v35 = vmax.f32 %v5057_v57, 0.0  ;;  %v5059_v56 = vadd.f32 %v5058_v42, %v5004_v46 }
0x1c05   : > { %v9853_v41 = vmax.f32 %v5059_v56, 0.0  ;;  %5177 = vrot.lane.b32.xlu0 %v9849_v35, %s6039_s23  ;;  %5157 = vrot.lane.b32.xlu1 %v9845_v21, %s6040_s24  ;;  %v5137_v54 = vpack.c.bf16 %v9849_v35, %v9845_v21 }
0x1c07   : > { %v5138_v53 = vpack.c.bf16 %v9853_v41, %v9851_v38 }
0x1c09   : > { %5159 = vrot.lane.b32.xlu0 %v9849_v35, %s6040_s24  ;;  %5139 = vrot.lane.b32.xlu1 %v9845_v21, %s6041_s25 }
0x1c0d   : > { %5141 = vrot.lane.b32.xlu0 %v9849_v35, %s6041_s25  ;;  %5119 = vrot.lane.b32.xlu1 %v9845_v21, %s10378_s29 }
0x1c11   : > { %5121 = vrot.lane.b32.xlu0 %v9849_v35, %s10378_s29  ;;  %5101 = vrot.lane.b32.xlu1 %v9845_v21, %s10364_s22 }
0x1c15   : > { %5103 = vrot.lane.b32.xlu0 %v9849_v35, %s10364_s22  ;;  %5083 = vrot.lane.b32.xlu1 %v9845_v21, %s10365_s28 }
0x1c19   : > { %5085 = vrot.lane.b32.xlu0 %v9849_v35, %s10365_s28  ;;  %5065 = vrot.lane.b32.xlu1 %v9845_v21, %s10366_s13 }
0x1c1d   : > { %5067 = vrot.lane.b32.xlu0 %v9849_v35, %s10366_s13  ;;  %5179 = vrot.lane.b32.xlu1 %v9851_v38, %s6039_s23 }
0x1c21   : > { %5181 = vrot.lane.b32.xlu0 %v9853_v41, %s6039_s23  ;;  %5161 = vrot.lane.b32.xlu1 %v9851_v38, %s6040_s24 }
0x1c25   : > { %5163 = vrot.lane.b32.xlu0 %v9853_v41, %s6040_s24  ;;  %5143 = vrot.lane.b32.xlu1 %v9851_v38, %s6041_s25 }
0x1c29   : > { %5145 = vrot.lane.b32.xlu0 %v9853_v41, %s6041_s25  ;;  %5193 = vrot.lane.b32.xlu1 %v9845_v21, %s10367_s27 }
0x1c2d   : > { %5195 = vrot.lane.b32.xlu0 %v9849_v35, %s10367_s27  ;;  %5123 = vrot.lane.b32.xlu1 %v9851_v38, %s10378_s29 }
0x1c31   : > { %5125 = vrot.lane.b32.xlu0 %v9853_v41, %s10378_s29  ;;  %5105 = vrot.lane.b32.xlu1 %v9851_v38, %s10364_s22 }
0x1c35   : > { %5107 = vrot.lane.b32.xlu0 %v9853_v41, %s10364_s22  ;;  %5087 = vrot.lane.b32.xlu1 %v9851_v38, %s10365_s28 }
0x1c39   : > { %5089 = vrot.lane.b32.xlu0 %v9853_v41, %s10365_s28  ;;  %5069 = vrot.lane.b32.xlu1 %v9851_v38, %s10366_s13 }
0x1c3d   : > { %5071 = vrot.lane.b32.xlu0 %v9853_v41, %s10366_s13  ;;  %5197 = vrot.lane.b32.xlu1 %v9851_v38, %s10367_s27 }
0x1c41   : > { %5199 = vrot.lane.b32.xlu0 %v9853_v41, %s10367_s27  ;;  %5219 = vperm.xlu1 %5873, %v5811_v61  }
0x1c45   : > { %5224 = vperm.xlu0 %5872, %v5812_v20  }
0x1c73   : > { %v5176_v52 = vpop.permute.xlu1 %5175 }
0x1c77   : > { %v5178_v39 = vpop.permute.xlu0 %5177  ;;  %v5158_v55 = vpop.permute.xlu1 %5157 }
0x1c7b   : > { %v5160_v49 = vpop.permute.xlu0 %5159  ;;  %v5140_v14 = vpop.permute.xlu1 %5139 }
0x1c7f   : > { %v5142_v3 = vpop.permute.xlu0 %5141  ;;  %v5120_v23 = vpop.permute.xlu1 %5119 }
0x1c83   : > { %v5122_v37 = vpop.permute.xlu0 %5121  ;;  %v9931_v44 = vpop.permute.xlu1 %5101 }
0x1c87   : > { %v9933_v2 = vpop.permute.xlu0 %5103  ;;  %v9935_v1 = vpop.permute.xlu1 %5083 }
0x1c8b   : > { %v9937_v60 = vpop.permute.xlu0 %5085  ;;  %v9939_v26 = vpop.permute.xlu1 %5065 }
0x1c8f   : > { %v9941_v6 = vpop.permute.xlu0 %5067  ;;  %v5180_v24 = vpop.permute.xlu1 %5179 }
0x1c90   : > { %v5183_v31 = vsel %vm595_vm1, %v5176_v52, %v5180_v24  ;;  %v5185_v36 = vsel %vm595_vm1, %v5180_v24, %v5176_v52 }
0x1c91   : > { %v5187_v18 = vmul.f32 %v5183_v31, %v6234_v17  ;;  %v5188_v58 = vmul.f32 %v5185_v36, %v6231_v16 }
0x1c93   : > { %v5182_v43 = vpop.permute.xlu0 %5181  ;;  %v5162_v25 = vpop.permute.xlu1 %5161 }
0x1c94   : > { %v5184_v0 = vsel %vm595_vm1, %v5178_v39, %v5182_v43  ;;  %v5186_v5 = vsel %vm595_vm1, %v5182_v43, %v5178_v39  ;;  %v5165_v19 = vsel %vm563_vm2, %v5158_v55, %v5162_v25  ;;  %v5167_v62 = vsel %vm563_vm2, %v5162_v25, %v5158_v55 }
0x1c95   : > { %v5189_v32 = vmul.f32 %v5184_v0, %v6234_v17  ;;  %v5190_v15 = vmul.f32 %v5186_v5, %v6231_v16  ;;  %v5169_v56 = vmul.f32 %v5165_v19, %v6253_v33  ;;  %v5170_v22 = vmul.f32 %v5167_v62, %v6256_v34 }
0x1c97   : > { %v5191_v40 = vpack.c.bf16 %v5189_v32, %v5187_v18  ;;  %v5164_v46 = vpop.permute.xlu0 %5163  ;;  %v5144_v4 = vpop.permute.xlu1 %5143  ;;  %v5192_v63 = vpack.c.bf16 %v5190_v15, %v5188_v58 }
0x1c98   : > { %v5166_v57 = vsel %vm563_vm2, %v5160_v49, %v5164_v46  ;;  %v5168_v42 = vsel %vm563_vm2, %v5164_v46, %v5160_v49  ;;  %v5147_v52 = vsel %vm531_vm3, %v5140_v14, %v5144_v4  ;;  %v5149_v39 = vsel %vm531_vm3, %v5144_v4, %v5140_v14 }
0x1c99   : > { %v5171_v61 = vmul.f32 %v5166_v57, %v6253_v33  ;;  %v5172_v20 = vmul.f32 %v5168_v42, %v6256_v34  ;;  %5239 = vmatprep.subr.bf16.mxu0 %v5192_v63  ;;  %v5151_v25 = vmul.f32 %v5147_v52, %v6275_v50  ;;  %v5152_v0 = vmul.f32 %v5149_v39, %v6278_v51 }
0x1c9a   : > { %5240 = vmatpush1.bf16.msra.mxu0 %v5191_v40 }
0x1c9b   : > { %v5173_v55 = vpack.c.bf16 %v5171_v61, %v5169_v56  ;;  %v5146_v24 = vpop.permute.xlu0 %5145  ;;  %v9971_v31 = vpop.permute.xlu1 %5193  ;;  %v5174_v49 = vpack.c.bf16 %v5172_v20, %v5170_v22 }
0x1c9c   : > { %v5148_v36 = vsel %vm531_vm3, %v5142_v3, %v5146_v24  ;;  %v5150_v43 = vsel %vm531_vm3, %v5146_v24, %v5142_v3 }
0x1c9d   : > { %v5153_v5 = vmul.f32 %v5148_v36, %v6275_v50  ;;  %v5154_v14 = vmul.f32 %v5150_v43, %v6278_v51  ;;  %5241 = vmatprep.subr.bf16.mxu0 %v5174_v49 }
0x1c9e   : > { %5242 = vmatpush1.bf16.msra.mxu0 %v5173_v55 }
0x1c9f   : > { %v5155_v18 = vpack.c.bf16 %v5153_v5, %v5151_v25  ;;  %v9981_v58 = vpop.permute.xlu0 %5195  ;;  %v5124_v32 = vpop.permute.xlu1 %5123  ;;  %v5156_v15 = vpack.c.bf16 %v5154_v14, %v5152_v0 }
0x1ca0   : > { %v5127_v19 = vsel %vm497_vm4, %v5120_v23, %v5124_v32  ;;  %v5129_v3 = vsel %vm497_vm4, %v5124_v32, %v5120_v23 }
0x1ca1   : > { %5243 = vmatprep.subr.bf16.mxu0 %v5156_v15  ;;  %v5131_v63 = vmul.f32 %v5129_v3, %v6299_v9  ;;  %v5132_v57 = vmul.f32 %v5127_v19, %v6302_v13 }
0x1ca2   : > { %5244 = vmatpush1.bf16.msra.mxu0 %v5155_v18 }
0x1ca3   : > { %v5126_v62 = vpop.permute.xlu0 %5125  ;;  %5245 = vmatprep.subr.bf16.mxu0 %v5138_v53  ;;  %v5106_v40 = vpop.permute.xlu1 %5105 }
0x1ca4   : > { %v5128_v46 = vsel %vm497_vm4, %v5122_v37, %v5126_v62  ;;  %v5130_v4 = vsel %vm497_vm4, %v5126_v62, %v5122_v37  ;;  %v5109_v38 = vsel %vm465_vm5, %v9931_v44, %v5106_v40  ;;  %v5111_v41 = vsel %vm465_vm5, %v5106_v40, %v9931_v44 }
0x1ca5   : > { %v5133_v42 = vmul.f32 %v5130_v4, %v6299_v9  ;;  %v5134_v23 = vmul.f32 %v5128_v46, %v6302_v13  ;;  %v5113_v52 = vmul.f32 %v5111_v41, %v6323_v28  ;;  %v5114_v44 = vmul.f32 %v5109_v38, %v6326_v29 }
0x1ca6   : > { %5246 = vmatpush1.bf16.msra.mxu0 %v5137_v54 }
0x1ca7   : > { %v5135_v53 = vpack.c.bf16 %v5133_v42, %v5131_v63  ;;  %v5108_v37 = vpop.permute.xlu0 %5107  ;;  %v5088_v56 = vpop.permute.xlu1 %5087  ;;  %v5136_v22 = vpack.c.bf16 %v5134_v23, %v5132_v57 }
0x1ca8   : > { %v5110_v61 = vsel %vm465_vm5, %v9933_v2, %v5108_v37  ;;  %v5112_v20 = vsel %vm465_vm5, %v5108_v37, %v9933_v2  ;;  %v5091_v35 = vsel %vm433_vm6, %v9935_v1, %v5088_v56  ;;  %v5093_v54 = vsel %vm433_vm6, %v5088_v56, %v9935_v1 }
0x1ca9   : > { %v5115_v39 = vmul.f32 %v5112_v20, %v6323_v28  ;;  %v5116_v21 = vmul.f32 %v5110_v61, %v6326_v29  ;;  %5247 = vmatprep.subr.bf16.mxu0 %v5136_v22  ;;  %v5095_v25 = vmul.f32 %v5093_v54, %v6345_v47  ;;  %v5096_v0 = vmul.f32 %v5091_v35, %v6348_v48  ;;  %v6007_v20 = vld [vmem:[%s10304_s1 + $0x120] ss:$8 sps:$4 sm:$0xff]  }
0x1caa   : > { %5248 = vmatpush1.bf16.msra.mxu0 %v5135_v53 }
0x1cab   : > { %v5117_v55 = vpack.c.bf16 %v5115_v39, %v5113_v52  ;;  %v5090_v2 = vpop.permute.xlu0 %5089  ;;  %v5070_v24 = vpop.permute.xlu1 %5069  ;;  %v5118_v49 = vpack.c.bf16 %v5116_v21, %v5114_v44 }
0x1cac   : > { %v5092_v36 = vsel %vm433_vm6, %v9937_v60, %v5090_v2  ;;  %v5094_v43 = vsel %vm433_vm6, %v5090_v2, %v9937_v60  ;;  %v5073_v14 = vsel %vm402_vm7, %v9939_v26, %v5070_v24  ;;  %v5075_v18 = vsel %vm402_vm7, %v5070_v24, %v9939_v26 }
0x1cad   : > { %v5097_v5 = vmul.f32 %v5094_v43, %v6345_v47  ;;  %v5098_v1 = vmul.f32 %v5092_v36, %v6348_v48  ;;  %5249 = vmatprep.subr.bf16.mxu0 %v5118_v49  ;;  %v5077_v40 = vmul.f32 %v5075_v18, %v6367_v7  ;;  %v5078_v46 = vmul.f32 %v5073_v14, %v6370_v8 }
0x1cae   : > { %5250 = vmatpush1.bf16.msra.mxu0 %v5117_v55 }
0x1caf   : > { %v5099_v32 = vpack.c.bf16 %v5097_v5, %v5095_v25  ;;  %v5072_v60 = vpop.permute.xlu0 %5071  ;;  %v5198_v15 = vpop.permute.xlu1 %5197  ;;  %v5100_v19 = vpack.c.bf16 %v5098_v1, %v5096_v0  ;;  %v5819_v0 = vld [vmem:[%s10305_s2 + $0x138] sm:$0xff] }
0x1cb0   : > { %v5074_v3 = vsel %vm402_vm7, %v9941_v6, %v5072_v60  ;;  %v5076_v62 = vsel %vm402_vm7, %v5072_v60, %v9941_v6  ;;  %v5201_v63 = vsel %vm10393_vm13, %v9971_v31, %v5198_v15  ;;  %v5203_v57 = vsel %vm10394_vm14, %v5198_v15, %v9971_v31 }
0x1cb1   : > { %v5079_v4 = vmul.f32 %v5076_v62, %v6367_v7  ;;  %v5080_v26 = vmul.f32 %v5074_v3, %v6370_v8  ;;  %5251 = vmatprep.subr.bf16.mxu0 %v5100_v19  ;;  %v5205_v53 = vmul.f32 %v5201_v63, %v6389_v27  ;;  %v5206_v37 = vmul.f32 %v5203_v57, %v6392_v30 }
0x1cb2   : > { %5252 = vmatpush1.bf16.msra.mxu0 %v5099_v32 }
0x1cb3   : > { %v5081_v42 = vpack.c.bf16 %v5079_v4, %v5077_v40  ;;  %v5200_v6 = vpop.permute.xlu0 %5199  ;;  %v5082_v23 = vpack.c.bf16 %v5080_v26, %v5078_v46 }
0x1cb4   : > { %v5202_v38 = vsel %vm10395_vm15, %v9981_v58, %v5200_v6  ;;  %v5204_v41 = vsel %vm10377_vm8, %v5200_v6, %v9981_v58 }
0x1cb5   : > { %v5207_v56 = vmul.f32 %v5202_v38, %v6389_v27  ;;  %v5208_v31 = vmul.f32 %v5204_v41, %v6392_v30  ;;  %5253 = vmatprep.subr.bf16.mxu0 %v5082_v23 }
0x1cb6   : > { %5254 = vmatpush1.bf16.msra.mxu0 %v5081_v42 }
0x1cb7   : > { %v5209_v22 = vpack.c.bf16 %v5207_v56, %v5205_v53  ;;  %v5210_v61 = vpack.c.bf16 %v5208_v31, %v5206_v37 }
0x1cb9   : > { %5269 = vmatprep.subr.bf16.mxu0 %v5210_v61 }
0x1cba   : > { %5270 = vmatpush2.bf16.msra.mxu0 %v5209_v22 }
0x1cbc   : > { %v5220_v58 = vpop.permute.xlu1 %5219 }
0x1cbd   : > { %5272 = vmatmul.mubr.bf16.vlgmr.msra.gmra.mxu0 %v6007_v20 }
0x1cc0   : > { %v5225_v35 = vpop.permute.xlu0 %5224 }
0x1d7d   : > { %v5273_v52 = vpop.f32.mrf.mxu0 }
0x1d7e   : > { %v5274_v44 = vadd.f32 %v5273_v52, %v5220_v58 }
0x1d7f   : > { %v5275_v39 = vpop.f32.mrf.mxu0 }
0x1d80   : > { %v10069_v21 = vadd.f32 %v5274_v44, %v9625_v12  ;;  %v5276_v55 = vadd.f32 %v5275_v39, %v5220_v58 }
0x1d81   : > { %v5277_v54 = vpop.f32.mrf.mxu0 }
0x1d82   : > { %v5278_v2 = vadd.f32 %v5277_v54, %v5225_v35  ;;  %5396 = vrot.lane.b32.xlu1 %v10069_v21, %s6039_s23  ;;  %v10077_v43 = vadd.f32 %v5276_v55, %v9657_v11  ;;  %v6008_v11 = vld [vmem:[%s10304_s1 + $0x134] ss:$8 sps:$4 sm:$0xff]  }
0x1d83   : > { %v5279_v24 = vpop.f32.mrf.mxu0  ;;  %5822 = vmatprep.mubr.msk.bf16.mxu1 %vm674_vm0, %v6008_v11  ;;  %vm10396_vm0 = vmmov %vm10377_vm8 }
0x1d84   : > { %v10074_v49 = vadd.f32 %v5278_v2, %v9630_v45  ;;  %v5280_v36 = vadd.f32 %v5279_v24, %v5225_v35 }
0x1d86   : > { %v10080_v25 = vadd.f32 %v5280_v36, %v9664_v59  ;;  %5398 = vrot.lane.b32.xlu0 %v10074_v49, %s6039_s23  ;;  %5378 = vrot.lane.b32.xlu1 %v10069_v21, %s6040_s24  ;;  %v5358_v12 = vpack.c.bf16 %v10074_v49, %v10069_v21  ;;  %v5818_v59 = vld [vmem:[%s10305_s2 + $0x130] sm:$0xff] }
0x1d88   : > { %v5359_v45 = vpack.c.bf16 %v10080_v25, %v10077_v43 }
0x1d8a   : > { %5380 = vrot.lane.b32.xlu0 %v10074_v49, %s6040_s24  ;;  %5360 = vrot.lane.b32.xlu1 %v10069_v21, %s6041_s25 }
0x1d8e   : > { %5362 = vrot.lane.b32.xlu0 %v10074_v49, %s6041_s25  ;;  %5340 = vrot.lane.b32.xlu1 %v10069_v21, %s10378_s29 }
0x1d92   : > { %5342 = vrot.lane.b32.xlu0 %v10074_v49, %s10378_s29  ;;  %5322 = vrot.lane.b32.xlu1 %v10069_v21, %s10364_s22 }
0x1d96   : > { %5324 = vrot.lane.b32.xlu0 %v10074_v49, %s10364_s22  ;;  %5304 = vrot.lane.b32.xlu1 %v10069_v21, %s10365_s28 }
0x1d9a   : > { %5306 = vrot.lane.b32.xlu0 %v10074_v49, %s10365_s28  ;;  %5286 = vrot.lane.b32.xlu1 %v10069_v21, %s10366_s13 }
0x1d9e   : > { %5288 = vrot.lane.b32.xlu0 %v10074_v49, %s10366_s13  ;;  %5400 = vrot.lane.b32.xlu1 %v10077_v43, %s6039_s23 }
0x1da2   : > { %5402 = vrot.lane.b32.xlu0 %v10080_v25, %s6039_s23  ;;  %5382 = vrot.lane.b32.xlu1 %v10077_v43, %s6040_s24 }
0x1da6   : > { %5384 = vrot.lane.b32.xlu0 %v10080_v25, %s6040_s24  ;;  %5364 = vrot.lane.b32.xlu1 %v10077_v43, %s6041_s25 }
0x1daa   : > { %5366 = vrot.lane.b32.xlu0 %v10080_v25, %s6041_s25  ;;  %5414 = vrot.lane.b32.xlu1 %v10069_v21, %s10367_s27 }
0x1dae   : > { %5416 = vrot.lane.b32.xlu0 %v10074_v49, %s10367_s27  ;;  %5344 = vrot.lane.b32.xlu1 %v10077_v43, %s10378_s29 }
0x1db2   : > { %5346 = vrot.lane.b32.xlu0 %v10080_v25, %s10378_s29  ;;  %5326 = vrot.lane.b32.xlu1 %v10077_v43, %s10364_s22 }
0x1db6   : > { %5328 = vrot.lane.b32.xlu0 %v10080_v25, %s10364_s22  ;;  %5308 = vrot.lane.b32.xlu1 %v10077_v43, %s10365_s28 }
0x1dba   : > { %5310 = vrot.lane.b32.xlu0 %v10080_v25, %s10365_s28  ;;  %5290 = vrot.lane.b32.xlu1 %v10077_v43, %s10366_s13 }
0x1dbe   : > { %5292 = vrot.lane.b32.xlu0 %v10080_v25, %s10366_s13  ;;  %5418 = vrot.lane.b32.xlu1 %v10077_v43, %s10367_s27 }
0x1dc2   : > { %5420 = vrot.lane.b32.xlu0 %v10080_v25, %s10367_s27  ;;  %5440 = vperm.xlu1 %5873, %v5818_v59  }
0x1dc6   : > { %5445 = vperm.xlu0 %5872, %v5819_v0  }
0x1df4   : > { %v5397_v5 = vpop.permute.xlu1 %5396 }
0x1df8   : > { %v5399_v1 = vpop.permute.xlu0 %5398  ;;  %v5379_v14 = vpop.permute.xlu1 %5378 }
0x1dfc   : > { %v5381_v18 = vpop.permute.xlu0 %5380  ;;  %v5361_v32 = vpop.permute.xlu1 %5360 }
0x1e00   : > { %v5363_v60 = vpop.permute.xlu0 %5362  ;;  %v5341_v15 = vpop.permute.xlu1 %5340 }
0x1e04   : > { %v5343_v19 = vpop.permute.xlu0 %5342  ;;  %v10158_v3 = vpop.permute.xlu1 %5322 }
0x1e08   : > { %v10160_v62 = vpop.permute.xlu0 %5324  ;;  %v10162_v40 = vpop.permute.xlu1 %5304 }
0x1e0c   : > { %v10164_v46 = vpop.permute.xlu0 %5306  ;;  %v10166_v4 = vpop.permute.xlu1 %5286 }
0x1e10   : > { %v10168_v26 = vpop.permute.xlu0 %5288  ;;  %v5401_v63 = vpop.permute.xlu1 %5400 }
0x1e11   : > { %v5404_v57 = vsel %vm595_vm1, %v5397_v5, %v5401_v63  ;;  %v5406_v42 = vsel %vm595_vm1, %v5401_v63, %v5397_v5 }
0x1e12   : > { %v5408_v53 = vmul.f32 %v5404_v57, %v6234_v17  ;;  %v5409_v37 = vmul.f32 %v5406_v42, %v6231_v16 }
0x1e14   : > { %v5403_v6 = vpop.permute.xlu0 %5402  ;;  %v5383_v23 = vpop.permute.xlu1 %5382 }
0x1e15   : > { %v5405_v38 = vsel %vm595_vm1, %v5399_v1, %v5403_v6  ;;  %v5407_v41 = vsel %vm595_vm1, %v5403_v6, %v5399_v1  ;;  %v5386_v22 = vsel %vm563_vm2, %v5379_v14, %v5383_v23  ;;  %v5388_v61 = vsel %vm563_vm2, %v5383_v23, %v5379_v14  ;;  %vm10397_vm1 = vmmov %vm10396_vm0 }
0x1e16   : > { %v5410_v56 = vmul.f32 %v5405_v38, %v6234_v17  ;;  %v5411_v31 = vmul.f32 %v5407_v41, %v6231_v16  ;;  %v5390_v17 = vmul.f32 %v5386_v22, %v6253_v33  ;;  %v5391_v16 = vmul.f32 %v5388_v61, %v6256_v34 }
0x1e18   : > { %v5412_v20 = vpack.c.bf16 %v5410_v56, %v5408_v53  ;;  %v5385_v58 = vpop.permute.xlu0 %5384  ;;  %v5365_v52 = vpop.permute.xlu1 %5364  ;;  %v5413_v44 = vpack.c.bf16 %v5411_v31, %v5409_v37 }
0x1e19   : > { %v5387_v39 = vsel %vm563_vm2, %v5381_v18, %v5385_v58  ;;  %v5389_v35 = vsel %vm563_vm2, %v5385_v58, %v5381_v18  ;;  %v5368_v2 = vsel %vm531_vm3, %v5361_v32, %v5365_v52  ;;  %v5370_v24 = vsel %vm531_vm3, %v5365_v52, %v5361_v32  ;;  %vm10398_vm2 = vmmov %vm10396_vm0 }
0x1e1a   : > { %v5392_v54 = vmul.f32 %v5387_v39, %v6253_v33  ;;  %v5393_v55 = vmul.f32 %v5389_v35, %v6256_v34  ;;  %5460 = vmatprep.subr.bf16.mxu1 %v5413_v44  ;;  %v5372_v34 = vmul.f32 %v5368_v2, %v6275_v50  ;;  %v5373_v1 = vmul.f32 %v5370_v24, %v6278_v51 }
0x1e1b   : > { %5461 = vmatpush1.bf16.msra.mxu1 %v5412_v20 }
0x1e1c   : > { %v5394_v36 = vpack.c.bf16 %v5392_v54, %v5390_v17  ;;  %v5367_v11 = vpop.permute.xlu0 %5366  ;;  %v10198_v59 = vpop.permute.xlu1 %5414  ;;  %v5395_v0 = vpack.c.bf16 %v5393_v55, %v5391_v16 }
0x1e1d   : > { %v5369_v5 = vsel %vm531_vm3, %v5363_v60, %v5367_v11  ;;  %v5371_v33 = vsel %vm531_vm3, %v5367_v11, %v5363_v60  ;;  %vm10399_vm3 = vmmov %vm10396_vm0 }
0x1e1e   : > { %v5374_v14 = vmul.f32 %v5369_v5, %v6275_v50  ;;  %v5375_v18 = vmul.f32 %v5371_v33, %v6278_v51  ;;  %5462 = vmatprep.subr.bf16.mxu1 %v5395_v0 }
0x1e1f   : > { %5463 = vmatpush1.bf16.msra.mxu1 %v5394_v36 }
0x1e20   : > { %v5376_v32 = vpack.c.bf16 %v5374_v14, %v5372_v34  ;;  %v10208_v63 = vpop.permute.xlu0 %5416  ;;  %v5345_v57 = vpop.permute.xlu1 %5344  ;;  %v5377_v42 = vpack.c.bf16 %v5375_v18, %v5373_v1 }
0x1e21   : > { %v5348_v6 = vsel %vm497_vm4, %v5341_v15, %v5345_v57  ;;  %v5350_v60 = vsel %vm497_vm4, %v5345_v57, %v5341_v15 }
0x1e22   : > { %5464 = vmatprep.subr.bf16.mxu1 %v5377_v42  ;;  %v5352_v41 = vmul.f32 %v5350_v60, %v6299_v9  ;;  %v5353_v53 = vmul.f32 %v5348_v6, %v6302_v13  ;;  %v6010_v42 = vld [vmem:[%s10304_s1 + $0x130] ss:$8 sps:$4 sm:$0xff]  }
0x1e23   : > { %5465 = vmatpush1.bf16.msra.mxu1 %v5376_v32 }
0x1e24   : > { %v5347_v23 = vpop.permute.xlu0 %5346  ;;  %5466 = vmatprep.subr.bf16.mxu1 %v5359_v45  ;;  %v5327_v50 = vpop.permute.xlu1 %5326 }
0x1e25   : > { %v5349_v51 = vsel %vm497_vm4, %v5343_v19, %v5347_v23  ;;  %v5351_v38 = vsel %vm497_vm4, %v5347_v23, %v5343_v19  ;;  %v5330_v43 = vsel %vm465_vm5, %v10158_v3, %v5327_v50  ;;  %v5332_v25 = vsel %vm465_vm5, %v5327_v50, %v10158_v3 }
0x1e26   : > { %v5354_v37 = vmul.f32 %v5351_v38, %v6299_v9  ;;  %v5355_v15 = vmul.f32 %v5349_v51, %v6302_v13  ;;  %v5334_v22 = vmul.f32 %v5332_v25, %v6323_v28  ;;  %v5335_v3 = vmul.f32 %v5330_v43, %v6326_v29 }
0x1e27   : > { %5467 = vmatpush1.bf16.msra.mxu1 %v5358_v12 }
0x1e28   : > { %v5356_v45 = vpack.c.bf16 %v5354_v37, %v5352_v41  ;;  %v5329_v19 = vpop.permute.xlu0 %5328  ;;  %v5309_v56 = vpop.permute.xlu1 %5308  ;;  %v5357_v31 = vpack.c.bf16 %v5355_v15, %v5353_v53 }
0x1e29   : > { %v5331_v9 = vsel %vm465_vm5, %v10160_v62, %v5329_v19  ;;  %v5333_v13 = vsel %vm465_vm5, %v5329_v19, %v10160_v62  ;;  %v5312_v49 = vsel %vm433_vm6, %v10162_v40, %v5309_v56  ;;  %v5314_v12 = vsel %vm433_vm6, %v5309_v56, %v10162_v40 }
0x1e2a   : > { %v5336_v61 = vmul.f32 %v5333_v13, %v6323_v28  ;;  %v5337_v21 = vmul.f32 %v5331_v9, %v6326_v29  ;;  %5468 = vmatprep.subr.bf16.mxu1 %v5357_v31  ;;  %v5316_v44 = vmul.f32 %v5314_v12, %v6345_v47  ;;  %v5317_v39 = vmul.f32 %v5312_v49, %v6348_v48 }
0x1e2b   : > { %5469 = vmatpush1.bf16.msra.mxu1 %v5356_v45 }
0x1e2c   : > { %v5338_v20 = vpack.c.bf16 %v5336_v61, %v5334_v22  ;;  %v5311_v62 = vpop.permute.xlu0 %5310  ;;  %v5291_v58 = vpop.permute.xlu1 %5290  ;;  %v5339_v52 = vpack.c.bf16 %v5337_v21, %v5335_v3 }
0x1e2d   : > { %v5313_v28 = vsel %vm433_vm6, %v10164_v46, %v5311_v62  ;;  %v5315_v29 = vsel %vm433_vm6, %v5311_v62, %v10164_v46  ;;  %v5294_v17 = vsel %vm402_vm7, %v10166_v4, %v5291_v58  ;;  %v5296_v16 = vsel %vm402_vm7, %v5291_v58, %v10166_v4 }
0x1e2e   : > { %v5318_v35 = vmul.f32 %v5315_v29, %v6345_v47  ;;  %v5319_v40 = vmul.f32 %v5313_v28, %v6348_v48  ;;  %5470 = vmatprep.subr.bf16.mxu1 %v5339_v52  ;;  %v5298_v24 = vmul.f32 %v5296_v16, %v6367_v7  ;;  %v5299_v36 = vmul.f32 %v5294_v17, %v6370_v8 }
0x1e2f   : > { %5471 = vmatpush1.bf16.msra.mxu1 %v5338_v20 }
0x1e30   : > { %v5320_v54 = vpack.c.bf16 %v5318_v35, %v5316_v44  ;;  %v5293_v46 = vpop.permute.xlu0 %5292  ;;  %v5419_v55 = vpop.permute.xlu1 %5418  ;;  %v5321_v2 = vpack.c.bf16 %v5319_v40, %v5317_v39 }
0x1e31   : > { %v5295_v47 = vsel %vm402_vm7, %v10168_v26, %v5293_v46  ;;  %v5297_v48 = vsel %vm402_vm7, %v5293_v46, %v10168_v26  ;;  %v5422_v0 = vsel %vm10396_vm0, %v10198_v59, %v5419_v55  ;;  %v5424_v5 = vsel %vm10397_vm1, %v5419_v55, %v10198_v59 }
0x1e32   : > { %v5300_v11 = vmul.f32 %v5297_v48, %v6367_v7  ;;  %v5301_v4 = vmul.f32 %v5295_v47, %v6370_v8  ;;  %5472 = vmatprep.subr.bf16.mxu1 %v5321_v2  ;;  %v5426_v1 = vmul.f32 %v5422_v0, %v6389_v27  ;;  %v5427_v14 = vmul.f32 %v5424_v5, %v6392_v30 }
0x1e33   : > { %5473 = vmatpush1.bf16.msra.mxu1 %v5320_v54 }
0x1e34   : > { %v5302_v33 = vpack.c.bf16 %v5300_v11, %v5298_v24  ;;  %v5421_v26 = vpop.permute.xlu0 %5420  ;;  %v5303_v34 = vpack.c.bf16 %v5301_v4, %v5299_v36 }
0x1e35   : > { %v5423_v7 = vsel %vm10398_vm2, %v10208_v63, %v5421_v26  ;;  %v5425_v8 = vsel %vm10399_vm3, %v5421_v26, %v10208_v63 }
0x1e36   : > { %v5428_v18 = vmul.f32 %v5423_v7, %v6389_v27  ;;  %v5429_v59 = vmul.f32 %v5425_v8, %v6392_v30  ;;  %5474 = vmatprep.subr.bf16.mxu1 %v5303_v34 }
0x1e37   : > { %5475 = vmatpush1.bf16.msra.mxu1 %v5302_v33 }
0x1e38   : > { %v5430_v32 = vpack.c.bf16 %v5428_v18, %v5426_v1  ;;  %v5431_v57 = vpack.c.bf16 %v5429_v59, %v5427_v14 }
0x1e3a   : > { %5490 = vmatprep.subr.bf16.mxu1 %v5431_v57 }
0x1e3b   : > { %5491 = vmatpush2.bf16.msra.mxu1 %v5430_v32 }
0x1e3d   : > { %v5441_v10 = vpop.permute.xlu1 %5440 }
0x1e3e   : > { %5493 = vmatmul.mubr.bf16.vlgmr.msra.gmra.mxu1 %v6010_v42 }
0x1e41   : > { %v5446_v60 = vpop.permute.xlu0 %5445 }
0x1efe   : > { %v5494_v27 = vpop.f32.mrf.mxu1 }
0x1eff   : > { %v5495_v63 = vadd.f32 %v5494_v27, %v5441_v10 }
0x1f00   : > { %v5496_v30 = vpop.f32.mrf.mxu1 }
0x1f01   : > { %5503 = vst [vmem:[%s386_s14] sm:$0xff] %v5495_v63  ;;  %v5497_v6 = vadd.f32 %v5496_v30, %v5441_v10 }
0x1f02   : > { %v5498_v23 = vpop.f32.mrf.mxu1 }
0x1f03   : > { %5504 = vst [vmem:[%s386_s14 + $0x8] sm:$0xff] %v5497_v6  ;;  %v5499_v50 = vadd.f32 %v5498_v23, %v5446_v60 }
0x1f04   : > { %v5500_v51 = vpop.f32.mrf.mxu1 }
0x1f05   : > { %5505 = vst [vmem:[%s386_s14 + $0x10] sm:$0xff] %v5499_v50  ;;  %v5501_v38 = vadd.f32 %v5500_v51, %v5446_v60 }
0x1f07   : > { %5506 = vst [vmem:[%s386_s14 + $0x18] sm:$0xff] %v5501_v38 }
0x1f08 PF: > { %s21_s17 = sadd.s32 1, %s6037_s17  }
0x1f09   : > { %p18_p4 = scmp.ge.s32.totalorder %s21_s17, 4  }
0x1f0b   :  { %20 = sbr.rel (!%p18_p4) target bundleno = 1 (0x1), region = 149 }

</bundles_post_ra>
